<compile_context>
chip_gen: v5e
topology: v5e:2x2
jax: 0.10.0
libtpu: 0.0.40
codegen_flags: <defaults>
</compile_context>

<pallas_src>
import functools
import math

import jax
import jax.numpy as jnp
from jax.experimental import pallas as pl
from jax.experimental.pallas import tpu as pltpu


def _round_up(x, m):
    return (x + m - 1) // m * m


# ---------------------------------------------------------------------------
# Per-layer tile selection
# ---------------------------------------------------------------------------
def _pick_tm(M):
    if M >= 1024:
        return 512
    if M >= 512:
        return 256
    if M >= 128:
        return 128
    return max(_round_up(M, 16), 16)   # bf16 sublane packing friendly


def _pick_tk(K):
    Kp = _round_up(K, 128)
    if Kp <= 512:                      # single K step for small-K layers
        return Kp
    for cand in (512, 384, 256):
        if Kp % cand == 0:
            return cand
    return 128


def _pick_tn(N):
    Np = _round_up(N, 128)
    return 256 if Np % 256 == 0 else (Np if Np <= 128 else 128)


# ---------------------------------------------------------------------------
# Pallas kernel 1a: single-K-step bf16 matmul + f32 epilogue (bias/ReLU/add).
# 2-D grid, no reduction axis, no branches.
# ---------------------------------------------------------------------------
def _matmul_single_kernel(a_ref, b_ref, bias_ref, *rest, relu, has_add):
    if has_add:
        add_ref, o_ref = rest
    else:
        (o_ref,) = rest
        add_ref = None
    r = jnp.dot(a_ref[...], b_ref[...], preferred_element_type=jnp.float32)
    r = r + bias_ref[...]
    if relu:
        r = jnp.maximum(r, 0.0)
    if add_ref is not None:
        r = r + add_ref[...].astype(jnp.float32)
    o_ref[...] = r.astype(o_ref.dtype)


# ---------------------------------------------------------------------------
# Pallas kernel 1b: multi-K-step bf16 matmul with resident f32 VMEM
# accumulator, fused epilogue on the last K step.
# ---------------------------------------------------------------------------
def _matmul_multi_kernel(a_ref, b_ref, bias_ref, *rest, relu, has_add):
    if has_add:
        add_ref, o_ref, acc_ref = rest
    else:
        o_ref, acc_ref = rest
        add_ref = None

    k = pl.program_id(2)

    @pl.when(k == 0)
    def _():
        acc_ref[...] = jnp.zeros_like(acc_ref)

    acc_ref[...] += jnp.dot(a_ref[...], b_ref[...],
                            preferred_element_type=jnp.float32)

    @pl.when(k == pl.num_programs(2) - 1)
    def _():
        r = acc_ref[...] + bias_ref[...]
        if relu:
            r = jnp.maximum(r, 0.0)
        if add_ref is not None:
            r = r + add_ref[...].astype(jnp.float32)
        o_ref[...] = r.astype(o_ref.dtype)


def matmul_bias(a, b, bias, *, relu=False, addend=None, out_dtype=jnp.float32):
    """a:(M,K) @ b:(K,N) + bias (+relu) (+addend); bf16 on MXU, f32 epilogue."""
    M, K = a.shape
    K2, N = b.shape
    assert K == K2
    tm, tk, tn = _pick_tm(M), _pick_tk(K), _pick_tn(N)
    Mp, Kp, Np = _round_up(M, tm), _round_up(K, tk), _round_up(N, tn)
    nk = Kp // tk

    a_bf = a.astype(jnp.bfloat16)
    b_bf = b.astype(jnp.bfloat16)
    a_p = a_bf if (Mp == M and Kp == K) else jnp.pad(
        a_bf, ((0, Mp - M), (0, Kp - K)))
    b_p = b_bf if (Kp == K and Np == N) else jnp.pad(
        b_bf, ((0, Kp - K), (0, Np - N)))
    bias_p = jnp.pad(bias.astype(jnp.float32).reshape(1, N),
                     ((0, 0), (0, Np - N)))

    has_add = addend is not None
    inputs = [a_p, b_p, bias_p]
    if has_add:
        add_p = addend if (Mp == M and Np == N) else jnp.pad(
            addend, ((0, Mp - M), (0, Np - N)))
        inputs.append(add_p)

    if nk == 1:
        kernel = functools.partial(_matmul_single_kernel,
                                   relu=relu, has_add=has_add)
        grid = (Mp // tm, Np // tn)
        in_specs = [
            pl.BlockSpec((tm, tk), lambda i, j: (i, 0)),
            pl.BlockSpec((tk, tn), lambda i, j: (0, j)),
            pl.BlockSpec((1, tn), lambda i, j: (0, j)),
        ]
        if has_add:
            in_specs.append(pl.BlockSpec((tm, tn), lambda i, j: (i, j)))
        out_specs = pl.BlockSpec((tm, tn), lambda i, j: (i, j))
        scratch_shapes = ()
        dims = ("parallel", "parallel")
    else:
        kernel = functools.partial(_matmul_multi_kernel,
                                   relu=relu, has_add=has_add)
        grid = (Mp // tm, Np // tn, nk)
        in_specs = [
            pl.BlockSpec((tm, tk), lambda i, j, k: (i, k)),
            pl.BlockSpec((tk, tn), lambda i, j, k: (k, j)),
            pl.BlockSpec((1, tn), lambda i, j, k: (0, j)),
        ]
        if has_add:
            in_specs.append(pl.BlockSpec((tm, tn), lambda i, j, k: (i, j)))
        out_specs = pl.BlockSpec((tm, tn), lambda i, j, k: (i, j))
        scratch_shapes = [pltpu.VMEM((tm, tn), jnp.float32)]
        dims = ("parallel", "parallel", "arbitrary")

    out = pl.pallas_call(
        kernel,
        out_shape=jax.ShapeDtypeStruct((Mp, Np), out_dtype),
        grid_spec=pltpu.PrefetchScalarGridSpec(
            num_scalar_prefetch=0,
            grid=grid,
            in_specs=in_specs,
            out_specs=out_specs,
            scratch_shapes=scratch_shapes,
        ),
        compiler_params=pltpu.CompilerParams(dimension_semantics=dims),
    )(*inputs)
    return out[:M, :N]


def conv2d(x_nhwc, w_oihw, bias, *, stride=1, pad=1, relu=False,
           addend_nhwc=None, out_dtype=jnp.bfloat16):
    """PyTorch-semantics Conv2d via im2col + Pallas matmul.  x is NHWC."""
    N, H, W, Cin = x_nhwc.shape
    O, I, KH, KW = w_oihw.shape
    assert I == Cin
    x_bf = x_nhwc.astype(jnp.bfloat16)
    xp = jnp.pad(x_bf, ((0, 0), (pad, pad), (pad, pad), (0, 0))) if pad else x_bf
    Ho = (H + 2 * pad - KH) // stride + 1
    Wo = (W + 2 * pad - KW) // stride + 1
    if KH == 1 and KW == 1 and stride == 1:
        patches = xp.reshape(N * Ho * Wo, Cin)          # 1x1 conv: pure reshape
    else:
        cols = [xp[:, i:i + stride * Ho:stride, j:j + stride * Wo:stride, :]
                for i in range(KH) for j in range(KW)]
        patches = jnp.concatenate(cols, axis=-1).reshape(
            N * Ho * Wo, KH * KW * Cin)
    w2 = jnp.transpose(w_oihw, (2, 3, 1, 0)).reshape(KH * KW * Cin, O)
    addend = None if addend_nhwc is None else addend_nhwc.reshape(N * Ho * Wo, O)
    out = matmul_bias(patches, w2, bias, relu=relu, addend=addend,
                      out_dtype=out_dtype)
    return out.reshape(N, Ho, Wo, O)


# ---------------------------------------------------------------------------
# Pallas kernel 2: fused BaseHead — 1x1 conv (matmul) + homogeneous
# refinement (softplus(beta) + clamp + reciprocal-scale) + mean add.
# ---------------------------------------------------------------------------
HOMOGENEOUS_MAX_SCALE = 4.0
HOMOGENEOUS_MIN_SCALE = 0.01
MAX_INV_SCALE = 1.0 / HOMOGENEOUS_MAX_SCALE
MIN_INV_SCALE = 1.0 / HOMOGENEOUS_MIN_SCALE
H_BETA = math.log(2.0) / (1.0 - MAX_INV_SCALE)
SOFTPLUS_THRESHOLD = 20.0  # PyTorch F.softplus default threshold


def _head_kernel(x_ref, w_ref, b_ref, mean_ref, o_ref, *, use_homogeneous):
    sc = jnp.dot(x_ref[...], w_ref[...], preferred_element_type=jnp.float32)
    sc = sc + b_ref[...]
    if use_homogeneous:
        h_in = sc[:, 3:4]                       # homogeneous channel
        bx = H_BETA * h_in
        sp = jnp.where(
            bx > SOFTPLUS_THRESHOLD,
            h_in,
            jnp.log(1.0 + jnp.exp(jnp.minimum(bx, SOFTPLUS_THRESHOLD))) / H_BETA)
        h = jnp.minimum(sp + MAX_INV_SCALE, MIN_INV_SCALE)
        # Only the first 3 lanes are kept downstream; scaling all lanes is fine.
        sc = sc * pl.reciprocal(h, approx=True)
    o_ref[...] = sc + mean_ref[...]


def head_forward(feats_nhwc, w_head, b_head, mean3, *, use_homogeneous):
    """feats_nhwc: (N,H,W,C); w_head: (out_ch, C); returns NCHW (N,3,H,W)."""
    N, H, W, C = feats_nhwc.shape
    out_ch = 4 if use_homogeneous else 3
    M = N * H * W
    x = feats_nhwc.reshape(M, C).astype(jnp.bfloat16)
    tm = _pick_tm(M)
    Mp = _round_up(M, tm)
    Cp = _round_up(C, 128)
    Np = 128

    x_p = x if (Mp == M and Cp == C) else jnp.pad(x, ((0, Mp - M), (0, Cp - C)))
    w_p = jnp.pad(w_head.T.astype(jnp.bfloat16),
                  ((0, Cp - C), (0, Np - out_ch)))
    b_p = jnp.pad(b_head.astype(jnp.float32).reshape(1, out_ch),
                  ((0, 0), (0, Np - out_ch)))
    mean_p = jnp.pad(jnp.asarray(mean3, jnp.float32).reshape(1, 3),
                     ((0, 0), (0, Np - 3)))

    kernel = functools.partial(_head_kernel, use_homogeneous=use_homogeneous)
    out = pl.pallas_call(
        kernel,
        out_shape=jax.ShapeDtypeStruct((Mp, Np), jnp.float32),
        grid_spec=pltpu.PrefetchScalarGridSpec(
            num_scalar_prefetch=0,
            grid=(Mp // tm,),
            in_specs=[
                pl.BlockSpec((tm, Cp), lambda i: (i, 0)),
                pl.BlockSpec((Cp, Np), lambda i: (0, 0)),
                pl.BlockSpec((1, Np), lambda i: (0, 0)),
                pl.BlockSpec((1, Np), lambda i: (0, 0)),
            ],
            out_specs=pl.BlockSpec((tm, Np), lambda i: (i, 0)),
        ),
        compiler_params=pltpu.CompilerParams(
            dimension_semantics=("parallel",)),   # shard rows across TCs (v7x)
    )(x_p, w_p, b_p, mean_p)
    sc = out[:M, :3].reshape(N, H, W, 3)
    return jnp.transpose(sc, (0, 3, 1, 2))  # NCHW


# ---------------------------------------------------------------------------
# Parameter construction (deterministic, PyTorch-style uniform init)
# ---------------------------------------------------------------------------
def _conv_params(key, out_c, in_c, kh, kw):
    kw_key, kb_key = jax.random.split(key)
    fan_in = in_c * kh * kw
    bound = 1.0 / math.sqrt(fan_in)
    w = jax.random.uniform(kw_key, (out_c, in_c, kh, kw), jnp.float32,
                           -bound, bound)
    b = jax.random.uniform(kb_key, (out_c,), jnp.float32, -bound, bound)
    return w, b


def init_params(key, *, num_encoder_features, use_homogeneous, mean3):
    F = num_encoder_features
    layer_defs = {
        "conv1": (32, 1, 3, 3),
        "conv2": (64, 32, 3, 3),
        "conv3": (128, 64, 3, 3),
        "conv4": (256, 128, 3, 3),
        "res1_conv1": (256, 256, 3, 3),
        "res1_conv2": (256, 256, 1, 1),
        "res1_conv3": (256, 256, 3, 3),
        "res2_conv1": (512, 256, 3, 3),
        "res2_conv2": (512, 512, 1, 1),
        "res2_conv3": (F, 512, 3, 3),
        "res2_skip": (F, 256, 1, 1),
    }
    keys = jax.random.split(key, len(layer_defs) + 1)
    params = {}
    for k_sub, (name, shape) in zip(keys[:-1], layer_defs.items()):
        params[name] = _conv_params(k_sub, *shape)
    out_ch = 4 if use_homogeneous else 3
    w_h, b_h = _conv_params(keys[-1], out_ch, F, 1, 1)
    params["head"] = (w_h.reshape(out_ch, F), b_h)      # 1x1 conv squeezed
    params["mean"] = jnp.asarray(mean3, jnp.float32)
    return params


# ---------------------------------------------------------------------------
# BaseRegressor forward: Encoder (ACE FCN, subsample 8) -> BaseHead
# ---------------------------------------------------------------------------
def base_regressor_forward(params, x_nchw, *, use_homogeneous):
    # layout: input NCHW -> internal NHWC (bf16 activations) -> output NCHW f32
    p = params
    x = jnp.transpose(x_nchw, (0, 2, 3, 1)).astype(jnp.float32)

    x = conv2d(x, *p["conv1"], stride=1, pad=1, relu=True)
    x = conv2d(x, *p["conv2"], stride=2, pad=1, relu=True)
    x = conv2d(x, *p["conv3"], stride=2, pad=1, relu=True)
    res = conv2d(x, *p["conv4"], stride=2, pad=1, relu=True)

    x = conv2d(res, *p["res1_conv1"], stride=1, pad=1, relu=True)
    x = conv2d(x, *p["res1_conv2"], stride=1, pad=0, relu=True)
    # res = res + relu(res1_conv3(x)), residual add fused into the matmul kernel
    res = conv2d(x, *p["res1_conv3"], stride=1, pad=1, relu=True,
                 addend_nhwc=res)

    x = conv2d(res, *p["res2_conv1"], stride=1, pad=1, relu=True)
    x = conv2d(x, *p["res2_conv2"], stride=1, pad=0, relu=True)
    x = conv2d(x, *p["res2_conv3"], stride=1, pad=1, relu=True)
    # feats = res2_skip(res) + x, skip-add fused into the matmul kernel
    feats = conv2d(res, *p["res2_skip"], stride=1, pad=0, relu=False,
                   addend_nhwc=x)

    w_head, b_head = p["head"]
    return head_forward(feats, w_head, b_head, p["mean"],
                        use_homogeneous=use_homogeneous)


if __name__ == "__main__":
    use_homogeneous = True
    num_encoder_features = 64            # small feature size for the demo

    key = jax.random.PRNGKey(0)
    k_param, k_input = jax.random.split(key)

    mean3 = jnp.array([0.5, -1.0, 2.0], jnp.float32)
    params = init_params(k_param,
                         num_encoder_features=num_encoder_features,
                         use_homogeneous=use_homogeneous,
                         mean3=mean3)

    # Encoder expects a single-channel (grayscale) image, NCHW.
    x = jax.random.normal(k_input, (2, 1, 32, 32), jnp.float32)

    fwd = jax.jit(functools.partial(base_regressor_forward,
                                    use_homogeneous=use_homogeneous))
    out = fwd(params, x)
    out = jax.block_until_ready(out)

    # OUTPUT_SUBSAMPLE = 8: 32x32 input -> 4x4 scene-coordinate map, 3 channels.
    assert out.shape == (2, 3, 4, 4), out.shape
    assert out.dtype == jnp.float32
    assert bool(jnp.all(jnp.isfinite(out)))
    print("KERNEL_OK")
</pallas_src>

<mosaic_0001>
module attributes {stable_mosaic.version = 11 : i64} {
  func.func @_matmul_single_kernel(%arg0: i32, %arg1: i32, %arg2: memref<512x128xbf16, #tpu.memory_space<vmem>>, %arg3: memref<128x128xbf16, #tpu.memory_space<vmem>>, %arg4: memref<1x128xf32, #tpu.memory_space<vmem>>, %arg5: memref<512x128xbf16, #tpu.memory_space<vmem>>) attributes {dimension_semantics = [#tpu.dimension_semantics<parallel>, #tpu.dimension_semantics<parallel>], iteration_bounds = array<i64: 4, 1>, scalar_prefetch = 0 : i64, scratch_operands = 0 : i64, tpu.core_type = #tpu.core_type<tc>, window_params = [{transform_indices = @transform_0, window_bounds = array<i64: 512, 128>}, {transform_indices = @transform_1, window_bounds = array<i64: 128, 128>}, {transform_indices = @transform_2, window_bounds = array<i64: 1, 128>}, {transform_indices = @transform_3, window_bounds = array<i64: 512, 128>}]} {
    %c0 = arith.constant 0 : index
    %c0_0 = arith.constant 0 : index
    %0 = vector.load %arg2[%c0, %c0_0] : memref<512x128xbf16, #tpu.memory_space<vmem>>, vector<512x128xbf16>
    %c0_1 = arith.constant 0 : index
    %c0_2 = arith.constant 0 : index
    %1 = vector.load %arg3[%c0_1, %c0_2] : memref<128x128xbf16, #tpu.memory_space<vmem>>, vector<128x128xbf16>
    %cst = arith.constant dense<0.000000e+00> : vector<512x128xf32>
    %2 = tpu.matmul %0, %1, %cst {dimension_numbers = #tpu.dot_dimension_numbers<[1], [0], [0], [1], [0, 0, 1, 1], [], []>} : vector<512x128xbf16>, vector<128x128xbf16>, vector<512x128xf32> -> vector<512x128xf32>
    %c0_3 = arith.constant 0 : index
    %c0_4 = arith.constant 0 : index
    %3 = vector.load %arg4[%c0_3, %c0_4] : memref<1x128xf32, #tpu.memory_space<vmem>>, vector<1x128xf32>
    %4 = vector.broadcast %3 : vector<1x128xf32> to vector<512x128xf32>
    %5 = arith.addf %2, %4 : vector<512x128xf32>
    %cst_5 = arith.constant 0.000000e+00 : f32
    %6 = vector.broadcast %cst_5 : f32 to vector<512x128xf32>
    %7 = arith.maximumf %5, %6 : vector<512x128xf32>
    %8 = arith.truncf %7 : vector<512x128xf32> to vector<512x128xbf16>
    %c0_6 = arith.constant 0 : index
    %c0_7 = arith.constant 0 : index
    %9 = vector.load %arg5[%c0_6, %c0_7] : memref<512x128xbf16, #tpu.memory_space<vmem>>, vector<512x128xbf16>
    tpu.vector_store %arg5[%c0_6, %c0_7], %8 {strides = array<i32>} : memref<512x128xbf16, #tpu.memory_space<vmem>>, vector<512x128xbf16>,
    return
  }
  func.func @transform_0(%arg0: i32, %arg1: i32) -> (i32, i32) {
    %c0_i32 = arith.constant 0 : i32
    %c0_i32_0 = arith.constant 0 : i32
    return %arg0, %c0_i32 : i32, i32
  }
  func.func @transform_1(%arg0: i32, %arg1: i32) -> (i32, i32) {
    %c0_i32 = arith.constant 0 : i32
    %c0_i32_0 = arith.constant 0 : i32
    return %c0_i32, %arg1 : i32, i32
  }
  func.func @transform_2(%arg0: i32, %arg1: i32) -> (i32, i32) {
    %c0_i32 = arith.constant 0 : i32
    %c0_i32_0 = arith.constant 0 : i32
    return %c0_i32, %arg1 : i32, i32
  }
  func.func @transform_3(%arg0: i32, %arg1: i32) -> (i32, i32) {
    %c0_i32 = arith.constant 0 : i32
    return %arg0, %arg1 : i32, i32
  }
}

module attributes {stable_mosaic.version = 11 : i64} {
  func.func @_matmul_single_kernel(%arg0: i32, %arg1: i32, %arg2: memref<256x384xbf16, #tpu.memory_space<vmem>>, %arg3: memref<384x128xbf16, #tpu.memory_space<vmem>>, %arg4: memref<1x128xf32, #tpu.memory_space<vmem>>, %arg5: memref<256x128xbf16, #tpu.memory_space<vmem>>) attributes {dimension_semantics = [#tpu.dimension_semantics<parallel>, #tpu.dimension_semantics<parallel>], iteration_bounds = array<i64: 2, 1>, scalar_prefetch = 0 : i64, scratch_operands = 0 : i64, tpu.core_type = #tpu.core_type<tc>, window_params = [{transform_indices = @transform_0, window_bounds = array<i64: 256, 384>}, {transform_indices = @transform_1, window_bounds = array<i64: 384, 128>}, {transform_indices = @transform_2, window_bounds = array<i64: 1, 128>}, {transform_indices = @transform_3, window_bounds = array<i64: 256, 128>}]} {
    %c0 = arith.constant 0 : index
    %c0_0 = arith.constant 0 : index
    %0 = vector.load %arg2[%c0, %c0_0] : memref<256x384xbf16, #tpu.memory_space<vmem>>, vector<256x384xbf16>
    %c0_1 = arith.constant 0 : index
    %c0_2 = arith.constant 0 : index
    %1 = vector.load %arg3[%c0_1, %c0_2] : memref<384x128xbf16, #tpu.memory_space<vmem>>, vector<384x128xbf16>
    %cst = arith.constant dense<0.000000e+00> : vector<256x128xf32>
    %2 = tpu.matmul %0, %1, %cst {dimension_numbers = #tpu.dot_dimension_numbers<[1], [0], [0], [1], [0, 0, 1, 1], [], []>} : vector<256x384xbf16>, vector<384x128xbf16>, vector<256x128xf32> -> vector<256x128xf32>
    %c0_3 = arith.constant 0 : index
    %c0_4 = arith.constant 0 : index
    %3 = vector.load %arg4[%c0_3, %c0_4] : memref<1x128xf32, #tpu.memory_space<vmem>>, vector<1x128xf32>
    %4 = vector.broadcast %3 : vector<1x128xf32> to vector<256x128xf32>
    %5 = arith.addf %2, %4 : vector<256x128xf32>
    %cst_5 = arith.constant 0.000000e+00 : f32
    %6 = vector.broadcast %cst_5 : f32 to vector<256x128xf32>
    %7 = arith.maximumf %5, %6 : vector<256x128xf32>
    %8 = arith.truncf %7 : vector<256x128xf32> to vector<256x128xbf16>
    %c0_6 = arith.constant 0 : index
    %c0_7 = arith.constant 0 : index
    %9 = vector.load %arg5[%c0_6, %c0_7] : memref<256x128xbf16, #tpu.memory_space<vmem>>, vector<256x128xbf16>
    tpu.vector_store %arg5[%c0_6, %c0_7], %8 {strides = array<i32>} : memref<256x128xbf16, #tpu.memory_space<vmem>>, vector<256x128xbf16>,
    return
  }
  func.func @transform_0(%arg0: i32, %arg1: i32) -> (i32, i32) {
    %c0_i32 = arith.constant 0 : i32
    %c0_i32_0 = arith.constant 0 : i32
    return %arg0, %c0_i32 : i32, i32
  }
  func.func @transform_1(%arg0: i32, %arg1: i32) -> (i32, i32) {
    %c0_i32 = arith.constant 0 : i32
    %c0_i32_0 = arith.constant 0 : i32
    return %c0_i32, %arg1 : i32, i32
  }
  func.func @transform_2(%arg0: i32, %arg1: i32) -> (i32, i32) {
    %c0_i32 = arith.constant 0 : i32
    %c0_i32_0 = arith.constant 0 : i32
    return %c0_i32, %arg1 : i32, i32
  }
  func.func @transform_3(%arg0: i32, %arg1: i32) -> (i32, i32) {
    %c0_i32 = arith.constant 0 : i32
    return %arg0, %arg1 : i32, i32
  }
}

module attributes {stable_mosaic.version = 11 : i64} {
  func.func @_matmul_multi_kernel(%arg0: i32, %arg1: i32, %arg2: i32, %arg3: memref<128x128xbf16, #tpu.memory_space<vmem>>, %arg4: memref<128x128xbf16, #tpu.memory_space<vmem>>, %arg5: memref<1x128xf32, #tpu.memory_space<vmem>>, %arg6: memref<128x128xbf16, #tpu.memory_space<vmem>>, %arg7: memref<128x128xf32, #tpu.memory_space<vmem>>) attributes {dimension_semantics = [#tpu.dimension_semantics<parallel>, #tpu.dimension_semantics<parallel>, #tpu.dimension_semantics<arbitrary>], iteration_bounds = array<i64: 1, 1, 5>, scalar_prefetch = 0 : i64, scratch_operands = 1 : i64, tpu.core_type = #tpu.core_type<tc>, window_params = [{transform_indices = @transform_0, window_bounds = array<i64: 128, 128>}, {transform_indices = @transform_1, window_bounds = array<i64: 128, 128>}, {transform_indices = @transform_2, window_bounds = array<i64: 1, 128>}, {transform_indices = @transform_3, window_bounds = array<i64: 128, 128>}]} {
    %c0_i32 = arith.constant 0 : i32
    %0 = arith.cmpi eq, %arg2, %c0_i32 : i32
    %1 = arith.extui %0 : i1 to i32
    %c0_i32_0 = arith.constant 0 : i32
    %2 = arith.cmpi ne, %1, %c0_i32_0 : i32
    scf.if %2 {
      %cst_9 = arith.constant 0.000000e+00 : f32
      %12 = vector.broadcast %cst_9 : f32 to vector<128x128xf32>
      %c0_10 = arith.constant 0 : index
      %c0_11 = arith.constant 0 : index
      %13 = vector.load %arg7[%c0_10, %c0_11] : memref<128x128xf32, #tpu.memory_space<vmem>>, vector<128x128xf32>
      tpu.vector_store %arg7[%c0_10, %c0_11], %12 {strides = array<i32>} : memref<128x128xf32, #tpu.memory_space<vmem>>, vector<128x128xf32>,
    } else {
    }
    %c0 = arith.constant 0 : index
    %c0_1 = arith.constant 0 : index
    %3 = vector.load %arg7[%c0, %c0_1] : memref<128x128xf32, #tpu.memory_space<vmem>>, vector<128x128xf32>
    %c0_2 = arith.constant 0 : index
    %c0_3 = arith.constant 0 : index
    %4 = vector.load %arg3[%c0_2, %c0_3] : memref<128x128xbf16, #tpu.memory_space<vmem>>, vector<128x128xbf16>
    %c0_4 = arith.constant 0 : index
    %c0_5 = arith.constant 0 : index
    %5 = vector.load %arg4[%c0_4, %c0_5] : memref<128x128xbf16, #tpu.memory_space<vmem>>, vector<128x128xbf16>
    %cst = arith.constant dense<0.000000e+00> : vector<128x128xf32>
    %6 = tpu.matmul %4, %5, %cst {dimension_numbers = #tpu.dot_dimension_numbers<[1], [0], [0], [1], [0, 0, 1, 1], [], []>} : vector<128x128xbf16>, vector<128x128xbf16>, vector<128x128xf32> -> vector<128x128xf32>
    %7 = arith.addf %3, %6 : vector<128x128xf32>
    %c0_6 = arith.constant 0 : index
    %c0_7 = arith.constant 0 : index
    %8 = vector.load %arg7[%c0_6, %c0_7] : memref<128x128xf32, #tpu.memory_space<vmem>>, vector<128x128xf32>
    tpu.vector_store %arg7[%c0_6, %c0_7], %7 {strides = array<i32>} : memref<128x128xf32, #tpu.memory_space<vmem>>, vector<128x128xf32>,
    %c4_i32 = arith.constant 4 : i32
    %9 = arith.cmpi eq, %arg2, %c4_i32 : i32
    %10 = arith.extui %9 : i1 to i32
    %c0_i32_8 = arith.constant 0 : i32
    %11 = arith.cmpi ne, %10, %c0_i32_8 : i32
    scf.if %11 {
      %c0_9 = arith.constant 0 : index
      %c0_10 = arith.constant 0 : index
      %12 = vector.load %arg7[%c0_9, %c0_10] : memref<128x128xf32, #tpu.memory_space<vmem>>, vector<128x128xf32>
      %c0_11 = arith.constant 0 : index
      %c0_12 = arith.constant 0 : index
      %13 = vector.load %arg5[%c0_11, %c0_12] : memref<1x128xf32, #tpu.memory_space<vmem>>, vector<1x128xf32>
      %14 = vector.broadcast %13 : vector<1x128xf32> to vector<128x128xf32>
      %15 = arith.addf %12, %14 : vector<128x128xf32>
      %cst_13 = arith.constant 0.000000e+00 : f32
      %16 = vector.broadcast %cst_13 : f32 to vector<128x128xf32>
      %17 = arith.maximumf %15, %16 : vector<128x128xf32>
      %18 = arith.truncf %17 : vector<128x128xf32> to vector<128x128xbf16>
      %c0_14 = arith.constant 0 : index
      %c0_15 = arith.constant 0 : index
      %19 = vector.load %arg6[%c0_14, %c0_15] : memref<128x128xbf16, #tpu.memory_space<vmem>>, vector<128x128xbf16>
      tpu.vector_store %arg6[%c0_14, %c0_15], %18 {strides = array<i32>} : memref<128x128xbf16, #tpu.memory_space<vmem>>, vector<128x128xbf16>,
    } else {
    }
    return
  }
  func.func @transform_0(%arg0: i32, %arg1: i32, %arg2: i32) -> (i32, i32) {
    %c0_i32 = arith.constant 0 : i32
    return %arg0, %arg2 : i32, i32
  }
  func.func @transform_1(%arg0: i32, %arg1: i32, %arg2: i32) -> (i32, i32) {
    %c0_i32 = arith.constant 0 : i32
    return %arg2, %arg1 : i32, i32
  }
  func.func @transform_2(%arg0: i32, %arg1: i32, %arg2: i32) -> (i32, i32) {
    %c0_i32 = arith.constant 0 : i32
    %c0_i32_0 = arith.constant 0 : i32
    return %c0_i32, %arg1 : i32, i32
  }
  func.func @transform_3(%arg0: i32, %arg1: i32, %arg2: i32) -> (i32, i32) {
    %c0_i32 = arith.constant 0 : i32
    return %arg0, %arg1 : i32, i32
  }
}

module attributes {stable_mosaic.version = 11 : i64} {
  func.func @_matmul_multi_kernel(%arg0: i32, %arg1: i32, %arg2: i32, %arg3: memref<32x384xbf16, #tpu.memory_space<vmem>>, %arg4: memref<384x256xbf16, #tpu.memory_space<vmem>>, %arg5: memref<1x256xf32, #tpu.memory_space<vmem>>, %arg6: memref<32x256xbf16, #tpu.memory_space<vmem>>, %arg7: memref<32x256xf32, #tpu.memory_space<vmem>>) attributes {dimension_semantics = [#tpu.dimension_semantics<parallel>, #tpu.dimension_semantics<parallel>, #tpu.dimension_semantics<arbitrary>], iteration_bounds = array<i64: 1, 1, 3>, scalar_prefetch = 0 : i64, scratch_operands = 1 : i64, tpu.core_type = #tpu.core_type<tc>, window_params = [{transform_indices = @transform_0, window_bounds = array<i64: 32, 384>}, {transform_indices = @transform_1, window_bounds = array<i64: 384, 256>}, {transform_indices = @transform_2, window_bounds = array<i64: 1, 256>}, {transform_indices = @transform_3, window_bounds = array<i64: 32, 256>}]} {
    %c0_i32 = arith.constant 0 : i32
    %0 = arith.cmpi eq, %arg2, %c0_i32 : i32
    %1 = arith.extui %0 : i1 to i32
    %c0_i32_0 = arith.constant 0 : i32
    %2 = arith.cmpi ne, %1, %c0_i32_0 : i32
    scf.if %2 {
      %cst_9 = arith.constant 0.000000e+00 : f32
      %12 = vector.broadcast %cst_9 : f32 to vector<32x256xf32>
      %c0_10 = arith.constant 0 : index
      %c0_11 = arith.constant 0 : index
      %13 = vector.load %arg7[%c0_10, %c0_11] : memref<32x256xf32, #tpu.memory_space<vmem>>, vector<32x256xf32>
      tpu.vector_store %arg7[%c0_10, %c0_11], %12 {strides = array<i32>} : memref<32x256xf32, #tpu.memory_space<vmem>>, vector<32x256xf32>,
    } else {
    }
    %c0 = arith.constant 0 : index
    %c0_1 = arith.constant 0 : index
    %3 = vector.load %arg7[%c0, %c0_1] : memref<32x256xf32, #tpu.memory_space<vmem>>, vector<32x256xf32>
    %c0_2 = arith.constant 0 : index
    %c0_3 = arith.constant 0 : index
    %4 = vector.load %arg3[%c0_2, %c0_3] : memref<32x384xbf16, #tpu.memory_space<vmem>>, vector<32x384xbf16>
    %c0_4 = arith.constant 0 : index
    %c0_5 = arith.constant 0 : index
    %5 = vector.load %arg4[%c0_4, %c0_5] : memref<384x256xbf16, #tpu.memory_space<vmem>>, vector<384x256xbf16>
    %cst = arith.constant dense<0.000000e+00> : vector<32x256xf32>
    %6 = tpu.matmul %4, %5, %cst {dimension_numbers = #tpu.dot_dimension_numbers<[1], [0], [0], [1], [0, 0, 1, 1], [], []>} : vector<32x384xbf16>, vector<384x256xbf16>, vector<32x256xf32> -> vector<32x256xf32>
    %7 = arith.addf %3, %6 : vector<32x256xf32>
    %c0_6 = arith.constant 0 : index
    %c0_7 = arith.constant 0 : index
    %8 = vector.load %arg7[%c0_6, %c0_7] : memref<32x256xf32, #tpu.memory_space<vmem>>, vector<32x256xf32>
    tpu.vector_store %arg7[%c0_6, %c0_7], %7 {strides = array<i32>} : memref<32x256xf32, #tpu.memory_space<vmem>>, vector<32x256xf32>,
    %c2_i32 = arith.constant 2 : i32
    %9 = arith.cmpi eq, %arg2, %c2_i32 : i32
    %10 = arith.extui %9 : i1 to i32
    %c0_i32_8 = arith.constant 0 : i32
    %11 = arith.cmpi ne, %10, %c0_i32_8 : i32
    scf.if %11 {
      %c0_9 = arith.constant 0 : index
      %c0_10 = arith.constant 0 : index
      %12 = vector.load %arg7[%c0_9, %c0_10] : memref<32x256xf32, #tpu.memory_space<vmem>>, vector<32x256xf32>
      %c0_11 = arith.constant 0 : index
      %c0_12 = arith.constant 0 : index
      %13 = vector.load %arg5[%c0_11, %c0_12] : memref<1x256xf32, #tpu.memory_space<vmem>>, vector<1x256xf32>
      %14 = vector.broadcast %13 : vector<1x256xf32> to vector<32x256xf32>
      %15 = arith.addf %12, %14 : vector<32x256xf32>
      %cst_13 = arith.constant 0.000000e+00 : f32
      %16 = vector.broadcast %cst_13 : f32 to vector<32x256xf32>
      %17 = arith.maximumf %15, %16 : vector<32x256xf32>
      %18 = arith.truncf %17 : vector<32x256xf32> to vector<32x256xbf16>
      %c0_14 = arith.constant 0 : index
      %c0_15 = arith.constant 0 : index
      %19 = vector.load %arg6[%c0_14, %c0_15] : memref<32x256xbf16, #tpu.memory_space<vmem>>, vector<32x256xbf16>
      tpu.vector_store %arg6[%c0_14, %c0_15], %18 {strides = array<i32>} : memref<32x256xbf16, #tpu.memory_space<vmem>>, vector<32x256xbf16>,
    } else {
    }
    return
  }
  func.func @transform_0(%arg0: i32, %arg1: i32, %arg2: i32) -> (i32, i32) {
    %c0_i32 = arith.constant 0 : i32
    return %arg0, %arg2 : i32, i32
  }
  func.func @transform_1(%arg0: i32, %arg1: i32, %arg2: i32) -> (i32, i32) {
    %c0_i32 = arith.constant 0 : i32
    return %arg2, %arg1 : i32, i32
  }
  func.func @transform_2(%arg0: i32, %arg1: i32, %arg2: i32) -> (i32, i32) {
    %c0_i32 = arith.constant 0 : i32
    %c0_i32_0 = arith.constant 0 : i32
    return %c0_i32, %arg1 : i32, i32
  }
  func.func @transform_3(%arg0: i32, %arg1: i32, %arg2: i32) -> (i32, i32) {
    %c0_i32 = arith.constant 0 : i32
    return %arg0, %arg1 : i32, i32
  }
}

module attributes {stable_mosaic.version = 11 : i64} {
  func.func @_matmul_multi_kernel(%arg0: i32, %arg1: i32, %arg2: i32, %arg3: memref<32x384xbf16, #tpu.memory_space<vmem>>, %arg4: memref<384x256xbf16, #tpu.memory_space<vmem>>, %arg5: memref<1x256xf32, #tpu.memory_space<vmem>>, %arg6: memref<32x256xbf16, #tpu.memory_space<vmem>>, %arg7: memref<32x256xf32, #tpu.memory_space<vmem>>) attributes {dimension_semantics = [#tpu.dimension_semantics<parallel>, #tpu.dimension_semantics<parallel>, #tpu.dimension_semantics<arbitrary>], iteration_bounds = array<i64: 1, 1, 6>, scalar_prefetch = 0 : i64, scratch_operands = 1 : i64, tpu.core_type = #tpu.core_type<tc>, window_params = [{transform_indices = @transform_0, window_bounds = array<i64: 32, 384>}, {transform_indices = @transform_1, window_bounds = array<i64: 384, 256>}, {transform_indices = @transform_2, window_bounds = array<i64: 1, 256>}, {transform_indices = @transform_3, window_bounds = array<i64: 32, 256>}]} {
    %c0_i32 = arith.constant 0 : i32
    %0 = arith.cmpi eq, %arg2, %c0_i32 : i32
    %1 = arith.extui %0 : i1 to i32
    %c0_i32_0 = arith.constant 0 : i32
    %2 = arith.cmpi ne, %1, %c0_i32_0 : i32
    scf.if %2 {
      %cst_9 = arith.constant 0.000000e+00 : f32
      %12 = vector.broadcast %cst_9 : f32 to vector<32x256xf32>
      %c0_10 = arith.constant 0 : index
      %c0_11 = arith.constant 0 : index
      %13 = vector.load %arg7[%c0_10, %c0_11] : memref<32x256xf32, #tpu.memory_space<vmem>>, vector<32x256xf32>
      tpu.vector_store %arg7[%c0_10, %c0_11], %12 {strides = array<i32>} : memref<32x256xf32, #tpu.memory_space<vmem>>, vector<32x256xf32>,
    } else {
    }
    %c0 = arith.constant 0 : index
    %c0_1 = arith.constant 0 : index
    %3 = vector.load %arg7[%c0, %c0_1] : memref<32x256xf32, #tpu.memory_space<vmem>>, vector<32x256xf32>
    %c0_2 = arith.constant 0 : index
    %c0_3 = arith.constant 0 : index
    %4 = vector.load %arg3[%c0_2, %c0_3] : memref<32x384xbf16, #tpu.memory_space<vmem>>, vector<32x384xbf16>
    %c0_4 = arith.constant 0 : index
    %c0_5 = arith.constant 0 : index
    %5 = vector.load %arg4[%c0_4, %c0_5] : memref<384x256xbf16, #tpu.memory_space<vmem>>, vector<384x256xbf16>
    %cst = arith.constant dense<0.000000e+00> : vector<32x256xf32>
    %6 = tpu.matmul %4, %5, %cst {dimension_numbers = #tpu.dot_dimension_numbers<[1], [0], [0], [1], [0, 0, 1, 1], [], []>} : vector<32x384xbf16>, vector<384x256xbf16>, vector<32x256xf32> -> vector<32x256xf32>
    %7 = arith.addf %3, %6 : vector<32x256xf32>
    %c0_6 = arith.constant 0 : index
    %c0_7 = arith.constant 0 : index
    %8 = vector.load %arg7[%c0_6, %c0_7] : memref<32x256xf32, #tpu.memory_space<vmem>>, vector<32x256xf32>
    tpu.vector_store %arg7[%c0_6, %c0_7], %7 {strides = array<i32>} : memref<32x256xf32, #tpu.memory_space<vmem>>, vector<32x256xf32>,
    %c5_i32 = arith.constant 5 : i32
    %9 = arith.cmpi eq, %arg2, %c5_i32 : i32
    %10 = arith.extui %9 : i1 to i32
    %c0_i32_8 = arith.constant 0 : i32
    %11 = arith.cmpi ne, %10, %c0_i32_8 : i32
    scf.if %11 {
      %c0_9 = arith.constant 0 : index
      %c0_10 = arith.constant 0 : index
      %12 = vector.load %arg7[%c0_9, %c0_10] : memref<32x256xf32, #tpu.memory_space<vmem>>, vector<32x256xf32>
      %c0_11 = arith.constant 0 : index
      %c0_12 = arith.constant 0 : index
      %13 = vector.load %arg5[%c0_11, %c0_12] : memref<1x256xf32, #tpu.memory_space<vmem>>, vector<1x256xf32>
      %14 = vector.broadcast %13 : vector<1x256xf32> to vector<32x256xf32>
      %15 = arith.addf %12, %14 : vector<32x256xf32>
      %cst_13 = arith.constant 0.000000e+00 : f32
      %16 = vector.broadcast %cst_13 : f32 to vector<32x256xf32>
      %17 = arith.maximumf %15, %16 : vector<32x256xf32>
      %18 = arith.truncf %17 : vector<32x256xf32> to vector<32x256xbf16>
      %c0_14 = arith.constant 0 : index
      %c0_15 = arith.constant 0 : index
      %19 = vector.load %arg6[%c0_14, %c0_15] : memref<32x256xbf16, #tpu.memory_space<vmem>>, vector<32x256xbf16>
      tpu.vector_store %arg6[%c0_14, %c0_15], %18 {strides = array<i32>} : memref<32x256xbf16, #tpu.memory_space<vmem>>, vector<32x256xbf16>,
    } else {
    }
    return
  }
  func.func @transform_0(%arg0: i32, %arg1: i32, %arg2: i32) -> (i32, i32) {
    %c0_i32 = arith.constant 0 : i32
    return %arg0, %arg2 : i32, i32
  }
  func.func @transform_1(%arg0: i32, %arg1: i32, %arg2: i32) -> (i32, i32) {
    %c0_i32 = arith.constant 0 : i32
    return %arg2, %arg1 : i32, i32
  }
  func.func @transform_2(%arg0: i32, %arg1: i32, %arg2: i32) -> (i32, i32) {
    %c0_i32 = arith.constant 0 : i32
    %c0_i32_0 = arith.constant 0 : i32
    return %c0_i32, %arg1 : i32, i32
  }
  func.func @transform_3(%arg0: i32, %arg1: i32, %arg2: i32) -> (i32, i32) {
    %c0_i32 = arith.constant 0 : i32
    return %arg0, %arg1 : i32, i32
  }
}

module attributes {stable_mosaic.version = 11 : i64} {
  func.func @_matmul_multi_kernel(%arg0: i32, %arg1: i32, %arg2: i32, %arg3: memref<32x384xbf16, #tpu.memory_space<vmem>>, %arg4: memref<384x256xbf16, #tpu.memory_space<vmem>>, %arg5: memref<1x256xf32, #tpu.memory_space<vmem>>, %arg6: memref<32x256xbf16, #tpu.memory_space<vmem>>, %arg7: memref<32x256xbf16, #tpu.memory_space<vmem>>, %arg8: memref<32x256xf32, #tpu.memory_space<vmem>>) attributes {dimension_semantics = [#tpu.dimension_semantics<parallel>, #tpu.dimension_semantics<parallel>, #tpu.dimension_semantics<arbitrary>], iteration_bounds = array<i64: 1, 1, 6>, scalar_prefetch = 0 : i64, scratch_operands = 1 : i64, tpu.core_type = #tpu.core_type<tc>, window_params = [{transform_indices = @transform_0, window_bounds = array<i64: 32, 384>}, {transform_indices = @transform_1, window_bounds = array<i64: 384, 256>}, {transform_indices = @transform_2, window_bounds = array<i64: 1, 256>}, {transform_indices = @transform_3, window_bounds = array<i64: 32, 256>}, {transform_indices = @transform_4, window_bounds = array<i64: 32, 256>}]} {
    %c0_i32 = arith.constant 0 : i32
    %0 = arith.cmpi eq, %arg2, %c0_i32 : i32
    %1 = arith.extui %0 : i1 to i32
    %c0_i32_0 = arith.constant 0 : i32
    %2 = arith.cmpi ne, %1, %c0_i32_0 : i32
    scf.if %2 {
      %cst_9 = arith.constant 0.000000e+00 : f32
      %12 = vector.broadcast %cst_9 : f32 to vector<32x256xf32>
      %c0_10 = arith.constant 0 : index
      %c0_11 = arith.constant 0 : index
      %13 = vector.load %arg8[%c0_10, %c0_11] : memref<32x256xf32, #tpu.memory_space<vmem>>, vector<32x256xf32>
      tpu.vector_store %arg8[%c0_10, %c0_11], %12 {strides = array<i32>} : memref<32x256xf32, #tpu.memory_space<vmem>>, vector<32x256xf32>,
    } else {
    }
    %c0 = arith.constant 0 : index
    %c0_1 = arith.constant 0 : index
    %3 = vector.load %arg8[%c0, %c0_1] : memref<32x256xf32, #tpu.memory_space<vmem>>, vector<32x256xf32>
    %c0_2 = arith.constant 0 : index
    %c0_3 = arith.constant 0 : index
    %4 = vector.load %arg3[%c0_2, %c0_3] : memref<32x384xbf16, #tpu.memory_space<vmem>>, vector<32x384xbf16>
    %c0_4 = arith.constant 0 : index
    %c0_5 = arith.constant 0 : index
    %5 = vector.load %arg4[%c0_4, %c0_5] : memref<384x256xbf16, #tpu.memory_space<vmem>>, vector<384x256xbf16>
    %cst = arith.constant dense<0.000000e+00> : vector<32x256xf32>
    %6 = tpu.matmul %4, %5, %cst {dimension_numbers = #tpu.dot_dimension_numbers<[1], [0], [0], [1], [0, 0, 1, 1], [], []>} : vector<32x384xbf16>, vector<384x256xbf16>, vector<32x256xf32> -> vector<32x256xf32>
    %7 = arith.addf %3, %6 : vector<32x256xf32>
    %c0_6 = arith.constant 0 : index
    %c0_7 = arith.constant 0 : index
    %8 = vector.load %arg8[%c0_6, %c0_7] : memref<32x256xf32, #tpu.memory_space<vmem>>, vector<32x256xf32>
    tpu.vector_store %arg8[%c0_6, %c0_7], %7 {strides = array<i32>} : memref<32x256xf32, #tpu.memory_space<vmem>>, vector<32x256xf32>,
    %c5_i32 = arith.constant 5 : i32
    %9 = arith.cmpi eq, %arg2, %c5_i32 : i32
    %10 = arith.extui %9 : i1 to i32
    %c0_i32_8 = arith.constant 0 : i32
    %11 = arith.cmpi ne, %10, %c0_i32_8 : i32
    scf.if %11 {
      %c0_9 = arith.constant 0 : index
      %c0_10 = arith.constant 0 : index
      %12 = vector.load %arg8[%c0_9, %c0_10] : memref<32x256xf32, #tpu.memory_space<vmem>>, vector<32x256xf32>
      %c0_11 = arith.constant 0 : index
      %c0_12 = arith.constant 0 : index
      %13 = vector.load %arg5[%c0_11, %c0_12] : memref<1x256xf32, #tpu.memory_space<vmem>>, vector<1x256xf32>
      %14 = vector.broadcast %13 : vector<1x256xf32> to vector<32x256xf32>
      %15 = arith.addf %12, %14 : vector<32x256xf32>
      %cst_13 = arith.constant 0.000000e+00 : f32
      %16 = vector.broadcast %cst_13 : f32 to vector<32x256xf32>
      %17 = arith.maximumf %15, %16 : vector<32x256xf32>
      %c0_14 = arith.constant 0 : index
      %c0_15 = arith.constant 0 : index
      %18 = vector.load %arg6[%c0_14, %c0_15] : memref<32x256xbf16, #tpu.memory_space<vmem>>, vector<32x256xbf16>
      %19 = arith.extf %18 : vector<32x256xbf16> to vector<32x256xf32>
      %20 = arith.addf %17, %19 : vector<32x256xf32>
      %21 = arith.truncf %20 : vector<32x256xf32> to vector<32x256xbf16>
      %c0_16 = arith.constant 0 : index
      %c0_17 = arith.constant 0 : index
      %22 = vector.load %arg7[%c0_16, %c0_17] : memref<32x256xbf16, #tpu.memory_space<vmem>>, vector<32x256xbf16>
      tpu.vector_store %arg7[%c0_16, %c0_17], %21 {strides = array<i32>} : memref<32x256xbf16, #tpu.memory_space<vmem>>, vector<32x256xbf16>,
    } else {
    }
    return
  }
  func.func @transform_0(%arg0: i32, %arg1: i32, %arg2: i32) -> (i32, i32) {
    %c0_i32 = arith.constant 0 : i32
    return %arg0, %arg2 : i32, i32
  }
  func.func @transform_1(%arg0: i32, %arg1: i32, %arg2: i32) -> (i32, i32) {
    %c0_i32 = arith.constant 0 : i32
    return %arg2, %arg1 : i32, i32
  }
  func.func @transform_2(%arg0: i32, %arg1: i32, %arg2: i32) -> (i32, i32) {
    %c0_i32 = arith.constant 0 : i32
    %c0_i32_0 = arith.constant 0 : i32
    return %c0_i32, %arg1 : i32, i32
  }
  func.func @transform_3(%arg0: i32, %arg1: i32, %arg2: i32) -> (i32, i32) {
    %c0_i32 = arith.constant 0 : i32
    return %arg0, %arg1 : i32, i32
  }
  func.func @transform_4(%arg0: i32, %arg1: i32, %arg2: i32) -> (i32, i32) {
    %c0_i32 = arith.constant 0 : i32
    return %arg0, %arg1 : i32, i32
  }
}

module attributes {stable_mosaic.version = 11 : i64} {
  func.func @_matmul_single_kernel(%arg0: i32, %arg1: i32, %arg2: memref<32x256xbf16, #tpu.memory_space<vmem>>, %arg3: memref<256x256xbf16, #tpu.memory_space<vmem>>, %arg4: memref<1x256xf32, #tpu.memory_space<vmem>>, %arg5: memref<32x256xbf16, #tpu.memory_space<vmem>>) attributes {dimension_semantics = [#tpu.dimension_semantics<parallel>, #tpu.dimension_semantics<parallel>], iteration_bounds = array<i64: 1, 1>, scalar_prefetch = 0 : i64, scratch_operands = 0 : i64, tpu.core_type = #tpu.core_type<tc>, window_params = [{transform_indices = @transform_0, window_bounds = array<i64: 32, 256>}, {transform_indices = @transform_1, window_bounds = array<i64: 256, 256>}, {transform_indices = @transform_2, window_bounds = array<i64: 1, 256>}, {transform_indices = @transform_3, window_bounds = array<i64: 32, 256>}]} {
    %c0 = arith.constant 0 : index
    %c0_0 = arith.constant 0 : index
    %0 = vector.load %arg2[%c0, %c0_0] : memref<32x256xbf16, #tpu.memory_space<vmem>>, vector<32x256xbf16>
    %c0_1 = arith.constant 0 : index
    %c0_2 = arith.constant 0 : index
    %1 = vector.load %arg3[%c0_1, %c0_2] : memref<256x256xbf16, #tpu.memory_space<vmem>>, vector<256x256xbf16>
    %cst = arith.constant dense<0.000000e+00> : vector<32x256xf32>
    %2 = tpu.matmul %0, %1, %cst {dimension_numbers = #tpu.dot_dimension_numbers<[1], [0], [0], [1], [0, 0, 1, 1], [], []>} : vector<32x256xbf16>, vector<256x256xbf16>, vector<32x256xf32> -> vector<32x256xf32>
    %c0_3 = arith.constant 0 : index
    %c0_4 = arith.constant 0 : index
    %3 = vector.load %arg4[%c0_3, %c0_4] : memref<1x256xf32, #tpu.memory_space<vmem>>, vector<1x256xf32>
    %4 = vector.broadcast %3 : vector<1x256xf32> to vector<32x256xf32>
    %5 = arith.addf %2, %4 : vector<32x256xf32>
    %cst_5 = arith.constant 0.000000e+00 : f32
    %6 = vector.broadcast %cst_5 : f32 to vector<32x256xf32>
    %7 = arith.maximumf %5, %6 : vector<32x256xf32>
    %8 = arith.truncf %7 : vector<32x256xf32> to vector<32x256xbf16>
    %c0_6 = arith.constant 0 : index
    %c0_7 = arith.constant 0 : index
    %9 = vector.load %arg5[%c0_6, %c0_7] : memref<32x256xbf16, #tpu.memory_space<vmem>>, vector<32x256xbf16>
    tpu.vector_store %arg5[%c0_6, %c0_7], %8 {strides = array<i32>} : memref<32x256xbf16, #tpu.memory_space<vmem>>, vector<32x256xbf16>,
    return
  }
  func.func @transform_0(%arg0: i32, %arg1: i32) -> (i32, i32) {
    %c0_i32 = arith.constant 0 : i32
    %c0_i32_0 = arith.constant 0 : i32
    return %arg0, %c0_i32 : i32, i32
  }
  func.func @transform_1(%arg0: i32, %arg1: i32) -> (i32, i32) {
    %c0_i32 = arith.constant 0 : i32
    %c0_i32_0 = arith.constant 0 : i32
    return %c0_i32, %arg1 : i32, i32
  }
  func.func @transform_2(%arg0: i32, %arg1: i32) -> (i32, i32) {
    %c0_i32 = arith.constant 0 : i32
    %c0_i32_0 = arith.constant 0 : i32
    return %c0_i32, %arg1 : i32, i32
  }
  func.func @transform_3(%arg0: i32, %arg1: i32) -> (i32, i32) {
    %c0_i32 = arith.constant 0 : i32
    return %arg0, %arg1 : i32, i32
  }
}

module attributes {stable_mosaic.version = 11 : i64} {
  func.func @_matmul_multi_kernel(%arg0: i32, %arg1: i32, %arg2: i32, %arg3: memref<32x384xbf16, #tpu.memory_space<vmem>>, %arg4: memref<384x256xbf16, #tpu.memory_space<vmem>>, %arg5: memref<1x256xf32, #tpu.memory_space<vmem>>, %arg6: memref<32x256xbf16, #tpu.memory_space<vmem>>, %arg7: memref<32x256xf32, #tpu.memory_space<vmem>>) attributes {dimension_semantics = [#tpu.dimension_semantics<parallel>, #tpu.dimension_semantics<parallel>, #tpu.dimension_semantics<arbitrary>], iteration_bounds = array<i64: 1, 2, 6>, scalar_prefetch = 0 : i64, scratch_operands = 1 : i64, tpu.core_type = #tpu.core_type<tc>, window_params = [{transform_indices = @transform_0, window_bounds = array<i64: 32, 384>}, {transform_indices = @transform_1, window_bounds = array<i64: 384, 256>}, {transform_indices = @transform_2, window_bounds = array<i64: 1, 256>}, {transform_indices = @transform_3, window_bounds = array<i64: 32, 256>}]} {
    %c0_i32 = arith.constant 0 : i32
    %0 = arith.cmpi eq, %arg2, %c0_i32 : i32
    %1 = arith.extui %0 : i1 to i32
    %c0_i32_0 = arith.constant 0 : i32
    %2 = arith.cmpi ne, %1, %c0_i32_0 : i32
    scf.if %2 {
      %cst_9 = arith.constant 0.000000e+00 : f32
      %12 = vector.broadcast %cst_9 : f32 to vector<32x256xf32>
      %c0_10 = arith.constant 0 : index
      %c0_11 = arith.constant 0 : index
      %13 = vector.load %arg7[%c0_10, %c0_11] : memref<32x256xf32, #tpu.memory_space<vmem>>, vector<32x256xf32>
      tpu.vector_store %arg7[%c0_10, %c0_11], %12 {strides = array<i32>} : memref<32x256xf32, #tpu.memory_space<vmem>>, vector<32x256xf32>,
    } else {
    }
    %c0 = arith.constant 0 : index
    %c0_1 = arith.constant 0 : index
    %3 = vector.load %arg7[%c0, %c0_1] : memref<32x256xf32, #tpu.memory_space<vmem>>, vector<32x256xf32>
    %c0_2 = arith.constant 0 : index
    %c0_3 = arith.constant 0 : index
    %4 = vector.load %arg3[%c0_2, %c0_3] : memref<32x384xbf16, #tpu.memory_space<vmem>>, vector<32x384xbf16>
    %c0_4 = arith.constant 0 : index
    %c0_5 = arith.constant 0 : index
    %5 = vector.load %arg4[%c0_4, %c0_5] : memref<384x256xbf16, #tpu.memory_space<vmem>>, vector<384x256xbf16>
    %cst = arith.constant dense<0.000000e+00> : vector<32x256xf32>
    %6 = tpu.matmul %4, %5, %cst {dimension_numbers = #tpu.dot_dimension_numbers<[1], [0], [0], [1], [0, 0, 1, 1], [], []>} : vector<32x384xbf16>, vector<384x256xbf16>, vector<32x256xf32> -> vector<32x256xf32>
    %7 = arith.addf %3, %6 : vector<32x256xf32>
    %c0_6 = arith.constant 0 : index
    %c0_7 = arith.constant 0 : index
    %8 = vector.load %arg7[%c0_6, %c0_7] : memref<32x256xf32, #tpu.memory_space<vmem>>, vector<32x256xf32>
    tpu.vector_store %arg7[%c0_6, %c0_7], %7 {strides = array<i32>} : memref<32x256xf32, #tpu.memory_space<vmem>>, vector<32x256xf32>,
    %c5_i32 = arith.constant 5 : i32
    %9 = arith.cmpi eq, %arg2, %c5_i32 : i32
    %10 = arith.extui %9 : i1 to i32
    %c0_i32_8 = arith.constant 0 : i32
    %11 = arith.cmpi ne, %10, %c0_i32_8 : i32
    scf.if %11 {
      %c0_9 = arith.constant 0 : index
      %c0_10 = arith.constant 0 : index
      %12 = vector.load %arg7[%c0_9, %c0_10] : memref<32x256xf32, #tpu.memory_space<vmem>>, vector<32x256xf32>
      %c0_11 = arith.constant 0 : index
      %c0_12 = arith.constant 0 : index
      %13 = vector.load %arg5[%c0_11, %c0_12] : memref<1x256xf32, #tpu.memory_space<vmem>>, vector<1x256xf32>
      %14 = vector.broadcast %13 : vector<1x256xf32> to vector<32x256xf32>
      %15 = arith.addf %12, %14 : vector<32x256xf32>
      %cst_13 = arith.constant 0.000000e+00 : f32
      %16 = vector.broadcast %cst_13 : f32 to vector<32x256xf32>
      %17 = arith.maximumf %15, %16 : vector<32x256xf32>
      %18 = arith.truncf %17 : vector<32x256xf32> to vector<32x256xbf16>
      %c0_14 = arith.constant 0 : index
      %c0_15 = arith.constant 0 : index
      %19 = vector.load %arg6[%c0_14, %c0_15] : memref<32x256xbf16, #tpu.memory_space<vmem>>, vector<32x256xbf16>
      tpu.vector_store %arg6[%c0_14, %c0_15], %18 {strides = array<i32>} : memref<32x256xbf16, #tpu.memory_space<vmem>>, vector<32x256xbf16>,
    } else {
    }
    return
  }
  func.func @transform_0(%arg0: i32, %arg1: i32, %arg2: i32) -> (i32, i32) {
    %c0_i32 = arith.constant 0 : i32
    return %arg0, %arg2 : i32, i32
  }
  func.func @transform_1(%arg0: i32, %arg1: i32, %arg2: i32) -> (i32, i32) {
    %c0_i32 = arith.constant 0 : i32
    return %arg2, %arg1 : i32, i32
  }
  func.func @transform_2(%arg0: i32, %arg1: i32, %arg2: i32) -> (i32, i32) {
    %c0_i32 = arith.constant 0 : i32
    %c0_i32_0 = arith.constant 0 : i32
    return %c0_i32, %arg1 : i32, i32
  }
  func.func @transform_3(%arg0: i32, %arg1: i32, %arg2: i32) -> (i32, i32) {
    %c0_i32 = arith.constant 0 : i32
    return %arg0, %arg1 : i32, i32
  }
}

module attributes {stable_mosaic.version = 11 : i64} {
  func.func @_matmul_single_kernel(%arg0: i32, %arg1: i32, %arg2: memref<32x512xbf16, #tpu.memory_space<vmem>>, %arg3: memref<512x256xbf16, #tpu.memory_space<vmem>>, %arg4: memref<1x256xf32, #tpu.memory_space<vmem>>, %arg5: memref<32x256xbf16, #tpu.memory_space<vmem>>) attributes {dimension_semantics = [#tpu.dimension_semantics<parallel>, #tpu.dimension_semantics<parallel>], iteration_bounds = array<i64: 1, 2>, scalar_prefetch = 0 : i64, scratch_operands = 0 : i64, tpu.core_type = #tpu.core_type<tc>, window_params = [{transform_indices = @transform_0, window_bounds = array<i64: 32, 512>}, {transform_indices = @transform_1, window_bounds = array<i64: 512, 256>}, {transform_indices = @transform_2, window_bounds = array<i64: 1, 256>}, {transform_indices = @transform_3, window_bounds = array<i64: 32, 256>}]} {
    %c0 = arith.constant 0 : index
    %c0_0 = arith.constant 0 : index
    %0 = vector.load %arg2[%c0, %c0_0] : memref<32x512xbf16, #tpu.memory_space<vmem>>, vector<32x512xbf16>
    %c0_1 = arith.constant 0 : index
    %c0_2 = arith.constant 0 : index
    %1 = vector.load %arg3[%c0_1, %c0_2] : memref<512x256xbf16, #tpu.memory_space<vmem>>, vector<512x256xbf16>
    %cst = arith.constant dense<0.000000e+00> : vector<32x256xf32>
    %2 = tpu.matmul %0, %1, %cst {dimension_numbers = #tpu.dot_dimension_numbers<[1], [0], [0], [1], [0, 0, 1, 1], [], []>} : vector<32x512xbf16>, vector<512x256xbf16>, vector<32x256xf32> -> vector<32x256xf32>
    %c0_3 = arith.constant 0 : index
    %c0_4 = arith.constant 0 : index
    %3 = vector.load %arg4[%c0_3, %c0_4] : memref<1x256xf32, #tpu.memory_space<vmem>>, vector<1x256xf32>
    %4 = vector.broadcast %3 : vector<1x256xf32> to vector<32x256xf32>
    %5 = arith.addf %2, %4 : vector<32x256xf32>
    %cst_5 = arith.constant 0.000000e+00 : f32
    %6 = vector.broadcast %cst_5 : f32 to vector<32x256xf32>
    %7 = arith.maximumf %5, %6 : vector<32x256xf32>
    %8 = arith.truncf %7 : vector<32x256xf32> to vector<32x256xbf16>
    %c0_6 = arith.constant 0 : index
    %c0_7 = arith.constant 0 : index
    %9 = vector.load %arg5[%c0_6, %c0_7] : memref<32x256xbf16, #tpu.memory_space<vmem>>, vector<32x256xbf16>
    tpu.vector_store %arg5[%c0_6, %c0_7], %8 {strides = array<i32>} : memref<32x256xbf16, #tpu.memory_space<vmem>>, vector<32x256xbf16>,
    return
  }
  func.func @transform_0(%arg0: i32, %arg1: i32) -> (i32, i32) {
    %c0_i32 = arith.constant 0 : i32
    %c0_i32_0 = arith.constant 0 : i32
    return %arg0, %c0_i32 : i32, i32
  }
  func.func @transform_1(%arg0: i32, %arg1: i32) -> (i32, i32) {
    %c0_i32 = arith.constant 0 : i32
    %c0_i32_0 = arith.constant 0 : i32
    return %c0_i32, %arg1 : i32, i32
  }
  func.func @transform_2(%arg0: i32, %arg1: i32) -> (i32, i32) {
    %c0_i32 = arith.constant 0 : i32
    %c0_i32_0 = arith.constant 0 : i32
    return %c0_i32, %arg1 : i32, i32
  }
  func.func @transform_3(%arg0: i32, %arg1: i32) -> (i32, i32) {
    %c0_i32 = arith.constant 0 : i32
    return %arg0, %arg1 : i32, i32
  }
}

module attributes {stable_mosaic.version = 11 : i64} {
  func.func @_matmul_multi_kernel(%arg0: i32, %arg1: i32, %arg2: i32, %arg3: memref<32x512xbf16, #tpu.memory_space<vmem>>, %arg4: memref<512x128xbf16, #tpu.memory_space<vmem>>, %arg5: memref<1x128xf32, #tpu.memory_space<vmem>>, %arg6: memref<32x128xbf16, #tpu.memory_space<vmem>>, %arg7: memref<32x128xf32, #tpu.memory_space<vmem>>) attributes {dimension_semantics = [#tpu.dimension_semantics<parallel>, #tpu.dimension_semantics<parallel>, #tpu.dimension_semantics<arbitrary>], iteration_bounds = array<i64: 1, 1, 9>, scalar_prefetch = 0 : i64, scratch_operands = 1 : i64, tpu.core_type = #tpu.core_type<tc>, window_params = [{transform_indices = @transform_0, window_bounds = array<i64: 32, 512>}, {transform_indices = @transform_1, window_bounds = array<i64: 512, 128>}, {transform_indices = @transform_2, window_bounds = array<i64: 1, 128>}, {transform_indices = @transform_3, window_bounds = array<i64: 32, 128>}]} {
    %c0_i32 = arith.constant 0 : i32
    %0 = arith.cmpi eq, %arg2, %c0_i32 : i32
    %1 = arith.extui %0 : i1 to i32
    %c0_i32_0 = arith.constant 0 : i32
    %2 = arith.cmpi ne, %1, %c0_i32_0 : i32
    scf.if %2 {
      %cst_9 = arith.constant 0.000000e+00 : f32
      %12 = vector.broadcast %cst_9 : f32 to vector<32x128xf32>
      %c0_10 = arith.constant 0 : index
      %c0_11 = arith.constant 0 : index
      %13 = vector.load %arg7[%c0_10, %c0_11] : memref<32x128xf32, #tpu.memory_space<vmem>>, vector<32x128xf32>
      tpu.vector_store %arg7[%c0_10, %c0_11], %12 {strides = array<i32>} : memref<32x128xf32, #tpu.memory_space<vmem>>, vector<32x128xf32>,
    } else {
    }
    %c0 = arith.constant 0 : index
    %c0_1 = arith.constant 0 : index
    %3 = vector.load %arg7[%c0, %c0_1] : memref<32x128xf32, #tpu.memory_space<vmem>>, vector<32x128xf32>
    %c0_2 = arith.constant 0 : index
    %c0_3 = arith.constant 0 : index
    %4 = vector.load %arg3[%c0_2, %c0_3] : memref<32x512xbf16, #tpu.memory_space<vmem>>, vector<32x512xbf16>
    %c0_4 = arith.constant 0 : index
    %c0_5 = arith.constant 0 : index
    %5 = vector.load %arg4[%c0_4, %c0_5] : memref<512x128xbf16, #tpu.memory_space<vmem>>, vector<512x128xbf16>
    %cst = arith.constant dense<0.000000e+00> : vector<32x128xf32>
    %6 = tpu.matmul %4, %5, %cst {dimension_numbers = #tpu.dot_dimension_numbers<[1], [0], [0], [1], [0, 0, 1, 1], [], []>} : vector<32x512xbf16>, vector<512x128xbf16>, vector<32x128xf32> -> vector<32x128xf32>
    %7 = arith.addf %3, %6 : vector<32x128xf32>
    %c0_6 = arith.constant 0 : index
    %c0_7 = arith.constant 0 : index
    %8 = vector.load %arg7[%c0_6, %c0_7] : memref<32x128xf32, #tpu.memory_space<vmem>>, vector<32x128xf32>
    tpu.vector_store %arg7[%c0_6, %c0_7], %7 {strides = array<i32>} : memref<32x128xf32, #tpu.memory_space<vmem>>, vector<32x128xf32>,
    %c8_i32 = arith.constant 8 : i32
    %9 = arith.cmpi eq, %arg2, %c8_i32 : i32
    %10 = arith.extui %9 : i1 to i32
    %c0_i32_8 = arith.constant 0 : i32
    %11 = arith.cmpi ne, %10, %c0_i32_8 : i32
    scf.if %11 {
      %c0_9 = arith.constant 0 : index
      %c0_10 = arith.constant 0 : index
      %12 = vector.load %arg7[%c0_9, %c0_10] : memref<32x128xf32, #tpu.memory_space<vmem>>, vector<32x128xf32>
      %c0_11 = arith.constant 0 : index
      %c0_12 = arith.constant 0 : index
      %13 = vector.load %arg5[%c0_11, %c0_12] : memref<1x128xf32, #tpu.memory_space<vmem>>, vector<1x128xf32>
      %14 = vector.broadcast %13 : vector<1x128xf32> to vector<32x128xf32>
      %15 = arith.addf %12, %14 : vector<32x128xf32>
      %cst_13 = arith.constant 0.000000e+00 : f32
      %16 = vector.broadcast %cst_13 : f32 to vector<32x128xf32>
      %17 = arith.maximumf %15, %16 : vector<32x128xf32>
      %18 = arith.truncf %17 : vector<32x128xf32> to vector<32x128xbf16>
      %c0_14 = arith.constant 0 : index
      %c0_15 = arith.constant 0 : index
      %19 = vector.load %arg6[%c0_14, %c0_15] : memref<32x128xbf16, #tpu.memory_space<vmem>>, vector<32x128xbf16>
      tpu.vector_store %arg6[%c0_14, %c0_15], %18 {strides = array<i32>} : memref<32x128xbf16, #tpu.memory_space<vmem>>, vector<32x128xbf16>,
    } else {
    }
    return
  }
  func.func @transform_0(%arg0: i32, %arg1: i32, %arg2: i32) -> (i32, i32) {
    %c0_i32 = arith.constant 0 : i32
    return %arg0, %arg2 : i32, i32
  }
  func.func @transform_1(%arg0: i32, %arg1: i32, %arg2: i32) -> (i32, i32) {
    %c0_i32 = arith.constant 0 : i32
    return %arg2, %arg1 : i32, i32
  }
  func.func @transform_2(%arg0: i32, %arg1: i32, %arg2: i32) -> (i32, i32) {
    %c0_i32 = arith.constant 0 : i32
    %c0_i32_0 = arith.constant 0 : i32
    return %c0_i32, %arg1 : i32, i32
  }
  func.func @transform_3(%arg0: i32, %arg1: i32, %arg2: i32) -> (i32, i32) {
    %c0_i32 = arith.constant 0 : i32
    return %arg0, %arg1 : i32, i32
  }
}

module attributes {stable_mosaic.version = 11 : i64} {
  func.func @_matmul_single_kernel(%arg0: i32, %arg1: i32, %arg2: memref<32x256xbf16, #tpu.memory_space<vmem>>, %arg3: memref<256x128xbf16, #tpu.memory_space<vmem>>, %arg4: memref<1x128xf32, #tpu.memory_space<vmem>>, %arg5: memref<32x128xbf16, #tpu.memory_space<vmem>>, %arg6: memref<32x128xbf16, #tpu.memory_space<vmem>>) attributes {dimension_semantics = [#tpu.dimension_semantics<parallel>, #tpu.dimension_semantics<parallel>], iteration_bounds = array<i64: 1, 1>, scalar_prefetch = 0 : i64, scratch_operands = 0 : i64, tpu.core_type = #tpu.core_type<tc>, window_params = [{transform_indices = @transform_0, window_bounds = array<i64: 32, 256>}, {transform_indices = @transform_1, window_bounds = array<i64: 256, 128>}, {transform_indices = @transform_2, window_bounds = array<i64: 1, 128>}, {transform_indices = @transform_3, window_bounds = array<i64: 32, 128>}, {transform_indices = @transform_4, window_bounds = array<i64: 32, 128>}]} {
    %c0 = arith.constant 0 : index
    %c0_0 = arith.constant 0 : index
    %0 = vector.load %arg2[%c0, %c0_0] : memref<32x256xbf16, #tpu.memory_space<vmem>>, vector<32x256xbf16>
    %c0_1 = arith.constant 0 : index
    %c0_2 = arith.constant 0 : index
    %1 = vector.load %arg3[%c0_1, %c0_2] : memref<256x128xbf16, #tpu.memory_space<vmem>>, vector<256x128xbf16>
    %cst = arith.constant dense<0.000000e+00> : vector<32x128xf32>
    %2 = tpu.matmul %0, %1, %cst {dimension_numbers = #tpu.dot_dimension_numbers<[1], [0], [0], [1], [0, 0, 1, 1], [], []>} : vector<32x256xbf16>, vector<256x128xbf16>, vector<32x128xf32> -> vector<32x128xf32>
    %c0_3 = arith.constant 0 : index
    %c0_4 = arith.constant 0 : index
    %3 = vector.load %arg4[%c0_3, %c0_4] : memref<1x128xf32, #tpu.memory_space<vmem>>, vector<1x128xf32>
    %4 = vector.broadcast %3 : vector<1x128xf32> to vector<32x128xf32>
    %5 = arith.addf %2, %4 : vector<32x128xf32>
    %c0_5 = arith.constant 0 : index
    %c0_6 = arith.constant 0 : index
    %6 = vector.load %arg5[%c0_5, %c0_6] : memref<32x128xbf16, #tpu.memory_space<vmem>>, vector<32x128xbf16>
    %7 = arith.extf %6 : vector<32x128xbf16> to vector<32x128xf32>
    %8 = arith.addf %5, %7 : vector<32x128xf32>
    %9 = arith.truncf %8 : vector<32x128xf32> to vector<32x128xbf16>
    %c0_7 = arith.constant 0 : index
    %c0_8 = arith.constant 0 : index
    %10 = vector.load %arg6[%c0_7, %c0_8] : memref<32x128xbf16, #tpu.memory_space<vmem>>, vector<32x128xbf16>
    tpu.vector_store %arg6[%c0_7, %c0_8], %9 {strides = array<i32>} : memref<32x128xbf16, #tpu.memory_space<vmem>>, vector<32x128xbf16>,
    return
  }
  func.func @transform_0(%arg0: i32, %arg1: i32) -> (i32, i32) {
    %c0_i32 = arith.constant 0 : i32
    %c0_i32_0 = arith.constant 0 : i32
    return %arg0, %c0_i32 : i32, i32
  }
  func.func @transform_1(%arg0: i32, %arg1: i32) -> (i32, i32) {
    %c0_i32 = arith.constant 0 : i32
    %c0_i32_0 = arith.constant 0 : i32
    return %c0_i32, %arg1 : i32, i32
  }
  func.func @transform_2(%arg0: i32, %arg1: i32) -> (i32, i32) {
    %c0_i32 = arith.constant 0 : i32
    %c0_i32_0 = arith.constant 0 : i32
    return %c0_i32, %arg1 : i32, i32
  }
  func.func @transform_3(%arg0: i32, %arg1: i32) -> (i32, i32) {
    %c0_i32 = arith.constant 0 : i32
    return %arg0, %arg1 : i32, i32
  }
  func.func @transform_4(%arg0: i32, %arg1: i32) -> (i32, i32) {
    %c0_i32 = arith.constant 0 : i32
    return %arg0, %arg1 : i32, i32
  }
}

module attributes {stable_mosaic.version = 11 : i64} {
  func.func @_head_kernel(%arg0: i32, %arg1: memref<32x128xbf16, #tpu.memory_space<vmem>>, %arg2: memref<128x128xbf16, #tpu.memory_space<vmem>>, %arg3: memref<1x128xf32, #tpu.memory_space<vmem>>, %arg4: memref<1x128xf32, #tpu.memory_space<vmem>>, %arg5: memref<32x128xf32, #tpu.memory_space<vmem>>) attributes {dimension_semantics = [#tpu.dimension_semantics<parallel>], iteration_bounds = array<i64: 1>, scalar_prefetch = 0 : i64, scratch_operands = 0 : i64, tpu.core_type = #tpu.core_type<tc>, window_params = [{transform_indices = @transform_0, window_bounds = array<i64: 32, 128>}, {pipeline_mode = #tpu.pipeline_mode<synchronous>, transform_indices = @transform_1, window_bounds = array<i64: 128, 128>}, {pipeline_mode = #tpu.pipeline_mode<synchronous>, transform_indices = @transform_2, window_bounds = array<i64: 1, 128>}, {pipeline_mode = #tpu.pipeline_mode<synchronous>, transform_indices = @transform_3, window_bounds = array<i64: 1, 128>}, {transform_indices = @transform_4, window_bounds = array<i64: 32, 128>}]} {
    %c0 = arith.constant 0 : index
    %c0_0 = arith.constant 0 : index
    %0 = vector.load %arg1[%c0, %c0_0] : memref<32x128xbf16, #tpu.memory_space<vmem>>, vector<32x128xbf16>
    %c0_1 = arith.constant 0 : index
    %c0_2 = arith.constant 0 : index
    %1 = vector.load %arg2[%c0_1, %c0_2] : memref<128x128xbf16, #tpu.memory_space<vmem>>, vector<128x128xbf16>
    %cst = arith.constant dense<0.000000e+00> : vector<32x128xf32>
    %2 = tpu.matmul %0, %1, %cst {dimension_numbers = #tpu.dot_dimension_numbers<[1], [0], [0], [1], [0, 0, 1, 1], [], []>} : vector<32x128xbf16>, vector<128x128xbf16>, vector<32x128xf32> -> vector<32x128xf32>
    %c0_3 = arith.constant 0 : index
    %c0_4 = arith.constant 0 : index
    %3 = vector.load %arg3[%c0_3, %c0_4] : memref<1x128xf32, #tpu.memory_space<vmem>>, vector<1x128xf32>
    %4 = vector.broadcast %3 : vector<1x128xf32> to vector<32x128xf32>
    %5 = arith.addf %2, %4 : vector<32x128xf32>
    %6 = vector.extract_strided_slice %5 {offsets = [0, 3], sizes = [32, 1], strides = [1, 1]} : vector<32x128xf32> to vector<32x1xf32>
    %cst_5 = arith.constant 0.924196243 : f32
    %7 = vector.broadcast %cst_5 : f32 to vector<32x1xf32>
    %8 = arith.mulf %7, %6 : vector<32x1xf32>
    %cst_6 = arith.constant 2.000000e+01 : f32
    %9 = vector.broadcast %cst_6 : f32 to vector<32x1xf32>
    %10 = arith.cmpf ogt, %8, %9 : vector<32x1xf32>
    %cst_7 = arith.constant 2.000000e+01 : f32
    %11 = vector.broadcast %cst_7 : f32 to vector<32x1xf32>
    %12 = arith.minimumf %8, %11 : vector<32x1xf32>
    %13 = math.exp %12 : vector<32x1xf32>
    %cst_8 = arith.constant 1.000000e+00 : f32
    %14 = vector.broadcast %cst_8 : f32 to vector<32x1xf32>
    %15 = arith.addf %14, %13 : vector<32x1xf32>
    %16 = math.log %15 : vector<32x1xf32>
    %cst_9 = arith.constant 0.924196243 : f32
    %17 = vector.broadcast %cst_9 : f32 to vector<32x1xf32>
    %18 = arith.divf %16, %17 : vector<32x1xf32>
    %19 = arith.select %10, %6, %18 : vector<32x1xi1>, vector<32x1xf32>
    %cst_10 = arith.constant 2.500000e-01 : f32
    %20 = vector.broadcast %cst_10 : f32 to vector<32x1xf32>
    %21 = arith.addf %19, %20 : vector<32x1xf32>
    %cst_11 = arith.constant 1.000000e+02 : f32
    %22 = vector.broadcast %cst_11 : f32 to vector<32x1xf32>
    %23 = arith.minimumf %21, %22 : vector<32x1xf32>
    %24 = tpu.reciprocal %23 {approx = true} : vector<32x1xf32> -> vector<32x1xf32>
    %25 = vector.broadcast %24 : vector<32x1xf32> to vector<32x128xf32>
    %26 = arith.mulf %5, %25 : vector<32x128xf32>
    %c0_12 = arith.constant 0 : index
    %c0_13 = arith.constant 0 : index
    %27 = vector.load %arg4[%c0_12, %c0_13] : memref<1x128xf32, #tpu.memory_space<vmem>>, vector<1x128xf32>
    %28 = vector.broadcast %27 : vector<1x128xf32> to vector<32x128xf32>
    %29 = arith.addf %26, %28 : vector<32x128xf32>
    %c0_14 = arith.constant 0 : index
    %c0_15 = arith.constant 0 : index
    %30 = vector.load %arg5[%c0_14, %c0_15] : memref<32x128xf32, #tpu.memory_space<vmem>>, vector<32x128xf32>
    tpu.vector_store %arg5[%c0_14, %c0_15], %29 {strides = array<i32>} : memref<32x128xf32, #tpu.memory_space<vmem>>, vector<32x128xf32>,
    return
  }
  func.func @transform_0(%arg0: i32) -> (i32, i32) {
    %c0_i32 = arith.constant 0 : i32
    %c0_i32_0 = arith.constant 0 : i32
    return %arg0, %c0_i32 : i32, i32
  }
  func.func @transform_1(%arg0: i32) -> (i32, i32) {
    %c0_i32 = arith.constant 0 : i32
    %c0_i32_0 = arith.constant 0 : i32
    %c0_i32_1 = arith.constant 0 : i32
    return %c0_i32, %c0_i32_0 : i32, i32
  }
  func.func @transform_2(%arg0: i32) -> (i32, i32) {
    %c0_i32 = arith.constant 0 : i32
    %c0_i32_0 = arith.constant 0 : i32
    %c0_i32_1 = arith.constant 0 : i32
    return %c0_i32, %c0_i32_0 : i32, i32
  }
  func.func @transform_3(%arg0: i32) -> (i32, i32) {
    %c0_i32 = arith.constant 0 : i32
    %c0_i32_0 = arith.constant 0 : i32
    %c0_i32_1 = arith.constant 0 : i32
    return %c0_i32, %c0_i32_0 : i32, i32
  }
  func.func @transform_4(%arg0: i32) -> (i32, i32) {
    %c0_i32 = arith.constant 0 : i32
    %c0_i32_0 = arith.constant 0 : i32
    return %arg0, %c0_i32 : i32, i32
  }
}

</mosaic_0001>

<bundles_post_ra>
// kernel: base_regressor_forward.12
= control target key start
LH: loop header
LB: loop body
LE: loop exit
PB: predicated region body
PF: predicated region fallthrough
CT: control target
= control target key end

     0   :  { %s1509_s12 = smov 0   ;;  %s1511_s13 = smov 0   ;;  %s1713_s0 = inlined_call_operand.vmem [shape: bf16[2048,128], index: 0, kind: input, shape index: {}]   ;;  %s1714_s1 = inlined_call_operand.vmem [shape: bf16[128,128], index: 1, kind: input, shape index: {}]   ;;  %s1715_s2 = inlined_call_operand.vmem [shape: f32[1,128], index: 2, kind: input, shape index: {}]   ;;  %s1716_s3 = inlined_call_operand.vmem [shape: bf16[2048,128], index: 3, kind: output, shape index: {}]  }
   0x1   :  { %s1513_s14 = smov 0  }
   0x2 LB: > { %s25_s15 = sadd.s32 1, %s1483_s13  ;;  %p1018_p0 = scmp.ge.s32.totalorder %s1487_s14, 1  ;;  %s1487_s14 = sphi %s1513_s14, %s13_s14   ;;  %s1483_s13 = sphi %s1511_s13, %s1718_s13   ;;  %s1479_s12 = sphi %s1509_s12, %s1717_s12  }
   0x3   : > { %p27_p1 = scmp.ge.s32.totalorder %s25_s15, 4  ;;  %p169_p2 = scmp.lt.s32.totalorder %s1487_s14, 5 }
   0x5   : > { %s1720_s15 = smov (%p27_p1, %s25_s15), 0  ;;  %p170_p3 = pnand %p1018_p0, %p169_p2 }
   0x6   : > { %s1019_s24 = sshll.u32 (!%p170_p3), %s1479_s12, 6 }
   0x7   : > { %173 = sbr.rel (%p170_p3) target bundleno = 305 (0x131), region = 32  ;;  %p204_p4 = scmp.lt.s32.totalorder (!%p170_p3), %s1019_s24, 255 }
   0xc   : > { %v1224_v0 = vld [vmem:[%s1714_s1 + $0x38] sm:$0xff]  ;;  %v1223_v1 = vld [vmem:[%s1714_s1 + $0x30] sm:$0xff]  ;;  %v1222_v2 = vld [vmem:[%s1714_s1 + $0x28] sm:$0xff]  ;;  %s1722_s24 = smov (!%p204_p4, %s1019_s24), 255 }
   0xd   : > { %549 = vmatpush.bf16.msra.mxu0 %v1224_v0  ;;  %1416 = vmatpush.bf16.msra.mxu1 %v1224_v0  ;;  %v1221_v3 = vld [vmem:[%s1714_s1 + $0x20] sm:$0xff]  ;;  %v1220_v4 = vld [vmem:[%s1714_s1 + $0x18] sm:$0xff]  ;;  %v1219_v5 = vld [vmem:[%s1714_s1 + $0x10] sm:$0xff]  ;;  %s1020_s4 = sshll.u32 %s1722_s24, 2 }
   0xe   : > { %1417 = vmatpush.bf16.msra.mxu2 %v1224_v0  ;;  %1418 = vmatpush.bf16.msra.mxu3 %v1224_v0  ;;  %v1218_v6 = vld [vmem:[%s1714_s1 + $0x8] sm:$0xff]  ;;  %v1217_v7 = vld [vmem:[%s1714_s1] sm:$0xff]  ;;  %s1562_s9 = scalar_lea.vmem %s1713_s0, %s1020_s4  ;;  %s1610_s17 = scalar_lea.vmem %s1716_s3, %s1020_s4 }
   0xf   : > { %v1185_v8 = vld [vmem:[%s1562_s9] sm:$0xff]  ;;  %v1186_v12 = vld [vmem:[%s1562_s9 + $0x8] sm:$0xff]  ;;  %v1187_v16 = vld [vmem:[%s1562_s9 + $0x10] sm:$0xff] }
  0x10   : > { %v1193_v9 = vld [vmem:[%s1562_s9 + $0x40] sm:$0xff]  ;;  %v1194_v13 = vld [vmem:[%s1562_s9 + $0x48] sm:$0xff]  ;;  %v1195_v17 = vld [vmem:[%s1562_s9 + $0x50] sm:$0xff] }
  0x11   : > { %550 = vmatpush.bf16.msra.mxu0 %v1223_v1  ;;  %1419 = vmatpush.bf16.msra.mxu1 %v1223_v1  ;;  %v1201_v10 = vld [vmem:[%s1562_s9 + $0x80] sm:$0xff]  ;;  %v1202_v14 = vld [vmem:[%s1562_s9 + $0x88] sm:$0xff]  ;;  %v1203_v18 = vld [vmem:[%s1562_s9 + $0x90] sm:$0xff] }
  0x12   : > { %1420 = vmatpush.bf16.msra.mxu2 %v1223_v1  ;;  %1421 = vmatpush.bf16.msra.mxu3 %v1223_v1  ;;  %v1209_v11 = vld [vmem:[%s1562_s9 + $0xc0] sm:$0xff]  ;;  %v1210_v15 = vld [vmem:[%s1562_s9 + $0xc8] sm:$0xff]  ;;  %v1211_v19 = vld [vmem:[%s1562_s9 + $0xd0] sm:$0xff] }
  0x13   : > { %v1188_v20 = vld [vmem:[%s1562_s9 + $0x18] sm:$0xff]  ;;  %v1189_v24 = vld [vmem:[%s1562_s9 + $0x20] sm:$0xff]  ;;  %v1190_v28 = vld [vmem:[%s1562_s9 + $0x28] sm:$0xff] }
  0x14   : > { %v1196_v21 = vld [vmem:[%s1562_s9 + $0x58] sm:$0xff]  ;;  %v1197_v25 = vld [vmem:[%s1562_s9 + $0x60] sm:$0xff]  ;;  %v1198_v29 = vld [vmem:[%s1562_s9 + $0x68] sm:$0xff] }
  0x15   : > { %551 = vmatpush.bf16.msra.mxu0 %v1222_v2  ;;  %1422 = vmatpush.bf16.msra.mxu1 %v1222_v2  ;;  %v1204_v22 = vld [vmem:[%s1562_s9 + $0x98] sm:$0xff]  ;;  %v1205_v26 = vld [vmem:[%s1562_s9 + $0xa0] sm:$0xff]  ;;  %v1206_v30 = vld [vmem:[%s1562_s9 + $0xa8] sm:$0xff] }
  0x16   : > { %1423 = vmatpush.bf16.msra.mxu2 %v1222_v2  ;;  %1424 = vmatpush.bf16.msra.mxu3 %v1222_v2  ;;  %v1212_v23 = vld [vmem:[%s1562_s9 + $0xd8] sm:$0xff]  ;;  %v1213_v27 = vld [vmem:[%s1562_s9 + $0xe0] sm:$0xff]  ;;  %v1214_v31 = vld [vmem:[%s1562_s9 + $0xe8] sm:$0xff] }
  0x17   : > { %v1191_v32 = vld [vmem:[%s1562_s9 + $0x30] sm:$0xff]  ;;  %v1192_v36 = vld [vmem:[%s1562_s9 + $0x38] sm:$0xff]  ;;  %v1599_v42 = vld [vmem:[%s1715_s2] ss:$0 sm:$0xff] }
  0x18   : > { %v1199_v33 = vld [vmem:[%s1562_s9 + $0x70] sm:$0xff]  ;;  %v1200_v37 = vld [vmem:[%s1562_s9 + $0x78] sm:$0xff] }
  0x19   : > { %552 = vmatpush.bf16.msra.mxu0 %v1221_v3  ;;  %1425 = vmatpush.bf16.msra.mxu1 %v1221_v3  ;;  %v1207_v34 = vld [vmem:[%s1562_s9 + $0xb0] sm:$0xff]  ;;  %v1208_v38 = vld [vmem:[%s1562_s9 + $0xb8] sm:$0xff] }
  0x1a   : > { %1426 = vmatpush.bf16.msra.mxu2 %v1221_v3  ;;  %1427 = vmatpush.bf16.msra.mxu3 %v1221_v3  ;;  %v1215_v35 = vld [vmem:[%s1562_s9 + $0xf0] sm:$0xff]  ;;  %v1216_v39 = vld [vmem:[%s1562_s9 + $0xf8] sm:$0xff] }
  0x1d   : > { %553 = vmatpush.bf16.msra.mxu0 %v1220_v4  ;;  %1428 = vmatpush.bf16.msra.mxu1 %v1220_v4 }
  0x1e   : > { %1429 = vmatpush.bf16.msra.mxu2 %v1220_v4  ;;  %1430 = vmatpush.bf16.msra.mxu3 %v1220_v4 }
  0x21   : > { %554 = vmatpush.bf16.msra.mxu0 %v1219_v5  ;;  %1431 = vmatpush.bf16.msra.mxu1 %v1219_v5 }
  0x22   : > { %1432 = vmatpush.bf16.msra.mxu2 %v1219_v5  ;;  %1433 = vmatpush.bf16.msra.mxu3 %v1219_v5 }
  0x25   : > { %555 = vmatpush.bf16.msra.mxu0 %v1218_v6  ;;  %1434 = vmatpush.bf16.msra.mxu1 %v1218_v6 }
  0x26   : > { %1435 = vmatpush.bf16.msra.mxu2 %v1218_v6  ;;  %1436 = vmatpush.bf16.msra.mxu3 %v1218_v6 }
  0x29   : > { %556 = vmatpush.bf16.msra.mxu0 %v1217_v7  ;;  %1437 = vmatpush.bf16.msra.mxu1 %v1217_v7 }
  0x2a   : > { %1438 = vmatpush.bf16.msra.mxu2 %v1217_v7  ;;  %1439 = vmatpush.bf16.msra.mxu3 %v1217_v7 }
  0x2c   : > { %557 = vmatmul.bf16.vlgmr.msra.gmra.mxu0 %v1185_v8  ;;  %597 = vmatmul.bf16.vlgmr.msra.gmra.mxu1 %v1193_v9 }
  0x2d   : > { %637 = vmatmul.bf16.vlgmr.msra.gmra.mxu2 %v1201_v10  ;;  %677 = vmatmul.bf16.vlgmr.msra.gmra.mxu3 %v1209_v11 }
  0x3c   : > { %562 = vmatmul.bf16.gmra.mxu0 %v1186_v12  ;;  %602 = vmatmul.bf16.gmra.mxu1 %v1194_v13 }
  0x3d   : > { %642 = vmatmul.bf16.gmra.mxu2 %v1202_v14  ;;  %682 = vmatmul.bf16.gmra.mxu3 %v1210_v15 }
  0x4c   : > { %567 = vmatmul.bf16.gmra.mxu0 %v1187_v16  ;;  %607 = vmatmul.bf16.gmra.mxu1 %v1195_v17 }
  0x4d   : > { %647 = vmatmul.bf16.gmra.mxu2 %v1203_v18  ;;  %687 = vmatmul.bf16.gmra.mxu3 %v1211_v19 }
  0x5c   : > { %572 = vmatmul.bf16.gmra.mxu0 %v1188_v20  ;;  %612 = vmatmul.bf16.gmra.mxu1 %v1196_v21 }
  0x5d   : > { %652 = vmatmul.bf16.gmra.mxu2 %v1204_v22  ;;  %692 = vmatmul.bf16.gmra.mxu3 %v1212_v23 }
  0x6c   : > { %577 = vmatmul.bf16.gmra.mxu0 %v1189_v24  ;;  %617 = vmatmul.bf16.gmra.mxu1 %v1197_v25 }
  0x6d   : > { %657 = vmatmul.bf16.gmra.mxu2 %v1205_v26  ;;  %697 = vmatmul.bf16.gmra.mxu3 %v1213_v27 }
  0x7c   : > { %582 = vmatmul.bf16.gmra.mxu0 %v1190_v28  ;;  %622 = vmatmul.bf16.gmra.mxu1 %v1198_v29 }
  0x7d   : > { %662 = vmatmul.bf16.gmra.mxu2 %v1206_v30  ;;  %702 = vmatmul.bf16.gmra.mxu3 %v1214_v31 }
  0x8c   : > { %587 = vmatmul.bf16.gmra.mxu0 %v1191_v32  ;;  %627 = vmatmul.bf16.gmra.mxu1 %v1199_v33 }
  0x8d   : > { %667 = vmatmul.bf16.gmra.mxu2 %v1207_v34  ;;  %707 = vmatmul.bf16.gmra.mxu3 %v1215_v35 }
  0x9c   : > { %592 = vmatmul.bf16.gmra.mxu0 %v1192_v36  ;;  %632 = vmatmul.bf16.gmra.mxu1 %v1200_v37 }
  0x9d   : > { %672 = vmatmul.bf16.gmra.mxu2 %v1208_v38  ;;  %712 = vmatmul.bf16.gmra.mxu3 %v1216_v39 }
  0xa9   : > { %v558_v40 = vpop.f32.mrf.mxu0  ;;  %v598_v41 = vpop.f32.mrf.mxu1 }
  0xaa   : > { %v559_v43 = vadd.f32 %v1599_v42, %v558_v40  ;;  %v599_v44 = vadd.f32 %v1599_v42, %v598_v41 }
  0xac   : > { %v718_v51 = vmax.f32 %v559_v43, 0.0  ;;  %v734_v52 = vmax.f32 %v599_v44, 0.0 }
  0xb0   : > { %v638_v45 = vpop.f32.mrf.mxu2  ;;  %v678_v46 = vpop.f32.mrf.mxu3 }
  0xb1   : > { %v560_v47 = vpop.f32.mrf.mxu0  ;;  %v600_v48 = vpop.f32.mrf.mxu1  ;;  %v639_v57 = vadd.f32 %v1599_v42, %v638_v45  ;;  %v679_v58 = vadd.f32 %v1599_v42, %v678_v46 }
  0xb2   : > { %v561_v49 = vadd.f32 %v1599_v42, %v560_v47  ;;  %v601_v50 = vadd.f32 %v1599_v42, %v600_v48 }
  0xb3   : > { %v750_v1 = vmax.f32 %v639_v57, 0.0  ;;  %v766_v2 = vmax.f32 %v679_v58, 0.0 }
  0xb4   : > { %v719_v53 = vmax.f32 %v561_v49, 0.0  ;;  %v735_v54 = vmax.f32 %v601_v50, 0.0 }
  0xb6   : > { %v1228_v55 = vpack.c.bf16 %v719_v53, %v718_v51  ;;  %v1268_v56 = vpack.c.bf16 %v735_v54, %v734_v52 }
  0xb8   : > { %1229 = vst [vmem:[%s1610_s17] sm:$0xff] %v1228_v55   ;;  %v640_v59 = vpop.f32.mrf.mxu2  ;;  %v680_v60 = vpop.f32.mrf.mxu3 }
  0xb9   : > { %1392 = vst [vmem:[%s1610_s17 + $0x40] sm:$0xff] %v1268_v56   ;;  %v641_v61 = vadd.f32 %v1599_v42, %v640_v59  ;;  %v681_v62 = vadd.f32 %v1599_v42, %v680_v60  ;;  %v563_v63 = vpop.f32.mrf.mxu0  ;;  %v603_v0 = vpop.f32.mrf.mxu1 }
  0xba   : > { %v564_v7 = vadd.f32 %v1599_v42, %v563_v63  ;;  %v604_v8 = vadd.f32 %v1599_v42, %v603_v0 }
  0xbb   : > { %v751_v3 = vmax.f32 %v641_v61, 0.0  ;;  %v767_v4 = vmax.f32 %v681_v62, 0.0 }
  0xbc   : > { %v720_v15 = vmax.f32 %v564_v7, 0.0  ;;  %v736_v16 = vmax.f32 %v604_v8, 0.0 }
  0xbd   : > { %v1308_v5 = vpack.c.bf16 %v751_v3, %v750_v1  ;;  %v1348_v6 = vpack.c.bf16 %v767_v4, %v766_v2 }
  0xbf   : > { %1400 = vst [vmem:[%s1610_s17 + $0x80] sm:$0xff] %v1308_v5  }
  0xc0   : > { %1408 = vst [vmem:[%s1610_s17 + $0xc0] sm:$0xff] %v1348_v6   ;;  %v643_v9 = vpop.f32.mrf.mxu2  ;;  %v683_v10 = vpop.f32.mrf.mxu3 }
  0xc1   : > { %v565_v11 = vpop.f32.mrf.mxu0  ;;  %v605_v12 = vpop.f32.mrf.mxu1  ;;  %v644_v21 = vadd.f32 %v1599_v42, %v643_v9  ;;  %v684_v22 = vadd.f32 %v1599_v42, %v683_v10 }
  0xc2   : > { %v566_v13 = vadd.f32 %v1599_v42, %v565_v11  ;;  %v606_v14 = vadd.f32 %v1599_v42, %v605_v12 }
  0xc3   : > { %v752_v29 = vmax.f32 %v644_v21, 0.0  ;;  %v768_v30 = vmax.f32 %v684_v22, 0.0 }
  0xc4   : > { %v721_v17 = vmax.f32 %v566_v13, 0.0  ;;  %v737_v18 = vmax.f32 %v606_v14, 0.0 }
  0xc6   : > { %v1233_v19 = vpack.c.bf16 %v721_v17, %v720_v15  ;;  %v1273_v20 = vpack.c.bf16 %v737_v18, %v736_v16 }
  0xc8   : > { %1385 = vst [vmem:[%s1610_s17 + $0x8] sm:$0xff] %v1233_v19   ;;  %v645_v23 = vpop.f32.mrf.mxu2  ;;  %v685_v24 = vpop.f32.mrf.mxu3 }
  0xc9   : > { %1393 = vst [vmem:[%s1610_s17 + $0x48] sm:$0xff] %v1273_v20   ;;  %v646_v25 = vadd.f32 %v1599_v42, %v645_v23  ;;  %v686_v26 = vadd.f32 %v1599_v42, %v685_v24  ;;  %v568_v27 = vpop.f32.mrf.mxu0  ;;  %v608_v28 = vpop.f32.mrf.mxu1 }
  0xca   : > { %v569_v35 = vadd.f32 %v1599_v42, %v568_v27  ;;  %v609_v36 = vadd.f32 %v1599_v42, %v608_v28 }
  0xcb   : > { %v753_v31 = vmax.f32 %v646_v25, 0.0  ;;  %v769_v32 = vmax.f32 %v686_v26, 0.0 }
  0xcc   : > { %v722_v44 = vmax.f32 %v569_v35, 0.0  ;;  %v738_v45 = vmax.f32 %v609_v36, 0.0 }
  0xcd   : > { %v1313_v33 = vpack.c.bf16 %v753_v31, %v752_v29  ;;  %v1353_v34 = vpack.c.bf16 %v769_v32, %v768_v30 }
  0xcf   : > { %1401 = vst [vmem:[%s1610_s17 + $0x88] sm:$0xff] %v1313_v33  }
  0xd0   : > { %1409 = vst [vmem:[%s1610_s17 + $0xc8] sm:$0xff] %v1353_v34   ;;  %v648_v37 = vpop.f32.mrf.mxu2  ;;  %v688_v38 = vpop.f32.mrf.mxu3 }
  0xd1   : > { %v570_v39 = vpop.f32.mrf.mxu0  ;;  %v610_v40 = vpop.f32.mrf.mxu1  ;;  %v649_v50 = vadd.f32 %v1599_v42, %v648_v37  ;;  %v689_v51 = vadd.f32 %v1599_v42, %v688_v38 }
  0xd2   : > { %v571_v41 = vadd.f32 %v1599_v42, %v570_v39  ;;  %v611_v43 = vadd.f32 %v1599_v42, %v610_v40 }
  0xd3   : > { %v754_v58 = vmax.f32 %v649_v50, 0.0  ;;  %v770_v59 = vmax.f32 %v689_v51, 0.0 }
  0xd4   : > { %v723_v46 = vmax.f32 %v571_v41, 0.0  ;;  %v739_v47 = vmax.f32 %v611_v43, 0.0 }
  0xd6   : > { %v1238_v48 = vpack.c.bf16 %v723_v46, %v722_v44  ;;  %v1278_v49 = vpack.c.bf16 %v739_v47, %v738_v45 }
  0xd8   : > { %1386 = vst [vmem:[%s1610_s17 + $0x10] sm:$0xff] %v1238_v48   ;;  %v650_v52 = vpop.f32.mrf.mxu2  ;;  %v690_v53 = vpop.f32.mrf.mxu3 }
  0xd9   : > { %1394 = vst [vmem:[%s1610_s17 + $0x50] sm:$0xff] %v1278_v49   ;;  %v651_v54 = vadd.f32 %v1599_v42, %v650_v52  ;;  %v691_v55 = vadd.f32 %v1599_v42, %v690_v53  ;;  %v573_v56 = vpop.f32.mrf.mxu0  ;;  %v613_v57 = vpop.f32.mrf.mxu1 }
  0xda   : > { %v574_v0 = vadd.f32 %v1599_v42, %v573_v56  ;;  %v614_v1 = vadd.f32 %v1599_v42, %v613_v57 }
  0xdb   : > { %v755_v60 = vmax.f32 %v651_v54, 0.0  ;;  %v771_v61 = vmax.f32 %v691_v55, 0.0 }
  0xdc   : > { %v724_v8 = vmax.f32 %v574_v0, 0.0  ;;  %v740_v9 = vmax.f32 %v614_v1, 0.0 }
  0xdd   : > { %v1318_v62 = vpack.c.bf16 %v755_v60, %v754_v58  ;;  %v1358_v63 = vpack.c.bf16 %v771_v61, %v770_v59 }
  0xdf   : > { %1402 = vst [vmem:[%s1610_s17 + $0x90] sm:$0xff] %v1318_v62  }
  0xe0   : > { %1410 = vst [vmem:[%s1610_s17 + $0xd0] sm:$0xff] %v1358_v63   ;;  %v653_v2 = vpop.f32.mrf.mxu2  ;;  %v693_v3 = vpop.f32.mrf.mxu3 }
  0xe1   : > { %v575_v4 = vpop.f32.mrf.mxu0  ;;  %v615_v5 = vpop.f32.mrf.mxu1  ;;  %v654_v14 = vadd.f32 %v1599_v42, %v653_v2  ;;  %v694_v15 = vadd.f32 %v1599_v42, %v693_v3 }
  0xe2   : > { %v576_v6 = vadd.f32 %v1599_v42, %v575_v4  ;;  %v616_v7 = vadd.f32 %v1599_v42, %v615_v5 }
  0xe3   : > { %v756_v22 = vmax.f32 %v654_v14, 0.0  ;;  %v772_v23 = vmax.f32 %v694_v15, 0.0 }
  0xe4   : > { %v725_v10 = vmax.f32 %v576_v6, 0.0  ;;  %v741_v11 = vmax.f32 %v616_v7, 0.0 }
  0xe6   : > { %v1243_v12 = vpack.c.bf16 %v725_v10, %v724_v8  ;;  %v1283_v13 = vpack.c.bf16 %v741_v11, %v740_v9 }
  0xe8   : > { %1387 = vst [vmem:[%s1610_s17 + $0x18] sm:$0xff] %v1243_v12   ;;  %v655_v16 = vpop.f32.mrf.mxu2  ;;  %v695_v17 = vpop.f32.mrf.mxu3 }
  0xe9   : > { %1395 = vst [vmem:[%s1610_s17 + $0x58] sm:$0xff] %v1283_v13   ;;  %v656_v18 = vadd.f32 %v1599_v42, %v655_v16  ;;  %v696_v19 = vadd.f32 %v1599_v42, %v695_v17  ;;  %v578_v20 = vpop.f32.mrf.mxu0  ;;  %v618_v21 = vpop.f32.mrf.mxu1 }
  0xea   : > { %v579_v28 = vadd.f32 %v1599_v42, %v578_v20  ;;  %v619_v29 = vadd.f32 %v1599_v42, %v618_v21 }
  0xeb   : > { %v757_v24 = vmax.f32 %v656_v18, 0.0  ;;  %v773_v25 = vmax.f32 %v696_v19, 0.0 }
  0xec   : > { %v726_v36 = vmax.f32 %v579_v28, 0.0  ;;  %v742_v37 = vmax.f32 %v619_v29, 0.0 }
  0xed   : > { %v1323_v26 = vpack.c.bf16 %v757_v24, %v756_v22  ;;  %v1363_v27 = vpack.c.bf16 %v773_v25, %v772_v23 }
  0xef   : > { %1403 = vst [vmem:[%s1610_s17 + $0x98] sm:$0xff] %v1323_v26  }
  0xf0   : > { %1411 = vst [vmem:[%s1610_s17 + $0xd8] sm:$0xff] %v1363_v27   ;;  %v658_v30 = vpop.f32.mrf.mxu2  ;;  %v698_v31 = vpop.f32.mrf.mxu3 }
  0xf1   : > { %v580_v32 = vpop.f32.mrf.mxu0  ;;  %v620_v33 = vpop.f32.mrf.mxu1  ;;  %v659_v43 = vadd.f32 %v1599_v42, %v658_v30  ;;  %v699_v44 = vadd.f32 %v1599_v42, %v698_v31 }
  0xf2   : > { %v581_v34 = vadd.f32 %v1599_v42, %v580_v32  ;;  %v621_v35 = vadd.f32 %v1599_v42, %v620_v33 }
  0xf3   : > { %v758_v51 = vmax.f32 %v659_v43, 0.0  ;;  %v774_v52 = vmax.f32 %v699_v44, 0.0 }
  0xf4   : > { %v727_v38 = vmax.f32 %v581_v34, 0.0  ;;  %v743_v39 = vmax.f32 %v621_v35, 0.0 }
  0xf6   : > { %v1248_v40 = vpack.c.bf16 %v727_v38, %v726_v36  ;;  %v1288_v41 = vpack.c.bf16 %v743_v39, %v742_v37 }
  0xf8   : > { %1388 = vst [vmem:[%s1610_s17 + $0x20] sm:$0xff] %v1248_v40   ;;  %v660_v45 = vpop.f32.mrf.mxu2  ;;  %v700_v46 = vpop.f32.mrf.mxu3 }
  0xf9   : > { %1396 = vst [vmem:[%s1610_s17 + $0x60] sm:$0xff] %v1288_v41   ;;  %v661_v47 = vadd.f32 %v1599_v42, %v660_v45  ;;  %v701_v48 = vadd.f32 %v1599_v42, %v700_v46  ;;  %v583_v49 = vpop.f32.mrf.mxu0  ;;  %v623_v50 = vpop.f32.mrf.mxu1 }
  0xfa   : > { %v584_v57 = vadd.f32 %v1599_v42, %v583_v49  ;;  %v624_v58 = vadd.f32 %v1599_v42, %v623_v50 }
  0xfb   : > { %v759_v53 = vmax.f32 %v661_v47, 0.0  ;;  %v775_v54 = vmax.f32 %v701_v48, 0.0 }
  0xfc   : > { %v728_v1 = vmax.f32 %v584_v57, 0.0  ;;  %v744_v2 = vmax.f32 %v624_v58, 0.0 }
  0xfd   : > { %v1328_v55 = vpack.c.bf16 %v759_v53, %v758_v51  ;;  %v1368_v56 = vpack.c.bf16 %v775_v54, %v774_v52 }
  0xff   : > { %1404 = vst [vmem:[%s1610_s17 + $0xa0] sm:$0xff] %v1328_v55  }
 0x100   : > { %1412 = vst [vmem:[%s1610_s17 + $0xe0] sm:$0xff] %v1368_v56   ;;  %v663_v59 = vpop.f32.mrf.mxu2  ;;  %v703_v60 = vpop.f32.mrf.mxu3 }
 0x101   : > { %v585_v61 = vpop.f32.mrf.mxu0  ;;  %v625_v62 = vpop.f32.mrf.mxu1  ;;  %v664_v7 = vadd.f32 %v1599_v42, %v663_v59  ;;  %v704_v8 = vadd.f32 %v1599_v42, %v703_v60 }
 0x102   : > { %v586_v63 = vadd.f32 %v1599_v42, %v585_v61  ;;  %v626_v0 = vadd.f32 %v1599_v42, %v625_v62 }
 0x103   : > { %v760_v15 = vmax.f32 %v664_v7, 0.0  ;;  %v776_v16 = vmax.f32 %v704_v8, 0.0 }
 0x104   : > { %v729_v3 = vmax.f32 %v586_v63, 0.0  ;;  %v745_v4 = vmax.f32 %v626_v0, 0.0 }
 0x106   : > { %v1253_v5 = vpack.c.bf16 %v729_v3, %v728_v1  ;;  %v1293_v6 = vpack.c.bf16 %v745_v4, %v744_v2 }
 0x108   : > { %1389 = vst [vmem:[%s1610_s17 + $0x28] sm:$0xff] %v1253_v5   ;;  %v665_v9 = vpop.f32.mrf.mxu2  ;;  %v705_v10 = vpop.f32.mrf.mxu3 }
 0x109   : > { %1397 = vst [vmem:[%s1610_s17 + $0x68] sm:$0xff] %v1293_v6   ;;  %v666_v11 = vadd.f32 %v1599_v42, %v665_v9  ;;  %v706_v12 = vadd.f32 %v1599_v42, %v705_v10  ;;  %v588_v13 = vpop.f32.mrf.mxu0  ;;  %v628_v14 = vpop.f32.mrf.mxu1 }
 0x10a   : > { %v589_v21 = vadd.f32 %v1599_v42, %v588_v13  ;;  %v629_v22 = vadd.f32 %v1599_v42, %v628_v14 }
 0x10b   : > { %v761_v17 = vmax.f32 %v666_v11, 0.0  ;;  %v777_v18 = vmax.f32 %v706_v12, 0.0 }
 0x10c   : > { %v730_v29 = vmax.f32 %v589_v21, 0.0  ;;  %v746_v30 = vmax.f32 %v629_v22, 0.0 }
 0x10d   : > { %v1333_v19 = vpack.c.bf16 %v761_v17, %v760_v15  ;;  %v1373_v20 = vpack.c.bf16 %v777_v18, %v776_v16 }
 0x10f   : > { %1405 = vst [vmem:[%s1610_s17 + $0xa8] sm:$0xff] %v1333_v19  }
 0x110   : > { %1413 = vst [vmem:[%s1610_s17 + $0xe8] sm:$0xff] %v1373_v20   ;;  %v668_v23 = vpop.f32.mrf.mxu2  ;;  %v708_v24 = vpop.f32.mrf.mxu3 }
 0x111   : > { %v590_v25 = vpop.f32.mrf.mxu0  ;;  %v630_v26 = vpop.f32.mrf.mxu1  ;;  %v669_v35 = vadd.f32 %v1599_v42, %v668_v23  ;;  %v709_v36 = vadd.f32 %v1599_v42, %v708_v24 }
 0x112   : > { %v591_v27 = vadd.f32 %v1599_v42, %v590_v25  ;;  %v631_v28 = vadd.f32 %v1599_v42, %v630_v26 }
 0x113   : > { %v762_v44 = vmax.f32 %v669_v35, 0.0  ;;  %v778_v45 = vmax.f32 %v709_v36, 0.0 }
 0x114   : > { %v731_v31 = vmax.f32 %v591_v27, 0.0  ;;  %v747_v32 = vmax.f32 %v631_v28, 0.0 }
 0x116   : > { %v1258_v33 = vpack.c.bf16 %v731_v31, %v730_v29  ;;  %v1298_v34 = vpack.c.bf16 %v747_v32, %v746_v30 }
 0x118   : > { %1390 = vst [vmem:[%s1610_s17 + $0x30] sm:$0xff] %v1258_v33   ;;  %v670_v37 = vpop.f32.mrf.mxu2  ;;  %v710_v38 = vpop.f32.mrf.mxu3 }
 0x119   : > { %1398 = vst [vmem:[%s1610_s17 + $0x70] sm:$0xff] %v1298_v34   ;;  %v671_v39 = vadd.f32 %v1599_v42, %v670_v37  ;;  %v711_v40 = vadd.f32 %v1599_v42, %v710_v38  ;;  %v593_v41 = vpop.f32.mrf.mxu0  ;;  %v633_v43 = vpop.f32.mrf.mxu1 }
 0x11a   : > { %v594_v50 = vadd.f32 %v1599_v42, %v593_v41  ;;  %v634_v51 = vadd.f32 %v1599_v42, %v633_v43 }
 0x11b   : > { %v763_v46 = vmax.f32 %v671_v39, 0.0  ;;  %v779_v47 = vmax.f32 %v711_v40, 0.0 }
 0x11c   : > { %v732_v58 = vmax.f32 %v594_v50, 0.0  ;;  %v748_v59 = vmax.f32 %v634_v51, 0.0 }
 0x11d   : > { %v1338_v48 = vpack.c.bf16 %v763_v46, %v762_v44  ;;  %v1378_v49 = vpack.c.bf16 %v779_v47, %v778_v45 }
 0x11f   : > { %1406 = vst [vmem:[%s1610_s17 + $0xb0] sm:$0xff] %v1338_v48  }
 0x120   : > { %1414 = vst [vmem:[%s1610_s17 + $0xf0] sm:$0xff] %v1378_v49   ;;  %v673_v52 = vpop.f32.mrf.mxu2  ;;  %v713_v53 = vpop.f32.mrf.mxu3 }
 0x121   : > { %v595_v54 = vpop.f32.mrf.mxu0  ;;  %v635_v55 = vpop.f32.mrf.mxu1  ;;  %v674_v0 = vadd.f32 %v1599_v42, %v673_v52  ;;  %v714_v1 = vadd.f32 %v1599_v42, %v713_v53 }
 0x122   : > { %v596_v56 = vadd.f32 %v1599_v42, %v595_v54  ;;  %v636_v57 = vadd.f32 %v1599_v42, %v635_v55 }
 0x123   : > { %v764_v6 = vmax.f32 %v674_v0, 0.0  ;;  %v780_v7 = vmax.f32 %v714_v1, 0.0 }
 0x124   : > { %v733_v60 = vmax.f32 %v596_v56, 0.0  ;;  %v749_v61 = vmax.f32 %v636_v57, 0.0 }
 0x126   : > { %v1263_v62 = vpack.c.bf16 %v733_v60, %v732_v58  ;;  %v1303_v63 = vpack.c.bf16 %v749_v61, %v748_v59 }
 0x128   : > { %1391 = vst [vmem:[%s1610_s17 + $0x38] sm:$0xff] %v1263_v62   ;;  %v675_v2 = vpop.f32.mrf.mxu2  ;;  %v715_v3 = vpop.f32.mrf.mxu3 }
 0x129   : > { %1399 = vst [vmem:[%s1610_s17 + $0x78] sm:$0xff] %v1303_v63   ;;  %v676_v4 = vadd.f32 %v1599_v42, %v675_v2  ;;  %v716_v5 = vadd.f32 %v1599_v42, %v715_v3 }
 0x12b   : > { %v765_v8 = vmax.f32 %v676_v4, 0.0  ;;  %v781_v9 = vmax.f32 %v716_v5, 0.0 }
 0x12d   : > { %v1343_v10 = vpack.c.bf16 %v765_v8, %v764_v6  ;;  %v1383_v11 = vpack.c.bf16 %v781_v9, %v780_v7 }
 0x12f   : > { %1407 = vst [vmem:[%s1610_s17 + $0xb8] sm:$0xff] %v1343_v10  }
 0x130   : > { %1415 = vst [vmem:[%s1610_s17 + $0xf8] sm:$0xff] %v1383_v11  }
 0x131 PF: > { %s13_s14 = sadd.s32 1, %s1487_s14   ;;  %s1717_s12 = smov %s1483_s13 }
 0x132   : > { %p10_p5 = scmp.ge.s32.totalorder %s13_s14, 6   ;;  %s1718_s13 = smov %s1720_s15 }
 0x134   :  { %12 = sbr.rel (!%p10_p5) target bundleno = 2 (0x2), region = 68 }

// kernel: base_regressor_forward.13
= control target key start
LH: loop header
LB: loop body
LE: loop exit
PB: predicated region body
PF: predicated region fallthrough
CT: control target
= control target key end

     0   :  { %s1771_s12 = smov 0   ;;  %s1773_s13 = smov 0   ;;  %s2132_s0 = inlined_call_operand.vmem [shape: bf16[512,384], index: 0, kind: input, shape index: {}]   ;;  %s2133_s1 = inlined_call_operand.vmem [shape: bf16[384,128], index: 1, kind: input, shape index: {}]   ;;  %s2134_s2 = inlined_call_operand.vmem [shape: f32[1,128], index: 2, kind: input, shape index: {}]   ;;  %s2135_s3 = inlined_call_operand.vmem [shape: bf16[512,128], index: 3, kind: output, shape index: {}]  }
   0x1   :  { %s1775_s14 = smov 0  }
   0x2 LB: > { %s25_s15 = sadd.s32 1, %s1745_s13  ;;  %p1215_p0 = scmp.ge.s32.totalorder %s1749_s14, 1  ;;  %s1749_s14 = sphi %s1775_s14, %s13_s14   ;;  %s1745_s13 = sphi %s1773_s13, %s2137_s13   ;;  %s1741_s12 = sphi %s1771_s12, %s2136_s12  }
   0x3   : > { %p27_p1 = scmp.ge.s32.totalorder %s25_s15, 2  ;;  %p170_p2 = scmp.lt.s32.totalorder %s1749_s14, 3 }
   0x5   : > { %s2139_s15 = smov (%p27_p1, %s25_s15), 0  ;;  %p171_p3 = pnand %p1215_p0, %p170_p2 }
   0x6   : > { %s1216_s7 = sshll.u32 (!%p171_p3), %s1741_s12, 5 }
   0x7   : > { %174 = sbr.rel (%p171_p3) target bundleno = 369 (0x171), region = 32  ;;  %p206_p4 = scmp.lt.s32.totalorder (!%p171_p3), %s1216_s7, 63 }
   0xc   : > { %v1565_v0 = vld [vmem:[%s2133_s1 + $0x38] sm:$0xff]  ;;  %v1564_v3 = vld [vmem:[%s2133_s1 + $0x30] sm:$0xff]  ;;  %v1563_v6 = vld [vmem:[%s2133_s1 + $0x28] sm:$0xff]  ;;  %s2141_s7 = smov (!%p206_p4, %s1216_s7), 63 }
   0xd   : > { %v1797_v1 = vld [vmem:[%s2133_s1 + $0x78] sm:$0xff]  ;;  %744 = vmatpush.bf16.msra.mxu0 %v1565_v0  ;;  %1677 = vmatpush.bf16.msra.mxu3 %v1565_v0  ;;  %v1812_v4 = vld [vmem:[%s2133_s1 + $0x70] sm:$0xff]  ;;  %v1827_v7 = vld [vmem:[%s2133_s1 + $0x68] sm:$0xff]  ;;  %s1701_s25 = smul.u32 12, %s2141_s7  ;;  %s1219_s24 = sshll.u32 %s2141_s7, 2 }
   0xe   : > { %v1802_v2 = vld [vmem:[%s2133_s1 + $0xb8] sm:$0xff]  ;;  %833 = vmatpush.bf16.msra.mxu1 %v1797_v1  ;;  %v1817_v5 = vld [vmem:[%s2133_s1 + $0xb0] sm:$0xff]  ;;  %v1832_v8 = vld [vmem:[%s2133_s1 + $0xa8] sm:$0xff]  ;;  %s2015_s27 = scalar_lea.vmem %s2135_s3, %s1219_s24 }
   0xf   : > { %922 = vmatpush.bf16.msra.mxu2 %v1802_v2  ;;  %v1562_v9 = vld [vmem:[%s2133_s1 + $0x20] sm:$0xff]  ;;  %v1561_v12 = vld [vmem:[%s2133_s1 + $0x18] sm:$0xff]  ;;  %v1560_v15 = vld [vmem:[%s2133_s1 + $0x10] sm:$0xff]  ;;  %s1884_s8 = scalar_lea.vmem %s2132_s0, %s1701_s25 }
  0x10   : > { %v1843_v10 = vld [vmem:[%s2133_s1 + $0x60] sm:$0xff]  ;;  %v1569_v13 = vld [vmem:[%s2133_s1 + $0x58] sm:$0xff]  ;;  %v1568_v16 = vld [vmem:[%s2133_s1 + $0x50] sm:$0xff] }
  0x11   : > { %745 = vmatpush.bf16.msra.mxu0 %v1564_v3  ;;  %1678 = vmatpush.bf16.msra.mxu3 %v1564_v3  ;;  %v1848_v11 = vld [vmem:[%s2133_s1 + $0xa0] sm:$0xff]  ;;  %v1863_v14 = vld [vmem:[%s2133_s1 + $0x98] sm:$0xff]  ;;  %v1876_v17 = vld [vmem:[%s2133_s1 + $0x90] sm:$0xff] }
  0x12   : > { %834 = vmatpush.bf16.msra.mxu1 %v1812_v4  ;;  %v1559_v18 = vld [vmem:[%s2133_s1 + $0x8] sm:$0xff]  ;;  %v1558_v21 = vld [vmem:[%s2133_s1] sm:$0xff]  ;;  %v1224_v29 = vld [vmem:[%s1884_s8 + $0xc] sm:$0xf0] }
  0x13   : > { %923 = vmatpush.bf16.msra.mxu2 %v1817_v5  ;;  %v1567_v19 = vld [vmem:[%s2133_s1 + $0x48] sm:$0xff]  ;;  %v1566_v22 = vld [vmem:[%s2133_s1 + $0x40] sm:$0xff]  ;;  %v1512_v31 = vld [vmem:[%s1884_s8 + $0x10] sm:$0xf0] }
  0x14   : > { %v1893_v20 = vld [vmem:[%s2133_s1 + $0x88] sm:$0xff]  ;;  %v1904_v23 = vld [vmem:[%s2133_s1 + $0x80] sm:$0xff]  ;;  %v1234_v36 = vld [vmem:[%s1884_s8 + $0x18] sm:$0xf] }
  0x15   : > { %746 = vmatpush.bf16.msra.mxu0 %v1563_v6  ;;  %1679 = vmatpush.bf16.msra.mxu3 %v1563_v6  ;;  %v1222_v24 = vld [vmem:[%s1884_s8] sm:$0xf]  ;;  %v1511_v25 = vld [vmem:[%s1884_s8 + $0x8] sm:$0xf0]  ;;  %v1510_v28 = vld [vmem:[%s1884_s8 + $0x4] sm:$0xf] }
  0x16   : > { %835 = vmatpush.bf16.msra.mxu1 %v1827_v7  ;;  %v1366_v26 = vld [vmem:[%s1884_s8 + $0x120] sm:$0xf]  ;;  %v1547_v27 = vld [vmem:[%s1884_s8 + $0x128] sm:$0xf0]  ;;  %v1230_v30 = vld [vmem:[%s1884_s8 + $0x8] sm:$0xf]  ;;  %v1223_v32 = vor.u32 %v1511_v25, %v1222_v24  ;;  %v1227_v34 = vor.u32 %v1510_v28, %v1224_v29 }
  0x17   : > { %924 = vmatpush.bf16.msra.mxu2 %v1832_v8  ;;  %v1367_v33 = vor.u32 %v1547_v27, %v1366_v26  ;;  %v1231_v35 = vor.u32 %v1512_v31, %v1230_v30  ;;  %v1514_v37 = vld [vmem:[%s1884_s8 + $0x20] sm:$0xf0]  ;;  %v1378_v38 = vld [vmem:[%s1884_s8 + $0x138] sm:$0xf]  ;;  %v1513_v40 = vld [vmem:[%s1884_s8 + $0x1c] sm:$0xf] }
  0x18   : > { %v1550_v39 = vld [vmem:[%s1884_s8 + $0x140] sm:$0xf0]  ;;  %v1236_v41 = vld [vmem:[%s1884_s8 + $0x24] sm:$0xf0]  ;;  %v1242_v42 = vld [vmem:[%s1884_s8 + $0x20] sm:$0xf]  ;;  %v1235_v44 = vor.u32 %v1514_v37, %v1234_v36 }
  0x19   : > { %747 = vmatpush.bf16.msra.mxu0 %v1562_v9  ;;  %1680 = vmatpush.bf16.msra.mxu3 %v1562_v9  ;;  %v1515_v43 = vld [vmem:[%s1884_s8 + $0x28] sm:$0xf0]  ;;  %v1379_v45 = vor.u32 %v1550_v39, %v1378_v38  ;;  %v1239_v46 = vor.u32 %v1513_v40, %v1236_v41  ;;  %v1246_v48 = vld [vmem:[%s1884_s8 + $0x30] sm:$0xf]  ;;  %v1517_v49 = vld [vmem:[%s1884_s8 + $0x38] sm:$0xf0] }
  0x1a   : > { %836 = vmatpush.bf16.msra.mxu1 %v1843_v10  ;;  %v1243_v47 = vor.u32 %v1515_v43, %v1242_v42  ;;  %v1390_v50 = vld [vmem:[%s1884_s8 + $0x150] sm:$0xf]  ;;  %v1553_v51 = vld [vmem:[%s1884_s8 + $0x158] sm:$0xf0]  ;;  %v1516_v52 = vld [vmem:[%s1884_s8 + $0x34] sm:$0xf]  ;;  %v1247_v56 = vor.u32 %v1517_v49, %v1246_v48 }
  0x1b   : > { %925 = vmatpush.bf16.msra.mxu2 %v1848_v11  ;;  %v1248_v53 = vld [vmem:[%s1884_s8 + $0x3c] sm:$0xf0]  ;;  %v1254_v54 = vld [vmem:[%s1884_s8 + $0x38] sm:$0xf]  ;;  %v1518_v55 = vld [vmem:[%s1884_s8 + $0x40] sm:$0xf0]  ;;  %v1391_v57 = vor.u32 %v1553_v51, %v1390_v50 }
  0x1c   : > { %v1251_v58 = vor.u32 %v1516_v52, %v1248_v53  ;;  %v1255_v59 = vor.u32 %v1518_v55, %v1254_v54  ;;  %v1258_v60 = vld [vmem:[%s1884_s8 + $0x48] sm:$0xf]  ;;  %v1520_v61 = vld [vmem:[%s1884_s8 + $0x50] sm:$0xf0]  ;;  %v1519_v0 = vld [vmem:[%s1884_s8 + $0x4c] sm:$0xf] }
  0x1d   : > { %748 = vmatpush.bf16.msra.mxu0 %v1561_v12  ;;  %1681 = vmatpush.bf16.msra.mxu3 %v1561_v12  ;;  %v1402_v62 = vld [vmem:[%s1884_s8 + $0x168] sm:$0xf]  ;;  %v1556_v63 = vld [vmem:[%s1884_s8 + $0x170] sm:$0xf0]  ;;  %v1521_v3 = vld [vmem:[%s1884_s8 + $0x58] sm:$0xf0] }
  0x1e   : > { %837 = vmatpush.bf16.msra.mxu1 %v1569_v13  ;;  %v1523_v9 = vld [vmem:[%s1884_s8 + $0x68] sm:$0xf0]  ;;  %v1368_v12 = vld [vmem:[%s1884_s8 + $0x12c] sm:$0xf0]  ;;  %v1549_v24 = vld [vmem:[%s1884_s8 + $0x13c] sm:$0xf] }
  0x1f   : > { %926 = vmatpush.bf16.msra.mxu2 %v1863_v14  ;;  %v1380_v25 = vld [vmem:[%s1884_s8 + $0x144] sm:$0xf0]  ;;  %v1290_v26 = vld [vmem:[%s1884_s8 + $0x80] sm:$0xf]  ;;  %v1527_v27 = vld [vmem:[%s1884_s8 + $0x88] sm:$0xf0] }
  0x20   : > { %v1383_v29 = vor.u32 %v1549_v24, %v1380_v25  ;;  %v1291_v31 = vor.u32 %v1527_v27, %v1290_v26  ;;  %v1392_v36 = vld [vmem:[%s1884_s8 + $0x15c] sm:$0xf0]  ;;  %v1302_v38 = vld [vmem:[%s1884_s8 + $0x98] sm:$0xf]  ;;  %v1530_v39 = vld [vmem:[%s1884_s8 + $0xa0] sm:$0xf0] }
  0x21   : > { %749 = vmatpush.bf16.msra.mxu0 %v1560_v15  ;;  %1682 = vmatpush.bf16.msra.mxu3 %v1560_v15  ;;  %v1524_v15 = vld [vmem:[%s1884_s8 + $0x70] sm:$0xf0]  ;;  %v1296_v37 = vld [vmem:[%s1884_s8 + $0x9c] sm:$0xf0]  ;;  %v1303_v43 = vor.u32 %v1530_v39, %v1302_v38  ;;  %v1404_v48 = vld [vmem:[%s1884_s8 + $0x174] sm:$0xf0] }
  0x22   : > { %838 = vmatpush.bf16.msra.mxu1 %v1568_v16  ;;  %v1308_v49 = vld [vmem:[%s1884_s8 + $0xb4] sm:$0xf0]  ;;  %v1314_v50 = vld [vmem:[%s1884_s8 + $0xb0] sm:$0xf]  ;;  %v1533_v51 = vld [vmem:[%s1884_s8 + $0xb8] sm:$0xf0] }
  0x23   : > { %927 = vmatpush.bf16.msra.mxu2 %v1876_v17  ;;  %v1315_v55 = vor.u32 %v1533_v51, %v1314_v50  ;;  %v1542_v50 = vld [vmem:[%s1884_s8 + $0x100] sm:$0xf0] }
  0x25   : > { %750 = vmatpush.bf16.msra.mxu0 %v1559_v18  ;;  %1683 = vmatpush.bf16.msra.mxu3 %v1559_v18 }
  0x26   : > { %839 = vmatpush.bf16.msra.mxu1 %v1567_v19 }
  0x27   : > { %928 = vmatpush.bf16.msra.mxu2 %v1893_v20 }
  0x29   : > { %751 = vmatpush.bf16.msra.mxu0 %v1558_v21  ;;  %1684 = vmatpush.bf16.msra.mxu3 %v1558_v21  ;;  %v1526_v21 = vld [vmem:[%s1884_s8 + $0x80] sm:$0xf0] }
  0x2a   : > { %840 = vmatpush.bf16.msra.mxu1 %v1566_v22 }
  0x2b   : > { %929 = vmatpush.bf16.msra.mxu2 %v1904_v23 }
  0x2c   : > { %752 = vmatmul.bf16.vlgmr.msra.gmra.mxu0 %v1223_v32  ;;  %812 = vmatmul.bf16.vlgmr.msra.gmra.mxu3 %v1367_v33  ;;  %v1294_v32 = vld [vmem:[%s1884_s8 + $0x90] sm:$0xf]  ;;  %v1529_v33 = vld [vmem:[%s1884_s8 + $0x98] sm:$0xf0] }
  0x2d   : > { %1685 = vmatpush.bf16.msrb.mxu3 %v1797_v1  ;;  %841 = vmatmul.bf16.vlgmr.msra.gmra.mxu1 %v1227_v34  ;;  %v1260_v1 = vld [vmem:[%s1884_s8 + $0x54] sm:$0xf0]  ;;  %v1528_v34 = vld [vmem:[%s1884_s8 + $0x94] sm:$0xf]  ;;  %v1295_v40 = vor.u32 %v1529_v33, %v1294_v32 }
  0x2e   : > { %930 = vmatmul.bf16.vlgmr.msra.gmra.mxu2 %v1231_v35  ;;  %v1263_v6 = vor.u32 %v1519_v0, %v1260_v1  ;;  %v1552_v35 = vld [vmem:[%s1884_s8 + $0x154] sm:$0xf]  ;;  %v1299_v42 = vor.u32 %v1528_v34, %v1296_v37 }
  0x2f   : > { %v1395_v41 = vor.u32 %v1552_v35, %v1392_v36 }
  0x31   : > { %1686 = vmatpush.bf16.msrb.mxu3 %v1812_v4  ;;  %v1259_v4 = vor.u32 %v1520_v61, %v1258_v60  ;;  %v1548_v60 = vld [vmem:[%s1884_s8 + $0x130] sm:$0xf0]  ;;  %v1320_v61 = vld [vmem:[%s1884_s8 + $0xcc] sm:$0xf0] }
  0x35   : > { %1687 = vmatpush.bf16.msrb.mxu3 %v1827_v7 }
  0x39   : > { %1688 = vmatpush.bf16.msrb.mxu3 %v1843_v10  ;;  %v1522_v10 = vld [vmem:[%s1884_s8 + $0x64] sm:$0xf] }
  0x3c   : > { %757 = vmatmul.bf16.gmra.mxu0 %v1235_v44  ;;  %817 = vmatmul.bf16.gmra.mxu3 %v1379_v45  ;;  %v1306_v44 = vld [vmem:[%s1884_s8 + $0xa8] sm:$0xf]  ;;  %v1532_v45 = vld [vmem:[%s1884_s8 + $0xb0] sm:$0xf0] }
  0x3d   : > { %1689 = vmatpush.bf16.msrb.mxu3 %v1569_v13  ;;  %846 = vmatmul.bf16.gmra.mxu1 %v1239_v46  ;;  %v1272_v13 = vld [vmem:[%s1884_s8 + $0x6c] sm:$0xf0]  ;;  %v1531_v46 = vld [vmem:[%s1884_s8 + $0xac] sm:$0xf]  ;;  %v1307_v52 = vor.u32 %v1532_v45, %v1306_v44  ;;  %v1541_v44 = vld [vmem:[%s1884_s8 + $0xf8] sm:$0xf0] }
  0x3e   : > { %935 = vmatmul.bf16.gmra.mxu2 %v1243_v47  ;;  %v1275_v18 = vor.u32 %v1522_v10, %v1272_v13  ;;  %v1555_v47 = vld [vmem:[%s1884_s8 + $0x16c] sm:$0xf]  ;;  %v1311_v54 = vor.u32 %v1531_v46, %v1308_v49  ;;  %v1540_v45 = vld [vmem:[%s1884_s8 + $0xf4] sm:$0xf]  ;;  %v1398_v46 = vld [vmem:[%s1884_s8 + $0x158] sm:$0xf] }
  0x3f   : > { %v1407_v53 = vor.u32 %v1555_v47, %v1404_v48  ;;  %v1554_v47 = vld [vmem:[%s1884_s8 + $0x160] sm:$0xf0]  ;;  %v1344_v48 = vld [vmem:[%s1884_s8 + $0xfc] sm:$0xf0]  ;;  %v1350_v49 = vld [vmem:[%s1884_s8 + $0xf8] sm:$0xf] }
  0x41   : > { %1690 = vmatpush.bf16.msrb.mxu3 %v1568_v16 }
  0x45   : > { %1691 = vmatpush.bf16.msrb.mxu3 %v1567_v19 }
  0x49   : > { %1692 = vmatpush.bf16.msrb.mxu3 %v1566_v22  ;;  %v1525_v22 = vld [vmem:[%s1884_s8 + $0x7c] sm:$0xf] }
  0x4c   : > { %762 = vmatmul.bf16.gmra.mxu0 %v1247_v56  ;;  %822 = vmatmul.bf16.gmra.mxu3 %v1391_v57  ;;  %v1318_v56 = vld [vmem:[%s1884_s8 + $0xc0] sm:$0xf]  ;;  %v1535_v57 = vld [vmem:[%s1884_s8 + $0xc8] sm:$0xf0] }
  0x4d   : > { %1693 = vmatpush.bf16.msra.mxu3 %v1802_v2  ;;  %851 = vmatmul.bf16.gmra.mxu1 %v1251_v58  ;;  %v1266_v2 = vld [vmem:[%s1884_s8 + $0x50] sm:$0xf]  ;;  %v1534_v58 = vld [vmem:[%s1884_s8 + $0xc4] sm:$0xf]  ;;  %v1319_v0 = vor.u32 %v1535_v57, %v1318_v56  ;;  %v1399_v56 = vor.u32 %v1554_v47, %v1398_v46 }
  0x4e   : > { %940 = vmatmul.bf16.gmra.mxu2 %v1255_v59  ;;  %v1267_v7 = vor.u32 %v1521_v3, %v1266_v2  ;;  %v1374_v59 = vld [vmem:[%s1884_s8 + $0x128] sm:$0xf]  ;;  %v1323_v3 = vor.u32 %v1534_v58, %v1320_v61 }
  0x4f   : > { %v1375_v1 = vor.u32 %v1548_v60, %v1374_v59  ;;  %v1347_v59 = vor.u32 %v1540_v45, %v1344_v48  ;;  %v1351_v60 = vor.u32 %v1542_v50, %v1350_v49 }
  0x51   : > { %1694 = vmatpush.bf16.msra.mxu3 %v1817_v5  ;;  %v1403_v5 = vor.u32 %v1556_v63, %v1402_v62  ;;  %v1326_v62 = vld [vmem:[%s1884_s8 + $0xc8] sm:$0xf]  ;;  %v1536_v63 = vld [vmem:[%s1884_s8 + $0xd0] sm:$0xf0] }
  0x55   : > { %1695 = vmatpush.bf16.msra.mxu3 %v1832_v8  ;;  %v1270_v8 = vld [vmem:[%s1884_s8 + $0x60] sm:$0xf] }
  0x56   : > { %v1271_v16 = vor.u32 %v1523_v9, %v1270_v8 }
  0x59   : > { %1696 = vmatpush.bf16.msra.mxu3 %v1848_v11  ;;  %v1546_v11 = vld [vmem:[%s1884_s8 + $0x124] sm:$0xf] }
  0x5c   : > { %767 = vmatmul.bf16.gmra.mxu0 %v1259_v4  ;;  %827 = vmatmul.bf16.gmra.mxu3 %v1403_v5  ;;  %v1327_v4 = vor.u32 %v1536_v63, %v1326_v62 }
  0x5d   : > { %1697 = vmatpush.bf16.msra.mxu3 %v1863_v14  ;;  %856 = vmatmul.bf16.gmra.mxu1 %v1263_v6  ;;  %v1278_v14 = vld [vmem:[%s1884_s8 + $0x68] sm:$0xf]  ;;  %v1995_v6 = vld [vmem:[%s2134_s2] ss:$0 sm:$0xff] }
  0x5e   : > { %945 = vmatmul.bf16.gmra.mxu2 %v1267_v7  ;;  %v1279_v19 = vor.u32 %v1524_v15, %v1278_v14  ;;  %v1330_v14 = vld [vmem:[%s1884_s8 + $0xd8] sm:$0xf]  ;;  %v1538_v15 = vld [vmem:[%s1884_s8 + $0xe0] sm:$0xf0] }
  0x5f   : > { %v1331_v26 = vor.u32 %v1538_v15, %v1330_v14  ;;  %v1557_v14 = vld [vmem:[%s1884_s8 + $0x178] sm:$0xf0]  ;;  %v1356_v15 = vld [vmem:[%s1884_s8 + $0x114] sm:$0xf0] }
  0x61   : > { %1698 = vmatpush.bf16.msra.mxu3 %v1876_v17  ;;  %v1371_v17 = vor.u32 %v1546_v11, %v1368_v12 }
  0x65   : > { %1699 = vmatpush.bf16.msra.mxu3 %v1893_v20  ;;  %v1282_v20 = vld [vmem:[%s1884_s8 + $0x78] sm:$0xf] }
  0x66   : > { %v1283_v28 = vor.u32 %v1526_v21, %v1282_v20  ;;  %v1338_v20 = vld [vmem:[%s1884_s8 + $0xe0] sm:$0xf]  ;;  %v1539_v21 = vld [vmem:[%s1884_s8 + $0xe8] sm:$0xf0] }
  0x69   : > { %1700 = vmatpush.bf16.msra.mxu3 %v1904_v23  ;;  %v1284_v23 = vld [vmem:[%s1884_s8 + $0x84] sm:$0xf0] }
  0x6a   : > { %v1287_v30 = vor.u32 %v1525_v22, %v1284_v23 }
  0x6c   : > { %772 = vmatmul.bf16.gmra.mxu0 %v1271_v16  ;;  %901 = vmatmul.bf16.vlgmr.msrb.gmra.mxu3 %v1371_v17  ;;  %v1537_v16 = vld [vmem:[%s1884_s8 + $0xdc] sm:$0xf]  ;;  %v1386_v17 = vld [vmem:[%s1884_s8 + $0x140] sm:$0xf] }
  0x6d   : > { %861 = vmatmul.bf16.gmra.mxu1 %v1275_v18  ;;  %v1551_v18 = vld [vmem:[%s1884_s8 + $0x148] sm:$0xf0] }
  0x6e   : > { %950 = vmatmul.bf16.gmra.mxu2 %v1279_v19  ;;  %v1332_v19 = vld [vmem:[%s1884_s8 + $0xe4] sm:$0xf0]  ;;  %v1387_v27 = vor.u32 %v1551_v18, %v1386_v17  ;;  %v1545_v17 = vld [vmem:[%s1884_s8 + $0x118] sm:$0xf0] }
  0x7c   : > { %777 = vmatmul.bf16.gmra.mxu0 %v1283_v28  ;;  %906 = vmatmul.bf16.gmra.mxu3 %v1383_v29 }
  0x7d   : > { %866 = vmatmul.bf16.gmra.mxu1 %v1287_v30  ;;  %v1335_v30 = vor.u32 %v1537_v16, %v1332_v19  ;;  %v1362_v16 = vld [vmem:[%s1884_s8 + $0x110] sm:$0xf] }
  0x7e   : > { %955 = vmatmul.bf16.gmra.mxu2 %v1291_v31  ;;  %v1339_v31 = vor.u32 %v1539_v21, %v1338_v20 }
  0x8c   : > { %782 = vmatmul.bf16.gmra.mxu0 %v1295_v40  ;;  %911 = vmatmul.bf16.gmra.mxu3 %v1395_v41 }
  0x8d   : > { %871 = vmatmul.bf16.gmra.mxu1 %v1299_v42 }
  0x8e   : > { %960 = vmatmul.bf16.gmra.mxu2 %v1303_v43  ;;  %v1342_v43 = vld [vmem:[%s1884_s8 + $0xf0] sm:$0xf] }
  0x9c   : > { %787 = vmatmul.bf16.gmra.mxu0 %v1307_v52  ;;  %916 = vmatmul.bf16.gmra.mxu3 %v1407_v53 }
  0x9d   : > { %876 = vmatmul.bf16.gmra.mxu1 %v1311_v54 }
  0x9e   : > { %965 = vmatmul.bf16.gmra.mxu2 %v1315_v55  ;;  %v1343_v55 = vor.u32 %v1541_v44, %v1342_v43 }
  0xa9   : > { %v753_v2 = vpop.f32.mrf.mxu0 }
  0xaa   : > { %v842_v5 = vpop.f32.mrf.mxu1  ;;  %v754_v7 = vadd.f32 %v1995_v6, %v753_v2 }
  0xac   : > { %792 = vmatmul.bf16.gmra.mxu0 %v1319_v0  ;;  %990 = vmatmul.bf16.vlgmr.msra.gmra.mxu3 %v1375_v1  ;;  %v843_v12 = vadd.f32 %v842_v5, %v754_v7 }
  0xad   : > { %881 = vmatmul.bf16.gmra.mxu1 %v1323_v3 }
  0xae   : > { %970 = vmatmul.bf16.gmra.mxu2 %v1327_v4 }
  0xaf   : > { %v1998_v8 = vpop.f32.mrf.mxu3 }
  0xb1   : > { %v931_v9 = vpop.f32.mrf.mxu2  ;;  %v755_v10 = vpop.f32.mrf.mxu0 }
  0xb2   : > { %v844_v11 = vpop.f32.mrf.mxu1  ;;  %v756_v13 = vadd.f32 %v1995_v6, %v755_v10  ;;  %v932_v22 = vadd.f32 %v931_v9, %v843_v12  ;;  %v1354_v10 = vld [vmem:[%s1884_s8 + $0x108] sm:$0xf]  ;;  %v1543_v12 = vld [vmem:[%s1884_s8 + $0x10c] sm:$0xf] }
  0xb4   : > { %v845_v24 = vadd.f32 %v844_v11, %v756_v13  ;;  %v1011_v33 = vmax.f32 %v932_v22, 0.0  ;;  %v1544_v11 = vld [vmem:[%s1884_s8 + $0x110] sm:$0xf0]  ;;  %v1410_v13 = vld [vmem:[%s1884_s8 + $0x170] sm:$0xf] }
  0xb5   : > { %v1355_v22 = vor.u32 %v1544_v11, %v1354_v10 }
  0xb7   : > { %v2009_v25 = vpop.f32.mrf.mxu3 }
  0xb9   : > { %v933_v23 = vpop.f32.mrf.mxu2  ;;  %v758_v29 = vpop.f32.mrf.mxu0 }
  0xba   : > { %v934_v28 = vadd.f32 %v933_v23, %v845_v24  ;;  %v847_v32 = vpop.f32.mrf.mxu1  ;;  %v759_v36 = vadd.f32 %v1995_v6, %v758_v29  ;;  %v1411_v24 = vor.u32 %v1557_v14, %v1410_v13 }
  0xbc   : > { %v1012_v34 = vmax.f32 %v934_v28, 0.0  ;;  %797 = vmatmul.bf16.gmra.mxu0 %v1331_v26  ;;  %995 = vmatmul.bf16.gmra.mxu3 %v1387_v27  ;;  %v848_v41 = vadd.f32 %v847_v32, %v759_v36  ;;  %v1359_v27 = vor.u32 %v1543_v12, %v1356_v15  ;;  %v1363_v28 = vor.u32 %v1545_v17, %v1362_v16 }
  0xbd   : > { %886 = vmatmul.bf16.gmra.mxu1 %v1335_v30 }
  0xbe   : > { %v1585_v35 = vpack.c.bf16 %v1012_v34, %v1011_v33  ;;  %975 = vmatmul.bf16.gmra.mxu2 %v1339_v31 }
  0xbf   : > { %v2019_v37 = vpop.f32.mrf.mxu3 }
  0xc0   : > { %1586 = vst [vmem:[%s2015_s27] sm:$0xff] %v1585_v35  }
  0xc1   : > { %v936_v38 = vpop.f32.mrf.mxu2  ;;  %v760_v39 = vpop.f32.mrf.mxu0 }
  0xc2   : > { %v849_v40 = vpop.f32.mrf.mxu1  ;;  %v761_v42 = vadd.f32 %v1995_v6, %v760_v39  ;;  %v937_v51 = vadd.f32 %v936_v38, %v848_v41 }
  0xc4   : > { %v850_v52 = vadd.f32 %v849_v40, %v761_v42  ;;  %v1013_v62 = vmax.f32 %v937_v51, 0.0  ;;  %v814_v51 = vadd.f32 %v1995_v6, %v1998_v8 }
  0xc7   : > { %v2030_v53 = vpop.f32.mrf.mxu3 }
  0xc9   : > { %v938_v54 = vpop.f32.mrf.mxu2  ;;  %v763_v58 = vpop.f32.mrf.mxu0 }
  0xca   : > { %v939_v57 = vadd.f32 %v938_v54, %v850_v52  ;;  %v852_v61 = vpop.f32.mrf.mxu1  ;;  %v764_v1 = vadd.f32 %v1995_v6, %v763_v58 }
  0xcc   : > { %v1014_v63 = vmax.f32 %v939_v57, 0.0  ;;  %802 = vmatmul.bf16.gmra.mxu0 %v1343_v55  ;;  %1000 = vmatmul.bf16.gmra.mxu3 %v1399_v56  ;;  %v853_v7 = vadd.f32 %v852_v61, %v764_v1 }
  0xcd   : > { %891 = vmatmul.bf16.gmra.mxu1 %v1347_v59 }
  0xce   : > { %v1590_v0 = vpack.c.bf16 %v1014_v63, %v1013_v62  ;;  %980 = vmatmul.bf16.gmra.mxu2 %v1351_v60 }
  0xcf   : > { %v2034_v2 = vpop.f32.mrf.mxu3 }
  0xd0   : > { %1662 = vst [vmem:[%s2015_s27 + $0x8] sm:$0xff] %v1590_v0  }
  0xd1   : > { %v941_v3 = vpop.f32.mrf.mxu2  ;;  %v765_v4 = vpop.f32.mrf.mxu0 }
  0xd2   : > { %v854_v5 = vpop.f32.mrf.mxu1  ;;  %v766_v9 = vadd.f32 %v1995_v6, %v765_v4  ;;  %v942_v18 = vadd.f32 %v941_v3, %v853_v7 }
  0xd4   : > { %v855_v19 = vadd.f32 %v854_v5, %v766_v9  ;;  %v1015_v30 = vmax.f32 %v942_v18, 0.0  ;;  %v819_v9 = vadd.f32 %v1995_v6, %v2019_v37 }
  0xd7   : > { %v2045_v20 = vpop.f32.mrf.mxu3 }
  0xd9   : > { %v943_v21 = vpop.f32.mrf.mxu2  ;;  %v768_v26 = vpop.f32.mrf.mxu0 }
  0xda   : > { %v944_v23 = vadd.f32 %v943_v21, %v855_v19  ;;  %v857_v29 = vpop.f32.mrf.mxu1  ;;  %v769_v33 = vadd.f32 %v1995_v6, %v768_v26 }
  0xdc   : > { %v1016_v31 = vmax.f32 %v944_v23, 0.0  ;;  %807 = vmatmul.bf16.gmra.mxu0 %v1355_v22  ;;  %1005 = vmatmul.bf16.gmra.mxu3 %v1411_v24  ;;  %v858_v39 = vadd.f32 %v857_v29, %v769_v33  ;;  %v824_v29 = vadd.f32 %v1995_v6, %v2034_v2 }
  0xdd   : > { %896 = vmatmul.bf16.gmra.mxu1 %v1359_v27 }
  0xde   : > { %v1595_v32 = vpack.c.bf16 %v1016_v31, %v1015_v30  ;;  %985 = vmatmul.bf16.gmra.mxu2 %v1363_v28 }
  0xdf   : > { %v2049_v34 = vpop.f32.mrf.mxu3 }
  0xe0   : > { %1663 = vst [vmem:[%s2015_s27 + $0x10] sm:$0xff] %v1595_v32  }
  0xe1   : > { %v946_v35 = vpop.f32.mrf.mxu2  ;;  %v770_v36 = vpop.f32.mrf.mxu0 }
  0xe2   : > { %v859_v38 = vpop.f32.mrf.mxu1  ;;  %v771_v40 = vadd.f32 %v1995_v6, %v770_v36  ;;  %v947_v41 = vadd.f32 %v946_v35, %v858_v39 }
  0xe4   : > { %v860_v42 = vadd.f32 %v859_v38, %v771_v40  ;;  %v1017_v48 = vmax.f32 %v947_v41, 0.0 }
  0xe7   : > { %v2052_v43 = vpop.f32.mrf.mxu3 }
  0xe9   : > { %v948_v44 = vpop.f32.mrf.mxu2  ;;  %v773_v46 = vpop.f32.mrf.mxu0 }
  0xea   : > { %v949_v45 = vadd.f32 %v948_v44, %v860_v42  ;;  %v862_v47 = vpop.f32.mrf.mxu1  ;;  %v774_v52 = vadd.f32 %v1995_v6, %v773_v46 }
  0xec   : > { %v1018_v49 = vmax.f32 %v949_v45, 0.0  ;;  %v863_v59 = vadd.f32 %v862_v47, %v774_v52 }
  0xee   : > { %v1600_v50 = vpack.c.bf16 %v1018_v49, %v1017_v48 }
  0xef   : > { %v902_v54 = vpop.f32.mrf.mxu3 }
  0xf0   : > { %1664 = vst [vmem:[%s2015_s27 + $0x18] sm:$0xff] %v1600_v50   ;;  %v2058_v55 = vadd.f32 %v902_v54, %v814_v51  ;;  %v829_v50 = vadd.f32 %v1995_v6, %v2049_v34 }
  0xf1   : > { %v951_v56 = vpop.f32.mrf.mxu2  ;;  %v775_v57 = vpop.f32.mrf.mxu0 }
  0xf2   : > { %v864_v58 = vpop.f32.mrf.mxu1  ;;  %v776_v60 = vadd.f32 %v1995_v6, %v775_v57  ;;  %v952_v61 = vadd.f32 %v951_v56, %v863_v59 }
  0xf4   : > { %v865_v62 = vadd.f32 %v864_v58, %v776_v60  ;;  %v1019_v4 = vmax.f32 %v952_v61, 0.0 }
  0xf7   : > { %v2061_v63 = vpop.f32.mrf.mxu3 }
  0xf9   : > { %v953_v0 = vpop.f32.mrf.mxu2  ;;  %v778_v8 = vpop.f32.mrf.mxu0 }
  0xfa   : > { %v954_v1 = vadd.f32 %v953_v0, %v865_v62  ;;  %v867_v3 = vpop.f32.mrf.mxu1  ;;  %v779_v10 = vadd.f32 %v1995_v6, %v778_v8 }
  0xfc   : > { %v1020_v5 = vmax.f32 %v954_v1, 0.0  ;;  %v868_v16 = vadd.f32 %v867_v3, %v779_v10 }
  0xfe   : > { %v1605_v7 = vpack.c.bf16 %v1020_v5, %v1019_v4 }
  0xff   : > { %v907_v11 = vpop.f32.mrf.mxu3 }
 0x100   : > { %1665 = vst [vmem:[%s2015_s27 + $0x20] sm:$0xff] %v1605_v7   ;;  %v2067_v12 = vadd.f32 %v907_v11, %v819_v9 }
 0x101   : > { %v956_v13 = vpop.f32.mrf.mxu2  ;;  %v780_v14 = vpop.f32.mrf.mxu0 }
 0x102   : > { %v869_v15 = vpop.f32.mrf.mxu1  ;;  %v781_v17 = vadd.f32 %v1995_v6, %v780_v14  ;;  %v957_v18 = vadd.f32 %v956_v13, %v868_v16 }
 0x104   : > { %v870_v19 = vadd.f32 %v869_v15, %v781_v17  ;;  %v1021_v26 = vmax.f32 %v957_v18, 0.0  ;;  %v816_v17 = vadd.f32 %v1995_v6, %v2009_v25 }
 0x106   : > { %v905_v18 = vadd.f32 %v2061_v63, %v816_v17 }
 0x107   : > { %v2070_v21 = vpop.f32.mrf.mxu3 }
 0x109   : > { %v958_v22 = vpop.f32.mrf.mxu2  ;;  %v783_v37 = vpop.f32.mrf.mxu0 }
 0x10a   : > { %v959_v24 = vadd.f32 %v958_v22, %v870_v19  ;;  %v872_v23 = vpop.f32.mrf.mxu1  ;;  %v784_v30 = vadd.f32 %v1995_v6, %v783_v37 }
 0x10c   : > { %v1022_v27 = vmax.f32 %v959_v24, 0.0  ;;  %v873_v38 = vadd.f32 %v872_v23, %v784_v30 }
 0x10e   : > { %v1610_v28 = vpack.c.bf16 %v1022_v27, %v1021_v26 }
 0x10f   : > { %v912_v31 = vpop.f32.mrf.mxu3 }
 0x110   : > { %1666 = vst [vmem:[%s2015_s27 + $0x28] sm:$0xff] %v1610_v28   ;;  %v2076_v32 = vadd.f32 %v912_v31, %v824_v29 }
 0x111   : > { %v961_v33 = vpop.f32.mrf.mxu2  ;;  %v785_v35 = vpop.f32.mrf.mxu0 }
 0x112   : > { %v874_v36 = vpop.f32.mrf.mxu1  ;;  %v786_v39 = vadd.f32 %v1995_v6, %v785_v35  ;;  %v962_v40 = vadd.f32 %v961_v33, %v873_v38 }
 0x114   : > { %v875_v41 = vadd.f32 %v874_v36, %v786_v39  ;;  %v1023_v47 = vmax.f32 %v962_v40, 0.0 }
 0x117   : > { %v2079_v42 = vpop.f32.mrf.mxu3 }
 0x119   : > { %v963_v44 = vpop.f32.mrf.mxu2  ;;  %v788_v2 = vpop.f32.mrf.mxu0 }
 0x11a   : > { %v964_v45 = vadd.f32 %v963_v44, %v875_v41  ;;  %v877_v46 = vpop.f32.mrf.mxu1  ;;  %v789_v51 = vadd.f32 %v1995_v6, %v788_v2 }
 0x11c   : > { %v1024_v48 = vmax.f32 %v964_v45, 0.0  ;;  %v878_v59 = vadd.f32 %v877_v46, %v789_v51  ;;  %v821_v45 = vadd.f32 %v1995_v6, %v2030_v53 }
 0x11e   : > { %v1615_v49 = vpack.c.bf16 %v1024_v48, %v1023_v47  ;;  %v910_v2 = vadd.f32 %v2070_v21, %v821_v45 }
 0x11f   : > { %v917_v52 = vpop.f32.mrf.mxu3 }
 0x120   : > { %1667 = vst [vmem:[%s2015_s27 + $0x30] sm:$0xff] %v1615_v49   ;;  %v2085_v54 = vadd.f32 %v917_v52, %v829_v50 }
 0x121   : > { %v966_v56 = vpop.f32.mrf.mxu2  ;;  %v790_v57 = vpop.f32.mrf.mxu0 }
 0x122   : > { %v879_v58 = vpop.f32.mrf.mxu1  ;;  %v791_v60 = vadd.f32 %v1995_v6, %v790_v57  ;;  %v967_v61 = vadd.f32 %v966_v56, %v878_v59 }
 0x124   : > { %v880_v62 = vadd.f32 %v879_v58, %v791_v60  ;;  %v1025_v4 = vmax.f32 %v967_v61, 0.0 }
 0x127   : > { %v2088_v0 = vpop.f32.mrf.mxu3 }
 0x129   : > { %v968_v1 = vpop.f32.mrf.mxu2  ;;  %v793_v34 = vpop.f32.mrf.mxu0 }
 0x12a   : > { %v969_v8 = vadd.f32 %v968_v1, %v880_v62  ;;  %v882_v3 = vpop.f32.mrf.mxu1  ;;  %v794_v9 = vadd.f32 %v1995_v6, %v793_v34 }
 0x12c   : > { %v1026_v5 = vmax.f32 %v969_v8, 0.0  ;;  %v883_v15 = vadd.f32 %v882_v3, %v794_v9 }
 0x12e   : > { %v1620_v7 = vpack.c.bf16 %v1026_v5, %v1025_v4  ;;  %v826_v5 = vadd.f32 %v1995_v6, %v2045_v20 }
 0x12f   : > { %v991_v10 = vpop.f32.mrf.mxu3 }
 0x130   : > { %1668 = vst [vmem:[%s2015_s27 + $0x38] sm:$0xff] %v1620_v7   ;;  %v992_v19 = vadd.f32 %v991_v10, %v2058_v55  ;;  %v915_v7 = vadd.f32 %v2079_v42, %v826_v5 }
 0x131   : > { %v971_v11 = vpop.f32.mrf.mxu2  ;;  %v795_v13 = vpop.f32.mrf.mxu0 }
 0x132   : > { %v884_v14 = vpop.f32.mrf.mxu1  ;;  %v796_v16 = vadd.f32 %v1995_v6, %v795_v13  ;;  %v972_v22 = vadd.f32 %v971_v11, %v883_v15  ;;  %v1035_v29 = vmax.f32 %v992_v19, 0.0 }
 0x134   : > { %v885_v24 = vadd.f32 %v884_v14, %v796_v16  ;;  %v1027_v33 = vmax.f32 %v972_v22, 0.0 }
 0x137   : > { %v993_v37 = vpop.f32.mrf.mxu3 }
 0x138   : > { %v994_v26 = vadd.f32 %v993_v37, %v905_v18 }
 0x139   : > { %v973_v23 = vpop.f32.mrf.mxu2  ;;  %v798_v28 = vpop.f32.mrf.mxu0 }
 0x13a   : > { %v974_v27 = vadd.f32 %v973_v23, %v885_v24  ;;  %v1036_v30 = vmax.f32 %v994_v26, 0.0  ;;  %v887_v31 = vpop.f32.mrf.mxu1  ;;  %v799_v63 = vadd.f32 %v1995_v6, %v798_v28 }
 0x13c   : > { %v1028_v35 = vmax.f32 %v974_v27, 0.0  ;;  %v1645_v36 = vpack.c.bf16 %v1036_v30, %v1035_v29  ;;  %v888_v41 = vadd.f32 %v887_v31, %v799_v63  ;;  %v831_v30 = vadd.f32 %v1995_v6, %v2052_v43 }
 0x13e   : > { %v1625_v25 = vpack.c.bf16 %v1028_v35, %v1027_v33  ;;  %1673 = vst [vmem:[%s2015_s27 + $0x60] sm:$0xff] %v1645_v36   ;;  %v920_v31 = vadd.f32 %v2088_v0, %v831_v30 }
 0x13f   : > { %v996_v55 = vpop.f32.mrf.mxu3 }
 0x140   : > { %1669 = vst [vmem:[%s2015_s27 + $0x40] sm:$0xff] %v1625_v25   ;;  %v997_v46 = vadd.f32 %v996_v55, %v2067_v12 }
 0x141   : > { %v976_v38 = vpop.f32.mrf.mxu2  ;;  %v800_v39 = vpop.f32.mrf.mxu0 }
 0x142   : > { %v889_v40 = vpop.f32.mrf.mxu1  ;;  %v801_v44 = vadd.f32 %v1995_v6, %v800_v39  ;;  %v977_v47 = vadd.f32 %v976_v38, %v888_v41  ;;  %v1037_v57 = vmax.f32 %v997_v46, 0.0 }
 0x144   : > { %v890_v48 = vadd.f32 %v889_v40, %v801_v44  ;;  %v1029_v60 = vmax.f32 %v977_v47, 0.0 }
 0x147   : > { %v998_v49 = vpop.f32.mrf.mxu3 }
 0x148   : > { %v999_v51 = vadd.f32 %v998_v49, %v910_v2 }
 0x149   : > { %v978_v50 = vpop.f32.mrf.mxu2  ;;  %v803_v56 = vpop.f32.mrf.mxu0 }
 0x14a   : > { %v979_v52 = vadd.f32 %v978_v50, %v890_v48  ;;  %v1038_v58 = vmax.f32 %v999_v51, 0.0  ;;  %v892_v59 = vpop.f32.mrf.mxu1  ;;  %v804_v21 = vadd.f32 %v1995_v6, %v803_v56 }
 0x14c   : > { %v1030_v61 = vmax.f32 %v979_v52, 0.0  ;;  %v1650_v62 = vpack.c.bf16 %v1038_v58, %v1037_v57  ;;  %v893_v3 = vadd.f32 %v892_v59, %v804_v21 }
 0x14e   : > { %v1630_v53 = vpack.c.bf16 %v1030_v61, %v1029_v60  ;;  %1674 = vst [vmem:[%s2015_s27 + $0x68] sm:$0xff] %v1650_v62  }
 0x14f   : > { %v1001_v12 = vpop.f32.mrf.mxu3 }
 0x150   : > { %1670 = vst [vmem:[%s2015_s27 + $0x48] sm:$0xff] %v1630_v53   ;;  %v1002_v9 = vadd.f32 %v1001_v12, %v2076_v32 }
 0x151   : > { %v981_v1 = vpop.f32.mrf.mxu2  ;;  %v805_v8 = vpop.f32.mrf.mxu0 }
 0x152   : > { %v894_v34 = vpop.f32.mrf.mxu1  ;;  %v806_v4 = vadd.f32 %v1995_v6, %v805_v8  ;;  %v982_v10 = vadd.f32 %v981_v1, %v893_v3  ;;  %v1039_v18 = vmax.f32 %v1002_v9, 0.0 }
 0x154   : > { %v895_v11 = vadd.f32 %v894_v34, %v806_v4  ;;  %v1031_v22 = vmax.f32 %v982_v10, 0.0 }
 0x157   : > { %v1003_v13 = vpop.f32.mrf.mxu3 }
 0x158   : > { %v1004_v15 = vadd.f32 %v1003_v13, %v915_v7 }
 0x159   : > { %v983_v14 = vpop.f32.mrf.mxu2  ;;  %v808_v17 = vpop.f32.mrf.mxu0 }
 0x15a   : > { %v984_v16 = vadd.f32 %v983_v14, %v895_v11  ;;  %v1040_v19 = vmax.f32 %v1004_v15, 0.0  ;;  %v897_v23 = vpop.f32.mrf.mxu1  ;;  %v809_v42 = vadd.f32 %v1995_v6, %v808_v17 }
 0x15c   : > { %v1032_v24 = vmax.f32 %v984_v16, 0.0  ;;  %v1655_v37 = vpack.c.bf16 %v1040_v19, %v1039_v18  ;;  %v898_v28 = vadd.f32 %v897_v23, %v809_v42 }
 0x15e   : > { %v1635_v20 = vpack.c.bf16 %v1032_v24, %v1031_v22  ;;  %1675 = vst [vmem:[%s2015_s27 + $0x70] sm:$0xff] %v1655_v37  }
 0x15f   : > { %v1006_v32 = vpop.f32.mrf.mxu3 }
 0x160   : > { %1671 = vst [vmem:[%s2015_s27 + $0x50] sm:$0xff] %v1635_v20   ;;  %v1007_v33 = vadd.f32 %v1006_v32, %v2085_v54 }
 0x161   : > { %v986_v26 = vpop.f32.mrf.mxu2  ;;  %v810_v27 = vpop.f32.mrf.mxu0 }
 0x162   : > { %v811_v29 = vadd.f32 %v1995_v6, %v810_v27  ;;  %v899_v35 = vpop.f32.mrf.mxu1  ;;  %v987_v36 = vadd.f32 %v986_v26, %v898_v28  ;;  %v1041_v40 = vmax.f32 %v1007_v33, 0.0 }
 0x164   : > { %v900_v25 = vadd.f32 %v899_v35, %v811_v29  ;;  %v1033_v44 = vmax.f32 %v987_v36, 0.0 }
 0x167   : > { %v1008_v63 = vpop.f32.mrf.mxu3 }
 0x168   : > { %v1009_v38 = vadd.f32 %v1008_v63, %v920_v31 }
 0x169   : > { %v988_v55 = vpop.f32.mrf.mxu2 }
 0x16a   : > { %v989_v39 = vadd.f32 %v988_v55, %v900_v25  ;;  %v1042_v41 = vmax.f32 %v1009_v38, 0.0 }
 0x16c   : > { %v1034_v45 = vmax.f32 %v989_v39, 0.0  ;;  %v1660_v2 = vpack.c.bf16 %v1042_v41, %v1041_v40 }
 0x16e   : > { %v1640_v46 = vpack.c.bf16 %v1034_v45, %v1033_v44  ;;  %1676 = vst [vmem:[%s2015_s27 + $0x78] sm:$0xff] %v1660_v2  }
 0x170   : > { %1672 = vst [vmem:[%s2015_s27 + $0x58] sm:$0xff] %v1640_v46  }
 0x171 PF: > { %s13_s14 = sadd.s32 1, %s1749_s14   ;;  %s2136_s12 = smov %s1745_s13 }
 0x172   : > { %p10_p5 = scmp.ge.s32.totalorder %s13_s14, 4   ;;  %s2137_s13 = smov %s2139_s15 }
 0x174   :  { %12 = sbr.rel (!%p10_p5) target bundleno = 2 (0x2), region = 68 }

// kernel: base_regressor_forward.14
= control target key start
LH: loop header
LB: loop body
LE: loop exit
PB: predicated region body
PF: predicated region fallthrough
CT: control target
= control target key end

     0   :  { %s1068_s12 = smov 0   ;;  %s1070_s13 = smov 0   ;;  %s1200_s0 = inlined_call_operand.vmem [shape: bf16[128,640], index: 0, kind: input, shape index: {}]   ;;  %s1201_s1 = inlined_call_operand.vmem [shape: bf16[640,128], index: 1, kind: input, shape index: {}]   ;;  %s1202_s2 = inlined_call_operand.vmem [shape: f32[1,128], index: 2, kind: input, shape index: {}]   ;;  %s1203_s3 = inlined_call_operand.vmem [shape: bf16[128,128], index: 3, kind: output, shape index: {}]  }
   0x1   :  { %s1072_s14 = smov 0   ;;  %s1074_s15 = smov 0  }
   0x2   :  { %s1076_s16 = smov 0  }
   0x3 LB: > { %s25_s17 = sadd.s32 1, %s1041_s15  ;;  %p48_p1 = scmp.ne.s32.totalorder %s1033_s13, %s1029_s12  ;;  %s1045_s16 = sphi %s1076_s16, %s13_s16   ;;  %s1041_s15 = sphi %s1074_s15, %s1207_s15   ;;  %s1037_s14 = sphi %s1072_s14, %s1206_s14   ;;  %s1033_s13 = sphi %s1070_s13, %s1205_s13   ;;  %s1029_s12 = sphi %s1068_s12, %s1204_s12  }
   0x4   : > { %p26_p0 = scmp.ge.s32.totalorder %s25_s17, 5  ;;  %p49_p2 = scmp.eq.s32.totalorder %s1045_s16, 0 }
   0x5   : > { %s41_s19 = sadd.s32 1, %s1033_s13  ;;  %p801_p5 = scmp.ge.s32.totalorder %s1045_s16, 5 }
   0x6   : > { %s1209_s17 = smov (%p26_p0, %s25_s17), 0  ;;  %p50_p3 = por %p49_p2, %p48_p1 }
   0x7   : > { %s37_s18 = ssub.s32 %s1041_s15, %s1209_s17  ;;  %162 = sbr.rel (%p801_p5) target bundleno = 32 (0x20), region = 20 }
   0x8   : > { %p39_p4 = scmp.eq.s32.totalorder %s37_s18, 0 }
   0xa   : > { %s1103_s20 = scalar_select %p39_p4, %s1033_s13, %s41_s19  }
   0xc   : > { %165 = sbr.rel (!%p50_p3) target bundleno = 32 (0x20), region = 24  ;;  %s167_s21 = sand.u32 (%p50_p3), 1, %s1033_s13  }
   0xd   : > { %s803_s22 = sshll.u32 (%p50_p3), %s1041_s15, 2  ;;  %s802_s23 = sshll.u32 (%p50_p3), %s167_s21, 6 }
   0xe   : > { %s1111_s26 = scalar_lea.vmem (%p50_p3), %s1200_s0, %s803_s22  ;;  %s169_s27 = scalar_lea.vmem (%p50_p3), [#allocation3], %s802_s23 }
   0xf   : > { %v191_v0 = vld [vmem:[%s1111_s26] sm:$0xf] (%p50_p3)  ;;  %v193_v1 = vld [vmem:[%s1111_s26 + $0x14] sm:$0xf] (%p50_p3)  ;;  %v195_v2 = vld [vmem:[%s1111_s26 + $0x28] sm:$0xf] (%p50_p3) }
  0x10   : > { %192 = vst [vmem:[%s169_s27] sm:$0xf] (%p50_p3), %v191_v0  ;;  %v197_v3 = vld [vmem:[%s1111_s26 + $0x3c] sm:$0xf] (%p50_p3)  ;;  %v199_v4 = vld [vmem:[%s1111_s26 + $0x50] sm:$0xf] (%p50_p3) }
  0x11   : > { %194 = vst [vmem:[%s169_s27 + $0x4] sm:$0xf] %v193_v1  ;;  %v201_v5 = vld [vmem:[%s1111_s26 + $0x64] sm:$0xf]  ;;  %v203_v6 = vld [vmem:[%s1111_s26 + $0x78] sm:$0xf] }
  0x12   : > { %196 = vst [vmem:[%s169_s27 + $0x8] sm:$0xf] %v195_v2  ;;  %v205_v7 = vld [vmem:[%s1111_s26 + $0x8c] sm:$0xf]  ;;  %v207_v8 = vld [vmem:[%s1111_s26 + $0xa0] sm:$0xf] }
  0x13   : > { %198 = vst [vmem:[%s169_s27 + $0xc] sm:$0xf] %v197_v3  ;;  %v209_v9 = vld [vmem:[%s1111_s26 + $0xb4] sm:$0xf]  ;;  %v211_v10 = vld [vmem:[%s1111_s26 + $0xc8] sm:$0xf] }
  0x14   : > { %200 = vst [vmem:[%s169_s27 + $0x10] sm:$0xf] %v199_v4  ;;  %v213_v11 = vld [vmem:[%s1111_s26 + $0xdc] sm:$0xf]  ;;  %v215_v12 = vld [vmem:[%s1111_s26 + $0xf0] sm:$0xf] }
  0x15   : > { %202 = vst [vmem:[%s169_s27 + $0x14] sm:$0xf] %v201_v5  ;;  %v217_v13 = vld [vmem:[%s1111_s26 + $0x104] sm:$0xf]  ;;  %v219_v14 = vld [vmem:[%s1111_s26 + $0x118] sm:$0xf] }
  0x16   : > { %204 = vst [vmem:[%s169_s27 + $0x18] sm:$0xf] %v203_v6  ;;  %v221_v15 = vld [vmem:[%s1111_s26 + $0x12c] sm:$0xf] }
  0x17   : > { %206 = vst [vmem:[%s169_s27 + $0x1c] sm:$0xf] %v205_v7 }
  0x18   : > { %208 = vst [vmem:[%s169_s27 + $0x20] sm:$0xf] %v207_v8 }
  0x19   : > { %210 = vst [vmem:[%s169_s27 + $0x24] sm:$0xf] %v209_v9 }
  0x1a   : > { %212 = vst [vmem:[%s169_s27 + $0x28] sm:$0xf] %v211_v10 }
  0x1b   : > { %214 = vst [vmem:[%s169_s27 + $0x2c] sm:$0xf] %v213_v11 }
  0x1c   : > { %216 = vst [vmem:[%s169_s27 + $0x30] sm:$0xf] %v215_v12 }
  0x1d   : > { %218 = vst [vmem:[%s169_s27 + $0x34] sm:$0xf] %v217_v13 }
  0x1e   : > { %220 = vst [vmem:[%s169_s27 + $0x38] sm:$0xf] %v219_v14 }
  0x1f   : > { %222 = vst [vmem:[%s169_s27 + $0x3c] sm:$0xf] %v221_v15 }
  0x20 PF: > { %p804_p6 = scmp.ge.s32.totalorder %s1045_s16, 1  ;;  %p289_p7 = scmp.lt.s32.totalorder %s1045_s16, 6 }
  0x22   : > { %p290_p8 = pnand %p804_p6, %p289_p7 }
  0x23   : > { %s296_s28 = sand.u32 (!%p290_p8), 1, %s1029_s12   ;;  %s806_s29 = sshll.u32 (!%p290_p8), %s1037_s14, 4 }
  0x24   : > { %293 = sbr.rel (%p290_p8) target bundleno = 272 (0x110), region = 69  ;;  %s805_s30 = sshll.u32 (!%p290_p8), %s296_s28, 6 }
  0x25   : > { %p335_p9 = scmp.lt.s32.totalorder (!%p290_p8), %s806_s29, 79  ;;  %s1138_s8 = scalar_lea.vmem (!%p290_p8), [#allocation3], %s805_s30 }
  0x26   : > { %p808_p10 = scmp.ne.s32.totalorder (!%p290_p8), %s1037_s14, 0 }
  0x29   : > { %s1211_s29 = smov (!%p335_p9, %s806_s29), 79  ;;  %358 = sbr.rel (%p808_p10) target bundleno = 63 (0x3f), region = 77 }
  0x2a   : > { %s807_s4 = sshll.u32 %s1211_s29, 2 }
  0x2b   : > { %s1136_s7 = scalar_lea.vmem %s1201_s1, %s807_s4 }
  0x2e   : > { %v1047_v16 = vmov 0.0  }
  0x2f   : > { %359 = vst [vmem:[#allocation2 + $0x30] sm:$0xff] %v1047_v16 }
  0x30   : > { %360 = vst [vmem:[#allocation2] sm:$0xff] %v1047_v16 }
  0x31   : > { %361 = vst [vmem:[#allocation2 + $0x58] sm:$0xff] %v1047_v16 }
  0x32   : > { %362 = vst [vmem:[#allocation2 + $0x18] sm:$0xff] %v1047_v16 }
  0x33   : > { %363 = vst [vmem:[#allocation2 + $0x50] sm:$0xff] %v1047_v16 }
  0x34   : > { %364 = vst [vmem:[#allocation2 + $0x68] sm:$0xff] %v1047_v16 }
  0x35   : > { %365 = vst [vmem:[#allocation2 + $0x8] sm:$0xff] %v1047_v16 }
  0x36   : > { %366 = vst [vmem:[#allocation2 + $0x48] sm:$0xff] %v1047_v16 }
  0x37   : > { %367 = vst [vmem:[#allocation2 + $0x40] sm:$0xff] %v1047_v16 }
  0x38   : > { %368 = vst [vmem:[#allocation2 + $0x20] sm:$0xff] %v1047_v16 }
  0x39   : > { %369 = vst [vmem:[#allocation2 + $0x10] sm:$0xff] %v1047_v16 }
  0x3a   : > { %370 = vst [vmem:[#allocation2 + $0x38] sm:$0xff] %v1047_v16 }
  0x3b   : > { %371 = vst [vmem:[#allocation2 + $0x60] sm:$0xff] %v1047_v16 }
  0x3c   : > { %372 = vst [vmem:[#allocation2 + $0x70] sm:$0xff] %v1047_v16 }
  0x3d   : > { %373 = vst [vmem:[#allocation2 + $0x78] sm:$0xff] %v1047_v16 }
  0x3e   : > { %374 = vst [vmem:[#allocation2 + $0x28] sm:$0xff] %v1047_v16 }
  0x3f PF: > { %v893_v17 = vld [vmem:[%s1136_s7 + $0x38] sm:$0xff]  ;;  %v892_v18 = vld [vmem:[%s1136_s7 + $0x30] sm:$0xff]  ;;  %v891_v19 = vld [vmem:[%s1136_s7 + $0x28] sm:$0xff]  ;;  %p873_p11 = scmp.ne.s32.totalorder %s1037_s14, 4 }
  0x40   : > { %519 = vmatpush.bf16.msra.mxu0 %v893_v17  ;;  %941 = vmatpush.bf16.msra.mxu1 %v893_v17  ;;  %v890_v20 = vld [vmem:[%s1136_s7 + $0x20] sm:$0xff]  ;;  %v889_v21 = vld [vmem:[%s1136_s7 + $0x18] sm:$0xff]  ;;  %v888_v22 = vld [vmem:[%s1136_s7 + $0x10] sm:$0xff] }
  0x41   : > { %942 = vmatpush.bf16.msra.mxu2 %v893_v17  ;;  %943 = vmatpush.bf16.msra.mxu3 %v893_v17  ;;  %v887_v23 = vld [vmem:[%s1136_s7 + $0x8] sm:$0xff]  ;;  %v886_v24 = vld [vmem:[%s1136_s7] sm:$0xff]  ;;  %v880_v26 = vld [vmem:[%s1138_s8 + $0x10] sm:$0xff] }
  0x42   : > { %v878_v25 = vld [vmem:[%s1138_s8] sm:$0xff]  ;;  %v884_v28 = vld [vmem:[%s1138_s8 + $0x30] sm:$0xff]  ;;  %v879_v29 = vld [vmem:[%s1138_s8 + $0x8] sm:$0xff] }
  0x43   : > { %v882_v27 = vld [vmem:[%s1138_s8 + $0x20] sm:$0xff]  ;;  %v881_v30 = vld [vmem:[%s1138_s8 + $0x18] sm:$0xff]  ;;  %v883_v31 = vld [vmem:[%s1138_s8 + $0x28] sm:$0xff] }
  0x44   : > { %520 = vmatpush.bf16.msra.mxu0 %v892_v18  ;;  %944 = vmatpush.bf16.msra.mxu1 %v892_v18  ;;  %v885_v32 = vld [vmem:[%s1138_s8 + $0x38] sm:$0xff]  ;;  %v375_v33 = vld [vmem:[#allocation2 + $0x30] sm:$0xff]  ;;  %v383_v39 = vld [vmem:[#allocation2 + $0x40] sm:$0xff] }
  0x45   : > { %945 = vmatpush.bf16.msra.mxu2 %v892_v18  ;;  %946 = vmatpush.bf16.msra.mxu3 %v892_v18  ;;  %v379_v34 = vld [vmem:[#allocation2 + $0x50] sm:$0xff]  ;;  %v387_v40 = vld [vmem:[#allocation2 + $0x60] sm:$0xff]  ;;  %v380_v42 = vld [vmem:[#allocation2 + $0x68] sm:$0xff] }
  0x46   : > { %v376_v41 = vld [vmem:[#allocation2] sm:$0xff]  ;;  %v388_v52 = vld [vmem:[#allocation2 + $0x70] sm:$0xff]  ;;  %v377_v53 = vld [vmem:[#allocation2 + $0x58] sm:$0xff] }
  0x47   : > { %v384_v51 = vld [vmem:[#allocation2 + $0x20] sm:$0xff]  ;;  %v381_v54 = vld [vmem:[#allocation2 + $0x8] sm:$0xff]  ;;  %v385_v63 = vld [vmem:[#allocation2 + $0x10] sm:$0xff] }
  0x48   : > { %521 = vmatpush.bf16.msra.mxu0 %v891_v19  ;;  %947 = vmatpush.bf16.msra.mxu1 %v891_v19  ;;  %v389_v0 = vld [vmem:[#allocation2 + $0x78] sm:$0xff]  ;;  %v382_v2 = vld [vmem:[#allocation2 + $0x48] sm:$0xff] }
  0x49   : > { %948 = vmatpush.bf16.msra.mxu2 %v891_v19  ;;  %949 = vmatpush.bf16.msra.mxu3 %v891_v19  ;;  %v378_v1 = vld [vmem:[#allocation2 + $0x18] sm:$0xff]  ;;  %v390_v12 = vld [vmem:[#allocation2 + $0x28] sm:$0xff] }
  0x4a   : > { %v386_v11 = vld [vmem:[#allocation2 + $0x38] sm:$0xff] }
  0x4c   : > { %522 = vmatpush.bf16.msra.mxu0 %v890_v20  ;;  %950 = vmatpush.bf16.msra.mxu1 %v890_v20 }
  0x4d   : > { %951 = vmatpush.bf16.msra.mxu2 %v890_v20  ;;  %952 = vmatpush.bf16.msra.mxu3 %v890_v20 }
  0x50   : > { %523 = vmatpush.bf16.msra.mxu0 %v889_v21  ;;  %953 = vmatpush.bf16.msra.mxu1 %v889_v21 }
  0x51   : > { %954 = vmatpush.bf16.msra.mxu2 %v889_v21  ;;  %955 = vmatpush.bf16.msra.mxu3 %v889_v21 }
  0x54   : > { %524 = vmatpush.bf16.msra.mxu0 %v888_v22  ;;  %956 = vmatpush.bf16.msra.mxu1 %v888_v22 }
  0x55   : > { %957 = vmatpush.bf16.msra.mxu2 %v888_v22  ;;  %958 = vmatpush.bf16.msra.mxu3 %v888_v22 }
  0x58   : > { %525 = vmatpush.bf16.msra.mxu0 %v887_v23  ;;  %959 = vmatpush.bf16.msra.mxu1 %v887_v23 }
  0x59   : > { %960 = vmatpush.bf16.msra.mxu2 %v887_v23  ;;  %961 = vmatpush.bf16.msra.mxu3 %v887_v23 }
  0x5c   : > { %526 = vmatpush.bf16.msra.mxu0 %v886_v24  ;;  %962 = vmatpush.bf16.msra.mxu1 %v886_v24 }
  0x5d   : > { %963 = vmatpush.bf16.msra.mxu2 %v886_v24  ;;  %964 = vmatpush.bf16.msra.mxu3 %v886_v24 }
  0x5f   : > { %527 = vmatmul.bf16.vlgmr.msra.gmra.mxu0 %v878_v25  ;;  %537 = vmatmul.bf16.vlgmr.msra.gmra.mxu1 %v880_v26 }
  0x60   : > { %547 = vmatmul.bf16.vlgmr.msra.gmra.mxu2 %v882_v27  ;;  %557 = vmatmul.bf16.vlgmr.msra.gmra.mxu3 %v884_v28 }
  0x6f   : > { %532 = vmatmul.bf16.gmra.mxu0 %v879_v29  ;;  %542 = vmatmul.bf16.gmra.mxu1 %v881_v30 }
  0x70   : > { %552 = vmatmul.bf16.gmra.mxu2 %v883_v31  ;;  %562 = vmatmul.bf16.gmra.mxu3 %v885_v32 }
  0xdc   : > { %v528_v35 = vpop.f32.mrf.mxu0  ;;  %v538_v36 = vpop.f32.mrf.mxu1 }
  0xdd   : > { %v568_v37 = vadd.f32 %v528_v35, %v375_v33  ;;  %v572_v38 = vadd.f32 %v538_v36, %v379_v34 }
  0xdf   : > { %584 = vst [vmem:[#allocation2 + $0x30] sm:$0xff] %v568_v37 }
  0xe0   : > { %588 = vst [vmem:[#allocation2 + $0x50] sm:$0xff] %v572_v38 }
  0xe3   : > { %v548_v43 = vpop.f32.mrf.mxu2  ;;  %v558_v44 = vpop.f32.mrf.mxu3 }
  0xe4   : > { %v576_v45 = vadd.f32 %v548_v43, %v383_v39  ;;  %v580_v46 = vadd.f32 %v558_v44, %v387_v40  ;;  %v530_v47 = vpop.f32.mrf.mxu0  ;;  %v540_v48 = vpop.f32.mrf.mxu1 }
  0xe5   : > { %v569_v49 = vadd.f32 %v530_v47, %v376_v41  ;;  %v573_v50 = vadd.f32 %v540_v48, %v380_v42 }
  0xe6   : > { %592 = vst [vmem:[#allocation2 + $0x40] sm:$0xff] %v576_v45 }
  0xe7   : > { %596 = vst [vmem:[#allocation2 + $0x60] sm:$0xff] %v580_v46 }
  0xe8   : > { %585 = vst [vmem:[#allocation2] sm:$0xff] %v569_v49 }
  0xe9   : > { %589 = vst [vmem:[#allocation2 + $0x68] sm:$0xff] %v573_v50 }
  0xeb   : > { %v550_v55 = vpop.f32.mrf.mxu2  ;;  %v560_v56 = vpop.f32.mrf.mxu3 }
  0xec   : > { %v577_v57 = vadd.f32 %v550_v55, %v384_v51  ;;  %v581_v58 = vadd.f32 %v560_v56, %v388_v52  ;;  %v533_v59 = vpop.f32.mrf.mxu0  ;;  %v543_v60 = vpop.f32.mrf.mxu1 }
  0xed   : > { %v570_v61 = vadd.f32 %v533_v59, %v377_v53  ;;  %v574_v62 = vadd.f32 %v543_v60, %v381_v54 }
  0xee   : > { %593 = vst [vmem:[#allocation2 + $0x20] sm:$0xff] %v577_v57 }
  0xef   : > { %597 = vst [vmem:[#allocation2 + $0x70] sm:$0xff] %v581_v58 }
  0xf0   : > { %586 = vst [vmem:[#allocation2 + $0x58] sm:$0xff] %v570_v61 }
  0xf1   : > { %590 = vst [vmem:[#allocation2 + $0x8] sm:$0xff] %v574_v62 }
  0xf3   : > { %v553_v3 = vpop.f32.mrf.mxu2  ;;  %v563_v4 = vpop.f32.mrf.mxu3 }
  0xf4   : > { %v578_v5 = vadd.f32 %v553_v3, %v385_v63  ;;  %v582_v6 = vadd.f32 %v563_v4, %v389_v0  ;;  %v535_v7 = vpop.f32.mrf.mxu0  ;;  %v545_v8 = vpop.f32.mrf.mxu1 }
  0xf5   : > { %v571_v9 = vadd.f32 %v535_v7, %v378_v1  ;;  %v575_v10 = vadd.f32 %v545_v8, %v382_v2 }
  0xf6   : > { %594 = vst [vmem:[#allocation2 + $0x10] sm:$0xff] %v578_v5 }
  0xf7   : > { %598 = vst [vmem:[#allocation2 + $0x78] sm:$0xff] %v582_v6 }
  0xf8   : > { %587 = vst [vmem:[#allocation2 + $0x18] sm:$0xff] %v571_v9 }
  0xf9   : > { %591 = vst [vmem:[#allocation2 + $0x48] sm:$0xff] %v575_v10 }
  0xfb   : > { %v555_v13 = vpop.f32.mrf.mxu2  ;;  %v565_v14 = vpop.f32.mrf.mxu3  ;;  %603 = sbr.rel (%p873_p11) target bundleno = 272 (0x110), region = 81 }
  0xfc   : > { %v579_v15 = vadd.f32 %v555_v13, %v386_v11  ;;  %v583_v16 = vadd.f32 %v565_v14, %v390_v12 }
  0xfe   : > { %595 = vst [vmem:[#allocation2 + $0x38] sm:$0xff] %v579_v15 }
  0xff   : > { %599 = vst [vmem:[#allocation2 + $0x28] sm:$0xff] %v583_v16 }
 0x100   : > { %v604_v17 = vld [vmem:[#allocation2 + $0x30] sm:$0xff]  ;;  %v605_v18 = vld [vmem:[#allocation2] sm:$0xff]  ;;  %v606_v20 = vld [vmem:[#allocation2 + $0x58] sm:$0xff] }
 0x101   : > { %v1006_v19 = vld [vmem:[%s1202_s2] ss:$0 sm:$0xff]  ;;  %v607_v21 = vld [vmem:[#allocation2 + $0x18] sm:$0xff]  ;;  %v608_v22 = vld [vmem:[#allocation2 + $0x50] sm:$0xff] }
 0x102   : > { %v609_v23 = vld [vmem:[#allocation2 + $0x68] sm:$0xff]  ;;  %v624_v25 = vadd.f32 %v1006_v19, %v604_v17  ;;  %v625_v26 = vadd.f32 %v1006_v19, %v605_v18  ;;  %v626_v27 = vadd.f32 %v1006_v19, %v606_v20  ;;  %v627_v28 = vadd.f32 %v1006_v19, %v607_v21  ;;  %v612_v34 = vld [vmem:[#allocation2 + $0x40] sm:$0xff]  ;;  %v614_v40 = vld [vmem:[#allocation2 + $0x10] sm:$0xff] }
 0x103   : > { %v610_v24 = vld [vmem:[#allocation2 + $0x8] sm:$0xff]  ;;  %v628_v30 = vadd.f32 %v1006_v19, %v608_v22  ;;  %v629_v31 = vadd.f32 %v1006_v19, %v609_v23  ;;  %v613_v35 = vld [vmem:[#allocation2 + $0x20] sm:$0xff]  ;;  %v617_v47 = vld [vmem:[#allocation2 + $0x70] sm:$0xff]  ;;  %v632_v50 = vadd.f32 %v1006_v19, %v612_v34  ;;  %v634_v56 = vadd.f32 %v1006_v19, %v614_v40 }
 0x104   : > { %v611_v29 = vld [vmem:[#allocation2 + $0x48] sm:$0xff]  ;;  %v630_v32 = vadd.f32 %v1006_v19, %v610_v24  ;;  %v640_v36 = vmax.f32 %v624_v25, 0.0  ;;  %v641_v37 = vmax.f32 %v625_v26, 0.0  ;;  %v642_v38 = vmax.f32 %v626_v27, 0.0  ;;  %v616_v46 = vld [vmem:[#allocation2 + $0x60] sm:$0xff]  ;;  %v618_v52 = vld [vmem:[#allocation2 + $0x78] sm:$0xff] }
 0x105   : > { %v631_v33 = vadd.f32 %v1006_v19, %v611_v29  ;;  %v643_v39 = vmax.f32 %v627_v28, 0.0  ;;  %v615_v41 = vld [vmem:[#allocation2 + $0x38] sm:$0xff]  ;;  %v644_v42 = vmax.f32 %v628_v30, 0.0  ;;  %v645_v43 = vmax.f32 %v629_v31, 0.0 }
 0x106   : > { %v646_v44 = vmax.f32 %v630_v32, 0.0  ;;  %v897_v48 = vpack.c.bf16 %v641_v37, %v640_v36  ;;  %v633_v51 = vadd.f32 %v1006_v19, %v613_v35  ;;  %v619_v53 = vld [vmem:[#allocation2 + $0x28] sm:$0xff]  ;;  %v635_v57 = vadd.f32 %v1006_v19, %v615_v41 }
 0x107   : > { %v647_v45 = vmax.f32 %v631_v33, 0.0  ;;  %v902_v49 = vpack.c.bf16 %v643_v39, %v642_v38  ;;  %v907_v54 = vpack.c.bf16 %v645_v43, %v644_v42  ;;  %v648_v58 = vmax.f32 %v632_v50, 0.0 }
 0x108   : > { %898 = vst [vmem:[%s1203_s3] sm:$0xff] %v897_v48   ;;  %v649_v59 = vmax.f32 %v633_v51, 0.0  ;;  %v636_v60 = vadd.f32 %v1006_v19, %v616_v46  ;;  %v637_v61 = vadd.f32 %v1006_v19, %v617_v47  ;;  %v650_v62 = vmax.f32 %v634_v56, 0.0 }
 0x109   : > { %v912_v55 = vpack.c.bf16 %v647_v45, %v646_v44  ;;  %934 = vst [vmem:[%s1203_s3 + $0x8] sm:$0xff] %v902_v49   ;;  %v651_v63 = vmax.f32 %v635_v57, 0.0  ;;  %v638_v0 = vadd.f32 %v1006_v19, %v618_v52  ;;  %v639_v1 = vadd.f32 %v1006_v19, %v619_v53 }
 0x10a   : > { %935 = vst [vmem:[%s1203_s3 + $0x10] sm:$0xff] %v907_v54   ;;  %v917_v2 = vpack.c.bf16 %v649_v59, %v648_v58  ;;  %v652_v3 = vmax.f32 %v636_v60, 0.0  ;;  %v653_v4 = vmax.f32 %v637_v61, 0.0 }
 0x10b   : > { %936 = vst [vmem:[%s1203_s3 + $0x18] sm:$0xff] %v912_v55   ;;  %v922_v5 = vpack.c.bf16 %v651_v63, %v650_v62  ;;  %v654_v6 = vmax.f32 %v638_v0, 0.0  ;;  %v655_v7 = vmax.f32 %v639_v1, 0.0 }
 0x10c   : > { %937 = vst [vmem:[%s1203_s3 + $0x20] sm:$0xff] %v917_v2   ;;  %v927_v8 = vpack.c.bf16 %v653_v4, %v652_v3 }
 0x10d   : > { %938 = vst [vmem:[%s1203_s3 + $0x28] sm:$0xff] %v922_v5   ;;  %v932_v9 = vpack.c.bf16 %v655_v7, %v654_v6 }
 0x10e   : > { %939 = vst [vmem:[%s1203_s3 + $0x30] sm:$0xff] %v927_v8  }
 0x10f   : > { %940 = vst [vmem:[%s1203_s3 + $0x38] sm:$0xff] %v932_v9  }
 0x110 PF: > { %s13_s16 = sadd.s32 1, %s1045_s16   ;;  %s1204_s12 = smov %s1033_s13 }
 0x111   : > { %p10_p12 = scmp.ge.s32.totalorder %s13_s16, 7   ;;  %s1205_s13 = smov %s1103_s20 }
 0x112   : > { %s1206_s14 = smov %s1041_s15  ;;  %s1207_s15 = smov %s1209_s17 }
 0x113   :  { %12 = sbr.rel (!%p10_p12) target bundleno = 3 (0x3), region = 122 }

// kernel: base_regressor_forward.15
= control target key start
LH: loop header
LB: loop body
LE: loop exit
PB: predicated region body
PF: predicated region fallthrough
CT: control target
= control target key end

     0   :  { %s1376_s12 = smov 0   ;;  %s1378_s13 = smov 0   ;;  %s1578_s0 = inlined_call_operand.vmem [shape: bf16[32,1152], index: 0, kind: input, shape index: {}]   ;;  %s1579_s1 = inlined_call_operand.vmem [shape: bf16[1152,256], index: 1, kind: input, shape index: {}]   ;;  %s1580_s2 = inlined_call_operand.vmem [shape: f32[1,256], index: 2, kind: input, shape index: {}]   ;;  %s1581_s3 = inlined_call_operand.vmem [shape: bf16[32,256], index: 3, kind: output, shape index: {}]  }
   0x1   :  { %s1380_s14 = smov 0   ;;  %s1382_s15 = smov 0  }
   0x2   :  { %s1384_s16 = smov 0  }
   0x3 LB: > { %s25_s17 = sadd.s32 1, %s1349_s15  ;;  %p48_p1 = scmp.ne.s32.totalorder %s1341_s13, %s1337_s12  ;;  %s1353_s16 = sphi %s1384_s16, %s13_s16   ;;  %s1349_s15 = sphi %s1382_s15, %s1585_s15   ;;  %s1345_s14 = sphi %s1380_s14, %s1584_s14   ;;  %s1341_s13 = sphi %s1378_s13, %s1583_s13   ;;  %s1337_s12 = sphi %s1376_s12, %s1582_s12  }
   0x4   : > { %p26_p0 = scmp.ge.s32.totalorder %s25_s17, 3  ;;  %p49_p2 = scmp.eq.s32.totalorder %s1353_s16, 0 }
   0x5   : > { %s41_s19 = sadd.s32 1, %s1341_s13  ;;  %p965_p5 = scmp.ge.s32.totalorder %s1353_s16, 3 }
   0x6   : > { %s1587_s17 = smov (%p26_p0, %s25_s17), 0  ;;  %p50_p3 = por %p49_p2, %p48_p1 }
   0x7   : > { %s37_s18 = ssub.s32 %s1349_s15, %s1587_s17  ;;  %164 = sbr.rel (%p965_p5) target bundleno = 25 (0x19), region = 20 }
   0x8   : > { %p39_p4 = scmp.eq.s32.totalorder %s37_s18, 0 }
   0xa   : > { %s1411_s20 = scalar_select %p39_p4, %s1341_s13, %s41_s19  }
   0xc   : > { %167 = sbr.rel (!%p50_p3) target bundleno = 25 (0x19), region = 24  ;;  %s169_s21 = sand.u32 (%p50_p3), 1, %s1341_s13  }
   0xd   : > { %s1200_s22 = smul.u32 (%p50_p3), 12, %s1349_s15 }
   0xe   : > { %s1272_s23 = smul.u32 (%p50_p3), 48, %s169_s21 }
   0xf   : > { %s177_s26 = scalar_lea.vmem (%p50_p3), %s1578_s0, %s1200_s22 }
  0x10   : > { %v192_v0 = vld [vmem:[%s177_s26] sm:$0xff] (%p50_p3)  ;;  %v196_v2 = vld [vmem:[%s177_s26 + $0x48] sm:$0xff] (%p50_p3)  ;;  %s171_s27 = scalar_lea.vmem (%p50_p3), [#allocation3], %s1272_s23  ;;  %v971_v6 = vld [vmem:[%s177_s26 + $0x50] sm:$0xf] (%p50_p3) }
  0x11   : > { %v194_v1 = vld [vmem:[%s177_s26 + $0x24] sm:$0xff]  ;;  %193 = vst [vmem:[%s171_s27] sm:$0xff] %v192_v0  ;;  %v198_v3 = vld [vmem:[%s177_s26 + $0x6c] sm:$0xff]  ;;  %v973_v7 = vld [vmem:[%s177_s26 + $0x74] sm:$0xf] }
  0x12   : > { %195 = vst [vmem:[%s171_s27 + $0xc] sm:$0xff] %v194_v1  ;;  %v967_v4 = vld [vmem:[%s177_s26 + $0x8] sm:$0xf]  ;;  %v969_v5 = vld [vmem:[%s177_s26 + $0x2c] sm:$0xf] }
  0x13   : > { %197 = vst [vmem:[%s171_s27 + $0x18] sm:$0xff] %v196_v2 }
  0x14   : > { %199 = vst [vmem:[%s171_s27 + $0x24] sm:$0xff] %v198_v3 }
  0x15   : > { %968 = vst [vmem:[%s171_s27 + $0x8] sm:$0xf] %v967_v4 }
  0x16   : > { %970 = vst [vmem:[%s171_s27 + $0x14] sm:$0xf] %v969_v5 }
  0x17   : > { %972 = vst [vmem:[%s171_s27 + $0x20] sm:$0xf] %v971_v6 }
  0x18   : > { %974 = vst [vmem:[%s171_s27 + $0x2c] sm:$0xf] %v973_v7 }
  0x19 PF: > { %p975_p6 = scmp.ge.s32.totalorder %s1353_s16, 1  ;;  %p235_p7 = scmp.lt.s32.totalorder %s1353_s16, 4 }
  0x1b   : > { %p236_p8 = pnand %p975_p6, %p235_p7 }
  0x1c   : > { %s242_s28 = sand.u32 (!%p236_p8), 1, %s1337_s12   ;;  %s286_s29 = smul.u32 (!%p236_p8), 48, %s1345_s14 }
  0x1d   : > { %239 = sbr.rel (%p236_p8) target bundleno = 277 (0x115), region = 54  ;;  %p978_p10 = scmp.ne.s32.totalorder (!%p236_p8), %s1345_s14, 0 }
  0x1e   : > { %s1273_s30 = smul.u32 (!%p236_p8), 48, %s242_s28  ;;  %p288_p9 = scmp.lt.s32.totalorder (!%p236_p8), %s286_s29, 143 }
  0x20   : > { %s1428_s8 = scalar_lea.vmem (!%p236_p8), [#allocation3], %s1273_s30 }
  0x22   : > { %s1589_s29 = smov (!%p288_p9, %s286_s29), 143  ;;  %318 = sbr.rel (%p978_p10) target bundleno = 48 (0x30), region = 62 }
  0x23   : > { %s1201_s4 = sshll.u32 %s1589_s29, 3 }
  0x24   : > { %s1426_s7 = scalar_lea.vmem %s1579_s1, %s1201_s4 }
  0x27   : > { %v1355_v8 = vmov 0.0  }
  0x28   : > { %319 = vst [vmem:[#allocation2 + $0x30] sm:$0xff] %v1355_v8 }
  0x29   : > { %320 = vst [vmem:[#allocation2] sm:$0xff] %v1355_v8 }
  0x2a   : > { %321 = vst [vmem:[#allocation2 + $0x18] sm:$0xff] %v1355_v8 }
  0x2b   : > { %322 = vst [vmem:[#allocation2 + $0x10] sm:$0xff] %v1355_v8 }
  0x2c   : > { %323 = vst [vmem:[#allocation2 + $0x8] sm:$0xff] %v1355_v8 }
  0x2d   : > { %324 = vst [vmem:[#allocation2 + $0x20] sm:$0xff] %v1355_v8 }
  0x2e   : > { %325 = vst [vmem:[#allocation2 + $0x28] sm:$0xff] %v1355_v8 }
  0x2f   : > { %326 = vst [vmem:[#allocation2 + $0x38] sm:$0xff] %v1355_v8 }
  0x30 PF: > { %v1061_v9 = vld [vmem:[%s1426_s7 + $0x70] sm:$0xf]  ;;  %v1223_v10 = vld [vmem:[%s1426_s7 + $0x74] sm:$0xf0]  ;;  %v1222_v18 = vld [vmem:[%s1426_s7 + $0x74] sm:$0xf] }
  0x31   : > { %v1125_v11 = vld [vmem:[%s1426_s7 + $0xf0] sm:$0xf]  ;;  %v1062_v12 = vor.u32 %v1223_v10, %v1061_v9  ;;  %v1239_v13 = vld [vmem:[%s1426_s7 + $0xf4] sm:$0xf0]  ;;  %v1063_v19 = vld [vmem:[%s1426_s7 + $0x78] sm:$0xf0] }
  0x32   : > { %v1189_v14 = vld [vmem:[%s1426_s7 + $0x170] sm:$0xf]  ;;  %v1255_v15 = vld [vmem:[%s1426_s7 + $0x174] sm:$0xf0]  ;;  %v1126_v16 = vor.u32 %v1239_v13, %v1125_v11  ;;  %v1053_v20 = vld [vmem:[%s1426_s7 + $0x60] sm:$0xf]  ;;  %v1066_v21 = vor.u32 %v1222_v18, %v1063_v19 }
  0x33   : > { %v1190_v17 = vor.u32 %v1255_v15, %v1189_v14  ;;  %663 = vmatpush.bf16.msra.mxu0 %v1062_v12  ;;  %v1221_v22 = vld [vmem:[%s1426_s7 + $0x64] sm:$0xf0]  ;;  %v1117_v23 = vld [vmem:[%s1426_s7 + $0xe0] sm:$0xf]  ;;  %v1220_v29 = vld [vmem:[%s1426_s7 + $0x64] sm:$0xf] }
  0x34   : > { %v1237_v24 = vld [vmem:[%s1426_s7 + $0xe4] sm:$0xf0]  ;;  %682 = vmatpush.bf16.msra.mxu1 %v1126_v16  ;;  %v1054_v25 = vor.u32 %v1221_v22, %v1053_v20  ;;  %v1181_v27 = vld [vmem:[%s1426_s7 + $0x160] sm:$0xf]  ;;  %720 = vmatpush.bf16.msra.mxu3 %v1066_v21  ;;  %v1055_v31 = vld [vmem:[%s1426_s7 + $0x68] sm:$0xf0] }
  0x35   : > { %701 = vmatpush.bf16.msra.mxu2 %v1190_v17  ;;  %v1118_v26 = vor.u32 %v1237_v24, %v1117_v23  ;;  %v1253_v28 = vld [vmem:[%s1426_s7 + $0x164] sm:$0xf0]  ;;  %v1045_v32 = vld [vmem:[%s1426_s7 + $0x50] sm:$0xf]  ;;  %v1219_v33 = vld [vmem:[%s1426_s7 + $0x54] sm:$0xf0]  ;;  %v1058_v34 = vor.u32 %v1220_v29, %v1055_v31 }
  0x36   : > { %v1182_v30 = vor.u32 %v1253_v28, %v1181_v27  ;;  %v1109_v35 = vld [vmem:[%s1426_s7 + $0xd0] sm:$0xf]  ;;  %v1235_v36 = vld [vmem:[%s1426_s7 + $0xd4] sm:$0xf0]  ;;  %v1046_v38 = vor.u32 %v1219_v33, %v1045_v32  ;;  %v1218_v40 = vld [vmem:[%s1426_s7 + $0x54] sm:$0xf] }
  0x37   : > { %v1173_v37 = vld [vmem:[%s1426_s7 + $0x150] sm:$0xf]  ;;  %664 = vmatpush.bf16.msra.mxu0 %v1054_v25  ;;  %v1251_v39 = vld [vmem:[%s1426_s7 + $0x154] sm:$0xf0]  ;;  %v1047_v41 = vld [vmem:[%s1426_s7 + $0x58] sm:$0xf0]  ;;  %v1110_v42 = vor.u32 %v1235_v36, %v1109_v35 }
  0x38   : > { %683 = vmatpush.bf16.msra.mxu1 %v1118_v26  ;;  %v1174_v43 = vor.u32 %v1251_v39, %v1173_v37  ;;  %v1037_v44 = vld [vmem:[%s1426_s7 + $0x40] sm:$0xf]  ;;  %v1217_v45 = vld [vmem:[%s1426_s7 + $0x44] sm:$0xf0]  ;;  %721 = vmatpush.bf16.msra.mxu3 %v1058_v34  ;;  %v1050_v47 = vor.u32 %v1218_v40, %v1047_v41  ;;  %v1216_v51 = vld [vmem:[%s1426_s7 + $0x44] sm:$0xf] }
  0x39   : > { %702 = vmatpush.bf16.msra.mxu2 %v1182_v30  ;;  %v1101_v46 = vld [vmem:[%s1426_s7 + $0xc0] sm:$0xf]  ;;  %v1233_v48 = vld [vmem:[%s1426_s7 + $0xc4] sm:$0xf0]  ;;  %v1039_v52 = vld [vmem:[%s1426_s7 + $0x48] sm:$0xf0]  ;;  %v1038_v53 = vor.u32 %v1217_v45, %v1037_v44 }
  0x3a   : > { %v1165_v49 = vld [vmem:[%s1426_s7 + $0x140] sm:$0xf]  ;;  %v1249_v50 = vld [vmem:[%s1426_s7 + $0x144] sm:$0xf0]  ;;  %v1102_v54 = vor.u32 %v1233_v48, %v1101_v46  ;;  %v1029_v56 = vld [vmem:[%s1426_s7 + $0x30] sm:$0xf]  ;;  %v1042_v59 = vor.u32 %v1216_v51, %v1039_v52 }
  0x3b   : > { %665 = vmatpush.bf16.msra.mxu0 %v1046_v38  ;;  %v1166_v55 = vor.u32 %v1249_v50, %v1165_v49  ;;  %v1215_v57 = vld [vmem:[%s1426_s7 + $0x34] sm:$0xf0]  ;;  %v1093_v58 = vld [vmem:[%s1426_s7 + $0xb0] sm:$0xf]  ;;  %v1214_v63 = vld [vmem:[%s1426_s7 + $0x34] sm:$0xf] }
  0x3c   : > { %684 = vmatpush.bf16.msra.mxu1 %v1110_v42  ;;  %722 = vmatpush.bf16.msra.mxu3 %v1050_v47  ;;  %v1231_v60 = vld [vmem:[%s1426_s7 + $0xb4] sm:$0xf0]  ;;  %v1157_v61 = vld [vmem:[%s1426_s7 + $0x130] sm:$0xf]  ;;  %v1031_v0 = vld [vmem:[%s1426_s7 + $0x38] sm:$0xf0]  ;;  %v1030_v1 = vor.u32 %v1215_v57, %v1029_v56 }
  0x3d   : > { %703 = vmatpush.bf16.msra.mxu2 %v1174_v43  ;;  %v1247_v62 = vld [vmem:[%s1426_s7 + $0x134] sm:$0xf0]  ;;  %v1094_v2 = vor.u32 %v1231_v60, %v1093_v58  ;;  %v1021_v4 = vld [vmem:[%s1426_s7 + $0x20] sm:$0xf]  ;;  %v1213_v5 = vld [vmem:[%s1426_s7 + $0x24] sm:$0xf0]  ;;  %v1034_v7 = vor.u32 %v1214_v63, %v1031_v0 }
  0x3e   : > { %v1158_v3 = vor.u32 %v1247_v62, %v1157_v61  ;;  %v1085_v6 = vld [vmem:[%s1426_s7 + $0xa0] sm:$0xf]  ;;  %v1229_v8 = vld [vmem:[%s1426_s7 + $0xa4] sm:$0xf0]  ;;  %v1212_v11 = vld [vmem:[%s1426_s7 + $0x24] sm:$0xf]  ;;  %v1022_v13 = vor.u32 %v1213_v5, %v1021_v4 }
  0x3f   : > { %666 = vmatpush.bf16.msra.mxu0 %v1038_v53  ;;  %v1149_v9 = vld [vmem:[%s1426_s7 + $0x120] sm:$0xf]  ;;  %v1245_v10 = vld [vmem:[%s1426_s7 + $0x124] sm:$0xf0]  ;;  %v1023_v12 = vld [vmem:[%s1426_s7 + $0x28] sm:$0xf0]  ;;  %v1086_v14 = vor.u32 %v1229_v8, %v1085_v6 }
  0x40   : > { %685 = vmatpush.bf16.msra.mxu1 %v1102_v54  ;;  %723 = vmatpush.bf16.msra.mxu3 %v1042_v59  ;;  %v1150_v15 = vor.u32 %v1245_v10, %v1149_v9  ;;  %v1013_v16 = vld [vmem:[%s1426_s7 + $0x10] sm:$0xf]  ;;  %v1211_v17 = vld [vmem:[%s1426_s7 + $0x14] sm:$0xf0]  ;;  %v1026_v19 = vor.u32 %v1212_v11, %v1023_v12  ;;  %v1210_v23 = vld [vmem:[%s1426_s7 + $0x14] sm:$0xf] }
  0x41   : > { %704 = vmatpush.bf16.msra.mxu2 %v1166_v55  ;;  %v1077_v18 = vld [vmem:[%s1426_s7 + $0x90] sm:$0xf]  ;;  %v1227_v20 = vld [vmem:[%s1426_s7 + $0x94] sm:$0xf0]  ;;  %v1015_v24 = vld [vmem:[%s1426_s7 + $0x18] sm:$0xf0]  ;;  %v1014_v25 = vor.u32 %v1211_v17, %v1013_v16 }
  0x42   : > { %v1141_v21 = vld [vmem:[%s1426_s7 + $0x110] sm:$0xf]  ;;  %v1243_v22 = vld [vmem:[%s1426_s7 + $0x114] sm:$0xf0]  ;;  %v1005_v26 = vld [vmem:[%s1426_s7] sm:$0xf]  ;;  %v1078_v29 = vor.u32 %v1227_v20, %v1077_v18  ;;  %v1018_v34 = vor.u32 %v1210_v23, %v1015_v24 }
  0x43   : > { %667 = vmatpush.bf16.msra.mxu0 %v1030_v1  ;;  %v1209_v27 = vld [vmem:[%s1426_s7 + $0x4] sm:$0xf0]  ;;  %v1069_v28 = vld [vmem:[%s1426_s7 + $0x80] sm:$0xf]  ;;  %v1142_v30 = vor.u32 %v1243_v22, %v1141_v21  ;;  %v1208_v35 = vld [vmem:[%s1426_s7 + $0x4] sm:$0xf] }
  0x44   : > { %686 = vmatpush.bf16.msra.mxu1 %v1094_v2  ;;  %724 = vmatpush.bf16.msra.mxu3 %v1034_v7  ;;  %v1225_v31 = vld [vmem:[%s1426_s7 + $0x84] sm:$0xf0]  ;;  %v1133_v32 = vld [vmem:[%s1426_s7 + $0x100] sm:$0xf]  ;;  %v1007_v36 = vld [vmem:[%s1426_s7 + $0x8] sm:$0xf0]  ;;  %v1006_v41 = vor.u32 %v1209_v27, %v1005_v26 }
  0x45   : > { %705 = vmatpush.bf16.msra.mxu2 %v1158_v3  ;;  %v1241_v33 = vld [vmem:[%s1426_s7 + $0x104] sm:$0xf0]  ;;  %v981_v37 = vld [vmem:[%s1428_s8] sm:$0xf]  ;;  %v1203_v38 = vld [vmem:[%s1428_s8 + $0x8] sm:$0xf0]  ;;  %v1070_v45 = vor.u32 %v1225_v31, %v1069_v28  ;;  %v1010_v50 = vor.u32 %v1208_v35, %v1007_v36 }
  0x46   : > { %v1238_v39 = vld [vmem:[%s1426_s7 + $0xf4] sm:$0xf]  ;;  %v1127_v40 = vld [vmem:[%s1426_s7 + $0xf8] sm:$0xf0]  ;;  %v1134_v46 = vor.u32 %v1241_v33, %v1133_v32  ;;  %v983_v47 = vld [vmem:[%s1428_s8 + $0xc] sm:$0xf0]  ;;  %v982_v52 = vor.u32 %v1203_v38, %v981_v37 }
  0x47   : > { %668 = vmatpush.bf16.msra.mxu0 %v1022_v13  ;;  %v1202_v42 = vld [vmem:[%s1428_s8 + $0x4] sm:$0xf]  ;;  %v1191_v44 = vld [vmem:[%s1426_s7 + $0x178] sm:$0xf0]  ;;  %v989_v48 = vld [vmem:[%s1428_s8 + $0x8] sm:$0xf]  ;;  %v1130_v51 = vor.u32 %v1238_v39, %v1127_v40 }
  0x48   : > { %687 = vmatpush.bf16.msra.mxu1 %v1086_v14  ;;  %725 = vmatpush.bf16.msra.mxu3 %v1026_v19  ;;  %v1254_v43 = vld [vmem:[%s1426_s7 + $0x174] sm:$0xf]  ;;  %v1236_v54 = vld [vmem:[%s1426_s7 + $0xe4] sm:$0xf]  ;;  %v1119_v55 = vld [vmem:[%s1426_s7 + $0xe8] sm:$0xf0]  ;;  %v1507_v56 = vor.u32 %v1202_v42, %v983_v47 }
  0x49   : > { %706 = vmatpush.bf16.msra.mxu2 %v1150_v15  ;;  %v1204_v49 = vld [vmem:[%s1428_s8 + $0x10] sm:$0xf0]  ;;  %v1194_v53 = vor.u32 %v1254_v43, %v1191_v44  ;;  %v1183_v59 = vld [vmem:[%s1426_s7 + $0x168] sm:$0xf0]  ;;  %v1122_v60 = vor.u32 %v1236_v54, %v1119_v55  ;;  %v1111_v63 = vld [vmem:[%s1426_s7 + $0xd8] sm:$0xf0] }
  0x4a   : > { %v1509_v57 = vor.u32 %v1204_v49, %v989_v48  ;;  %v1252_v58 = vld [vmem:[%s1426_s7 + $0x164] sm:$0xf]  ;;  %v1234_v62 = vld [vmem:[%s1426_s7 + $0xd4] sm:$0xf]  ;;  %v1175_v1 = vld [vmem:[%s1426_s7 + $0x158] sm:$0xf0] }
  0x4b   : > { %669 = vmatpush.bf16.msra.mxu0 %v1014_v25  ;;  %v1186_v61 = vor.u32 %v1252_v58, %v1183_v59  ;;  %v1250_v0 = vld [vmem:[%s1426_s7 + $0x154] sm:$0xf]  ;;  %v1114_v2 = vor.u32 %v1234_v62, %v1111_v63  ;;  %v1232_v4 = vld [vmem:[%s1426_s7 + $0xc4] sm:$0xf]  ;;  %v1103_v5 = vld [vmem:[%s1426_s7 + $0xc8] sm:$0xf0] }
  0x4c   : > { %688 = vmatpush.bf16.msra.mxu1 %v1078_v29  ;;  %726 = vmatpush.bf16.msra.mxu3 %v1018_v34  ;;  %v1178_v3 = vor.u32 %v1250_v0, %v1175_v1  ;;  %v1248_v6 = vld [vmem:[%s1426_s7 + $0x144] sm:$0xf]  ;;  %v1167_v7 = vld [vmem:[%s1426_s7 + $0x148] sm:$0xf0]  ;;  %v1106_v8 = vor.u32 %v1232_v4, %v1103_v5  ;;  %v993_v9 = vld [vmem:[%s1428_s8 + $0x18] sm:$0xf] }
  0x4d   : > { %707 = vmatpush.bf16.msra.mxu2 %v1142_v30  ;;  %v1170_v10 = vor.u32 %v1248_v6, %v1167_v7  ;;  %v1206_v11 = vld [vmem:[%s1428_s8 + $0x20] sm:$0xf0]  ;;  %v1095_v13 = vld [vmem:[%s1426_s7 + $0xb8] sm:$0xf0]  ;;  %v995_v17 = vld [vmem:[%s1428_s8 + $0x24] sm:$0xf0] }
  0x4e   : > { %v1230_v12 = vld [vmem:[%s1426_s7 + $0xb4] sm:$0xf]  ;;  %v1205_v14 = vld [vmem:[%s1428_s8 + $0x1c] sm:$0xf]  ;;  %v1001_v18 = vld [vmem:[%s1428_s8 + $0x20] sm:$0xf]  ;;  %v994_v21 = vor.u32 %v1206_v11, %v993_v9 }
  0x4f   : > { %670 = vmatpush.bf16.msra.mxu0 %v1006_v41  ;;  %v1246_v15 = vld [vmem:[%s1426_s7 + $0x134] sm:$0xf]  ;;  %v1159_v16 = vld [vmem:[%s1426_s7 + $0x138] sm:$0xf0]  ;;  %v1098_v20 = vor.u32 %v1230_v12, %v1095_v13  ;;  %v1228_v23 = vld [vmem:[%s1426_s7 + $0xa4] sm:$0xf]  ;;  %v998_v25 = vor.u32 %v1205_v14, %v995_v17 }
  0x50   : > { %689 = vmatpush.bf16.msra.mxu1 %v1070_v45  ;;  %727 = vmatpush.bf16.msra.mxu3 %v1010_v50  ;;  %v1207_v19 = vld [vmem:[%s1428_s8 + $0x28] sm:$0xf0]  ;;  %v1162_v22 = vor.u32 %v1246_v15, %v1159_v16  ;;  %v1244_v27 = vld [vmem:[%s1426_s7 + $0x124] sm:$0xf]  ;;  %v1226_v31 = vld [vmem:[%s1426_s7 + $0x94] sm:$0xf] }
  0x51   : > { %708 = vmatpush.bf16.msra.mxu2 %v1134_v46  ;;  %v1087_v24 = vld [vmem:[%s1426_s7 + $0xa8] sm:$0xf0]  ;;  %v1002_v26 = vor.u32 %v1207_v19, %v1001_v18  ;;  %v1079_v32 = vld [vmem:[%s1426_s7 + $0x98] sm:$0xf0]  ;;  %v1242_v33 = vld [vmem:[%s1426_s7 + $0x114] sm:$0xf] }
  0x52   : > { %671 = vmatmul.bf16.vlgmr.msra.gmra.mxu0 %v982_v52  ;;  %v1151_v28 = vld [vmem:[%s1426_s7 + $0x128] sm:$0xf0]  ;;  %v1090_v29 = vor.u32 %v1228_v23, %v1087_v24  ;;  %v1143_v34 = vld [vmem:[%s1426_s7 + $0x118] sm:$0xf0]  ;;  %v1082_v35 = vor.u32 %v1226_v31, %v1079_v32  ;;  %v1224_v37 = vld [vmem:[%s1426_s7 + $0x84] sm:$0xf] }
  0x53   : > { %690 = vmatmul.bf16.vlgmr.msra.gmra.mxu1 %v1507_v56  ;;  %728 = vmatmul.bf16.vlgmr.msra.gmra.mxu3 %v982_v52  ;;  %v1154_v30 = vor.u32 %v1244_v27, %v1151_v28  ;;  %v1146_v36 = vor.u32 %v1242_v33, %v1143_v34  ;;  %v1071_v38 = vld [vmem:[%s1426_s7 + $0x88] sm:$0xf0]  ;;  %v1240_v39 = vld [vmem:[%s1426_s7 + $0x104] sm:$0xf]  ;;  %v327_v46 = vld [vmem:[#allocation2 + $0x30] sm:$0xff]  ;;  %p1195_p11 = scmp.ne.s32.totalorder %s1345_s14, 2 }
  0x54   : > { %758 = vmatpush.bf16.msrb.mxu1 %v1194_v53  ;;  %709 = vmatmul.bf16.vlgmr.msra.gmra.mxu2 %v1509_v57  ;;  %v1135_v40 = vld [vmem:[%s1426_s7 + $0x108] sm:$0xf0]  ;;  %v1074_v41 = vor.u32 %v1224_v37, %v1071_v38  ;;  %v329_v54 = vld [vmem:[#allocation2 + $0x18] sm:$0xff]  ;;  %v328_v14 = vld [vmem:[#allocation2] sm:$0xff] }
  0x55   : > { %1256 = vmatpush.bf16.msrb.mxu2 %v1130_v51  ;;  %739 = vmatpush.bf16.msrb.mxu0 %v1130_v51  ;;  %v1138_v42 = vor.u32 %v1240_v39, %v1135_v40  ;;  %v331_v62 = vld [vmem:[#allocation2 + $0x8] sm:$0xff]  ;;  %v330_v24 = vld [vmem:[#allocation2 + $0x10] sm:$0xff]  ;;  %v334_v31 = vld [vmem:[#allocation2 + $0x38] sm:$0xff] }
  0x56   : > { %1264 = vmatpush.bf16.msrb.mxu3 %v1194_v53  ;;  %v333_v6 = vld [vmem:[#allocation2 + $0x28] sm:$0xff] }
  0x58   : > { %759 = vmatpush.bf16.msrb.mxu1 %v1186_v61 }
  0x59   : > { %1257 = vmatpush.bf16.msrb.mxu2 %v1122_v60  ;;  %740 = vmatpush.bf16.msrb.mxu0 %v1122_v60 }
  0x5a   : > { %1265 = vmatpush.bf16.msrb.mxu3 %v1186_v61 }
  0x5c   : > { %760 = vmatpush.bf16.msrb.mxu1 %v1178_v3 }
  0x5d   : > { %1258 = vmatpush.bf16.msrb.mxu2 %v1114_v2  ;;  %741 = vmatpush.bf16.msrb.mxu0 %v1114_v2 }
  0x5e   : > { %1266 = vmatpush.bf16.msrb.mxu3 %v1178_v3 }
  0x60   : > { %761 = vmatpush.bf16.msrb.mxu1 %v1170_v10 }
  0x61   : > { %1259 = vmatpush.bf16.msrb.mxu2 %v1106_v8  ;;  %742 = vmatpush.bf16.msrb.mxu0 %v1106_v8 }
  0x62   : > { %1267 = vmatpush.bf16.msrb.mxu3 %v1170_v10  ;;  %676 = vmatmul.bf16.gmra.mxu0 %v994_v21 }
  0x63   : > { %695 = vmatmul.bf16.gmra.mxu1 %v998_v25  ;;  %733 = vmatmul.bf16.gmra.mxu3 %v994_v21 }
  0x64   : > { %762 = vmatpush.bf16.msrb.mxu1 %v1162_v22  ;;  %714 = vmatmul.bf16.gmra.mxu2 %v1002_v26 }
  0x65   : > { %1260 = vmatpush.bf16.msrb.mxu2 %v1098_v20  ;;  %743 = vmatpush.bf16.msrb.mxu0 %v1098_v20  ;;  %v332_v20 = vld [vmem:[#allocation2 + $0x20] sm:$0xff] }
  0x66   : > { %1268 = vmatpush.bf16.msrb.mxu3 %v1162_v22 }
  0x68   : > { %763 = vmatpush.bf16.msrb.mxu1 %v1154_v30 }
  0x69   : > { %1261 = vmatpush.bf16.msrb.mxu2 %v1090_v29  ;;  %744 = vmatpush.bf16.msrb.mxu0 %v1090_v29 }
  0x6a   : > { %1269 = vmatpush.bf16.msrb.mxu3 %v1154_v30 }
  0x6c   : > { %764 = vmatpush.bf16.msrb.mxu1 %v1146_v36 }
  0x6d   : > { %1262 = vmatpush.bf16.msrb.mxu2 %v1082_v35  ;;  %745 = vmatpush.bf16.msrb.mxu0 %v1082_v35 }
  0x6e   : > { %1270 = vmatpush.bf16.msrb.mxu3 %v1146_v36 }
  0x70   : > { %765 = vmatpush.bf16.msrb.mxu1 %v1138_v42 }
  0x71   : > { %1263 = vmatpush.bf16.msrb.mxu2 %v1074_v41  ;;  %746 = vmatpush.bf16.msrb.mxu0 %v1074_v41 }
  0x72   : > { %1271 = vmatpush.bf16.msrb.mxu3 %v1138_v42 }
  0x73   : > { %766 = vmatmul.bf16.vlgmr.msrb.gmra.mxu1 %v1509_v57 }
  0x74   : > { %747 = vmatmul.bf16.vlgmr.msrb.gmra.mxu0 %v1507_v56  ;;  %752 = vmatmul.bf16.vlgmr.msrb.gmra.mxu2 %v998_v25 }
  0x75   : > { %771 = vmatmul.bf16.vlgmr.msrb.gmra.mxu3 %v1002_v26 }
  0xcf   : > { %v672_v43 = vpop.f32.mrf.mxu0 }
  0xd0   : > { %v691_v44 = vpop.f32.mrf.mxu1 }
  0xd1   : > { %v692_v45 = vadd.f32 %v691_v44, %v672_v43 }
  0xd6   : > { %v729_v49 = vpop.f32.mrf.mxu3 }
  0xd7   : > { %v710_v47 = vpop.f32.mrf.mxu2  ;;  %v674_v50 = vpop.f32.mrf.mxu0 }
  0xd8   : > { %v711_v48 = vadd.f32 %v710_v47, %v692_v45  ;;  %v693_v51 = vpop.f32.mrf.mxu1 }
  0xd9   : > { %v694_v53 = vadd.f32 %v693_v51, %v674_v50 }
  0xda   : > { %v777_v52 = vadd.f32 %v711_v48, %v327_v46 }
  0xdc   : > { %785 = vst [vmem:[#allocation2 + $0x30] sm:$0xff] %v777_v52 }
  0xde   : > { %v731_v56 = vpop.f32.mrf.mxu3 }
  0xdf   : > { %v712_v55 = vpop.f32.mrf.mxu2  ;;  %v677_v59 = vpop.f32.mrf.mxu0 }
  0xe0   : > { %v713_v58 = vadd.f32 %v712_v55, %v694_v53  ;;  %v696_v60 = vpop.f32.mrf.mxu1 }
  0xe1   : > { %v697_v61 = vadd.f32 %v696_v60, %v677_v59 }
  0xe2   : > { %v779_v57 = vadd.f32 %v713_v58, %v329_v54 }
  0xe4   : > { %787 = vst [vmem:[#allocation2 + $0x18] sm:$0xff] %v779_v57 }
  0xe6   : > { %v734_v1 = vpop.f32.mrf.mxu3 }
  0xe7   : > { %v715_v63 = vpop.f32.mrf.mxu2  ;;  %v679_v2 = vpop.f32.mrf.mxu0 }
  0xe8   : > { %v716_v0 = vadd.f32 %v715_v63, %v697_v61  ;;  %v698_v3 = vpop.f32.mrf.mxu1 }
  0xe9   : > { %v699_v5 = vadd.f32 %v698_v3, %v679_v2 }
  0xea   : > { %v781_v4 = vadd.f32 %v716_v0, %v331_v62 }
  0xec   : > { %789 = vst [vmem:[#allocation2 + $0x8] sm:$0xff] %v781_v4 }
  0xee   : > { %v736_v9 = vpop.f32.mrf.mxu3 }
  0xef   : > { %v717_v7 = vpop.f32.mrf.mxu2 }
  0xf0   : > { %v718_v8 = vadd.f32 %v717_v7, %v699_v5  ;;  %v767_v13 = vpop.f32.mrf.mxu1 }
  0xf1   : > { %v748_v10 = vpop.f32.mrf.mxu0 }
  0xf2   : > { %v783_v11 = vadd.f32 %v718_v8, %v333_v6  ;;  %v749_v12 = vadd.f32 %v748_v10, %v729_v49 }
  0xf4   : > { %791 = vst [vmem:[#allocation2 + $0x28] sm:$0xff] %v783_v11  ;;  %v768_v15 = vadd.f32 %v767_v13, %v749_v12 }
  0xf6   : > { %v778_v16 = vadd.f32 %v768_v15, %v328_v14 }
  0xf7   : > { %v753_v17 = vpop.f32.mrf.mxu2 }
  0xf8   : > { %786 = vst [vmem:[#allocation2] sm:$0xff] %v778_v16  ;;  %v754_v18 = vadd.f32 %v753_v17, %v734_v1  ;;  %v772_v19 = vpop.f32.mrf.mxu3  ;;  %v769_v25 = vpop.f32.mrf.mxu1 }
  0xf9   : > { %v750_v21 = vpop.f32.mrf.mxu0 }
  0xfa   : > { %v773_v22 = vadd.f32 %v772_v19, %v754_v18  ;;  %v751_v23 = vadd.f32 %v750_v21, %v731_v56 }
  0xfc   : > { %v782_v26 = vadd.f32 %v773_v22, %v332_v20  ;;  %v770_v27 = vadd.f32 %v769_v25, %v751_v23 }
  0xfe   : > { %790 = vst [vmem:[#allocation2 + $0x20] sm:$0xff] %v782_v26  ;;  %v780_v28 = vadd.f32 %v770_v27, %v330_v24 }
  0xff   : > { %v755_v29 = vpop.f32.mrf.mxu2 }
 0x100   : > { %788 = vst [vmem:[#allocation2 + $0x10] sm:$0xff] %v780_v28  ;;  %v756_v30 = vadd.f32 %v755_v29, %v736_v9  ;;  %v774_v32 = vpop.f32.mrf.mxu3 }
 0x102   : > { %v775_v33 = vadd.f32 %v774_v32, %v756_v30  ;;  %796 = sbr.rel (%p1195_p11) target bundleno = 277 (0x115), region = 66 }
 0x104   : > { %v784_v34 = vadd.f32 %v775_v33, %v334_v31 }
 0x106   : > { %792 = vst [vmem:[#allocation2 + $0x38] sm:$0xff] %v784_v34 }
 0x107   : > { %v797_v35 = vld [vmem:[#allocation2 + $0x30] sm:$0xff]  ;;  %v798_v36 = vld [vmem:[#allocation2] sm:$0xff]  ;;  %v799_v40 = vld [vmem:[#allocation2 + $0x18] sm:$0xff] }
 0x108   : > { %v805_v37 = vld [vmem:[%s1580_s2] sm:$0x3]  ;;  %v800_v41 = vld [vmem:[#allocation2 + $0x10] sm:$0xff]  ;;  %v801_v42 = vld [vmem:[#allocation2 + $0x8] sm:$0xff] }
 0x109   : > { %v807_v38 = vperm.slane %v805_v37, 0  ;;  %v808_v39 = vperm.slane %v805_v37, 1  ;;  %v802_v43 = vld [vmem:[#allocation2 + $0x20] sm:$0xff]  ;;  %v803_v44 = vld [vmem:[#allocation2 + $0x28] sm:$0xff] }
 0x10b   : > { %v811_v46 = vadd.f32 %v807_v38, %v797_v35  ;;  %v812_v47 = vadd.f32 %v808_v39, %v798_v36  ;;  %v813_v48 = vadd.f32 %v807_v38, %v799_v40  ;;  %v814_v49 = vadd.f32 %v808_v39, %v800_v41 }
 0x10c   : > { %v815_v50 = vadd.f32 %v807_v38, %v801_v42  ;;  %v816_v51 = vadd.f32 %v808_v39, %v802_v43  ;;  %v817_v52 = vadd.f32 %v807_v38, %v803_v44 }
 0x10d   : > { %v804_v45 = vld [vmem:[#allocation2 + $0x38] sm:$0xff]  ;;  %v819_v54 = vmax.f32 %v811_v46, 0.0  ;;  %v820_v55 = vmax.f32 %v812_v47, 0.0  ;;  %v821_v58 = vmax.f32 %v813_v48, 0.0  ;;  %v822_v56 = vmax.f32 %v814_v49, 0.0 }
 0x10e   : > { %v818_v53 = vadd.f32 %v808_v39, %v804_v45  ;;  %v823_v59 = vmax.f32 %v815_v50, 0.0  ;;  %v824_v60 = vmax.f32 %v816_v51, 0.0  ;;  %v825_v57 = vmax.f32 %v817_v52, 0.0 }
 0x10f   : > { %v827_v62 = vpack.c.bf16 %v820_v55, %v819_v54  ;;  %v828_v63 = vpack.c.bf16 %v822_v56, %v821_v58 }
 0x110   : > { %v826_v61 = vmax.f32 %v818_v53, 0.0  ;;  %v829_v0 = vpack.c.bf16 %v824_v60, %v823_v59 }
 0x111   : > { %831 = vst [vmem:[%s1581_s3] sm:$0xff] %v827_v62 }
 0x112   : > { %v830_v1 = vpack.c.bf16 %v826_v61, %v825_v57  ;;  %832 = vst [vmem:[%s1581_s3 + $0x8] sm:$0xff] %v828_v63 }
 0x113   : > { %833 = vst [vmem:[%s1581_s3 + $0x10] sm:$0xff] %v829_v0 }
 0x114   : > { %834 = vst [vmem:[%s1581_s3 + $0x18] sm:$0xff] %v830_v1 }
 0x115 PF: > { %s13_s16 = sadd.s32 1, %s1353_s16   ;;  %s1582_s12 = smov %s1341_s13 }
 0x116   : > { %p10_p12 = scmp.ge.s32.totalorder %s13_s16, 5   ;;  %s1583_s13 = smov %s1411_s20 }
 0x117   : > { %s1584_s14 = smov %s1349_s15  ;;  %s1585_s15 = smov %s1587_s17 }
 0x118   :  { %12 = sbr.rel (!%p10_p12) target bundleno = 3 (0x3), region = 113 }

// kernel: base_regressor_forward.16
= control target key start
LH: loop header
LB: loop body
LE: loop exit
PB: predicated region body
PF: predicated region fallthrough
CT: control target
= control target key end

     0   :  { %s1376_s12 = smov 0   ;;  %s1378_s13 = smov 0   ;;  %s1578_s0 = inlined_call_operand.vmem [shape: bf16[32,2304], index: 0, kind: input, shape index: {}]   ;;  %s1579_s1 = inlined_call_operand.vmem [shape: bf16[2304,256], index: 1, kind: input, shape index: {}]   ;;  %s1580_s2 = inlined_call_operand.vmem [shape: f32[1,256], index: 2, kind: input, shape index: {}]   ;;  %s1581_s3 = inlined_call_operand.vmem [shape: bf16[32,256], index: 3, kind: output, shape index: {}]  }
   0x1   :  { %s1380_s14 = smov 0   ;;  %s1382_s15 = smov 0  }
   0x2   :  { %s1384_s16 = smov 0  }
   0x3 LB: > { %s25_s17 = sadd.s32 1, %s1349_s15  ;;  %p48_p1 = scmp.ne.s32.totalorder %s1341_s13, %s1337_s12  ;;  %s1353_s16 = sphi %s1384_s16, %s13_s16   ;;  %s1349_s15 = sphi %s1382_s15, %s1585_s15   ;;  %s1345_s14 = sphi %s1380_s14, %s1584_s14   ;;  %s1341_s13 = sphi %s1378_s13, %s1583_s13   ;;  %s1337_s12 = sphi %s1376_s12, %s1582_s12  }
   0x4   : > { %p26_p0 = scmp.ge.s32.totalorder %s25_s17, 6  ;;  %p49_p2 = scmp.eq.s32.totalorder %s1353_s16, 0 }
   0x5   : > { %s41_s19 = sadd.s32 1, %s1341_s13  ;;  %p965_p5 = scmp.ge.s32.totalorder %s1353_s16, 6 }
   0x6   : > { %s1587_s17 = smov (%p26_p0, %s25_s17), 0  ;;  %p50_p3 = por %p49_p2, %p48_p1 }
   0x7   : > { %s37_s18 = ssub.s32 %s1349_s15, %s1587_s17  ;;  %164 = sbr.rel (%p965_p5) target bundleno = 25 (0x19), region = 20 }
   0x8   : > { %p39_p4 = scmp.eq.s32.totalorder %s37_s18, 0 }
   0xa   : > { %s1411_s20 = scalar_select %p39_p4, %s1341_s13, %s41_s19  }
   0xc   : > { %167 = sbr.rel (!%p50_p3) target bundleno = 25 (0x19), region = 24  ;;  %s169_s21 = sand.u32 (%p50_p3), 1, %s1341_s13  }
   0xd   : > { %s1200_s22 = smul.u32 (%p50_p3), 12, %s1349_s15 }
   0xe   : > { %s1272_s23 = smul.u32 (%p50_p3), 48, %s169_s21 }
   0xf   : > { %s177_s26 = scalar_lea.vmem (%p50_p3), %s1578_s0, %s1200_s22 }
  0x10   : > { %v192_v0 = vld [vmem:[%s177_s26] sm:$0xff] (%p50_p3)  ;;  %v194_v1 = vld [vmem:[%s177_s26 + $0x48] sm:$0xff] (%p50_p3)  ;;  %v196_v2 = vld [vmem:[%s177_s26 + $0x90] sm:$0xff] (%p50_p3)  ;;  %s171_s27 = scalar_lea.vmem (%p50_p3), [#allocation3], %s1272_s23 }
  0x11   : > { %193 = vst [vmem:[%s171_s27] sm:$0xff] %v192_v0  ;;  %v198_v3 = vld [vmem:[%s177_s26 + $0xd8] sm:$0xff]  ;;  %v967_v4 = vld [vmem:[%s177_s26 + $0x8] sm:$0xf]  ;;  %v969_v5 = vld [vmem:[%s177_s26 + $0x50] sm:$0xf] }
  0x12   : > { %195 = vst [vmem:[%s171_s27 + $0xc] sm:$0xff] %v194_v1  ;;  %v971_v6 = vld [vmem:[%s177_s26 + $0x98] sm:$0xf]  ;;  %v973_v7 = vld [vmem:[%s177_s26 + $0xe0] sm:$0xf] }
  0x13   : > { %197 = vst [vmem:[%s171_s27 + $0x18] sm:$0xff] %v196_v2 }
  0x14   : > { %199 = vst [vmem:[%s171_s27 + $0x24] sm:$0xff] %v198_v3 }
  0x15   : > { %968 = vst [vmem:[%s171_s27 + $0x8] sm:$0xf] %v967_v4 }
  0x16   : > { %970 = vst [vmem:[%s171_s27 + $0x14] sm:$0xf] %v969_v5 }
  0x17   : > { %972 = vst [vmem:[%s171_s27 + $0x20] sm:$0xf] %v971_v6 }
  0x18   : > { %974 = vst [vmem:[%s171_s27 + $0x2c] sm:$0xf] %v973_v7 }
  0x19 PF: > { %p975_p6 = scmp.ge.s32.totalorder %s1353_s16, 1  ;;  %p235_p7 = scmp.lt.s32.totalorder %s1353_s16, 7 }
  0x1b   : > { %p236_p8 = pnand %p975_p6, %p235_p7 }
  0x1c   : > { %s242_s28 = sand.u32 (!%p236_p8), 1, %s1337_s12   ;;  %s286_s29 = smul.u32 (!%p236_p8), 48, %s1345_s14 }
  0x1d   : > { %239 = sbr.rel (%p236_p8) target bundleno = 277 (0x115), region = 54  ;;  %p978_p10 = scmp.ne.s32.totalorder (!%p236_p8), %s1345_s14, 0 }
  0x1e   : > { %s1273_s30 = smul.u32 (!%p236_p8), 48, %s242_s28  ;;  %p288_p9 = scmp.lt.s32.totalorder (!%p236_p8), %s286_s29, 287 }
  0x20   : > { %s1428_s8 = scalar_lea.vmem (!%p236_p8), [#allocation3], %s1273_s30 }
  0x22   : > { %s1589_s29 = smov (!%p288_p9, %s286_s29), 287  ;;  %318 = sbr.rel (%p978_p10) target bundleno = 48 (0x30), region = 62 }
  0x23   : > { %s1201_s4 = sshll.u32 %s1589_s29, 3 }
  0x24   : > { %s1426_s7 = scalar_lea.vmem %s1579_s1, %s1201_s4 }
  0x27   : > { %v1355_v8 = vmov 0.0  }
  0x28   : > { %319 = vst [vmem:[#allocation2 + $0x30] sm:$0xff] %v1355_v8 }
  0x29   : > { %320 = vst [vmem:[#allocation2] sm:$0xff] %v1355_v8 }
  0x2a   : > { %321 = vst [vmem:[#allocation2 + $0x18] sm:$0xff] %v1355_v8 }
  0x2b   : > { %322 = vst [vmem:[#allocation2 + $0x10] sm:$0xff] %v1355_v8 }
  0x2c   : > { %323 = vst [vmem:[#allocation2 + $0x8] sm:$0xff] %v1355_v8 }
  0x2d   : > { %324 = vst [vmem:[#allocation2 + $0x20] sm:$0xff] %v1355_v8 }
  0x2e   : > { %325 = vst [vmem:[#allocation2 + $0x28] sm:$0xff] %v1355_v8 }
  0x2f   : > { %326 = vst [vmem:[#allocation2 + $0x38] sm:$0xff] %v1355_v8 }
  0x30 PF: > { %v1061_v9 = vld [vmem:[%s1426_s7 + $0x70] sm:$0xf]  ;;  %v1223_v10 = vld [vmem:[%s1426_s7 + $0x74] sm:$0xf0]  ;;  %v1222_v18 = vld [vmem:[%s1426_s7 + $0x74] sm:$0xf] }
  0x31   : > { %v1125_v11 = vld [vmem:[%s1426_s7 + $0xf0] sm:$0xf]  ;;  %v1062_v12 = vor.u32 %v1223_v10, %v1061_v9  ;;  %v1239_v13 = vld [vmem:[%s1426_s7 + $0xf4] sm:$0xf0]  ;;  %v1063_v19 = vld [vmem:[%s1426_s7 + $0x78] sm:$0xf0] }
  0x32   : > { %v1189_v14 = vld [vmem:[%s1426_s7 + $0x170] sm:$0xf]  ;;  %v1255_v15 = vld [vmem:[%s1426_s7 + $0x174] sm:$0xf0]  ;;  %v1126_v16 = vor.u32 %v1239_v13, %v1125_v11  ;;  %v1053_v20 = vld [vmem:[%s1426_s7 + $0x60] sm:$0xf]  ;;  %v1066_v21 = vor.u32 %v1222_v18, %v1063_v19 }
  0x33   : > { %v1190_v17 = vor.u32 %v1255_v15, %v1189_v14  ;;  %663 = vmatpush.bf16.msra.mxu0 %v1062_v12  ;;  %v1221_v22 = vld [vmem:[%s1426_s7 + $0x64] sm:$0xf0]  ;;  %v1117_v23 = vld [vmem:[%s1426_s7 + $0xe0] sm:$0xf]  ;;  %v1220_v29 = vld [vmem:[%s1426_s7 + $0x64] sm:$0xf] }
  0x34   : > { %v1237_v24 = vld [vmem:[%s1426_s7 + $0xe4] sm:$0xf0]  ;;  %682 = vmatpush.bf16.msra.mxu1 %v1126_v16  ;;  %v1054_v25 = vor.u32 %v1221_v22, %v1053_v20  ;;  %v1181_v27 = vld [vmem:[%s1426_s7 + $0x160] sm:$0xf]  ;;  %720 = vmatpush.bf16.msra.mxu3 %v1066_v21  ;;  %v1055_v31 = vld [vmem:[%s1426_s7 + $0x68] sm:$0xf0] }
  0x35   : > { %701 = vmatpush.bf16.msra.mxu2 %v1190_v17  ;;  %v1118_v26 = vor.u32 %v1237_v24, %v1117_v23  ;;  %v1253_v28 = vld [vmem:[%s1426_s7 + $0x164] sm:$0xf0]  ;;  %v1045_v32 = vld [vmem:[%s1426_s7 + $0x50] sm:$0xf]  ;;  %v1219_v33 = vld [vmem:[%s1426_s7 + $0x54] sm:$0xf0]  ;;  %v1058_v34 = vor.u32 %v1220_v29, %v1055_v31 }
  0x36   : > { %v1182_v30 = vor.u32 %v1253_v28, %v1181_v27  ;;  %v1109_v35 = vld [vmem:[%s1426_s7 + $0xd0] sm:$0xf]  ;;  %v1235_v36 = vld [vmem:[%s1426_s7 + $0xd4] sm:$0xf0]  ;;  %v1046_v38 = vor.u32 %v1219_v33, %v1045_v32  ;;  %v1218_v40 = vld [vmem:[%s1426_s7 + $0x54] sm:$0xf] }
  0x37   : > { %v1173_v37 = vld [vmem:[%s1426_s7 + $0x150] sm:$0xf]  ;;  %664 = vmatpush.bf16.msra.mxu0 %v1054_v25  ;;  %v1251_v39 = vld [vmem:[%s1426_s7 + $0x154] sm:$0xf0]  ;;  %v1047_v41 = vld [vmem:[%s1426_s7 + $0x58] sm:$0xf0]  ;;  %v1110_v42 = vor.u32 %v1235_v36, %v1109_v35 }
  0x38   : > { %683 = vmatpush.bf16.msra.mxu1 %v1118_v26  ;;  %v1174_v43 = vor.u32 %v1251_v39, %v1173_v37  ;;  %v1037_v44 = vld [vmem:[%s1426_s7 + $0x40] sm:$0xf]  ;;  %v1217_v45 = vld [vmem:[%s1426_s7 + $0x44] sm:$0xf0]  ;;  %721 = vmatpush.bf16.msra.mxu3 %v1058_v34  ;;  %v1050_v47 = vor.u32 %v1218_v40, %v1047_v41  ;;  %v1216_v51 = vld [vmem:[%s1426_s7 + $0x44] sm:$0xf] }
  0x39   : > { %702 = vmatpush.bf16.msra.mxu2 %v1182_v30  ;;  %v1101_v46 = vld [vmem:[%s1426_s7 + $0xc0] sm:$0xf]  ;;  %v1233_v48 = vld [vmem:[%s1426_s7 + $0xc4] sm:$0xf0]  ;;  %v1039_v52 = vld [vmem:[%s1426_s7 + $0x48] sm:$0xf0]  ;;  %v1038_v53 = vor.u32 %v1217_v45, %v1037_v44 }
  0x3a   : > { %v1165_v49 = vld [vmem:[%s1426_s7 + $0x140] sm:$0xf]  ;;  %v1249_v50 = vld [vmem:[%s1426_s7 + $0x144] sm:$0xf0]  ;;  %v1102_v54 = vor.u32 %v1233_v48, %v1101_v46  ;;  %v1029_v56 = vld [vmem:[%s1426_s7 + $0x30] sm:$0xf]  ;;  %v1042_v59 = vor.u32 %v1216_v51, %v1039_v52 }
  0x3b   : > { %665 = vmatpush.bf16.msra.mxu0 %v1046_v38  ;;  %v1166_v55 = vor.u32 %v1249_v50, %v1165_v49  ;;  %v1215_v57 = vld [vmem:[%s1426_s7 + $0x34] sm:$0xf0]  ;;  %v1093_v58 = vld [vmem:[%s1426_s7 + $0xb0] sm:$0xf]  ;;  %v1214_v63 = vld [vmem:[%s1426_s7 + $0x34] sm:$0xf] }
  0x3c   : > { %684 = vmatpush.bf16.msra.mxu1 %v1110_v42  ;;  %722 = vmatpush.bf16.msra.mxu3 %v1050_v47  ;;  %v1231_v60 = vld [vmem:[%s1426_s7 + $0xb4] sm:$0xf0]  ;;  %v1157_v61 = vld [vmem:[%s1426_s7 + $0x130] sm:$0xf]  ;;  %v1031_v0 = vld [vmem:[%s1426_s7 + $0x38] sm:$0xf0]  ;;  %v1030_v1 = vor.u32 %v1215_v57, %v1029_v56 }
  0x3d   : > { %703 = vmatpush.bf16.msra.mxu2 %v1174_v43  ;;  %v1247_v62 = vld [vmem:[%s1426_s7 + $0x134] sm:$0xf0]  ;;  %v1094_v2 = vor.u32 %v1231_v60, %v1093_v58  ;;  %v1021_v4 = vld [vmem:[%s1426_s7 + $0x20] sm:$0xf]  ;;  %v1213_v5 = vld [vmem:[%s1426_s7 + $0x24] sm:$0xf0]  ;;  %v1034_v7 = vor.u32 %v1214_v63, %v1031_v0 }
  0x3e   : > { %v1158_v3 = vor.u32 %v1247_v62, %v1157_v61  ;;  %v1085_v6 = vld [vmem:[%s1426_s7 + $0xa0] sm:$0xf]  ;;  %v1229_v8 = vld [vmem:[%s1426_s7 + $0xa4] sm:$0xf0]  ;;  %v1212_v11 = vld [vmem:[%s1426_s7 + $0x24] sm:$0xf]  ;;  %v1022_v13 = vor.u32 %v1213_v5, %v1021_v4 }
  0x3f   : > { %666 = vmatpush.bf16.msra.mxu0 %v1038_v53  ;;  %v1149_v9 = vld [vmem:[%s1426_s7 + $0x120] sm:$0xf]  ;;  %v1245_v10 = vld [vmem:[%s1426_s7 + $0x124] sm:$0xf0]  ;;  %v1023_v12 = vld [vmem:[%s1426_s7 + $0x28] sm:$0xf0]  ;;  %v1086_v14 = vor.u32 %v1229_v8, %v1085_v6 }
  0x40   : > { %685 = vmatpush.bf16.msra.mxu1 %v1102_v54  ;;  %723 = vmatpush.bf16.msra.mxu3 %v1042_v59  ;;  %v1150_v15 = vor.u32 %v1245_v10, %v1149_v9  ;;  %v1013_v16 = vld [vmem:[%s1426_s7 + $0x10] sm:$0xf]  ;;  %v1211_v17 = vld [vmem:[%s1426_s7 + $0x14] sm:$0xf0]  ;;  %v1026_v19 = vor.u32 %v1212_v11, %v1023_v12  ;;  %v1210_v23 = vld [vmem:[%s1426_s7 + $0x14] sm:$0xf] }
  0x41   : > { %704 = vmatpush.bf16.msra.mxu2 %v1166_v55  ;;  %v1077_v18 = vld [vmem:[%s1426_s7 + $0x90] sm:$0xf]  ;;  %v1227_v20 = vld [vmem:[%s1426_s7 + $0x94] sm:$0xf0]  ;;  %v1015_v24 = vld [vmem:[%s1426_s7 + $0x18] sm:$0xf0]  ;;  %v1014_v25 = vor.u32 %v1211_v17, %v1013_v16 }
  0x42   : > { %v1141_v21 = vld [vmem:[%s1426_s7 + $0x110] sm:$0xf]  ;;  %v1243_v22 = vld [vmem:[%s1426_s7 + $0x114] sm:$0xf0]  ;;  %v1005_v26 = vld [vmem:[%s1426_s7] sm:$0xf]  ;;  %v1078_v29 = vor.u32 %v1227_v20, %v1077_v18  ;;  %v1018_v34 = vor.u32 %v1210_v23, %v1015_v24 }
  0x43   : > { %667 = vmatpush.bf16.msra.mxu0 %v1030_v1  ;;  %v1209_v27 = vld [vmem:[%s1426_s7 + $0x4] sm:$0xf0]  ;;  %v1069_v28 = vld [vmem:[%s1426_s7 + $0x80] sm:$0xf]  ;;  %v1142_v30 = vor.u32 %v1243_v22, %v1141_v21  ;;  %v1208_v35 = vld [vmem:[%s1426_s7 + $0x4] sm:$0xf] }
  0x44   : > { %686 = vmatpush.bf16.msra.mxu1 %v1094_v2  ;;  %724 = vmatpush.bf16.msra.mxu3 %v1034_v7  ;;  %v1225_v31 = vld [vmem:[%s1426_s7 + $0x84] sm:$0xf0]  ;;  %v1133_v32 = vld [vmem:[%s1426_s7 + $0x100] sm:$0xf]  ;;  %v1007_v36 = vld [vmem:[%s1426_s7 + $0x8] sm:$0xf0]  ;;  %v1006_v41 = vor.u32 %v1209_v27, %v1005_v26 }
  0x45   : > { %705 = vmatpush.bf16.msra.mxu2 %v1158_v3  ;;  %v1241_v33 = vld [vmem:[%s1426_s7 + $0x104] sm:$0xf0]  ;;  %v981_v37 = vld [vmem:[%s1428_s8] sm:$0xf]  ;;  %v1203_v38 = vld [vmem:[%s1428_s8 + $0x8] sm:$0xf0]  ;;  %v1070_v45 = vor.u32 %v1225_v31, %v1069_v28  ;;  %v1010_v50 = vor.u32 %v1208_v35, %v1007_v36 }
  0x46   : > { %v1238_v39 = vld [vmem:[%s1426_s7 + $0xf4] sm:$0xf]  ;;  %v1127_v40 = vld [vmem:[%s1426_s7 + $0xf8] sm:$0xf0]  ;;  %v1134_v46 = vor.u32 %v1241_v33, %v1133_v32  ;;  %v983_v47 = vld [vmem:[%s1428_s8 + $0xc] sm:$0xf0]  ;;  %v982_v52 = vor.u32 %v1203_v38, %v981_v37 }
  0x47   : > { %668 = vmatpush.bf16.msra.mxu0 %v1022_v13  ;;  %v1202_v42 = vld [vmem:[%s1428_s8 + $0x4] sm:$0xf]  ;;  %v1191_v44 = vld [vmem:[%s1426_s7 + $0x178] sm:$0xf0]  ;;  %v989_v48 = vld [vmem:[%s1428_s8 + $0x8] sm:$0xf]  ;;  %v1130_v51 = vor.u32 %v1238_v39, %v1127_v40 }
  0x48   : > { %687 = vmatpush.bf16.msra.mxu1 %v1086_v14  ;;  %725 = vmatpush.bf16.msra.mxu3 %v1026_v19  ;;  %v1254_v43 = vld [vmem:[%s1426_s7 + $0x174] sm:$0xf]  ;;  %v1236_v54 = vld [vmem:[%s1426_s7 + $0xe4] sm:$0xf]  ;;  %v1119_v55 = vld [vmem:[%s1426_s7 + $0xe8] sm:$0xf0]  ;;  %v1507_v56 = vor.u32 %v1202_v42, %v983_v47 }
  0x49   : > { %706 = vmatpush.bf16.msra.mxu2 %v1150_v15  ;;  %v1204_v49 = vld [vmem:[%s1428_s8 + $0x10] sm:$0xf0]  ;;  %v1194_v53 = vor.u32 %v1254_v43, %v1191_v44  ;;  %v1183_v59 = vld [vmem:[%s1426_s7 + $0x168] sm:$0xf0]  ;;  %v1122_v60 = vor.u32 %v1236_v54, %v1119_v55  ;;  %v1111_v63 = vld [vmem:[%s1426_s7 + $0xd8] sm:$0xf0] }
  0x4a   : > { %v1509_v57 = vor.u32 %v1204_v49, %v989_v48  ;;  %v1252_v58 = vld [vmem:[%s1426_s7 + $0x164] sm:$0xf]  ;;  %v1234_v62 = vld [vmem:[%s1426_s7 + $0xd4] sm:$0xf]  ;;  %v1175_v1 = vld [vmem:[%s1426_s7 + $0x158] sm:$0xf0] }
  0x4b   : > { %669 = vmatpush.bf16.msra.mxu0 %v1014_v25  ;;  %v1186_v61 = vor.u32 %v1252_v58, %v1183_v59  ;;  %v1250_v0 = vld [vmem:[%s1426_s7 + $0x154] sm:$0xf]  ;;  %v1114_v2 = vor.u32 %v1234_v62, %v1111_v63  ;;  %v1232_v4 = vld [vmem:[%s1426_s7 + $0xc4] sm:$0xf]  ;;  %v1103_v5 = vld [vmem:[%s1426_s7 + $0xc8] sm:$0xf0] }
  0x4c   : > { %688 = vmatpush.bf16.msra.mxu1 %v1078_v29  ;;  %726 = vmatpush.bf16.msra.mxu3 %v1018_v34  ;;  %v1178_v3 = vor.u32 %v1250_v0, %v1175_v1  ;;  %v1248_v6 = vld [vmem:[%s1426_s7 + $0x144] sm:$0xf]  ;;  %v1167_v7 = vld [vmem:[%s1426_s7 + $0x148] sm:$0xf0]  ;;  %v1106_v8 = vor.u32 %v1232_v4, %v1103_v5  ;;  %v993_v9 = vld [vmem:[%s1428_s8 + $0x18] sm:$0xf] }
  0x4d   : > { %707 = vmatpush.bf16.msra.mxu2 %v1142_v30  ;;  %v1170_v10 = vor.u32 %v1248_v6, %v1167_v7  ;;  %v1206_v11 = vld [vmem:[%s1428_s8 + $0x20] sm:$0xf0]  ;;  %v1095_v13 = vld [vmem:[%s1426_s7 + $0xb8] sm:$0xf0]  ;;  %v995_v17 = vld [vmem:[%s1428_s8 + $0x24] sm:$0xf0] }
  0x4e   : > { %v1230_v12 = vld [vmem:[%s1426_s7 + $0xb4] sm:$0xf]  ;;  %v1205_v14 = vld [vmem:[%s1428_s8 + $0x1c] sm:$0xf]  ;;  %v1001_v18 = vld [vmem:[%s1428_s8 + $0x20] sm:$0xf]  ;;  %v994_v21 = vor.u32 %v1206_v11, %v993_v9 }
  0x4f   : > { %670 = vmatpush.bf16.msra.mxu0 %v1006_v41  ;;  %v1246_v15 = vld [vmem:[%s1426_s7 + $0x134] sm:$0xf]  ;;  %v1159_v16 = vld [vmem:[%s1426_s7 + $0x138] sm:$0xf0]  ;;  %v1098_v20 = vor.u32 %v1230_v12, %v1095_v13  ;;  %v1228_v23 = vld [vmem:[%s1426_s7 + $0xa4] sm:$0xf]  ;;  %v998_v25 = vor.u32 %v1205_v14, %v995_v17 }
  0x50   : > { %689 = vmatpush.bf16.msra.mxu1 %v1070_v45  ;;  %727 = vmatpush.bf16.msra.mxu3 %v1010_v50  ;;  %v1207_v19 = vld [vmem:[%s1428_s8 + $0x28] sm:$0xf0]  ;;  %v1162_v22 = vor.u32 %v1246_v15, %v1159_v16  ;;  %v1244_v27 = vld [vmem:[%s1426_s7 + $0x124] sm:$0xf]  ;;  %v1226_v31 = vld [vmem:[%s1426_s7 + $0x94] sm:$0xf] }
  0x51   : > { %708 = vmatpush.bf16.msra.mxu2 %v1134_v46  ;;  %v1087_v24 = vld [vmem:[%s1426_s7 + $0xa8] sm:$0xf0]  ;;  %v1002_v26 = vor.u32 %v1207_v19, %v1001_v18  ;;  %v1079_v32 = vld [vmem:[%s1426_s7 + $0x98] sm:$0xf0]  ;;  %v1242_v33 = vld [vmem:[%s1426_s7 + $0x114] sm:$0xf] }
  0x52   : > { %671 = vmatmul.bf16.vlgmr.msra.gmra.mxu0 %v982_v52  ;;  %v1151_v28 = vld [vmem:[%s1426_s7 + $0x128] sm:$0xf0]  ;;  %v1090_v29 = vor.u32 %v1228_v23, %v1087_v24  ;;  %v1143_v34 = vld [vmem:[%s1426_s7 + $0x118] sm:$0xf0]  ;;  %v1082_v35 = vor.u32 %v1226_v31, %v1079_v32  ;;  %v1224_v37 = vld [vmem:[%s1426_s7 + $0x84] sm:$0xf] }
  0x53   : > { %690 = vmatmul.bf16.vlgmr.msra.gmra.mxu1 %v1507_v56  ;;  %728 = vmatmul.bf16.vlgmr.msra.gmra.mxu3 %v982_v52  ;;  %v1154_v30 = vor.u32 %v1244_v27, %v1151_v28  ;;  %v1146_v36 = vor.u32 %v1242_v33, %v1143_v34  ;;  %v1071_v38 = vld [vmem:[%s1426_s7 + $0x88] sm:$0xf0]  ;;  %v1240_v39 = vld [vmem:[%s1426_s7 + $0x104] sm:$0xf]  ;;  %v327_v46 = vld [vmem:[#allocation2 + $0x30] sm:$0xff]  ;;  %p1195_p11 = scmp.ne.s32.totalorder %s1345_s14, 5 }
  0x54   : > { %758 = vmatpush.bf16.msrb.mxu1 %v1194_v53  ;;  %709 = vmatmul.bf16.vlgmr.msra.gmra.mxu2 %v1509_v57  ;;  %v1135_v40 = vld [vmem:[%s1426_s7 + $0x108] sm:$0xf0]  ;;  %v1074_v41 = vor.u32 %v1224_v37, %v1071_v38  ;;  %v329_v54 = vld [vmem:[#allocation2 + $0x18] sm:$0xff]  ;;  %v328_v14 = vld [vmem:[#allocation2] sm:$0xff] }
  0x55   : > { %1256 = vmatpush.bf16.msrb.mxu2 %v1130_v51  ;;  %739 = vmatpush.bf16.msrb.mxu0 %v1130_v51  ;;  %v1138_v42 = vor.u32 %v1240_v39, %v1135_v40  ;;  %v331_v62 = vld [vmem:[#allocation2 + $0x8] sm:$0xff]  ;;  %v330_v24 = vld [vmem:[#allocation2 + $0x10] sm:$0xff]  ;;  %v334_v31 = vld [vmem:[#allocation2 + $0x38] sm:$0xff] }
  0x56   : > { %1264 = vmatpush.bf16.msrb.mxu3 %v1194_v53  ;;  %v333_v6 = vld [vmem:[#allocation2 + $0x28] sm:$0xff] }
  0x58   : > { %759 = vmatpush.bf16.msrb.mxu1 %v1186_v61 }
  0x59   : > { %1257 = vmatpush.bf16.msrb.mxu2 %v1122_v60  ;;  %740 = vmatpush.bf16.msrb.mxu0 %v1122_v60 }
  0x5a   : > { %1265 = vmatpush.bf16.msrb.mxu3 %v1186_v61 }
  0x5c   : > { %760 = vmatpush.bf16.msrb.mxu1 %v1178_v3 }
  0x5d   : > { %1258 = vmatpush.bf16.msrb.mxu2 %v1114_v2  ;;  %741 = vmatpush.bf16.msrb.mxu0 %v1114_v2 }
  0x5e   : > { %1266 = vmatpush.bf16.msrb.mxu3 %v1178_v3 }
  0x60   : > { %761 = vmatpush.bf16.msrb.mxu1 %v1170_v10 }
  0x61   : > { %1259 = vmatpush.bf16.msrb.mxu2 %v1106_v8  ;;  %742 = vmatpush.bf16.msrb.mxu0 %v1106_v8 }
  0x62   : > { %1267 = vmatpush.bf16.msrb.mxu3 %v1170_v10  ;;  %676 = vmatmul.bf16.gmra.mxu0 %v994_v21 }
  0x63   : > { %695 = vmatmul.bf16.gmra.mxu1 %v998_v25  ;;  %733 = vmatmul.bf16.gmra.mxu3 %v994_v21 }
  0x64   : > { %762 = vmatpush.bf16.msrb.mxu1 %v1162_v22  ;;  %714 = vmatmul.bf16.gmra.mxu2 %v1002_v26 }
  0x65   : > { %1260 = vmatpush.bf16.msrb.mxu2 %v1098_v20  ;;  %743 = vmatpush.bf16.msrb.mxu0 %v1098_v20  ;;  %v332_v20 = vld [vmem:[#allocation2 + $0x20] sm:$0xff] }
  0x66   : > { %1268 = vmatpush.bf16.msrb.mxu3 %v1162_v22 }
  0x68   : > { %763 = vmatpush.bf16.msrb.mxu1 %v1154_v30 }
  0x69   : > { %1261 = vmatpush.bf16.msrb.mxu2 %v1090_v29  ;;  %744 = vmatpush.bf16.msrb.mxu0 %v1090_v29 }
  0x6a   : > { %1269 = vmatpush.bf16.msrb.mxu3 %v1154_v30 }
  0x6c   : > { %764 = vmatpush.bf16.msrb.mxu1 %v1146_v36 }
  0x6d   : > { %1262 = vmatpush.bf16.msrb.mxu2 %v1082_v35  ;;  %745 = vmatpush.bf16.msrb.mxu0 %v1082_v35 }
  0x6e   : > { %1270 = vmatpush.bf16.msrb.mxu3 %v1146_v36 }
  0x70   : > { %765 = vmatpush.bf16.msrb.mxu1 %v1138_v42 }
  0x71   : > { %1263 = vmatpush.bf16.msrb.mxu2 %v1074_v41  ;;  %746 = vmatpush.bf16.msrb.mxu0 %v1074_v41 }
  0x72   : > { %1271 = vmatpush.bf16.msrb.mxu3 %v1138_v42 }
  0x73   : > { %766 = vmatmul.bf16.vlgmr.msrb.gmra.mxu1 %v1509_v57 }
  0x74   : > { %747 = vmatmul.bf16.vlgmr.msrb.gmra.mxu0 %v1507_v56  ;;  %752 = vmatmul.bf16.vlgmr.msrb.gmra.mxu2 %v998_v25 }
  0x75   : > { %771 = vmatmul.bf16.vlgmr.msrb.gmra.mxu3 %v1002_v26 }
  0xcf   : > { %v672_v43 = vpop.f32.mrf.mxu0 }
  0xd0   : > { %v691_v44 = vpop.f32.mrf.mxu1 }
  0xd1   : > { %v692_v45 = vadd.f32 %v691_v44, %v672_v43 }
  0xd6   : > { %v729_v49 = vpop.f32.mrf.mxu3 }
  0xd7   : > { %v710_v47 = vpop.f32.mrf.mxu2  ;;  %v674_v50 = vpop.f32.mrf.mxu0 }
  0xd8   : > { %v711_v48 = vadd.f32 %v710_v47, %v692_v45  ;;  %v693_v51 = vpop.f32.mrf.mxu1 }
  0xd9   : > { %v694_v53 = vadd.f32 %v693_v51, %v674_v50 }
  0xda   : > { %v777_v52 = vadd.f32 %v711_v48, %v327_v46 }
  0xdc   : > { %785 = vst [vmem:[#allocation2 + $0x30] sm:$0xff] %v777_v52 }
  0xde   : > { %v731_v56 = vpop.f32.mrf.mxu3 }
  0xdf   : > { %v712_v55 = vpop.f32.mrf.mxu2  ;;  %v677_v59 = vpop.f32.mrf.mxu0 }
  0xe0   : > { %v713_v58 = vadd.f32 %v712_v55, %v694_v53  ;;  %v696_v60 = vpop.f32.mrf.mxu1 }
  0xe1   : > { %v697_v61 = vadd.f32 %v696_v60, %v677_v59 }
  0xe2   : > { %v779_v57 = vadd.f32 %v713_v58, %v329_v54 }
  0xe4   : > { %787 = vst [vmem:[#allocation2 + $0x18] sm:$0xff] %v779_v57 }
  0xe6   : > { %v734_v1 = vpop.f32.mrf.mxu3 }
  0xe7   : > { %v715_v63 = vpop.f32.mrf.mxu2  ;;  %v679_v2 = vpop.f32.mrf.mxu0 }
  0xe8   : > { %v716_v0 = vadd.f32 %v715_v63, %v697_v61  ;;  %v698_v3 = vpop.f32.mrf.mxu1 }
  0xe9   : > { %v699_v5 = vadd.f32 %v698_v3, %v679_v2 }
  0xea   : > { %v781_v4 = vadd.f32 %v716_v0, %v331_v62 }
  0xec   : > { %789 = vst [vmem:[#allocation2 + $0x8] sm:$0xff] %v781_v4 }
  0xee   : > { %v736_v9 = vpop.f32.mrf.mxu3 }
  0xef   : > { %v717_v7 = vpop.f32.mrf.mxu2 }
  0xf0   : > { %v718_v8 = vadd.f32 %v717_v7, %v699_v5  ;;  %v767_v13 = vpop.f32.mrf.mxu1 }
  0xf1   : > { %v748_v10 = vpop.f32.mrf.mxu0 }
  0xf2   : > { %v783_v11 = vadd.f32 %v718_v8, %v333_v6  ;;  %v749_v12 = vadd.f32 %v748_v10, %v729_v49 }
  0xf4   : > { %791 = vst [vmem:[#allocation2 + $0x28] sm:$0xff] %v783_v11  ;;  %v768_v15 = vadd.f32 %v767_v13, %v749_v12 }
  0xf6   : > { %v778_v16 = vadd.f32 %v768_v15, %v328_v14 }
  0xf7   : > { %v753_v17 = vpop.f32.mrf.mxu2 }
  0xf8   : > { %786 = vst [vmem:[#allocation2] sm:$0xff] %v778_v16  ;;  %v754_v18 = vadd.f32 %v753_v17, %v734_v1  ;;  %v772_v19 = vpop.f32.mrf.mxu3  ;;  %v769_v25 = vpop.f32.mrf.mxu1 }
  0xf9   : > { %v750_v21 = vpop.f32.mrf.mxu0 }
  0xfa   : > { %v773_v22 = vadd.f32 %v772_v19, %v754_v18  ;;  %v751_v23 = vadd.f32 %v750_v21, %v731_v56 }
  0xfc   : > { %v782_v26 = vadd.f32 %v773_v22, %v332_v20  ;;  %v770_v27 = vadd.f32 %v769_v25, %v751_v23 }
  0xfe   : > { %790 = vst [vmem:[#allocation2 + $0x20] sm:$0xff] %v782_v26  ;;  %v780_v28 = vadd.f32 %v770_v27, %v330_v24 }
  0xff   : > { %v755_v29 = vpop.f32.mrf.mxu2 }
 0x100   : > { %788 = vst [vmem:[#allocation2 + $0x10] sm:$0xff] %v780_v28  ;;  %v756_v30 = vadd.f32 %v755_v29, %v736_v9  ;;  %v774_v32 = vpop.f32.mrf.mxu3 }
 0x102   : > { %v775_v33 = vadd.f32 %v774_v32, %v756_v30  ;;  %796 = sbr.rel (%p1195_p11) target bundleno = 277 (0x115), region = 66 }
 0x104   : > { %v784_v34 = vadd.f32 %v775_v33, %v334_v31 }
 0x106   : > { %792 = vst [vmem:[#allocation2 + $0x38] sm:$0xff] %v784_v34 }
 0x107   : > { %v797_v35 = vld [vmem:[#allocation2 + $0x30] sm:$0xff]  ;;  %v798_v36 = vld [vmem:[#allocation2] sm:$0xff]  ;;  %v799_v40 = vld [vmem:[#allocation2 + $0x18] sm:$0xff] }
 0x108   : > { %v805_v37 = vld [vmem:[%s1580_s2] sm:$0x3]  ;;  %v800_v41 = vld [vmem:[#allocation2 + $0x10] sm:$0xff]  ;;  %v801_v42 = vld [vmem:[#allocation2 + $0x8] sm:$0xff] }
 0x109   : > { %v807_v38 = vperm.slane %v805_v37, 0  ;;  %v808_v39 = vperm.slane %v805_v37, 1  ;;  %v802_v43 = vld [vmem:[#allocation2 + $0x20] sm:$0xff]  ;;  %v803_v44 = vld [vmem:[#allocation2 + $0x28] sm:$0xff] }
 0x10b   : > { %v811_v46 = vadd.f32 %v807_v38, %v797_v35  ;;  %v812_v47 = vadd.f32 %v808_v39, %v798_v36  ;;  %v813_v48 = vadd.f32 %v807_v38, %v799_v40  ;;  %v814_v49 = vadd.f32 %v808_v39, %v800_v41 }
 0x10c   : > { %v815_v50 = vadd.f32 %v807_v38, %v801_v42  ;;  %v816_v51 = vadd.f32 %v808_v39, %v802_v43  ;;  %v817_v52 = vadd.f32 %v807_v38, %v803_v44 }
 0x10d   : > { %v804_v45 = vld [vmem:[#allocation2 + $0x38] sm:$0xff]  ;;  %v819_v54 = vmax.f32 %v811_v46, 0.0  ;;  %v820_v55 = vmax.f32 %v812_v47, 0.0  ;;  %v821_v58 = vmax.f32 %v813_v48, 0.0  ;;  %v822_v56 = vmax.f32 %v814_v49, 0.0 }
 0x10e   : > { %v818_v53 = vadd.f32 %v808_v39, %v804_v45  ;;  %v823_v59 = vmax.f32 %v815_v50, 0.0  ;;  %v824_v60 = vmax.f32 %v816_v51, 0.0  ;;  %v825_v57 = vmax.f32 %v817_v52, 0.0 }
 0x10f   : > { %v827_v62 = vpack.c.bf16 %v820_v55, %v819_v54  ;;  %v828_v63 = vpack.c.bf16 %v822_v56, %v821_v58 }
 0x110   : > { %v826_v61 = vmax.f32 %v818_v53, 0.0  ;;  %v829_v0 = vpack.c.bf16 %v824_v60, %v823_v59 }
 0x111   : > { %831 = vst [vmem:[%s1581_s3] sm:$0xff] %v827_v62 }
 0x112   : > { %v830_v1 = vpack.c.bf16 %v826_v61, %v825_v57  ;;  %832 = vst [vmem:[%s1581_s3 + $0x8] sm:$0xff] %v828_v63 }
 0x113   : > { %833 = vst [vmem:[%s1581_s3 + $0x10] sm:$0xff] %v829_v0 }
 0x114   : > { %834 = vst [vmem:[%s1581_s3 + $0x18] sm:$0xff] %v830_v1 }
 0x115 PF: > { %s13_s16 = sadd.s32 1, %s1353_s16   ;;  %s1582_s12 = smov %s1341_s13 }
 0x116   : > { %p10_p12 = scmp.ge.s32.totalorder %s13_s16, 8   ;;  %s1583_s13 = smov %s1411_s20 }
 0x117   : > { %s1584_s14 = smov %s1349_s15  ;;  %s1585_s15 = smov %s1587_s17 }
 0x118   :  { %12 = sbr.rel (!%p10_p12) target bundleno = 3 (0x3), region = 113 }

// kernel: base_regressor_forward.17
= control target key start
LH: loop header
LB: loop body
LE: loop exit
PB: predicated region body
PF: predicated region fallthrough
CT: control target
= control target key end

     0   :  { %s763_s1 = inlined_call_operand.vmem [shape: bf16[256,256], index: 1, kind: input, shape index: {}]   ;;  %s764_s0 = inlined_call_operand.vmem [shape: bf16[32,256], index: 0, kind: input, shape index: {}]   ;;  %s765_s2 = inlined_call_operand.vmem [shape: f32[1,256], index: 2, kind: input, shape index: {}]   ;;  %s766_s3 = inlined_call_operand.vmem [shape: bf16[32,256], index: 3, kind: output, shape index: {}]  }
   0x1   :  { %v406_v0 = vld [vmem:[%s763_s1 + $0x70] sm:$0xf]  ;;  %v495_v1 = vld [vmem:[%s763_s1 + $0x74] sm:$0xf0]  ;;  %v494_v5 = vld [vmem:[%s763_s1 + $0x74] sm:$0xf] }
   0x2   :  { %v470_v2 = vld [vmem:[%s763_s1 + $0xf0] sm:$0xf]  ;;  %v407_v3 = vor.u32 %v495_v1, %v406_v0  ;;  %v511_v4 = vld [vmem:[%s763_s1 + $0xf4] sm:$0xf0]  ;;  %v408_v6 = vld [vmem:[%s763_s1 + $0x78] sm:$0xf0] }
   0x3   :  { %v471_v7 = vor.u32 %v511_v4, %v470_v2  ;;  %v411_v8 = vor.u32 %v494_v5, %v408_v6  ;;  %v510_v9 = vld [vmem:[%s763_s1 + $0xf4] sm:$0xf]  ;;  %v472_v10 = vld [vmem:[%s763_s1 + $0xf8] sm:$0xf0]  ;;  %v398_v11 = vld [vmem:[%s763_s1 + $0x60] sm:$0xf] }
   0x4   :  { %236 = vmatpush.bf16.msra.mxu0 %v407_v3  ;;  %v475_v12 = vor.u32 %v510_v9, %v472_v10  ;;  %v493_v13 = vld [vmem:[%s763_s1 + $0x64] sm:$0xf0]  ;;  %v462_v14 = vld [vmem:[%s763_s1 + $0xe0] sm:$0xf]  ;;  %v492_v18 = vld [vmem:[%s763_s1 + $0x64] sm:$0xf] }
   0x5   :  { %v509_v15 = vld [vmem:[%s763_s1 + $0xe4] sm:$0xf0]  ;;  %255 = vmatpush.bf16.msra.mxu1 %v471_v7  ;;  %274 = vmatpush.bf16.msra.mxu2 %v411_v8  ;;  %v399_v16 = vor.u32 %v493_v13, %v398_v11  ;;  %v400_v19 = vld [vmem:[%s763_s1 + $0x68] sm:$0xf0]  ;;  %v508_v20 = vld [vmem:[%s763_s1 + $0xe4] sm:$0xf] }
   0x6   :  { %v463_v17 = vor.u32 %v509_v15, %v462_v14  ;;  %293 = vmatpush.bf16.msra.mxu3 %v475_v12  ;;  %v403_v21 = vor.u32 %v492_v18, %v400_v19  ;;  %v464_v22 = vld [vmem:[%s763_s1 + $0xe8] sm:$0xf0]  ;;  %v390_v23 = vld [vmem:[%s763_s1 + $0x50] sm:$0xf]  ;;  %v491_v24 = vld [vmem:[%s763_s1 + $0x54] sm:$0xf0] }
   0x7   :  { %v467_v25 = vor.u32 %v508_v20, %v464_v22  ;;  %v454_v26 = vld [vmem:[%s763_s1 + $0xd0] sm:$0xf]  ;;  %v507_v27 = vld [vmem:[%s763_s1 + $0xd4] sm:$0xf0]  ;;  %v490_v28 = vld [vmem:[%s763_s1 + $0x54] sm:$0xf]  ;;  %v391_v29 = vor.u32 %v491_v24, %v390_v23 }
   0x8   :  { %237 = vmatpush.bf16.msra.mxu0 %v399_v16  ;;  %v392_v30 = vld [vmem:[%s763_s1 + $0x58] sm:$0xf0]  ;;  %v506_v31 = vld [vmem:[%s763_s1 + $0xd4] sm:$0xf]  ;;  %v455_v33 = vor.u32 %v507_v27, %v454_v26  ;;  %v382_v35 = vld [vmem:[%s763_s1 + $0x40] sm:$0xf] }
   0x9   :  { %v456_v32 = vld [vmem:[%s763_s1 + $0xd8] sm:$0xf0]  ;;  %256 = vmatpush.bf16.msra.mxu1 %v463_v17  ;;  %275 = vmatpush.bf16.msra.mxu2 %v403_v21  ;;  %v395_v34 = vor.u32 %v490_v28, %v392_v30  ;;  %v489_v36 = vld [vmem:[%s763_s1 + $0x44] sm:$0xf0]  ;;  %v446_v37 = vld [vmem:[%s763_s1 + $0xc0] sm:$0xf] }
   0xa   :  { %294 = vmatpush.bf16.msra.mxu3 %v467_v25  ;;  %v459_v38 = vor.u32 %v506_v31, %v456_v32  ;;  %v505_v39 = vld [vmem:[%s763_s1 + $0xc4] sm:$0xf0]  ;;  %v488_v40 = vld [vmem:[%s763_s1 + $0x44] sm:$0xf]  ;;  %v384_v41 = vld [vmem:[%s763_s1 + $0x48] sm:$0xf0]  ;;  %v383_v44 = vor.u32 %v489_v36, %v382_v35 }
   0xb   :  { %v504_v42 = vld [vmem:[%s763_s1 + $0xc4] sm:$0xf]  ;;  %v448_v43 = vld [vmem:[%s763_s1 + $0xc8] sm:$0xf0]  ;;  %v447_v45 = vor.u32 %v505_v39, %v446_v37  ;;  %v387_v46 = vor.u32 %v488_v40, %v384_v41  ;;  %v374_v47 = vld [vmem:[%s763_s1 + $0x30] sm:$0xf] }
   0xc   :  { %238 = vmatpush.bf16.msra.mxu0 %v391_v29  ;;  %v487_v48 = vld [vmem:[%s763_s1 + $0x34] sm:$0xf0]  ;;  %v438_v49 = vld [vmem:[%s763_s1 + $0xb0] sm:$0xf]  ;;  %v451_v50 = vor.u32 %v504_v42, %v448_v43  ;;  %v486_v52 = vld [vmem:[%s763_s1 + $0x34] sm:$0xf] }
   0xd   :  { %257 = vmatpush.bf16.msra.mxu1 %v455_v33  ;;  %276 = vmatpush.bf16.msra.mxu2 %v395_v34  ;;  %v503_v51 = vld [vmem:[%s763_s1 + $0xb4] sm:$0xf0]  ;;  %v376_v53 = vld [vmem:[%s763_s1 + $0x38] sm:$0xf0]  ;;  %v502_v54 = vld [vmem:[%s763_s1 + $0xb4] sm:$0xf]  ;;  %v375_v56 = vor.u32 %v487_v48, %v374_v47 }
   0xe   :  { %295 = vmatpush.bf16.msra.mxu3 %v459_v38  ;;  %v440_v55 = vld [vmem:[%s763_s1 + $0xb8] sm:$0xf0]  ;;  %v439_v57 = vor.u32 %v503_v51, %v438_v49  ;;  %v379_v58 = vor.u32 %v486_v52, %v376_v53  ;;  %v366_v59 = vld [vmem:[%s763_s1 + $0x20] sm:$0xf]  ;;  %v485_v60 = vld [vmem:[%s763_s1 + $0x24] sm:$0xf0] }
   0xf   :  { %v430_v61 = vld [vmem:[%s763_s1 + $0xa0] sm:$0xf]  ;;  %v443_v62 = vor.u32 %v502_v54, %v440_v55  ;;  %v501_v63 = vld [vmem:[%s763_s1 + $0xa4] sm:$0xf0]  ;;  %v484_v0 = vld [vmem:[%s763_s1 + $0x24] sm:$0xf]  ;;  %v367_v4 = vor.u32 %v485_v60, %v366_v59 }
  0x10   :  { %239 = vmatpush.bf16.msra.mxu0 %v383_v44  ;;  %v368_v1 = vld [vmem:[%s763_s1 + $0x28] sm:$0xf0]  ;;  %v500_v2 = vld [vmem:[%s763_s1 + $0xa4] sm:$0xf]  ;;  %v431_v5 = vor.u32 %v501_v63, %v430_v61  ;;  %v358_v7 = vld [vmem:[%s763_s1 + $0x10] sm:$0xf] }
  0x11   :  { %258 = vmatpush.bf16.msra.mxu1 %v447_v45  ;;  %277 = vmatpush.bf16.msra.mxu2 %v387_v46  ;;  %v432_v3 = vld [vmem:[%s763_s1 + $0xa8] sm:$0xf0]  ;;  %v371_v6 = vor.u32 %v484_v0, %v368_v1  ;;  %v483_v8 = vld [vmem:[%s763_s1 + $0x14] sm:$0xf0]  ;;  %v422_v9 = vld [vmem:[%s763_s1 + $0x90] sm:$0xf] }
  0x12   :  { %296 = vmatpush.bf16.msra.mxu3 %v451_v50  ;;  %v435_v10 = vor.u32 %v500_v2, %v432_v3  ;;  %v499_v11 = vld [vmem:[%s763_s1 + $0x94] sm:$0xf0]  ;;  %v482_v12 = vld [vmem:[%s763_s1 + $0x14] sm:$0xf]  ;;  %v360_v13 = vld [vmem:[%s763_s1 + $0x18] sm:$0xf0]  ;;  %v359_v16 = vor.u32 %v483_v8, %v358_v7 }
  0x13   :  { %v498_v14 = vld [vmem:[%s763_s1 + $0x94] sm:$0xf]  ;;  %v424_v15 = vld [vmem:[%s763_s1 + $0x98] sm:$0xf0]  ;;  %v423_v17 = vor.u32 %v499_v11, %v422_v9  ;;  %v363_v18 = vor.u32 %v482_v12, %v360_v13  ;;  %v350_v19 = vld [vmem:[%s763_s1] sm:$0xf] }
  0x14   :  { %240 = vmatpush.bf16.msra.mxu0 %v375_v56  ;;  %v481_v20 = vld [vmem:[%s763_s1 + $0x4] sm:$0xf0]  ;;  %v414_v21 = vld [vmem:[%s763_s1 + $0x80] sm:$0xf]  ;;  %v427_v22 = vor.u32 %v498_v14, %v424_v15  ;;  %v480_v24 = vld [vmem:[%s763_s1 + $0x4] sm:$0xf] }
  0x15   :  { %259 = vmatpush.bf16.msra.mxu1 %v439_v57  ;;  %278 = vmatpush.bf16.msra.mxu2 %v379_v58  ;;  %v497_v23 = vld [vmem:[%s763_s1 + $0x84] sm:$0xf0]  ;;  %v352_v25 = vld [vmem:[%s763_s1 + $0x8] sm:$0xf0]  ;;  %v496_v26 = vld [vmem:[%s763_s1 + $0x84] sm:$0xf]  ;;  %v351_v28 = vor.u32 %v481_v20, %v350_v19 }
  0x16   :  { %297 = vmatpush.bf16.msra.mxu3 %v443_v62  ;;  %v416_v27 = vld [vmem:[%s763_s1 + $0x88] sm:$0xf0]  ;;  %v334_v29 = vld [vmem:[%s764_s0] sm:$0xf]  ;;  %v477_v30 = vld [vmem:[%s764_s0 + $0x4] sm:$0xf0]  ;;  %v415_v31 = vor.u32 %v497_v23, %v414_v21  ;;  %v355_v32 = vor.u32 %v480_v24, %v352_v25 }
  0x17   :  { %v476_v33 = vld [vmem:[%s764_s0 + $0x4] sm:$0xf]  ;;  %v336_v34 = vld [vmem:[%s764_s0 + $0x8] sm:$0xf0]  ;;  %v419_v35 = vor.u32 %v496_v26, %v416_v27  ;;  %v335_v36 = vor.u32 %v477_v30, %v334_v29  ;;  %v342_v38 = vld [vmem:[%s764_s0 + $0x10] sm:$0xf] }
  0x18   :  { %241 = vmatpush.bf16.msra.mxu0 %v367_v4  ;;  %v339_v37 = vor.u32 %v476_v33, %v336_v34  ;;  %v479_v39 = vld [vmem:[%s764_s0 + $0x14] sm:$0xf0]  ;;  %v478_v40 = vld [vmem:[%s764_s0 + $0x14] sm:$0xf]  ;;  %v344_v41 = vld [vmem:[%s764_s0 + $0x18] sm:$0xf0] }
  0x19   :  { %260 = vmatpush.bf16.msra.mxu1 %v431_v5  ;;  %279 = vmatpush.bf16.msra.mxu2 %v371_v6  ;;  %v343_v42 = vor.u32 %v479_v39, %v342_v38  ;;  %v347_v43 = vor.u32 %v478_v40, %v344_v41  ;;  %v50_v44 = vld [vmem:[%s765_s2] sm:$0x3] }
  0x1a   :  { %298 = vmatpush.bf16.msra.mxu3 %v435_v10  ;;  %v52_v45 = vperm.slane %v50_v44, 0  ;;  %v53_v49 = vperm.slane %v50_v44, 1 }
  0x1c   :  { %242 = vmatpush.bf16.msra.mxu0 %v359_v16 }
  0x1d   :  { %261 = vmatpush.bf16.msra.mxu1 %v423_v17  ;;  %280 = vmatpush.bf16.msra.mxu2 %v363_v18 }
  0x1e   :  { %299 = vmatpush.bf16.msra.mxu3 %v427_v22 }
  0x20   :  { %243 = vmatpush.bf16.msra.mxu0 %v351_v28 }
  0x21   :  { %262 = vmatpush.bf16.msra.mxu1 %v415_v31  ;;  %281 = vmatpush.bf16.msra.mxu2 %v355_v32 }
  0x22   :  { %300 = vmatpush.bf16.msra.mxu3 %v419_v35 }
  0x23   :  { %244 = vmatmul.bf16.vlgmr.msra.gmra.mxu0 %v335_v36 }
  0x24   :  { %263 = vmatmul.bf16.vlgmr.msra.gmra.mxu1 %v339_v37  ;;  %282 = vmatmul.bf16.vlgmr.msra.gmra.mxu2 %v335_v36 }
  0x25   :  { %301 = vmatmul.bf16.vlgmr.msra.gmra.mxu3 %v339_v37 }
  0x33   :  { %249 = vmatmul.bf16.gmra.mxu0 %v343_v42 }
  0x34   :  { %268 = vmatmul.bf16.gmra.mxu1 %v347_v43  ;;  %287 = vmatmul.bf16.gmra.mxu2 %v343_v42 }
  0x35   :  { %306 = vmatmul.bf16.gmra.mxu3 %v347_v43 }
  0xa0   :  { %v245_v46 = vpop.f32.mrf.mxu0 }
  0xa1   :  { %v264_v47 = vpop.f32.mrf.mxu1  ;;  %v246_v48 = vadd.f32 %v245_v46, %v52_v45 }
  0xa3   :  { %v265_v50 = vadd.f32 %v264_v47, %v246_v48 }
  0xa5   :  { %v312_v55 = vmax.f32 %v265_v50, 0.0 }
  0xa7   :  { %v283_v51 = vpop.f32.mrf.mxu2 }
  0xa8   :  { %v284_v52 = vadd.f32 %v283_v51, %v53_v49  ;;  %v302_v53 = vpop.f32.mrf.mxu3  ;;  %v247_v54 = vpop.f32.mrf.mxu0 }
  0xa9   :  { %v266_v57 = vpop.f32.mrf.mxu1  ;;  %v248_v59 = vadd.f32 %v247_v54, %v52_v45 }
  0xaa   :  { %v303_v56 = vadd.f32 %v302_v53, %v284_v52 }
  0xab   :  { %v267_v62 = vadd.f32 %v266_v57, %v248_v59 }
  0xac   :  { %v313_v58 = vmax.f32 %v303_v56, 0.0 }
  0xad   :  { %v314_v4 = vmax.f32 %v267_v62, 0.0 }
  0xae   :  { %v320_v60 = vpack.c.bf16 %v313_v58, %v312_v55 }
  0xaf   :  { %v285_v61 = vpop.f32.mrf.mxu2 }
  0xb0   :  { %324 = vst [vmem:[%s766_s3] sm:$0xff] %v320_v60  ;;  %v286_v63 = vadd.f32 %v285_v61, %v53_v49  ;;  %v304_v0 = vpop.f32.mrf.mxu3  ;;  %v250_v1 = vpop.f32.mrf.mxu0 }
  0xb1   :  { %v251_v3 = vadd.f32 %v250_v1, %v52_v45  ;;  %v269_v6 = vpop.f32.mrf.mxu1 }
  0xb2   :  { %v305_v2 = vadd.f32 %v304_v0, %v286_v63 }
  0xb3   :  { %v270_v8 = vadd.f32 %v269_v6, %v251_v3 }
  0xb4   :  { %v315_v5 = vmax.f32 %v305_v2, 0.0 }
  0xb5   :  { %v316_v13 = vmax.f32 %v270_v8, 0.0 }
  0xb6   :  { %v321_v7 = vpack.c.bf16 %v315_v5, %v314_v4 }
  0xb7   :  { %v288_v9 = vpop.f32.mrf.mxu2 }
  0xb8   :  { %325 = vst [vmem:[%s766_s3 + $0x8] sm:$0xff] %v321_v7  ;;  %v289_v10 = vadd.f32 %v288_v9, %v53_v49  ;;  %v307_v11 = vpop.f32.mrf.mxu3  ;;  %v252_v12 = vpop.f32.mrf.mxu0 }
  0xb9   :  { %v253_v16 = vadd.f32 %v252_v12, %v52_v45  ;;  %v271_v18 = vpop.f32.mrf.mxu1 }
  0xba   :  { %v308_v14 = vadd.f32 %v307_v11, %v289_v10 }
  0xbb   :  { %v272_v20 = vadd.f32 %v271_v18, %v253_v16 }
  0xbc   :  { %v317_v15 = vmax.f32 %v308_v14, 0.0 }
  0xbd   :  { %v318_v24 = vmax.f32 %v272_v20, 0.0 }
  0xbe   :  { %v322_v17 = vpack.c.bf16 %v317_v15, %v316_v13 }
  0xbf   :  { %v290_v19 = vpop.f32.mrf.mxu2 }
  0xc0   :  { %326 = vst [vmem:[%s766_s3 + $0x10] sm:$0xff] %v322_v17  ;;  %v291_v21 = vadd.f32 %v290_v19, %v53_v49  ;;  %v309_v22 = vpop.f32.mrf.mxu3 }
  0xc2   :  { %v310_v23 = vadd.f32 %v309_v22, %v291_v21 }
  0xc4   :  { %v319_v25 = vmax.f32 %v310_v23, 0.0 }
  0xc6   :  { %v323_v26 = vpack.c.bf16 %v319_v25, %v318_v24 }
  0xc8   :  { %327 = vst [vmem:[%s766_s3 + $0x18] sm:$0xff] %v323_v26 }

// kernel: base_regressor_forward.18
= control target key start
LH: loop header
LB: loop body
LE: loop exit
PB: predicated region body
PF: predicated region fallthrough
CT: control target
= control target key end

     0   :  { %s1491_s15 = smov 0   ;;  %s1493_s16 = smov 0   ;;  %s1705_s0 = inlined_call_operand.vmem [shape: bf16[32,2304], index: 0, kind: input, shape index: {}]   ;;  %s1706_s1 = inlined_call_operand.vmem [shape: bf16[2304,256], index: 1, kind: input, shape index: {}]   ;;  %s1707_s2 = inlined_call_operand.vmem [shape: f32[1,256], index: 2, kind: input, shape index: {}]   ;;  %s1708_s3 = inlined_call_operand.vmem [shape: bf16[32,256], index: 3, kind: input, shape index: {}]   ;;  %s1709_s4 = inlined_call_operand.vmem [shape: bf16[32,256], index: 4, kind: output, shape index: {}]  }
   0x1   :  { %s1495_s17 = smov 0   ;;  %s1497_s18 = smov 0  }
   0x2   :  { %s1499_s19 = smov 0  }
   0x3 LB: > { %s26_s20 = sadd.s32 1, %s1459_s18  ;;  %p49_p1 = scmp.ne.s32.totalorder %s1451_s16, %s1447_s15  ;;  %s1463_s19 = sphi %s1499_s19, %s14_s19   ;;  %s1459_s18 = sphi %s1497_s18, %s1713_s18   ;;  %s1455_s17 = sphi %s1495_s17, %s1712_s17   ;;  %s1451_s16 = sphi %s1493_s16, %s1711_s16   ;;  %s1447_s15 = sphi %s1491_s15, %s1710_s15  }
   0x4   : > { %p27_p0 = scmp.ge.s32.totalorder %s26_s20, 6  ;;  %p50_p2 = scmp.eq.s32.totalorder %s1463_s19, 0 }
   0x5   : > { %s42_s22 = sadd.s32 1, %s1451_s16  ;;  %p1075_p5 = scmp.ge.s32.totalorder %s1463_s19, 6 }
   0x6   : > { %s1715_s20 = smov (%p27_p0, %s26_s20), 0  ;;  %p51_p3 = por %p50_p2, %p49_p1 }
   0x7   : > { %s38_s21 = ssub.s32 %s1459_s18, %s1715_s20  ;;  %208 = sbr.rel (%p1075_p5) target bundleno = 25 (0x19), region = 24 }
   0x8   : > { %p40_p4 = scmp.eq.s32.totalorder %s38_s21, 0 }
   0xa   : > { %s1526_s23 = scalar_select %p40_p4, %s1451_s16, %s42_s22  }
   0xc   : > { %211 = sbr.rel (!%p51_p3) target bundleno = 25 (0x19), region = 28  ;;  %s213_s24 = sand.u32 (%p51_p3), 1, %s1451_s16  }
   0xd   : > { %s1310_s25 = smul.u32 (%p51_p3), 12, %s1459_s18 }
   0xe   : > { %s1382_s26 = smul.u32 (%p51_p3), 48, %s213_s24 }
   0xf   : > { %s221_s29 = scalar_lea.vmem (%p51_p3), %s1705_s0, %s1310_s25 }
  0x10   : > { %v236_v0 = vld [vmem:[%s221_s29] sm:$0xff] (%p51_p3)  ;;  %v238_v1 = vld [vmem:[%s221_s29 + $0x48] sm:$0xff] (%p51_p3)  ;;  %v240_v2 = vld [vmem:[%s221_s29 + $0x90] sm:$0xff] (%p51_p3)  ;;  %s215_s30 = scalar_lea.vmem (%p51_p3), [#allocation3], %s1382_s26 }
  0x11   : > { %237 = vst [vmem:[%s215_s30] sm:$0xff] %v236_v0  ;;  %v242_v3 = vld [vmem:[%s221_s29 + $0xd8] sm:$0xff]  ;;  %v1077_v4 = vld [vmem:[%s221_s29 + $0x8] sm:$0xf]  ;;  %v1079_v5 = vld [vmem:[%s221_s29 + $0x50] sm:$0xf] }
  0x12   : > { %239 = vst [vmem:[%s215_s30 + $0xc] sm:$0xff] %v238_v1  ;;  %v1081_v6 = vld [vmem:[%s221_s29 + $0x98] sm:$0xf]  ;;  %v1083_v7 = vld [vmem:[%s221_s29 + $0xe0] sm:$0xf] }
  0x13   : > { %241 = vst [vmem:[%s215_s30 + $0x18] sm:$0xff] %v240_v2 }
  0x14   : > { %243 = vst [vmem:[%s215_s30 + $0x24] sm:$0xff] %v242_v3 }
  0x15   : > { %1078 = vst [vmem:[%s215_s30 + $0x8] sm:$0xf] %v1077_v4 }
  0x16   : > { %1080 = vst [vmem:[%s215_s30 + $0x14] sm:$0xf] %v1079_v5 }
  0x17   : > { %1082 = vst [vmem:[%s215_s30 + $0x20] sm:$0xf] %v1081_v6 }
  0x18   : > { %1084 = vst [vmem:[%s215_s30 + $0x2c] sm:$0xf] %v1083_v7 }
  0x19 PF: > { %p1085_p6 = scmp.ge.s32.totalorder %s1463_s19, 1  ;;  %p279_p7 = scmp.lt.s32.totalorder %s1463_s19, 7 }
  0x1b   : > { %p280_p8 = pnand %p1085_p6, %p279_p7 }
  0x1c   : > { %s286_s5 = sand.u32 (!%p280_p8), 1, %s1447_s15   ;;  %s342_s6 = smul.u32 (!%p280_p8), 48, %s1455_s17 }
  0x1d   : > { %283 = sbr.rel (%p280_p8) target bundleno = 279 (0x117), region = 58  ;;  %p1088_p10 = scmp.ne.s32.totalorder (!%p280_p8), %s1455_s17, 0 }
  0x1e   : > { %s1383_s7 = smul.u32 (!%p280_p8), 48, %s286_s5  ;;  %p344_p9 = scmp.lt.s32.totalorder (!%p280_p8), %s342_s6, 287 }
  0x20   : > { %s1543_s12 = scalar_lea.vmem (!%p280_p8), [#allocation3], %s1383_s7 }
  0x22   : > { %s1717_s6 = smov (!%p344_p9, %s342_s6), 287  ;;  %386 = sbr.rel (%p1088_p10) target bundleno = 48 (0x30), region = 66 }
  0x23   : > { %s1311_s8 = sshll.u32 %s1717_s6, 3 }
  0x24   : > { %s1541_s11 = scalar_lea.vmem %s1706_s1, %s1311_s8 }
  0x27   : > { %v1465_v8 = vmov 0.0  }
  0x28   : > { %387 = vst [vmem:[#allocation2 + $0x30] sm:$0xff] %v1465_v8 }
  0x29   : > { %388 = vst [vmem:[#allocation2] sm:$0xff] %v1465_v8 }
  0x2a   : > { %389 = vst [vmem:[#allocation2 + $0x18] sm:$0xff] %v1465_v8 }
  0x2b   : > { %390 = vst [vmem:[#allocation2 + $0x10] sm:$0xff] %v1465_v8 }
  0x2c   : > { %391 = vst [vmem:[#allocation2 + $0x8] sm:$0xff] %v1465_v8 }
  0x2d   : > { %392 = vst [vmem:[#allocation2 + $0x20] sm:$0xff] %v1465_v8 }
  0x2e   : > { %393 = vst [vmem:[#allocation2 + $0x28] sm:$0xff] %v1465_v8 }
  0x2f   : > { %394 = vst [vmem:[#allocation2 + $0x38] sm:$0xff] %v1465_v8 }
  0x30 PF: > { %v1171_v9 = vld [vmem:[%s1541_s11 + $0x70] sm:$0xf]  ;;  %v1333_v10 = vld [vmem:[%s1541_s11 + $0x74] sm:$0xf0]  ;;  %v1332_v18 = vld [vmem:[%s1541_s11 + $0x74] sm:$0xf] }
  0x31   : > { %v1235_v11 = vld [vmem:[%s1541_s11 + $0xf0] sm:$0xf]  ;;  %v1172_v12 = vor.u32 %v1333_v10, %v1171_v9  ;;  %v1349_v13 = vld [vmem:[%s1541_s11 + $0xf4] sm:$0xf0]  ;;  %v1173_v19 = vld [vmem:[%s1541_s11 + $0x78] sm:$0xf0] }
  0x32   : > { %v1299_v14 = vld [vmem:[%s1541_s11 + $0x170] sm:$0xf]  ;;  %v1365_v15 = vld [vmem:[%s1541_s11 + $0x174] sm:$0xf0]  ;;  %v1236_v16 = vor.u32 %v1349_v13, %v1235_v11  ;;  %v1163_v20 = vld [vmem:[%s1541_s11 + $0x60] sm:$0xf]  ;;  %v1176_v21 = vor.u32 %v1332_v18, %v1173_v19 }
  0x33   : > { %v1300_v17 = vor.u32 %v1365_v15, %v1299_v14  ;;  %731 = vmatpush.bf16.msra.mxu0 %v1172_v12  ;;  %v1331_v22 = vld [vmem:[%s1541_s11 + $0x64] sm:$0xf0]  ;;  %v1227_v23 = vld [vmem:[%s1541_s11 + $0xe0] sm:$0xf]  ;;  %v1330_v29 = vld [vmem:[%s1541_s11 + $0x64] sm:$0xf] }
  0x34   : > { %v1347_v24 = vld [vmem:[%s1541_s11 + $0xe4] sm:$0xf0]  ;;  %750 = vmatpush.bf16.msra.mxu1 %v1236_v16  ;;  %v1164_v25 = vor.u32 %v1331_v22, %v1163_v20  ;;  %v1291_v27 = vld [vmem:[%s1541_s11 + $0x160] sm:$0xf]  ;;  %788 = vmatpush.bf16.msra.mxu3 %v1176_v21  ;;  %v1165_v31 = vld [vmem:[%s1541_s11 + $0x68] sm:$0xf0] }
  0x35   : > { %769 = vmatpush.bf16.msra.mxu2 %v1300_v17  ;;  %v1228_v26 = vor.u32 %v1347_v24, %v1227_v23  ;;  %v1363_v28 = vld [vmem:[%s1541_s11 + $0x164] sm:$0xf0]  ;;  %v1155_v32 = vld [vmem:[%s1541_s11 + $0x50] sm:$0xf]  ;;  %v1329_v33 = vld [vmem:[%s1541_s11 + $0x54] sm:$0xf0]  ;;  %v1168_v34 = vor.u32 %v1330_v29, %v1165_v31 }
  0x36   : > { %v1292_v30 = vor.u32 %v1363_v28, %v1291_v27  ;;  %v1219_v35 = vld [vmem:[%s1541_s11 + $0xd0] sm:$0xf]  ;;  %v1345_v36 = vld [vmem:[%s1541_s11 + $0xd4] sm:$0xf0]  ;;  %v1156_v38 = vor.u32 %v1329_v33, %v1155_v32  ;;  %v1328_v40 = vld [vmem:[%s1541_s11 + $0x54] sm:$0xf] }
  0x37   : > { %v1283_v37 = vld [vmem:[%s1541_s11 + $0x150] sm:$0xf]  ;;  %732 = vmatpush.bf16.msra.mxu0 %v1164_v25  ;;  %v1361_v39 = vld [vmem:[%s1541_s11 + $0x154] sm:$0xf0]  ;;  %v1157_v41 = vld [vmem:[%s1541_s11 + $0x58] sm:$0xf0]  ;;  %v1220_v42 = vor.u32 %v1345_v36, %v1219_v35 }
  0x38   : > { %751 = vmatpush.bf16.msra.mxu1 %v1228_v26  ;;  %v1284_v43 = vor.u32 %v1361_v39, %v1283_v37  ;;  %v1147_v44 = vld [vmem:[%s1541_s11 + $0x40] sm:$0xf]  ;;  %v1327_v45 = vld [vmem:[%s1541_s11 + $0x44] sm:$0xf0]  ;;  %789 = vmatpush.bf16.msra.mxu3 %v1168_v34  ;;  %v1160_v47 = vor.u32 %v1328_v40, %v1157_v41  ;;  %v1326_v51 = vld [vmem:[%s1541_s11 + $0x44] sm:$0xf] }
  0x39   : > { %770 = vmatpush.bf16.msra.mxu2 %v1292_v30  ;;  %v1211_v46 = vld [vmem:[%s1541_s11 + $0xc0] sm:$0xf]  ;;  %v1343_v48 = vld [vmem:[%s1541_s11 + $0xc4] sm:$0xf0]  ;;  %v1149_v52 = vld [vmem:[%s1541_s11 + $0x48] sm:$0xf0]  ;;  %v1148_v53 = vor.u32 %v1327_v45, %v1147_v44 }
  0x3a   : > { %v1275_v49 = vld [vmem:[%s1541_s11 + $0x140] sm:$0xf]  ;;  %v1359_v50 = vld [vmem:[%s1541_s11 + $0x144] sm:$0xf0]  ;;  %v1212_v54 = vor.u32 %v1343_v48, %v1211_v46  ;;  %v1139_v56 = vld [vmem:[%s1541_s11 + $0x30] sm:$0xf]  ;;  %v1152_v59 = vor.u32 %v1326_v51, %v1149_v52 }
  0x3b   : > { %733 = vmatpush.bf16.msra.mxu0 %v1156_v38  ;;  %v1276_v55 = vor.u32 %v1359_v50, %v1275_v49  ;;  %v1325_v57 = vld [vmem:[%s1541_s11 + $0x34] sm:$0xf0]  ;;  %v1203_v58 = vld [vmem:[%s1541_s11 + $0xb0] sm:$0xf]  ;;  %v1324_v63 = vld [vmem:[%s1541_s11 + $0x34] sm:$0xf] }
  0x3c   : > { %752 = vmatpush.bf16.msra.mxu1 %v1220_v42  ;;  %790 = vmatpush.bf16.msra.mxu3 %v1160_v47  ;;  %v1341_v60 = vld [vmem:[%s1541_s11 + $0xb4] sm:$0xf0]  ;;  %v1267_v61 = vld [vmem:[%s1541_s11 + $0x130] sm:$0xf]  ;;  %v1141_v0 = vld [vmem:[%s1541_s11 + $0x38] sm:$0xf0]  ;;  %v1140_v1 = vor.u32 %v1325_v57, %v1139_v56 }
  0x3d   : > { %771 = vmatpush.bf16.msra.mxu2 %v1284_v43  ;;  %v1357_v62 = vld [vmem:[%s1541_s11 + $0x134] sm:$0xf0]  ;;  %v1204_v2 = vor.u32 %v1341_v60, %v1203_v58  ;;  %v1131_v4 = vld [vmem:[%s1541_s11 + $0x20] sm:$0xf]  ;;  %v1323_v5 = vld [vmem:[%s1541_s11 + $0x24] sm:$0xf0]  ;;  %v1144_v7 = vor.u32 %v1324_v63, %v1141_v0 }
  0x3e   : > { %v1268_v3 = vor.u32 %v1357_v62, %v1267_v61  ;;  %v1195_v6 = vld [vmem:[%s1541_s11 + $0xa0] sm:$0xf]  ;;  %v1339_v8 = vld [vmem:[%s1541_s11 + $0xa4] sm:$0xf0]  ;;  %v1322_v11 = vld [vmem:[%s1541_s11 + $0x24] sm:$0xf]  ;;  %v1132_v13 = vor.u32 %v1323_v5, %v1131_v4 }
  0x3f   : > { %734 = vmatpush.bf16.msra.mxu0 %v1148_v53  ;;  %v1259_v9 = vld [vmem:[%s1541_s11 + $0x120] sm:$0xf]  ;;  %v1355_v10 = vld [vmem:[%s1541_s11 + $0x124] sm:$0xf0]  ;;  %v1133_v12 = vld [vmem:[%s1541_s11 + $0x28] sm:$0xf0]  ;;  %v1196_v14 = vor.u32 %v1339_v8, %v1195_v6 }
  0x40   : > { %753 = vmatpush.bf16.msra.mxu1 %v1212_v54  ;;  %791 = vmatpush.bf16.msra.mxu3 %v1152_v59  ;;  %v1260_v15 = vor.u32 %v1355_v10, %v1259_v9  ;;  %v1123_v16 = vld [vmem:[%s1541_s11 + $0x10] sm:$0xf]  ;;  %v1321_v17 = vld [vmem:[%s1541_s11 + $0x14] sm:$0xf0]  ;;  %v1136_v19 = vor.u32 %v1322_v11, %v1133_v12  ;;  %v1320_v23 = vld [vmem:[%s1541_s11 + $0x14] sm:$0xf] }
  0x41   : > { %772 = vmatpush.bf16.msra.mxu2 %v1276_v55  ;;  %v1187_v18 = vld [vmem:[%s1541_s11 + $0x90] sm:$0xf]  ;;  %v1337_v20 = vld [vmem:[%s1541_s11 + $0x94] sm:$0xf0]  ;;  %v1125_v24 = vld [vmem:[%s1541_s11 + $0x18] sm:$0xf0]  ;;  %v1124_v25 = vor.u32 %v1321_v17, %v1123_v16 }
  0x42   : > { %v1251_v21 = vld [vmem:[%s1541_s11 + $0x110] sm:$0xf]  ;;  %v1353_v22 = vld [vmem:[%s1541_s11 + $0x114] sm:$0xf0]  ;;  %v1115_v26 = vld [vmem:[%s1541_s11] sm:$0xf]  ;;  %v1188_v29 = vor.u32 %v1337_v20, %v1187_v18  ;;  %v1128_v34 = vor.u32 %v1320_v23, %v1125_v24 }
  0x43   : > { %735 = vmatpush.bf16.msra.mxu0 %v1140_v1  ;;  %v1319_v27 = vld [vmem:[%s1541_s11 + $0x4] sm:$0xf0]  ;;  %v1179_v28 = vld [vmem:[%s1541_s11 + $0x80] sm:$0xf]  ;;  %v1252_v30 = vor.u32 %v1353_v22, %v1251_v21  ;;  %v1318_v35 = vld [vmem:[%s1541_s11 + $0x4] sm:$0xf] }
  0x44   : > { %754 = vmatpush.bf16.msra.mxu1 %v1204_v2  ;;  %792 = vmatpush.bf16.msra.mxu3 %v1144_v7  ;;  %v1335_v31 = vld [vmem:[%s1541_s11 + $0x84] sm:$0xf0]  ;;  %v1243_v32 = vld [vmem:[%s1541_s11 + $0x100] sm:$0xf]  ;;  %v1117_v36 = vld [vmem:[%s1541_s11 + $0x8] sm:$0xf0]  ;;  %v1116_v41 = vor.u32 %v1319_v27, %v1115_v26 }
  0x45   : > { %773 = vmatpush.bf16.msra.mxu2 %v1268_v3  ;;  %v1351_v33 = vld [vmem:[%s1541_s11 + $0x104] sm:$0xf0]  ;;  %v1091_v37 = vld [vmem:[%s1543_s12] sm:$0xf]  ;;  %v1313_v38 = vld [vmem:[%s1543_s12 + $0x8] sm:$0xf0]  ;;  %v1180_v45 = vor.u32 %v1335_v31, %v1179_v28  ;;  %v1120_v50 = vor.u32 %v1318_v35, %v1117_v36 }
  0x46   : > { %v1348_v39 = vld [vmem:[%s1541_s11 + $0xf4] sm:$0xf]  ;;  %v1237_v40 = vld [vmem:[%s1541_s11 + $0xf8] sm:$0xf0]  ;;  %v1244_v46 = vor.u32 %v1351_v33, %v1243_v32  ;;  %v1093_v47 = vld [vmem:[%s1543_s12 + $0xc] sm:$0xf0]  ;;  %v1092_v52 = vor.u32 %v1313_v38, %v1091_v37 }
  0x47   : > { %736 = vmatpush.bf16.msra.mxu0 %v1132_v13  ;;  %v1312_v42 = vld [vmem:[%s1543_s12 + $0x4] sm:$0xf]  ;;  %v1301_v44 = vld [vmem:[%s1541_s11 + $0x178] sm:$0xf0]  ;;  %v1099_v48 = vld [vmem:[%s1543_s12 + $0x8] sm:$0xf]  ;;  %v1240_v51 = vor.u32 %v1348_v39, %v1237_v40 }
  0x48   : > { %755 = vmatpush.bf16.msra.mxu1 %v1196_v14  ;;  %793 = vmatpush.bf16.msra.mxu3 %v1136_v19  ;;  %v1364_v43 = vld [vmem:[%s1541_s11 + $0x174] sm:$0xf]  ;;  %v1346_v54 = vld [vmem:[%s1541_s11 + $0xe4] sm:$0xf]  ;;  %v1229_v55 = vld [vmem:[%s1541_s11 + $0xe8] sm:$0xf0]  ;;  %v1622_v56 = vor.u32 %v1312_v42, %v1093_v47 }
  0x49   : > { %774 = vmatpush.bf16.msra.mxu2 %v1260_v15  ;;  %v1314_v49 = vld [vmem:[%s1543_s12 + $0x10] sm:$0xf0]  ;;  %v1304_v53 = vor.u32 %v1364_v43, %v1301_v44  ;;  %v1293_v59 = vld [vmem:[%s1541_s11 + $0x168] sm:$0xf0]  ;;  %v1232_v60 = vor.u32 %v1346_v54, %v1229_v55  ;;  %v1221_v63 = vld [vmem:[%s1541_s11 + $0xd8] sm:$0xf0] }
  0x4a   : > { %v1624_v57 = vor.u32 %v1314_v49, %v1099_v48  ;;  %v1362_v58 = vld [vmem:[%s1541_s11 + $0x164] sm:$0xf]  ;;  %v1344_v62 = vld [vmem:[%s1541_s11 + $0xd4] sm:$0xf]  ;;  %v1285_v1 = vld [vmem:[%s1541_s11 + $0x158] sm:$0xf0] }
  0x4b   : > { %737 = vmatpush.bf16.msra.mxu0 %v1124_v25  ;;  %v1296_v61 = vor.u32 %v1362_v58, %v1293_v59  ;;  %v1360_v0 = vld [vmem:[%s1541_s11 + $0x154] sm:$0xf]  ;;  %v1224_v2 = vor.u32 %v1344_v62, %v1221_v63  ;;  %v1342_v4 = vld [vmem:[%s1541_s11 + $0xc4] sm:$0xf]  ;;  %v1213_v5 = vld [vmem:[%s1541_s11 + $0xc8] sm:$0xf0] }
  0x4c   : > { %756 = vmatpush.bf16.msra.mxu1 %v1188_v29  ;;  %794 = vmatpush.bf16.msra.mxu3 %v1128_v34  ;;  %v1288_v3 = vor.u32 %v1360_v0, %v1285_v1  ;;  %v1358_v6 = vld [vmem:[%s1541_s11 + $0x144] sm:$0xf]  ;;  %v1277_v7 = vld [vmem:[%s1541_s11 + $0x148] sm:$0xf0]  ;;  %v1216_v8 = vor.u32 %v1342_v4, %v1213_v5  ;;  %v1103_v9 = vld [vmem:[%s1543_s12 + $0x18] sm:$0xf] }
  0x4d   : > { %775 = vmatpush.bf16.msra.mxu2 %v1252_v30  ;;  %v1280_v10 = vor.u32 %v1358_v6, %v1277_v7  ;;  %v1316_v11 = vld [vmem:[%s1543_s12 + $0x20] sm:$0xf0]  ;;  %v1205_v13 = vld [vmem:[%s1541_s11 + $0xb8] sm:$0xf0]  ;;  %v1105_v17 = vld [vmem:[%s1543_s12 + $0x24] sm:$0xf0] }
  0x4e   : > { %v1340_v12 = vld [vmem:[%s1541_s11 + $0xb4] sm:$0xf]  ;;  %v1315_v14 = vld [vmem:[%s1543_s12 + $0x1c] sm:$0xf]  ;;  %v1111_v18 = vld [vmem:[%s1543_s12 + $0x20] sm:$0xf]  ;;  %v1104_v21 = vor.u32 %v1316_v11, %v1103_v9 }
  0x4f   : > { %738 = vmatpush.bf16.msra.mxu0 %v1116_v41  ;;  %v1356_v15 = vld [vmem:[%s1541_s11 + $0x134] sm:$0xf]  ;;  %v1269_v16 = vld [vmem:[%s1541_s11 + $0x138] sm:$0xf0]  ;;  %v1208_v20 = vor.u32 %v1340_v12, %v1205_v13  ;;  %v1338_v23 = vld [vmem:[%s1541_s11 + $0xa4] sm:$0xf]  ;;  %v1108_v25 = vor.u32 %v1315_v14, %v1105_v17 }
  0x50   : > { %757 = vmatpush.bf16.msra.mxu1 %v1180_v45  ;;  %795 = vmatpush.bf16.msra.mxu3 %v1120_v50  ;;  %v1317_v19 = vld [vmem:[%s1543_s12 + $0x28] sm:$0xf0]  ;;  %v1272_v22 = vor.u32 %v1356_v15, %v1269_v16  ;;  %v1354_v27 = vld [vmem:[%s1541_s11 + $0x124] sm:$0xf]  ;;  %v1336_v31 = vld [vmem:[%s1541_s11 + $0x94] sm:$0xf] }
  0x51   : > { %776 = vmatpush.bf16.msra.mxu2 %v1244_v46  ;;  %v1197_v24 = vld [vmem:[%s1541_s11 + $0xa8] sm:$0xf0]  ;;  %v1112_v26 = vor.u32 %v1317_v19, %v1111_v18  ;;  %v1189_v32 = vld [vmem:[%s1541_s11 + $0x98] sm:$0xf0]  ;;  %v1352_v33 = vld [vmem:[%s1541_s11 + $0x114] sm:$0xf] }
  0x52   : > { %739 = vmatmul.bf16.vlgmr.msra.gmra.mxu0 %v1092_v52  ;;  %v1261_v28 = vld [vmem:[%s1541_s11 + $0x128] sm:$0xf0]  ;;  %v1200_v29 = vor.u32 %v1338_v23, %v1197_v24  ;;  %v1253_v34 = vld [vmem:[%s1541_s11 + $0x118] sm:$0xf0]  ;;  %v1192_v35 = vor.u32 %v1336_v31, %v1189_v32  ;;  %v1334_v37 = vld [vmem:[%s1541_s11 + $0x84] sm:$0xf] }
  0x53   : > { %758 = vmatmul.bf16.vlgmr.msra.gmra.mxu1 %v1622_v56  ;;  %796 = vmatmul.bf16.vlgmr.msra.gmra.mxu3 %v1092_v52  ;;  %v1264_v30 = vor.u32 %v1354_v27, %v1261_v28  ;;  %v1256_v36 = vor.u32 %v1352_v33, %v1253_v34  ;;  %v1181_v38 = vld [vmem:[%s1541_s11 + $0x88] sm:$0xf0]  ;;  %v1350_v39 = vld [vmem:[%s1541_s11 + $0x104] sm:$0xf]  ;;  %v395_v46 = vld [vmem:[#allocation2 + $0x30] sm:$0xff]  ;;  %p1305_p11 = scmp.ne.s32.totalorder %s1455_s17, 5 }
  0x54   : > { %826 = vmatpush.bf16.msrb.mxu1 %v1304_v53  ;;  %777 = vmatmul.bf16.vlgmr.msra.gmra.mxu2 %v1624_v57  ;;  %v1245_v40 = vld [vmem:[%s1541_s11 + $0x108] sm:$0xf0]  ;;  %v1184_v41 = vor.u32 %v1334_v37, %v1181_v38  ;;  %v397_v54 = vld [vmem:[#allocation2 + $0x18] sm:$0xff]  ;;  %v396_v14 = vld [vmem:[#allocation2] sm:$0xff] }
  0x55   : > { %1366 = vmatpush.bf16.msrb.mxu2 %v1240_v51  ;;  %807 = vmatpush.bf16.msrb.mxu0 %v1240_v51  ;;  %v1248_v42 = vor.u32 %v1350_v39, %v1245_v40  ;;  %v399_v62 = vld [vmem:[#allocation2 + $0x8] sm:$0xff]  ;;  %v398_v24 = vld [vmem:[#allocation2 + $0x10] sm:$0xff]  ;;  %v402_v31 = vld [vmem:[#allocation2 + $0x38] sm:$0xff] }
  0x56   : > { %1374 = vmatpush.bf16.msrb.mxu3 %v1304_v53  ;;  %v401_v6 = vld [vmem:[#allocation2 + $0x28] sm:$0xff] }
  0x58   : > { %827 = vmatpush.bf16.msrb.mxu1 %v1296_v61 }
  0x59   : > { %1367 = vmatpush.bf16.msrb.mxu2 %v1232_v60  ;;  %808 = vmatpush.bf16.msrb.mxu0 %v1232_v60 }
  0x5a   : > { %1375 = vmatpush.bf16.msrb.mxu3 %v1296_v61 }
  0x5c   : > { %828 = vmatpush.bf16.msrb.mxu1 %v1288_v3 }
  0x5d   : > { %1368 = vmatpush.bf16.msrb.mxu2 %v1224_v2  ;;  %809 = vmatpush.bf16.msrb.mxu0 %v1224_v2 }
  0x5e   : > { %1376 = vmatpush.bf16.msrb.mxu3 %v1288_v3 }
  0x60   : > { %829 = vmatpush.bf16.msrb.mxu1 %v1280_v10 }
  0x61   : > { %1369 = vmatpush.bf16.msrb.mxu2 %v1216_v8  ;;  %810 = vmatpush.bf16.msrb.mxu0 %v1216_v8 }
  0x62   : > { %1377 = vmatpush.bf16.msrb.mxu3 %v1280_v10  ;;  %744 = vmatmul.bf16.gmra.mxu0 %v1104_v21 }
  0x63   : > { %763 = vmatmul.bf16.gmra.mxu1 %v1108_v25  ;;  %801 = vmatmul.bf16.gmra.mxu3 %v1104_v21 }
  0x64   : > { %830 = vmatpush.bf16.msrb.mxu1 %v1272_v22  ;;  %782 = vmatmul.bf16.gmra.mxu2 %v1112_v26 }
  0x65   : > { %1370 = vmatpush.bf16.msrb.mxu2 %v1208_v20  ;;  %811 = vmatpush.bf16.msrb.mxu0 %v1208_v20  ;;  %v400_v20 = vld [vmem:[#allocation2 + $0x20] sm:$0xff] }
  0x66   : > { %1378 = vmatpush.bf16.msrb.mxu3 %v1272_v22 }
  0x68   : > { %831 = vmatpush.bf16.msrb.mxu1 %v1264_v30 }
  0x69   : > { %1371 = vmatpush.bf16.msrb.mxu2 %v1200_v29  ;;  %812 = vmatpush.bf16.msrb.mxu0 %v1200_v29 }
  0x6a   : > { %1379 = vmatpush.bf16.msrb.mxu3 %v1264_v30 }
  0x6c   : > { %832 = vmatpush.bf16.msrb.mxu1 %v1256_v36 }
  0x6d   : > { %1372 = vmatpush.bf16.msrb.mxu2 %v1192_v35  ;;  %813 = vmatpush.bf16.msrb.mxu0 %v1192_v35 }
  0x6e   : > { %1380 = vmatpush.bf16.msrb.mxu3 %v1256_v36 }
  0x70   : > { %833 = vmatpush.bf16.msrb.mxu1 %v1248_v42 }
  0x71   : > { %1373 = vmatpush.bf16.msrb.mxu2 %v1184_v41  ;;  %814 = vmatpush.bf16.msrb.mxu0 %v1184_v41 }
  0x72   : > { %1381 = vmatpush.bf16.msrb.mxu3 %v1248_v42 }
  0x73   : > { %834 = vmatmul.bf16.vlgmr.msrb.gmra.mxu1 %v1624_v57 }
  0x74   : > { %815 = vmatmul.bf16.vlgmr.msrb.gmra.mxu0 %v1622_v56  ;;  %820 = vmatmul.bf16.vlgmr.msrb.gmra.mxu2 %v1108_v25 }
  0x75   : > { %839 = vmatmul.bf16.vlgmr.msrb.gmra.mxu3 %v1112_v26 }
  0xcf   : > { %v740_v43 = vpop.f32.mrf.mxu0 }
  0xd0   : > { %v759_v44 = vpop.f32.mrf.mxu1 }
  0xd1   : > { %v760_v45 = vadd.f32 %v759_v44, %v740_v43 }
  0xd6   : > { %v797_v49 = vpop.f32.mrf.mxu3 }
  0xd7   : > { %v778_v47 = vpop.f32.mrf.mxu2  ;;  %v742_v50 = vpop.f32.mrf.mxu0 }
  0xd8   : > { %v779_v48 = vadd.f32 %v778_v47, %v760_v45  ;;  %v761_v51 = vpop.f32.mrf.mxu1 }
  0xd9   : > { %v762_v53 = vadd.f32 %v761_v51, %v742_v50 }
  0xda   : > { %v845_v52 = vadd.f32 %v779_v48, %v395_v46 }
  0xdc   : > { %853 = vst [vmem:[#allocation2 + $0x30] sm:$0xff] %v845_v52 }
  0xde   : > { %v799_v56 = vpop.f32.mrf.mxu3 }
  0xdf   : > { %v780_v55 = vpop.f32.mrf.mxu2  ;;  %v745_v59 = vpop.f32.mrf.mxu0 }
  0xe0   : > { %v781_v58 = vadd.f32 %v780_v55, %v762_v53  ;;  %v764_v60 = vpop.f32.mrf.mxu1 }
  0xe1   : > { %v765_v61 = vadd.f32 %v764_v60, %v745_v59 }
  0xe2   : > { %v847_v57 = vadd.f32 %v781_v58, %v397_v54 }
  0xe4   : > { %855 = vst [vmem:[#allocation2 + $0x18] sm:$0xff] %v847_v57 }
  0xe6   : > { %v802_v1 = vpop.f32.mrf.mxu3 }
  0xe7   : > { %v783_v63 = vpop.f32.mrf.mxu2  ;;  %v747_v2 = vpop.f32.mrf.mxu0 }
  0xe8   : > { %v784_v0 = vadd.f32 %v783_v63, %v765_v61  ;;  %v766_v3 = vpop.f32.mrf.mxu1 }
  0xe9   : > { %v767_v5 = vadd.f32 %v766_v3, %v747_v2 }
  0xea   : > { %v849_v4 = vadd.f32 %v784_v0, %v399_v62 }
  0xec   : > { %857 = vst [vmem:[#allocation2 + $0x8] sm:$0xff] %v849_v4 }
  0xee   : > { %v804_v9 = vpop.f32.mrf.mxu3 }
  0xef   : > { %v785_v7 = vpop.f32.mrf.mxu2 }
  0xf0   : > { %v786_v8 = vadd.f32 %v785_v7, %v767_v5  ;;  %v835_v13 = vpop.f32.mrf.mxu1 }
  0xf1   : > { %v816_v10 = vpop.f32.mrf.mxu0 }
  0xf2   : > { %v851_v11 = vadd.f32 %v786_v8, %v401_v6  ;;  %v817_v12 = vadd.f32 %v816_v10, %v797_v49 }
  0xf4   : > { %859 = vst [vmem:[#allocation2 + $0x28] sm:$0xff] %v851_v11  ;;  %v836_v15 = vadd.f32 %v835_v13, %v817_v12 }
  0xf6   : > { %v846_v16 = vadd.f32 %v836_v15, %v396_v14 }
  0xf7   : > { %v821_v17 = vpop.f32.mrf.mxu2 }
  0xf8   : > { %854 = vst [vmem:[#allocation2] sm:$0xff] %v846_v16  ;;  %v822_v18 = vadd.f32 %v821_v17, %v802_v1  ;;  %v840_v19 = vpop.f32.mrf.mxu3  ;;  %v837_v25 = vpop.f32.mrf.mxu1 }
  0xf9   : > { %v818_v21 = vpop.f32.mrf.mxu0 }
  0xfa   : > { %v841_v22 = vadd.f32 %v840_v19, %v822_v18  ;;  %v819_v23 = vadd.f32 %v818_v21, %v799_v56 }
  0xfc   : > { %v850_v26 = vadd.f32 %v841_v22, %v400_v20  ;;  %v838_v27 = vadd.f32 %v837_v25, %v819_v23 }
  0xfe   : > { %858 = vst [vmem:[#allocation2 + $0x20] sm:$0xff] %v850_v26  ;;  %v848_v28 = vadd.f32 %v838_v27, %v398_v24 }
  0xff   : > { %v823_v29 = vpop.f32.mrf.mxu2 }
 0x100   : > { %856 = vst [vmem:[#allocation2 + $0x10] sm:$0xff] %v848_v28  ;;  %v824_v30 = vadd.f32 %v823_v29, %v804_v9  ;;  %v842_v32 = vpop.f32.mrf.mxu3 }
 0x102   : > { %v843_v33 = vadd.f32 %v842_v32, %v824_v30  ;;  %864 = sbr.rel (%p1305_p11) target bundleno = 279 (0x117), region = 70 }
 0x104   : > { %v852_v34 = vadd.f32 %v843_v33, %v402_v31 }
 0x106   : > { %860 = vst [vmem:[#allocation2 + $0x38] sm:$0xff] %v852_v34 }
 0x107   : > { %v865_v35 = vld [vmem:[#allocation2 + $0x30] sm:$0xff]  ;;  %v866_v36 = vld [vmem:[#allocation2] sm:$0xff]  ;;  %v867_v41 = vld [vmem:[#allocation2 + $0x18] sm:$0xff] }
 0x108   : > { %v873_v37 = vld [vmem:[%s1707_s2] sm:$0x3]  ;;  %v868_v42 = vld [vmem:[#allocation2 + $0x10] sm:$0xff]  ;;  %v896_v45 = vld [vmem:[%s1708_s3 + $0x8] sm:$0xff] }
 0x109   : > { %v875_v38 = vperm.slane %v873_v37, 0  ;;  %v876_v39 = vperm.slane %v873_v37, 1  ;;  %v895_v40 = vld [vmem:[%s1708_s3] sm:$0xff]  ;;  %v869_v46 = vld [vmem:[#allocation2 + $0x8] sm:$0xff]  ;;  %v897_v52 = vld [vmem:[%s1708_s3 + $0x10] sm:$0xff]  ;;  %v901_v53 = vunpack.c.l.bf16 %v896_v45  ;;  %v902_v54 = vunpack.c.h.bf16 %v896_v45 }
 0x10a   : > { %v899_v43 = vunpack.c.l.bf16 %v895_v40  ;;  %v900_v44 = vunpack.c.h.bf16 %v895_v40  ;;  %v870_v47 = vld [vmem:[#allocation2 + $0x20] sm:$0xff]  ;;  %v871_v61 = vld [vmem:[#allocation2 + $0x28] sm:$0xff]  ;;  %v903_v1 = vunpack.c.l.bf16 %v897_v52  ;;  %v904_v2 = vunpack.c.h.bf16 %v897_v52  ;;  %v898_v3 = vld [vmem:[%s1708_s3 + $0x18] sm:$0xff] }
 0x10b   : > { %v879_v48 = vadd.f32 %v875_v38, %v865_v35  ;;  %v880_v49 = vadd.f32 %v876_v39, %v866_v36  ;;  %v881_v50 = vadd.f32 %v875_v38, %v867_v41  ;;  %v882_v51 = vadd.f32 %v876_v39, %v868_v42 }
 0x10c   : > { %v883_v55 = vadd.f32 %v875_v38, %v869_v46  ;;  %v884_v58 = vadd.f32 %v876_v39, %v870_v47  ;;  %v885_v10 = vadd.f32 %v875_v38, %v871_v61  ;;  %v905_v14 = vunpack.c.l.bf16 %v898_v3 }
 0x10d   : > { %v887_v56 = vmax.f32 %v879_v48, 0.0  ;;  %v888_v59 = vmax.f32 %v880_v49, 0.0  ;;  %v889_v60 = vmax.f32 %v881_v50, 0.0  ;;  %v890_v57 = vmax.f32 %v882_v51, 0.0  ;;  %v872_v62 = vld [vmem:[#allocation2 + $0x38] sm:$0xff] }
 0x10e   : > { %v891_v63 = vmax.f32 %v883_v55, 0.0  ;;  %v892_v0 = vmax.f32 %v884_v58, 0.0  ;;  %v886_v11 = vadd.f32 %v876_v39, %v872_v62  ;;  %v906_v15 = vunpack.c.h.bf16 %v898_v3 }
 0x10f   : > { %v907_v4 = vadd.f32 %v899_v43, %v887_v56  ;;  %v908_v5 = vadd.f32 %v900_v44, %v888_v59  ;;  %v909_v6 = vadd.f32 %v901_v53, %v889_v60  ;;  %v910_v7 = vadd.f32 %v902_v54, %v890_v57 }
 0x110   : > { %v911_v8 = vadd.f32 %v903_v1, %v891_v63  ;;  %v912_v9 = vadd.f32 %v904_v2, %v892_v0  ;;  %v893_v17 = vmax.f32 %v885_v10, 0.0  ;;  %v894_v18 = vmax.f32 %v886_v11, 0.0 }
 0x111   : > { %v915_v12 = vpack.c.bf16 %v908_v5, %v907_v4  ;;  %v916_v13 = vpack.c.bf16 %v910_v7, %v909_v6 }
 0x112   : > { %v917_v16 = vpack.c.bf16 %v912_v9, %v911_v8  ;;  %v913_v19 = vadd.f32 %v905_v14, %v893_v17  ;;  %v914_v20 = vadd.f32 %v906_v15, %v894_v18 }
 0x113   : > { %919 = vst [vmem:[%s1709_s4] sm:$0xff] %v915_v12 }
 0x114   : > { %920 = vst [vmem:[%s1709_s4 + $0x8] sm:$0xff] %v916_v13  ;;  %v918_v21 = vpack.c.bf16 %v914_v20, %v913_v19 }
 0x115   : > { %921 = vst [vmem:[%s1709_s4 + $0x10] sm:$0xff] %v917_v16 }
 0x116   : > { %922 = vst [vmem:[%s1709_s4 + $0x18] sm:$0xff] %v918_v21 }
 0x117 PF: > { %s14_s19 = sadd.s32 1, %s1463_s19   ;;  %s1710_s15 = smov %s1451_s16 }
 0x118   : > { %p11_p12 = scmp.ge.s32.totalorder %s14_s19, 8   ;;  %s1711_s16 = smov %s1526_s23 }
 0x119   : > { %s1712_s17 = smov %s1459_s18  ;;  %s1713_s18 = smov %s1715_s20 }
 0x11a   :  { %13 = sbr.rel (!%p11_p12) target bundleno = 3 (0x3), region = 120 }

// kernel: base_regressor_forward.19
= control target key start
LH: loop header
LB: loop body
LE: loop exit
PB: predicated region body
PF: predicated region fallthrough
CT: control target
= control target key end

     0   :  { %s2117_s0 = inlined_call_operand.vmem [shape: bf16[32,2304], index: 0, kind: input, shape index: {}]   ;;  %s2118_s1 = inlined_call_operand.vmem [shape: bf16[2304,512], index: 1, kind: input, shape index: {}]   ;;  %s2119_s2 = inlined_call_operand.vmem [shape: f32[1,512], index: 2, kind: input, shape index: {}]   ;;  %s2120_s3 = inlined_call_operand.vmem [shape: bf16[32,512], index: 3, kind: output, shape index: {}]  }
   0x1   :  { %2122 = sst [smem:[#allocation7_spill]] %s2117_s0 }
   0x2   :  { %2123 = sst [smem:[#allocation8_spill]] %s2118_s1 }
   0x3   :  { %s1715_s12 = smov 0   ;;  %s1717_s13 = smov 0  }
   0x4   :  { %s1719_s14 = smov 0   ;;  %s1721_s15 = smov 0  }
   0x5   :  { %s1723_s16 = smov 0   ;;  %s1725_s17 = smov 0  }
   0x6   :  { %s1727_s18 = smov 0   ;;  %s1729_s19 = smov 0  }
   0x7   :  { %s1731_s20 = smov 0   ;;  %s1733_s21 = smov 0  }
   0x8   :  { %s1735_s22 = smov 0  }
   0x9 LB: > { %s1198_s23 = sadd.s32 4294967295, %s1692_s22   ;;  %s25_s24 = sadd.s32 1, %s1684_s20  ;;  %s1692_s22 = sphi %s1735_s22, %s13_s22   ;;  %s1688_s21 = sphi %s1733_s21, %s2140_s21   ;;  %s1684_s20 = sphi %s1731_s20, %s2139_s20   ;;  %s1680_s19 = sphi %s1729_s19, %s2138_s19   ;;  %s1676_s18 = sphi %s1727_s18, %s2137_s18   ;;  %s1672_s17 = sphi %s1725_s17, %s2136_s17   ;;  %s1668_s16 = sphi %s1723_s16, %s2135_s16   ;;  %s1664_s15 = sphi %s1721_s15, %s2134_s15   ;;  %s1660_s14 = sphi %s1719_s14, %s2133_s14   ;;  %s1656_s13 = sphi %s1717_s13, %s2132_s13   ;;  %s1652_s12 = sphi %s1715_s12, %s2131_s12  }
   0xa   : > { %p26_p0 = scmp.ge.s32.totalorder %s25_s24, 6  ;;  %s28_s25 = sadd.s32 1, %s1688_s21 }
   0xb   : > { %s41_s26 = sadd.s32 1, %s1672_s17  ;;  %p48_p1 = scmp.ne.s32.totalorder %s1672_s17, %s1668_s16 }
   0xc   : > { %s2142_s24 = smov (%p26_p0, %s25_s24), 0  ;;  %s2144_s25 = smov (!%p26_p0, %s28_s25), %s1688_s21 }
   0xd   : > { %s37_s27 = ssub.s32 %s1684_s20, %s2142_s24  ;;  %p49_p2 = scmp.eq.s32.totalorder %s1692_s22, 0 }
   0xe   : > { %p30_p3 = scmp.ge.s32.totalorder %s2144_s25, 2  ;;  %p39_p4 = scmp.eq.s32.totalorder %s37_s27, 0 }
   0xf   : > { %p1782_p5 = por %p49_p2, %p48_p1  ;;  %s69_s29 = sadd.s32 1, %s1664_s15 }
  0x10   : > { %s2146_s25 = smov (%p30_p3, %s2144_s25), 0  ;;  %p76_p6 = scmp.ne.s32.totalorder %s1664_s15, %s1660_s14 }
  0x11   : > { %2125 = sst [smem:[#allocation6_spill]] %s2146_s25  ;;  %s65_s4 = ssub.s32 %s1688_s21, %s2146_s25 }
  0x12   : > { %s1790_s30 = scalar_select %p39_p4, %s1672_s17, %s41_s26  }
  0x13   : > { %s66_s5 = sor.u32 %s65_s4, %s37_s27  ;;  %p121_p7 = scmp.eq.s32.totalorder %s65_s4, 0 }
  0x14   : > { %p67_p8 = scmp.eq.s32.totalorder %s66_s5, 0  ;;  %p1796_p9 = por %p76_p6, %p49_p2 }
  0x15   : > { %s123_s7 = sadd.s32 1, %s1656_s13  ;;  %p133_p10 = scmp.ne.s32.totalorder %s1656_s13, %s1652_s12 }
  0x16   : > { %s1804_s8 = scalar_select %p67_p8, %s1664_s15, %s69_s29  }
  0x17   : > { %s1807_s9 = scalar_select %p121_p7, %s1656_s13, %s123_s7  }
  0x18   : > { %p134_p11 = scmp.eq.s32.totalorder %s1198_s23, 11  ;;  %p1201_p13 = scmp.ge.s32.totalorder %s1692_s22, 12 }
  0x1a   : > { %p1809_p12 = por %p134_p11, %p133_p10  ;;  %156 = sbr.rel (%p1201_p13) target bundleno = 106 (0x6a), region = 16 }
  0x1f   : > { %159 = sbr.rel (!%p1782_p5) target bundleno = 48 (0x30), region = 20  ;;  %s161_s11 = sand.u32 (%p1782_p5), 1, %s1672_s17  }
  0x20   : > { %s1440_s26 = smul.u32 (%p1782_p5), 12, %s1684_s20  ;;  %s2128_s0 = sld [smem:[#allocation7_spill]] (%p1782_p5) }
  0x21   : > { %s1513_s27 = smul.u32 (%p1782_p5), 48, %s161_s11 }
  0x23   : > { %s163_s23 = scalar_lea.vmem (%p1782_p5), [#allocation3], %s1513_s27 }
  0x26   : > { %s169_s5 = scalar_lea.vmem %s2128_s0, %s1440_s26 }
  0x27   : > { %v184_v0 = vld [vmem:[%s169_s5] sm:$0xff]  ;;  %v186_v1 = vld [vmem:[%s169_s5 + $0x48] sm:$0xff]  ;;  %v188_v2 = vld [vmem:[%s169_s5 + $0x90] sm:$0xff] }
  0x28   : > { %185 = vst [vmem:[%s163_s23] sm:$0xff] %v184_v0  ;;  %v190_v3 = vld [vmem:[%s169_s5 + $0xd8] sm:$0xff]  ;;  %v1203_v4 = vld [vmem:[%s169_s5 + $0x8] sm:$0xf]  ;;  %v1205_v5 = vld [vmem:[%s169_s5 + $0x50] sm:$0xf] }
  0x29   : > { %187 = vst [vmem:[%s163_s23 + $0xc] sm:$0xff] %v186_v1  ;;  %v1207_v6 = vld [vmem:[%s169_s5 + $0x98] sm:$0xf]  ;;  %v1209_v7 = vld [vmem:[%s169_s5 + $0xe0] sm:$0xf] }
  0x2a   : > { %189 = vst [vmem:[%s163_s23 + $0x18] sm:$0xff] %v188_v2 }
  0x2b   : > { %191 = vst [vmem:[%s163_s23 + $0x24] sm:$0xff] %v190_v3 }
  0x2c   : > { %1204 = vst [vmem:[%s163_s23 + $0x8] sm:$0xf] %v1203_v4 }
  0x2d   : > { %1206 = vst [vmem:[%s163_s23 + $0x14] sm:$0xf] %v1205_v5 }
  0x2e   : > { %1208 = vst [vmem:[%s163_s23 + $0x20] sm:$0xf] %v1207_v6 }
  0x2f   : > { %1210 = vst [vmem:[%s163_s23 + $0x2c] sm:$0xf] %v1209_v7 }
  0x30 PF: > { %213 = sbr.rel (!%p1796_p9) target bundleno = 106 (0x6a), region = 46  ;;  %s215_s28 = sand.u32 (%p1796_p9), 1, %s1664_s15  }
  0x31   : > { %s1514_s7 = smul.u32 (%p1796_p9), 384, %s215_s28  ;;  %s1211_s11 = sshll.u32 (%p1796_p9), %s1688_s21, 1 }
  0x32   : > { %s1441_s26 = smul.u32 (%p1796_p9), 192, %s1684_s20  ;;  %s2129_s1 = sld [smem:[#allocation8_spill]] (%p1796_p9) }
  0x33   : > { %s1834_s6 = scalar_lea.vmem (%p1796_p9), [#allocation4], %s1514_s7 }
  0x34   : > { %s221_s27 = sadd.s32 (%p1796_p9), %s1441_s26, %s1211_s11 }
  0x35   : > { %s1213_s29 = sshll.u32 %s221_s27, 2 }
  0x38   : > { %s1829_s5 = scalar_lea.vmem %s2129_s1, %s1213_s29 }
  0x39   : > { %v346_v8 = vld [vmem:[%s1829_s5] sm:$0xff]  ;;  %v348_v9 = vld [vmem:[%s1829_s5 + $0x10] sm:$0xff] }
  0x3a   : > { %v350_v10 = vld [vmem:[%s1829_s5 + $0x20] sm:$0xff]  ;;  %347 = vst [vmem:[%s1834_s6] sm:$0xff] %v346_v8  ;;  %v352_v11 = vld [vmem:[%s1829_s5 + $0x30] sm:$0xff] }
  0x3b   : > { %349 = vst [vmem:[%s1834_s6 + $0x8] sm:$0xff] %v348_v9  ;;  %v354_v12 = vld [vmem:[%s1829_s5 + $0x40] sm:$0xff]  ;;  %v356_v13 = vld [vmem:[%s1829_s5 + $0x50] sm:$0xff] }
  0x3c   : > { %351 = vst [vmem:[%s1834_s6 + $0x10] sm:$0xff] %v350_v10  ;;  %v358_v14 = vld [vmem:[%s1829_s5 + $0x60] sm:$0xff]  ;;  %v360_v15 = vld [vmem:[%s1829_s5 + $0x70] sm:$0xff] }
  0x3d   : > { %353 = vst [vmem:[%s1834_s6 + $0x18] sm:$0xff] %v352_v11  ;;  %v362_v16 = vld [vmem:[%s1829_s5 + $0x80] sm:$0xff]  ;;  %v364_v17 = vld [vmem:[%s1829_s5 + $0x90] sm:$0xff] }
  0x3e   : > { %355 = vst [vmem:[%s1834_s6 + $0x20] sm:$0xff] %v354_v12  ;;  %v366_v18 = vld [vmem:[%s1829_s5 + $0xa0] sm:$0xff]  ;;  %v368_v19 = vld [vmem:[%s1829_s5 + $0xb0] sm:$0xff] }
  0x3f   : > { %357 = vst [vmem:[%s1834_s6 + $0x28] sm:$0xff] %v356_v13  ;;  %v370_v20 = vld [vmem:[%s1829_s5 + $0xc0] sm:$0xff]  ;;  %v372_v21 = vld [vmem:[%s1829_s5 + $0xd0] sm:$0xff] }
  0x40   : > { %359 = vst [vmem:[%s1834_s6 + $0x30] sm:$0xff] %v358_v14  ;;  %v374_v22 = vld [vmem:[%s1829_s5 + $0xe0] sm:$0xff]  ;;  %v376_v23 = vld [vmem:[%s1829_s5 + $0xf0] sm:$0xff] }
  0x41   : > { %361 = vst [vmem:[%s1834_s6 + $0x38] sm:$0xff] %v360_v15  ;;  %v378_v24 = vld [vmem:[%s1829_s5 + $0x100] sm:$0xff]  ;;  %v380_v25 = vld [vmem:[%s1829_s5 + $0x110] sm:$0xff] }
  0x42   : > { %363 = vst [vmem:[%s1834_s6 + $0x40] sm:$0xff] %v362_v16  ;;  %v382_v26 = vld [vmem:[%s1829_s5 + $0x120] sm:$0xff]  ;;  %v384_v27 = vld [vmem:[%s1829_s5 + $0x130] sm:$0xff] }
  0x43   : > { %365 = vst [vmem:[%s1834_s6 + $0x48] sm:$0xff] %v364_v17  ;;  %v386_v28 = vld [vmem:[%s1829_s5 + $0x140] sm:$0xff]  ;;  %v388_v29 = vld [vmem:[%s1829_s5 + $0x150] sm:$0xff] }
  0x44   : > { %367 = vst [vmem:[%s1834_s6 + $0x50] sm:$0xff] %v366_v18  ;;  %v390_v30 = vld [vmem:[%s1829_s5 + $0x160] sm:$0xff]  ;;  %v392_v31 = vld [vmem:[%s1829_s5 + $0x170] sm:$0xff] }
  0x45   : > { %369 = vst [vmem:[%s1834_s6 + $0x58] sm:$0xff] %v368_v19  ;;  %v394_v32 = vld [vmem:[%s1829_s5 + $0x180] sm:$0xff]  ;;  %v396_v33 = vld [vmem:[%s1829_s5 + $0x190] sm:$0xff] }
  0x46   : > { %371 = vst [vmem:[%s1834_s6 + $0x60] sm:$0xff] %v370_v20  ;;  %v398_v34 = vld [vmem:[%s1829_s5 + $0x1a0] sm:$0xff]  ;;  %v400_v35 = vld [vmem:[%s1829_s5 + $0x1b0] sm:$0xff] }
  0x47   : > { %373 = vst [vmem:[%s1834_s6 + $0x68] sm:$0xff] %v372_v21  ;;  %v402_v36 = vld [vmem:[%s1829_s5 + $0x1c0] sm:$0xff]  ;;  %v404_v37 = vld [vmem:[%s1829_s5 + $0x1d0] sm:$0xff] }
  0x48   : > { %375 = vst [vmem:[%s1834_s6 + $0x70] sm:$0xff] %v374_v22  ;;  %v406_v38 = vld [vmem:[%s1829_s5 + $0x1e0] sm:$0xff]  ;;  %v408_v39 = vld [vmem:[%s1829_s5 + $0x1f0] sm:$0xff] }
  0x49   : > { %377 = vst [vmem:[%s1834_s6 + $0x78] sm:$0xff] %v376_v23  ;;  %v410_v40 = vld [vmem:[%s1829_s5 + $0x200] sm:$0xff]  ;;  %v412_v41 = vld [vmem:[%s1829_s5 + $0x210] sm:$0xff] }
  0x4a   : > { %379 = vst [vmem:[%s1834_s6 + $0x80] sm:$0xff] %v378_v24  ;;  %v414_v42 = vld [vmem:[%s1829_s5 + $0x220] sm:$0xff]  ;;  %v416_v43 = vld [vmem:[%s1829_s5 + $0x230] sm:$0xff] }
  0x4b   : > { %381 = vst [vmem:[%s1834_s6 + $0x88] sm:$0xff] %v380_v25  ;;  %v418_v44 = vld [vmem:[%s1829_s5 + $0x240] sm:$0xff]  ;;  %v420_v45 = vld [vmem:[%s1829_s5 + $0x250] sm:$0xff] }
  0x4c   : > { %383 = vst [vmem:[%s1834_s6 + $0x90] sm:$0xff] %v382_v26  ;;  %v422_v46 = vld [vmem:[%s1829_s5 + $0x260] sm:$0xff]  ;;  %v424_v47 = vld [vmem:[%s1829_s5 + $0x270] sm:$0xff] }
  0x4d   : > { %385 = vst [vmem:[%s1834_s6 + $0x98] sm:$0xff] %v384_v27  ;;  %v426_v48 = vld [vmem:[%s1829_s5 + $0x280] sm:$0xff]  ;;  %v428_v49 = vld [vmem:[%s1829_s5 + $0x290] sm:$0xff] }
  0x4e   : > { %387 = vst [vmem:[%s1834_s6 + $0xa0] sm:$0xff] %v386_v28  ;;  %v430_v50 = vld [vmem:[%s1829_s5 + $0x2a0] sm:$0xff]  ;;  %v432_v51 = vld [vmem:[%s1829_s5 + $0x2b0] sm:$0xff] }
  0x4f   : > { %389 = vst [vmem:[%s1834_s6 + $0xa8] sm:$0xff] %v388_v29  ;;  %v434_v52 = vld [vmem:[%s1829_s5 + $0x2c0] sm:$0xff]  ;;  %v436_v53 = vld [vmem:[%s1829_s5 + $0x2d0] sm:$0xff] }
  0x50   : > { %391 = vst [vmem:[%s1834_s6 + $0xb0] sm:$0xff] %v390_v30  ;;  %v438_v54 = vld [vmem:[%s1829_s5 + $0x2e0] sm:$0xff]  ;;  %v440_v55 = vld [vmem:[%s1829_s5 + $0x2f0] sm:$0xff] }
  0x51   : > { %393 = vst [vmem:[%s1834_s6 + $0xb8] sm:$0xff] %v392_v31 }
  0x52   : > { %395 = vst [vmem:[%s1834_s6 + $0xc0] sm:$0xff] %v394_v32 }
  0x53   : > { %397 = vst [vmem:[%s1834_s6 + $0xc8] sm:$0xff] %v396_v33 }
  0x54   : > { %399 = vst [vmem:[%s1834_s6 + $0xd0] sm:$0xff] %v398_v34 }
  0x55   : > { %401 = vst [vmem:[%s1834_s6 + $0xd8] sm:$0xff] %v400_v35 }
  0x56   : > { %403 = vst [vmem:[%s1834_s6 + $0xe0] sm:$0xff] %v402_v36 }
  0x57   : > { %405 = vst [vmem:[%s1834_s6 + $0xe8] sm:$0xff] %v404_v37 }
  0x58   : > { %407 = vst [vmem:[%s1834_s6 + $0xf0] sm:$0xff] %v406_v38 }
  0x59   : > { %409 = vst [vmem:[%s1834_s6 + $0xf8] sm:$0xff] %v408_v39 }
  0x5a   : > { %411 = vst [vmem:[%s1834_s6 + $0x100] sm:$0xff] %v410_v40 }
  0x5b   : > { %413 = vst [vmem:[%s1834_s6 + $0x108] sm:$0xff] %v412_v41 }
  0x5c   : > { %415 = vst [vmem:[%s1834_s6 + $0x110] sm:$0xff] %v414_v42 }
  0x5d   : > { %417 = vst [vmem:[%s1834_s6 + $0x118] sm:$0xff] %v416_v43 }
  0x5e   : > { %419 = vst [vmem:[%s1834_s6 + $0x120] sm:$0xff] %v418_v44 }
  0x5f   : > { %421 = vst [vmem:[%s1834_s6 + $0x128] sm:$0xff] %v420_v45 }
  0x60   : > { %423 = vst [vmem:[%s1834_s6 + $0x130] sm:$0xff] %v422_v46 }
  0x61   : > { %425 = vst [vmem:[%s1834_s6 + $0x138] sm:$0xff] %v424_v47 }
  0x62   : > { %427 = vst [vmem:[%s1834_s6 + $0x140] sm:$0xff] %v426_v48 }
  0x63   : > { %429 = vst [vmem:[%s1834_s6 + $0x148] sm:$0xff] %v428_v49 }
  0x64   : > { %431 = vst [vmem:[%s1834_s6 + $0x150] sm:$0xff] %v430_v50 }
  0x65   : > { %433 = vst [vmem:[%s1834_s6 + $0x158] sm:$0xff] %v432_v51 }
  0x66   : > { %435 = vst [vmem:[%s1834_s6 + $0x160] sm:$0xff] %v434_v52 }
  0x67   : > { %437 = vst [vmem:[%s1834_s6 + $0x168] sm:$0xff] %v436_v53 }
  0x68   : > { %439 = vst [vmem:[%s1834_s6 + $0x170] sm:$0xff] %v438_v54 }
  0x69   : > { %441 = vst [vmem:[%s1834_s6 + $0x178] sm:$0xff] %v440_v55 }
  0x6a PF: > { %p1214_p0 = scmp.ge.s32.totalorder %s1692_s22, 1  ;;  %p454_p1 = scmp.lt.s32.totalorder %s1692_s22, 13 }
  0x6c   : > { %p455_p2 = pnand %p1214_p0, %p454_p1 }
  0x6d   : > { %s461_s0 = sand.u32 (!%p455_p2), 1, %s1668_s16   ;;  %s468_s23 = sand.u32 (!%p455_p2), 1, %s1660_s14  }
  0x6e   : > { %458 = sbr.rel (%p455_p2) target bundleno = 368 (0x170), region = 88  ;;  %s495_s7 = sand.u32 (!%p455_p2), 1, %s1652_s12  }
  0x6f   : > { %s1515_s28 = smul.u32 (!%p455_p2), 48, %s461_s0  ;;  %s1215_s26 = sshll.u32 (!%p455_p2), %s495_s7, 5 }
  0x70   : > { %s1516_s11 = smul.u32 (!%p455_p2), 384, %s468_s23  ;;  %s1216_s27 = sshll.u32 (!%p455_p2), %s1680_s19, 1 }
  0x71   : > { %p503_p3 = scmp.lt.s32.totalorder (!%p455_p2), %s1216_s27, 3  ;;  %s1941_s6 = scalar_lea.vmem (!%p455_p2), [#allocation3], %s1515_s28 }
  0x72   : > { %s1943_s1 = scalar_lea.vmem (!%p455_p2), [#allocation4], %s1516_s11  ;;  %s1945_s25 = scalar_lea.vmem (!%p455_p2), [#allocation5], %s1215_s26 }
  0x73   : > { %s2148_s27 = smov (!%p503_p3, %s1216_s27), 3  ;;  %p1217_p4 = scmp.ne.s32.totalorder %s1676_s18, 0 }
  0x74   : > { %s505_s5 = scalar_lea.vmem %s2119_s2, %s2148_s27 }
  0x75   : > { %512 = sbr.rel (%p1217_p4) target bundleno = 131 (0x83), region = 100 }
  0x7a   : > { %v1694_v56 = vmov 0.0  }
  0x7b   : > { %513 = vst [vmem:[#allocation2 + $0x30] sm:$0xff] %v1694_v56 }
  0x7c   : > { %514 = vst [vmem:[#allocation2] sm:$0xff] %v1694_v56 }
  0x7d   : > { %515 = vst [vmem:[#allocation2 + $0x18] sm:$0xff] %v1694_v56 }
  0x7e   : > { %516 = vst [vmem:[#allocation2 + $0x10] sm:$0xff] %v1694_v56 }
  0x7f   : > { %517 = vst [vmem:[#allocation2 + $0x8] sm:$0xff] %v1694_v56 }
  0x80   : > { %518 = vst [vmem:[#allocation2 + $0x20] sm:$0xff] %v1694_v56 }
  0x81   : > { %519 = vst [vmem:[#allocation2 + $0x28] sm:$0xff] %v1694_v56 }
  0x82   : > { %520 = vst [vmem:[#allocation2 + $0x38] sm:$0xff] %v1694_v56 }
  0x83 PF: > { %v1300_v57 = vld [vmem:[%s1943_s1 + $0x70] sm:$0xf]  ;;  %v1463_v58 = vld [vmem:[%s1943_s1 + $0x74] sm:$0xf0]  ;;  %v1462_v2 = vld [vmem:[%s1943_s1 + $0x74] sm:$0xf] }
  0x84   : > { %v1364_v59 = vld [vmem:[%s1943_s1 + $0xf0] sm:$0xf]  ;;  %v1301_v60 = vor.u32 %v1463_v58, %v1300_v57  ;;  %v1479_v61 = vld [vmem:[%s1943_s1 + $0xf4] sm:$0xf0]  ;;  %v1302_v3 = vld [vmem:[%s1943_s1 + $0x78] sm:$0xf0] }
  0x85   : > { %v1428_v62 = vld [vmem:[%s1943_s1 + $0x170] sm:$0xf]  ;;  %v1495_v63 = vld [vmem:[%s1943_s1 + $0x174] sm:$0xf0]  ;;  %v1365_v0 = vor.u32 %v1479_v61, %v1364_v59  ;;  %v1292_v4 = vld [vmem:[%s1943_s1 + $0x60] sm:$0xf]  ;;  %v1305_v5 = vor.u32 %v1462_v2, %v1302_v3 }
  0x86   : > { %v1429_v1 = vor.u32 %v1495_v63, %v1428_v62  ;;  %857 = vmatpush.bf16.msra.mxu0 %v1301_v60  ;;  %v1461_v6 = vld [vmem:[%s1943_s1 + $0x64] sm:$0xf0]  ;;  %v1356_v7 = vld [vmem:[%s1943_s1 + $0xe0] sm:$0xf]  ;;  %v1460_v13 = vld [vmem:[%s1943_s1 + $0x64] sm:$0xf] }
  0x87   : > { %v1477_v8 = vld [vmem:[%s1943_s1 + $0xe4] sm:$0xf0]  ;;  %876 = vmatpush.bf16.msra.mxu1 %v1365_v0  ;;  %v1293_v9 = vor.u32 %v1461_v6, %v1292_v4  ;;  %v1420_v11 = vld [vmem:[%s1943_s1 + $0x160] sm:$0xf]  ;;  %914 = vmatpush.bf16.msra.mxu3 %v1305_v5  ;;  %v1294_v15 = vld [vmem:[%s1943_s1 + $0x68] sm:$0xf0] }
  0x88   : > { %895 = vmatpush.bf16.msra.mxu2 %v1429_v1  ;;  %v1357_v10 = vor.u32 %v1477_v8, %v1356_v7  ;;  %v1493_v12 = vld [vmem:[%s1943_s1 + $0x164] sm:$0xf0]  ;;  %v1284_v16 = vld [vmem:[%s1943_s1 + $0x50] sm:$0xf]  ;;  %v1459_v17 = vld [vmem:[%s1943_s1 + $0x54] sm:$0xf0]  ;;  %v1297_v18 = vor.u32 %v1460_v13, %v1294_v15 }
  0x89   : > { %v1421_v14 = vor.u32 %v1493_v12, %v1420_v11  ;;  %v1348_v19 = vld [vmem:[%s1943_s1 + $0xd0] sm:$0xf]  ;;  %v1475_v20 = vld [vmem:[%s1943_s1 + $0xd4] sm:$0xf0]  ;;  %v1285_v22 = vor.u32 %v1459_v17, %v1284_v16  ;;  %v1458_v24 = vld [vmem:[%s1943_s1 + $0x54] sm:$0xf] }
  0x8a   : > { %v1412_v21 = vld [vmem:[%s1943_s1 + $0x150] sm:$0xf]  ;;  %858 = vmatpush.bf16.msra.mxu0 %v1293_v9  ;;  %v1491_v23 = vld [vmem:[%s1943_s1 + $0x154] sm:$0xf0]  ;;  %v1286_v25 = vld [vmem:[%s1943_s1 + $0x58] sm:$0xf0]  ;;  %v1349_v26 = vor.u32 %v1475_v20, %v1348_v19 }
  0x8b   : > { %877 = vmatpush.bf16.msra.mxu1 %v1357_v10  ;;  %v1413_v27 = vor.u32 %v1491_v23, %v1412_v21  ;;  %v1276_v28 = vld [vmem:[%s1943_s1 + $0x40] sm:$0xf]  ;;  %v1457_v29 = vld [vmem:[%s1943_s1 + $0x44] sm:$0xf0]  ;;  %915 = vmatpush.bf16.msra.mxu3 %v1297_v18  ;;  %v1289_v31 = vor.u32 %v1458_v24, %v1286_v25  ;;  %v1456_v35 = vld [vmem:[%s1943_s1 + $0x44] sm:$0xf] }
  0x8c   : > { %896 = vmatpush.bf16.msra.mxu2 %v1421_v14  ;;  %v1340_v30 = vld [vmem:[%s1943_s1 + $0xc0] sm:$0xf]  ;;  %v1473_v32 = vld [vmem:[%s1943_s1 + $0xc4] sm:$0xf0]  ;;  %v1278_v36 = vld [vmem:[%s1943_s1 + $0x48] sm:$0xf0]  ;;  %v1277_v37 = vor.u32 %v1457_v29, %v1276_v28 }
  0x8d   : > { %v1404_v33 = vld [vmem:[%s1943_s1 + $0x140] sm:$0xf]  ;;  %v1489_v34 = vld [vmem:[%s1943_s1 + $0x144] sm:$0xf0]  ;;  %v1341_v38 = vor.u32 %v1473_v32, %v1340_v30  ;;  %v1268_v40 = vld [vmem:[%s1943_s1 + $0x30] sm:$0xf]  ;;  %v1281_v43 = vor.u32 %v1456_v35, %v1278_v36 }
  0x8e   : > { %859 = vmatpush.bf16.msra.mxu0 %v1285_v22  ;;  %v1405_v39 = vor.u32 %v1489_v34, %v1404_v33  ;;  %v1455_v41 = vld [vmem:[%s1943_s1 + $0x34] sm:$0xf0]  ;;  %v1332_v42 = vld [vmem:[%s1943_s1 + $0xb0] sm:$0xf]  ;;  %v1454_v47 = vld [vmem:[%s1943_s1 + $0x34] sm:$0xf] }
  0x8f   : > { %878 = vmatpush.bf16.msra.mxu1 %v1349_v26  ;;  %916 = vmatpush.bf16.msra.mxu3 %v1289_v31  ;;  %v1471_v44 = vld [vmem:[%s1943_s1 + $0xb4] sm:$0xf0]  ;;  %v1396_v45 = vld [vmem:[%s1943_s1 + $0x130] sm:$0xf]  ;;  %v1270_v48 = vld [vmem:[%s1943_s1 + $0x38] sm:$0xf0]  ;;  %v1269_v49 = vor.u32 %v1455_v41, %v1268_v40 }
  0x90   : > { %897 = vmatpush.bf16.msra.mxu2 %v1413_v27  ;;  %v1487_v46 = vld [vmem:[%s1943_s1 + $0x134] sm:$0xf0]  ;;  %v1333_v50 = vor.u32 %v1471_v44, %v1332_v42  ;;  %v1260_v52 = vld [vmem:[%s1943_s1 + $0x20] sm:$0xf]  ;;  %v1453_v53 = vld [vmem:[%s1943_s1 + $0x24] sm:$0xf0]  ;;  %v1273_v55 = vor.u32 %v1454_v47, %v1270_v48 }
  0x91   : > { %v1397_v51 = vor.u32 %v1487_v46, %v1396_v45  ;;  %v1324_v54 = vld [vmem:[%s1943_s1 + $0xa0] sm:$0xf]  ;;  %v1469_v56 = vld [vmem:[%s1943_s1 + $0xa4] sm:$0xf0]  ;;  %v1452_v59 = vld [vmem:[%s1943_s1 + $0x24] sm:$0xf]  ;;  %v1261_v61 = vor.u32 %v1453_v53, %v1260_v52 }
  0x92   : > { %860 = vmatpush.bf16.msra.mxu0 %v1277_v37  ;;  %v1388_v57 = vld [vmem:[%s1943_s1 + $0x120] sm:$0xf]  ;;  %v1485_v58 = vld [vmem:[%s1943_s1 + $0x124] sm:$0xf0]  ;;  %v1262_v60 = vld [vmem:[%s1943_s1 + $0x28] sm:$0xf0]  ;;  %v1325_v62 = vor.u32 %v1469_v56, %v1324_v54 }
  0x93   : > { %879 = vmatpush.bf16.msra.mxu1 %v1341_v38  ;;  %917 = vmatpush.bf16.msra.mxu3 %v1281_v43  ;;  %v1389_v63 = vor.u32 %v1485_v58, %v1388_v57  ;;  %v1252_v0 = vld [vmem:[%s1943_s1 + $0x10] sm:$0xf]  ;;  %v1451_v1 = vld [vmem:[%s1943_s1 + $0x14] sm:$0xf0]  ;;  %v1265_v3 = vor.u32 %v1452_v59, %v1262_v60  ;;  %v1450_v7 = vld [vmem:[%s1943_s1 + $0x14] sm:$0xf] }
  0x94   : > { %898 = vmatpush.bf16.msra.mxu2 %v1405_v39  ;;  %v1316_v2 = vld [vmem:[%s1943_s1 + $0x90] sm:$0xf]  ;;  %v1467_v4 = vld [vmem:[%s1943_s1 + $0x94] sm:$0xf0]  ;;  %v1254_v8 = vld [vmem:[%s1943_s1 + $0x18] sm:$0xf0]  ;;  %v1253_v9 = vor.u32 %v1451_v1, %v1252_v0 }
  0x95   : > { %v1380_v5 = vld [vmem:[%s1943_s1 + $0x110] sm:$0xf]  ;;  %v1483_v6 = vld [vmem:[%s1943_s1 + $0x114] sm:$0xf0]  ;;  %v1244_v10 = vld [vmem:[%s1943_s1] sm:$0xf]  ;;  %v1317_v13 = vor.u32 %v1467_v4, %v1316_v2  ;;  %v1257_v18 = vor.u32 %v1450_v7, %v1254_v8 }
  0x96   : > { %861 = vmatpush.bf16.msra.mxu0 %v1269_v49  ;;  %v1449_v11 = vld [vmem:[%s1943_s1 + $0x4] sm:$0xf0]  ;;  %v1308_v12 = vld [vmem:[%s1943_s1 + $0x80] sm:$0xf]  ;;  %v1381_v14 = vor.u32 %v1483_v6, %v1380_v5  ;;  %v1448_v19 = vld [vmem:[%s1943_s1 + $0x4] sm:$0xf] }
  0x97   : > { %880 = vmatpush.bf16.msra.mxu1 %v1333_v50  ;;  %918 = vmatpush.bf16.msra.mxu3 %v1273_v55  ;;  %v1465_v15 = vld [vmem:[%s1943_s1 + $0x84] sm:$0xf0]  ;;  %v1372_v16 = vld [vmem:[%s1943_s1 + $0x100] sm:$0xf]  ;;  %v1246_v20 = vld [vmem:[%s1943_s1 + $0x8] sm:$0xf0]  ;;  %v1245_v25 = vor.u32 %v1449_v11, %v1244_v10 }
  0x98   : > { %899 = vmatpush.bf16.msra.mxu2 %v1397_v51  ;;  %v1481_v17 = vld [vmem:[%s1943_s1 + $0x104] sm:$0xf0]  ;;  %v1220_v21 = vld [vmem:[%s1941_s6] sm:$0xf]  ;;  %v1443_v22 = vld [vmem:[%s1941_s6 + $0x8] sm:$0xf0]  ;;  %v1309_v29 = vor.u32 %v1465_v15, %v1308_v12  ;;  %v1249_v34 = vor.u32 %v1448_v19, %v1246_v20 }
  0x99   : > { %v1478_v23 = vld [vmem:[%s1943_s1 + $0xf4] sm:$0xf]  ;;  %v1366_v24 = vld [vmem:[%s1943_s1 + $0xf8] sm:$0xf0]  ;;  %v1373_v30 = vor.u32 %v1481_v17, %v1372_v16  ;;  %v1222_v31 = vld [vmem:[%s1941_s6 + $0xc] sm:$0xf0]  ;;  %v1221_v36 = vor.u32 %v1443_v22, %v1220_v21 }
  0x9a   : > { %862 = vmatpush.bf16.msra.mxu0 %v1261_v61  ;;  %v1442_v26 = vld [vmem:[%s1941_s6 + $0x4] sm:$0xf]  ;;  %v1430_v28 = vld [vmem:[%s1943_s1 + $0x178] sm:$0xf0]  ;;  %v1228_v32 = vld [vmem:[%s1941_s6 + $0x8] sm:$0xf]  ;;  %v1369_v35 = vor.u32 %v1478_v23, %v1366_v24 }
  0x9b   : > { %881 = vmatpush.bf16.msra.mxu1 %v1325_v62  ;;  %919 = vmatpush.bf16.msra.mxu3 %v1265_v3  ;;  %v1494_v27 = vld [vmem:[%s1943_s1 + $0x174] sm:$0xf]  ;;  %v1476_v38 = vld [vmem:[%s1943_s1 + $0xe4] sm:$0xf]  ;;  %v1358_v39 = vld [vmem:[%s1943_s1 + $0xe8] sm:$0xf0]  ;;  %v2024_v40 = vor.u32 %v1442_v26, %v1222_v31 }
  0x9c   : > { %900 = vmatpush.bf16.msra.mxu2 %v1389_v63  ;;  %v1444_v33 = vld [vmem:[%s1941_s6 + $0x10] sm:$0xf0]  ;;  %v1433_v37 = vor.u32 %v1494_v27, %v1430_v28  ;;  %v1422_v43 = vld [vmem:[%s1943_s1 + $0x168] sm:$0xf0]  ;;  %v1361_v44 = vor.u32 %v1476_v38, %v1358_v39  ;;  %v1350_v47 = vld [vmem:[%s1943_s1 + $0xd8] sm:$0xf0] }
  0x9d   : > { %v2026_v41 = vor.u32 %v1444_v33, %v1228_v32  ;;  %v1492_v42 = vld [vmem:[%s1943_s1 + $0x164] sm:$0xf]  ;;  %v1474_v46 = vld [vmem:[%s1943_s1 + $0xd4] sm:$0xf]  ;;  %v1414_v49 = vld [vmem:[%s1943_s1 + $0x158] sm:$0xf0] }
  0x9e   : > { %863 = vmatpush.bf16.msra.mxu0 %v1253_v9  ;;  %v1425_v45 = vor.u32 %v1492_v42, %v1422_v43  ;;  %v1490_v48 = vld [vmem:[%s1943_s1 + $0x154] sm:$0xf]  ;;  %v1353_v50 = vor.u32 %v1474_v46, %v1350_v47  ;;  %v1472_v52 = vld [vmem:[%s1943_s1 + $0xc4] sm:$0xf]  ;;  %v1342_v53 = vld [vmem:[%s1943_s1 + $0xc8] sm:$0xf0] }
  0x9f   : > { %882 = vmatpush.bf16.msra.mxu1 %v1317_v13  ;;  %920 = vmatpush.bf16.msra.mxu3 %v1257_v18  ;;  %v1417_v51 = vor.u32 %v1490_v48, %v1414_v49  ;;  %v1488_v54 = vld [vmem:[%s1943_s1 + $0x144] sm:$0xf]  ;;  %v1406_v55 = vld [vmem:[%s1943_s1 + $0x148] sm:$0xf0]  ;;  %v1345_v56 = vor.u32 %v1472_v52, %v1342_v53  ;;  %v1232_v57 = vld [vmem:[%s1941_s6 + $0x18] sm:$0xf] }
  0xa0   : > { %901 = vmatpush.bf16.msra.mxu2 %v1381_v14  ;;  %v1409_v58 = vor.u32 %v1488_v54, %v1406_v55  ;;  %v1446_v59 = vld [vmem:[%s1941_s6 + $0x20] sm:$0xf0]  ;;  %v1334_v61 = vld [vmem:[%s1943_s1 + $0xb8] sm:$0xf0]  ;;  %v1234_v1 = vld [vmem:[%s1941_s6 + $0x24] sm:$0xf0] }
  0xa1   : > { %v1470_v60 = vld [vmem:[%s1943_s1 + $0xb4] sm:$0xf]  ;;  %v1445_v62 = vld [vmem:[%s1941_s6 + $0x1c] sm:$0xf]  ;;  %v1240_v2 = vld [vmem:[%s1941_s6 + $0x20] sm:$0xf]  ;;  %v1233_v5 = vor.u32 %v1446_v59, %v1232_v57 }
  0xa2   : > { %864 = vmatpush.bf16.msra.mxu0 %v1245_v25  ;;  %v1486_v63 = vld [vmem:[%s1943_s1 + $0x134] sm:$0xf]  ;;  %v1398_v0 = vld [vmem:[%s1943_s1 + $0x138] sm:$0xf0]  ;;  %v1337_v4 = vor.u32 %v1470_v60, %v1334_v61  ;;  %v1468_v7 = vld [vmem:[%s1943_s1 + $0xa4] sm:$0xf]  ;;  %v1237_v9 = vor.u32 %v1445_v62, %v1234_v1 }
  0xa3   : > { %883 = vmatpush.bf16.msra.mxu1 %v1309_v29  ;;  %921 = vmatpush.bf16.msra.mxu3 %v1249_v34  ;;  %v1447_v3 = vld [vmem:[%s1941_s6 + $0x28] sm:$0xf0]  ;;  %v1401_v6 = vor.u32 %v1486_v63, %v1398_v0  ;;  %v1484_v11 = vld [vmem:[%s1943_s1 + $0x124] sm:$0xf]  ;;  %v1466_v15 = vld [vmem:[%s1943_s1 + $0x94] sm:$0xf] }
  0xa4   : > { %902 = vmatpush.bf16.msra.mxu2 %v1373_v30  ;;  %v1326_v8 = vld [vmem:[%s1943_s1 + $0xa8] sm:$0xf0]  ;;  %v1241_v10 = vor.u32 %v1447_v3, %v1240_v2  ;;  %v1318_v16 = vld [vmem:[%s1943_s1 + $0x98] sm:$0xf0]  ;;  %v1482_v17 = vld [vmem:[%s1943_s1 + $0x114] sm:$0xf] }
  0xa5   : > { %865 = vmatmul.bf16.vlgmr.msra.gmra.mxu0 %v1221_v36  ;;  %v1390_v12 = vld [vmem:[%s1943_s1 + $0x128] sm:$0xf0]  ;;  %v1329_v13 = vor.u32 %v1468_v7, %v1326_v8  ;;  %v1382_v18 = vld [vmem:[%s1943_s1 + $0x118] sm:$0xf0]  ;;  %v1321_v19 = vor.u32 %v1466_v15, %v1318_v16  ;;  %v1464_v21 = vld [vmem:[%s1943_s1 + $0x84] sm:$0xf] }
  0xa6   : > { %884 = vmatmul.bf16.vlgmr.msra.gmra.mxu1 %v2024_v40  ;;  %922 = vmatmul.bf16.vlgmr.msra.gmra.mxu3 %v1221_v36  ;;  %v1393_v14 = vor.u32 %v1484_v11, %v1390_v12  ;;  %v1385_v20 = vor.u32 %v1482_v17, %v1382_v18  ;;  %v1310_v22 = vld [vmem:[%s1943_s1 + $0x88] sm:$0xf0]  ;;  %v1480_v23 = vld [vmem:[%s1943_s1 + $0x104] sm:$0xf]  ;;  %v521_v30 = vld [vmem:[#allocation2 + $0x30] sm:$0xff]  ;;  %p1434_p5 = scmp.ne.s32.totalorder %s1676_s18, 5 }
  0xa7   : > { %952 = vmatpush.bf16.msrb.mxu1 %v1433_v37  ;;  %903 = vmatmul.bf16.vlgmr.msra.gmra.mxu2 %v2026_v41  ;;  %v1374_v24 = vld [vmem:[%s1943_s1 + $0x108] sm:$0xf0]  ;;  %v1313_v25 = vor.u32 %v1464_v21, %v1310_v22  ;;  %v523_v38 = vld [vmem:[#allocation2 + $0x18] sm:$0xff]  ;;  %v522_v62 = vld [vmem:[#allocation2] sm:$0xff] }
  0xa8   : > { %1497 = vmatpush.bf16.msrb.mxu2 %v1369_v35  ;;  %933 = vmatpush.bf16.msrb.mxu0 %v1369_v35  ;;  %v1377_v26 = vor.u32 %v1480_v23, %v1374_v24  ;;  %v525_v46 = vld [vmem:[#allocation2 + $0x8] sm:$0xff]  ;;  %v524_v8 = vld [vmem:[#allocation2 + $0x10] sm:$0xff]  ;;  %v528_v15 = vld [vmem:[#allocation2 + $0x38] sm:$0xff] }
  0xa9   : > { %1505 = vmatpush.bf16.msrb.mxu3 %v1433_v37  ;;  %v527_v54 = vld [vmem:[#allocation2 + $0x28] sm:$0xff] }
  0xab   : > { %953 = vmatpush.bf16.msrb.mxu1 %v1425_v45 }
  0xac   : > { %1498 = vmatpush.bf16.msrb.mxu2 %v1361_v44  ;;  %934 = vmatpush.bf16.msrb.mxu0 %v1361_v44 }
  0xad   : > { %1506 = vmatpush.bf16.msrb.mxu3 %v1425_v45 }
  0xaf   : > { %954 = vmatpush.bf16.msrb.mxu1 %v1417_v51 }
  0xb0   : > { %1499 = vmatpush.bf16.msrb.mxu2 %v1353_v50  ;;  %935 = vmatpush.bf16.msrb.mxu0 %v1353_v50 }
  0xb1   : > { %1507 = vmatpush.bf16.msrb.mxu3 %v1417_v51 }
  0xb3   : > { %955 = vmatpush.bf16.msrb.mxu1 %v1409_v58 }
  0xb4   : > { %1500 = vmatpush.bf16.msrb.mxu2 %v1345_v56  ;;  %936 = vmatpush.bf16.msrb.mxu0 %v1345_v56 }
  0xb5   : > { %1508 = vmatpush.bf16.msrb.mxu3 %v1409_v58  ;;  %870 = vmatmul.bf16.gmra.mxu0 %v1233_v5 }
  0xb6   : > { %889 = vmatmul.bf16.gmra.mxu1 %v1237_v9  ;;  %927 = vmatmul.bf16.gmra.mxu3 %v1233_v5 }
  0xb7   : > { %956 = vmatpush.bf16.msrb.mxu1 %v1401_v6  ;;  %908 = vmatmul.bf16.gmra.mxu2 %v1241_v10 }
  0xb8   : > { %1501 = vmatpush.bf16.msrb.mxu2 %v1337_v4  ;;  %937 = vmatpush.bf16.msrb.mxu0 %v1337_v4  ;;  %v526_v4 = vld [vmem:[#allocation2 + $0x20] sm:$0xff] }
  0xb9   : > { %1509 = vmatpush.bf16.msrb.mxu3 %v1401_v6 }
  0xbb   : > { %957 = vmatpush.bf16.msrb.mxu1 %v1393_v14 }
  0xbc   : > { %1502 = vmatpush.bf16.msrb.mxu2 %v1329_v13  ;;  %938 = vmatpush.bf16.msrb.mxu0 %v1329_v13 }
  0xbd   : > { %1510 = vmatpush.bf16.msrb.mxu3 %v1393_v14 }
  0xbf   : > { %958 = vmatpush.bf16.msrb.mxu1 %v1385_v20 }
  0xc0   : > { %1503 = vmatpush.bf16.msrb.mxu2 %v1321_v19  ;;  %939 = vmatpush.bf16.msrb.mxu0 %v1321_v19 }
  0xc1   : > { %1511 = vmatpush.bf16.msrb.mxu3 %v1385_v20 }
  0xc3   : > { %959 = vmatpush.bf16.msrb.mxu1 %v1377_v26 }
  0xc4   : > { %1504 = vmatpush.bf16.msrb.mxu2 %v1313_v25  ;;  %940 = vmatpush.bf16.msrb.mxu0 %v1313_v25 }
  0xc5   : > { %1512 = vmatpush.bf16.msrb.mxu3 %v1377_v26 }
  0xc6   : > { %960 = vmatmul.bf16.vlgmr.msrb.gmra.mxu1 %v2026_v41 }
  0xc7   : > { %941 = vmatmul.bf16.vlgmr.msrb.gmra.mxu0 %v2024_v40  ;;  %946 = vmatmul.bf16.vlgmr.msrb.gmra.mxu2 %v1237_v9 }
  0xc8   : > { %965 = vmatmul.bf16.vlgmr.msrb.gmra.mxu3 %v1241_v10 }
 0x122   : > { %v866_v27 = vpop.f32.mrf.mxu0 }
 0x123   : > { %v885_v28 = vpop.f32.mrf.mxu1 }
 0x124   : > { %v886_v29 = vadd.f32 %v885_v28, %v866_v27 }
 0x129   : > { %v923_v33 = vpop.f32.mrf.mxu3 }
 0x12a   : > { %v904_v31 = vpop.f32.mrf.mxu2  ;;  %v868_v34 = vpop.f32.mrf.mxu0 }
 0x12b   : > { %v905_v32 = vadd.f32 %v904_v31, %v886_v29  ;;  %v887_v35 = vpop.f32.mrf.mxu1 }
 0x12c   : > { %v888_v37 = vadd.f32 %v887_v35, %v868_v34 }
 0x12d   : > { %v971_v36 = vadd.f32 %v905_v32, %v521_v30 }
 0x12f   : > { %979 = vst [vmem:[#allocation2 + $0x30] sm:$0xff] %v971_v36 }
 0x131   : > { %v925_v40 = vpop.f32.mrf.mxu3 }
 0x132   : > { %v906_v39 = vpop.f32.mrf.mxu2  ;;  %v871_v43 = vpop.f32.mrf.mxu0 }
 0x133   : > { %v907_v42 = vadd.f32 %v906_v39, %v888_v37  ;;  %v890_v44 = vpop.f32.mrf.mxu1 }
 0x134   : > { %v891_v45 = vadd.f32 %v890_v44, %v871_v43 }
 0x135   : > { %v973_v41 = vadd.f32 %v907_v42, %v523_v38 }
 0x137   : > { %981 = vst [vmem:[#allocation2 + $0x18] sm:$0xff] %v973_v41 }
 0x139   : > { %v928_v49 = vpop.f32.mrf.mxu3 }
 0x13a   : > { %v909_v47 = vpop.f32.mrf.mxu2  ;;  %v873_v50 = vpop.f32.mrf.mxu0 }
 0x13b   : > { %v910_v48 = vadd.f32 %v909_v47, %v891_v45  ;;  %v892_v51 = vpop.f32.mrf.mxu1 }
 0x13c   : > { %v893_v53 = vadd.f32 %v892_v51, %v873_v50 }
 0x13d   : > { %v975_v52 = vadd.f32 %v910_v48, %v525_v46 }
 0x13f   : > { %983 = vst [vmem:[#allocation2 + $0x8] sm:$0xff] %v975_v52 }
 0x141   : > { %v930_v57 = vpop.f32.mrf.mxu3 }
 0x142   : > { %v911_v55 = vpop.f32.mrf.mxu2 }
 0x143   : > { %v912_v56 = vadd.f32 %v911_v55, %v893_v53  ;;  %v961_v61 = vpop.f32.mrf.mxu1 }
 0x144   : > { %v942_v58 = vpop.f32.mrf.mxu0 }
 0x145   : > { %v977_v59 = vadd.f32 %v912_v56, %v527_v54  ;;  %v943_v60 = vadd.f32 %v942_v58, %v923_v33 }
 0x147   : > { %985 = vst [vmem:[#allocation2 + $0x28] sm:$0xff] %v977_v59  ;;  %v962_v63 = vadd.f32 %v961_v61, %v943_v60 }
 0x149   : > { %v972_v0 = vadd.f32 %v962_v63, %v522_v62 }
 0x14a   : > { %v947_v1 = vpop.f32.mrf.mxu2 }
 0x14b   : > { %980 = vst [vmem:[#allocation2] sm:$0xff] %v972_v0  ;;  %v948_v2 = vadd.f32 %v947_v1, %v928_v49  ;;  %v966_v3 = vpop.f32.mrf.mxu3  ;;  %v963_v9 = vpop.f32.mrf.mxu1 }
 0x14c   : > { %v944_v5 = vpop.f32.mrf.mxu0 }
 0x14d   : > { %v967_v6 = vadd.f32 %v966_v3, %v948_v2  ;;  %v945_v7 = vadd.f32 %v944_v5, %v925_v40 }
 0x14f   : > { %v976_v10 = vadd.f32 %v967_v6, %v526_v4  ;;  %v964_v11 = vadd.f32 %v963_v9, %v945_v7 }
 0x151   : > { %984 = vst [vmem:[#allocation2 + $0x20] sm:$0xff] %v976_v10  ;;  %v974_v12 = vadd.f32 %v964_v11, %v524_v8 }
 0x152   : > { %v949_v13 = vpop.f32.mrf.mxu2 }
 0x153   : > { %982 = vst [vmem:[#allocation2 + $0x10] sm:$0xff] %v974_v12  ;;  %v950_v14 = vadd.f32 %v949_v13, %v930_v57  ;;  %v968_v16 = vpop.f32.mrf.mxu3 }
 0x155   : > { %v969_v17 = vadd.f32 %v968_v16, %v950_v14  ;;  %990 = sbr.rel (%p1434_p5) target bundleno = 360 (0x168), region = 104 }
 0x157   : > { %v978_v18 = vadd.f32 %v969_v17, %v528_v15 }
 0x159   : > { %986 = vst [vmem:[#allocation2 + $0x38] sm:$0xff] %v978_v18 }
 0x15a   : > { %v991_v19 = vld [vmem:[#allocation2 + $0x30] sm:$0xff]  ;;  %v992_v20 = vld [vmem:[#allocation2] sm:$0xff]  ;;  %v993_v24 = vld [vmem:[#allocation2 + $0x18] sm:$0xff] }
 0x15b   : > { %v999_v21 = vld [vmem:[%s505_s5] sm:$0x3]  ;;  %v994_v25 = vld [vmem:[#allocation2 + $0x10] sm:$0xff]  ;;  %v995_v26 = vld [vmem:[#allocation2 + $0x8] sm:$0xff] }
 0x15c   : > { %v1001_v22 = vperm.slane %v999_v21, 0  ;;  %v1002_v23 = vperm.slane %v999_v21, 1  ;;  %v996_v27 = vld [vmem:[#allocation2 + $0x20] sm:$0xff]  ;;  %v997_v28 = vld [vmem:[#allocation2 + $0x28] sm:$0xff] }
 0x15e   : > { %v1005_v30 = vadd.f32 %v1001_v22, %v991_v19  ;;  %v1006_v31 = vadd.f32 %v1002_v23, %v992_v20  ;;  %v1007_v32 = vadd.f32 %v1001_v22, %v993_v24  ;;  %v1008_v33 = vadd.f32 %v1002_v23, %v994_v25 }
 0x15f   : > { %v1009_v34 = vadd.f32 %v1001_v22, %v995_v26  ;;  %v1010_v35 = vadd.f32 %v1002_v23, %v996_v27  ;;  %v1011_v36 = vadd.f32 %v1001_v22, %v997_v28 }
 0x160   : > { %v998_v29 = vld [vmem:[#allocation2 + $0x38] sm:$0xff]  ;;  %v1013_v38 = vmax.f32 %v1005_v30, 0.0  ;;  %v1014_v39 = vmax.f32 %v1006_v31, 0.0  ;;  %v1015_v42 = vmax.f32 %v1007_v32, 0.0  ;;  %v1016_v40 = vmax.f32 %v1008_v33, 0.0 }
 0x161   : > { %v1012_v37 = vadd.f32 %v1002_v23, %v998_v29  ;;  %v1017_v43 = vmax.f32 %v1009_v34, 0.0  ;;  %v1018_v44 = vmax.f32 %v1010_v35, 0.0  ;;  %v1019_v41 = vmax.f32 %v1011_v36, 0.0 }
 0x162   : > { %v1021_v46 = vpack.c.bf16 %v1014_v39, %v1013_v38  ;;  %v1022_v47 = vpack.c.bf16 %v1016_v40, %v1015_v42 }
 0x163   : > { %v1020_v45 = vmax.f32 %v1012_v37, 0.0  ;;  %v1023_v48 = vpack.c.bf16 %v1018_v44, %v1017_v43 }
 0x164   : > { %1025 = vst [vmem:[%s1945_s25] sm:$0xff] %v1021_v46 }
 0x165   : > { %v1024_v49 = vpack.c.bf16 %v1020_v45, %v1019_v41  ;;  %1026 = vst [vmem:[%s1945_s25 + $0x8] sm:$0xff] %v1022_v47 }
 0x166   : > { %1027 = vst [vmem:[%s1945_s25 + $0x10] sm:$0xff] %v1023_v48 }
 0x167   : > { %1028 = vst [vmem:[%s1945_s25 + $0x18] sm:$0xff] %v1024_v49 }
 0x168 PF: > { %1035 = sbr.rel (!%p1809_p12) target bundleno = 368 (0x170), region = 108  ;;  %s1496_s14 = sshll.u32 (%p1809_p12), %s1680_s19, 3 }
 0x169   : > { %s1041_s0 = scalar_lea.vmem (%p1809_p12), %s2120_s3, %s1496_s14 }
 0x16b   : > { %v1076_v50 = vld [vmem:[%s1945_s25] sm:$0xff] (%p1809_p12) }
 0x16c   : > { %v1078_v51 = vld [vmem:[%s1945_s25 + $0x8] sm:$0xff] (%p1809_p12)  ;;  %1077 = vst [vmem:[%s1041_s0] sm:$0xff] (%p1809_p12), %v1076_v50 }
 0x16d   : > { %v1080_v52 = vld [vmem:[%s1945_s25 + $0x10] sm:$0xff]  ;;  %1079 = vst [vmem:[%s1041_s0 + $0x10] sm:$0xff] %v1078_v51 }
 0x16e   : > { %v1082_v53 = vld [vmem:[%s1945_s25 + $0x18] sm:$0xff]  ;;  %1081 = vst [vmem:[%s1041_s0 + $0x20] sm:$0xff] %v1080_v52 }
 0x16f   : > { %1083 = vst [vmem:[%s1041_s0 + $0x30] sm:$0xff] %v1082_v53 }
 0x170 PF: > { %s13_s22 = sadd.s32 1, %s1692_s22   ;;  %s2130_s10 = sld [smem:[#allocation6_spill]] }
 0x171   : > { %p10_p6 = scmp.ge.s32.totalorder %s13_s22, 14   ;;  %s2131_s12 = smov %s1656_s13 }
 0x172   : > { %s2132_s13 = smov %s1807_s9  ;;  %s2133_s14 = smov %s1664_s15 }
 0x173   : > { %s2134_s15 = smov %s1804_s8  ;;  %s2135_s16 = smov %s1672_s17 }
 0x174   : > { %s2136_s17 = smov %s1790_s30  ;;  %s2137_s18 = smov %s1684_s20 }
 0x175   : > { %s2138_s19 = smov %s1688_s21  ;;  %s2139_s20 = smov %s2142_s24 }
 0x176   : > { %s2140_s21 = smov %s2130_s10  ;;  %12 = sbr.rel (!%p10_p6) target bundleno = 9 (0x9), region = 194 }

// kernel: base_regressor_forward.20
= control target key start
LH: loop header
LB: loop body
LE: loop exit
PB: predicated region body
PF: predicated region fallthrough
CT: control target
= control target key end

     0   :  { %s1749_s12 = smov 0   ;;  %s1751_s13 = smov 0   ;;  %s2177_s0 = inlined_call_operand.vmem [shape: bf16[32,512], index: 0, kind: input, shape index: {}]   ;;  %s2178_s1 = inlined_call_operand.vmem [shape: bf16[512,512], index: 1, kind: input, shape index: {}]   ;;  %s2179_s2 = inlined_call_operand.vmem [shape: f32[1,512], index: 2, kind: input, shape index: {}]   ;;  %s2180_s3 = inlined_call_operand.vmem [shape: bf16[32,512], index: 3, kind: output, shape index: {}]  }
   0x1   :  { %s1753_s14 = smov 0   ;;  %s1755_s15 = smov 0  }
   0x2   :  { %s1757_s16 = smov 0  }
   0x3 LB: > { %s22_s17 = sadd.s32 1, %s1723_s15  ;;  %s1270_s18 = sadd.s32 4294967295, %s1727_s16   ;;  %s1727_s16 = sphi %s1757_s16, %s13_s16   ;;  %s1723_s15 = sphi %s1755_s15, %s2185_s15   ;;  %s1719_s14 = sphi %s1753_s14, %s2184_s14   ;;  %s1715_s13 = sphi %s1751_s13, %s2183_s13   ;;  %s1711_s12 = sphi %s1749_s12, %s2182_s12  }
   0x4   : > { %p23_p0 = scmp.ge.s32.totalorder %s22_s17, 2  ;;  %p65_p1 = scmp.ne.s32.totalorder %s1715_s13, %s1711_s12 }
   0x5   : > { %p66_p2 = scmp.eq.s32.totalorder %s1727_s16, 0  ;;  %p123_p4 = scmp.eq.s32.totalorder %s1270_s18, 1 }
   0x6   : > { %s2187_s17 = smov (%p23_p0, %s22_s17), 0  ;;  %s58_s20 = sadd.s32 1, %s1715_s13 }
   0x7   : > { %p67_p3 = por %p66_p2, %p65_p1  ;;  %s55_s19 = ssub.s32 %s1723_s15, %s2187_s17 }
   0x8   : > { %p56_p5 = scmp.eq.s32.totalorder %s55_s19, 0  ;;  %p1784_p6 = por %p123_p4, %p65_p1 }
   0x9   : > { %p1274_p7 = scmp.ge.s32.totalorder %s1727_s16, 2 }
   0xa   : > { %s1789_s22 = scalar_select %p56_p5, %s1715_s13, %s58_s20  }
   0xb   : > { %155 = sbr.rel (%p1274_p7) target bundleno = 84 (0x54), region = 20 }
  0x10   : > { %158 = sbr.rel (!%p67_p3) target bundleno = 84 (0x54), region = 24  ;;  %s160_s23 = sand.u32 (%p67_p3), 1, %s1715_s13  }
  0x11   : > { %s1575_s24 = sshll.u32 (%p67_p3), %s1723_s15, 3  ;;  %s1275_s25 = sshll.u32 (%p67_p3), %s160_s23, 9 }
  0x12   : > { %s1797_s28 = scalar_lea.vmem (%p67_p3), %s2178_s1, %s1575_s24  ;;  %s1802_s29 = scalar_lea.vmem (%p67_p3), [#allocation2], %s1275_s25 }
  0x13   : > { %v320_v0 = vld [vmem:[%s1797_s28] sm:$0xff] (%p67_p3)  ;;  %v322_v1 = vld [vmem:[%s1797_s28 + $0x10] sm:$0xff] (%p67_p3) }
  0x14   : > { %v324_v2 = vld [vmem:[%s1797_s28 + $0x20] sm:$0xff] (%p67_p3)  ;;  %321 = vst [vmem:[%s1802_s29] sm:$0xff] (%p67_p3), %v320_v0  ;;  %v326_v3 = vld [vmem:[%s1797_s28 + $0x30] sm:$0xff] (%p67_p3) }
  0x15   : > { %323 = vst [vmem:[%s1802_s29 + $0x8] sm:$0xff] %v322_v1  ;;  %v328_v4 = vld [vmem:[%s1797_s28 + $0x40] sm:$0xff]  ;;  %v330_v5 = vld [vmem:[%s1797_s28 + $0x50] sm:$0xff] }
  0x16   : > { %325 = vst [vmem:[%s1802_s29 + $0x10] sm:$0xff] %v324_v2  ;;  %v332_v6 = vld [vmem:[%s1797_s28 + $0x60] sm:$0xff]  ;;  %v334_v7 = vld [vmem:[%s1797_s28 + $0x70] sm:$0xff] }
  0x17   : > { %327 = vst [vmem:[%s1802_s29 + $0x18] sm:$0xff] %v326_v3  ;;  %v336_v8 = vld [vmem:[%s1797_s28 + $0x80] sm:$0xff]  ;;  %v338_v9 = vld [vmem:[%s1797_s28 + $0x90] sm:$0xff] }
  0x18   : > { %329 = vst [vmem:[%s1802_s29 + $0x20] sm:$0xff] %v328_v4  ;;  %v340_v10 = vld [vmem:[%s1797_s28 + $0xa0] sm:$0xff]  ;;  %v342_v11 = vld [vmem:[%s1797_s28 + $0xb0] sm:$0xff] }
  0x19   : > { %331 = vst [vmem:[%s1802_s29 + $0x28] sm:$0xff] %v330_v5  ;;  %v344_v12 = vld [vmem:[%s1797_s28 + $0xc0] sm:$0xff]  ;;  %v346_v13 = vld [vmem:[%s1797_s28 + $0xd0] sm:$0xff] }
  0x1a   : > { %333 = vst [vmem:[%s1802_s29 + $0x30] sm:$0xff] %v332_v6  ;;  %v348_v14 = vld [vmem:[%s1797_s28 + $0xe0] sm:$0xff]  ;;  %v350_v15 = vld [vmem:[%s1797_s28 + $0xf0] sm:$0xff] }
  0x1b   : > { %335 = vst [vmem:[%s1802_s29 + $0x38] sm:$0xff] %v334_v7  ;;  %v352_v16 = vld [vmem:[%s1797_s28 + $0x100] sm:$0xff]  ;;  %v354_v17 = vld [vmem:[%s1797_s28 + $0x110] sm:$0xff] }
  0x1c   : > { %337 = vst [vmem:[%s1802_s29 + $0x40] sm:$0xff] %v336_v8  ;;  %v356_v18 = vld [vmem:[%s1797_s28 + $0x120] sm:$0xff]  ;;  %v358_v19 = vld [vmem:[%s1797_s28 + $0x130] sm:$0xff] }
  0x1d   : > { %339 = vst [vmem:[%s1802_s29 + $0x48] sm:$0xff] %v338_v9  ;;  %v360_v20 = vld [vmem:[%s1797_s28 + $0x140] sm:$0xff]  ;;  %v362_v21 = vld [vmem:[%s1797_s28 + $0x150] sm:$0xff] }
  0x1e   : > { %341 = vst [vmem:[%s1802_s29 + $0x50] sm:$0xff] %v340_v10  ;;  %v364_v22 = vld [vmem:[%s1797_s28 + $0x160] sm:$0xff]  ;;  %v366_v23 = vld [vmem:[%s1797_s28 + $0x170] sm:$0xff] }
  0x1f   : > { %343 = vst [vmem:[%s1802_s29 + $0x58] sm:$0xff] %v342_v11  ;;  %v368_v24 = vld [vmem:[%s1797_s28 + $0x180] sm:$0xff]  ;;  %v370_v25 = vld [vmem:[%s1797_s28 + $0x190] sm:$0xff] }
  0x20   : > { %345 = vst [vmem:[%s1802_s29 + $0x60] sm:$0xff] %v344_v12  ;;  %v372_v26 = vld [vmem:[%s1797_s28 + $0x1a0] sm:$0xff]  ;;  %v374_v27 = vld [vmem:[%s1797_s28 + $0x1b0] sm:$0xff] }
  0x21   : > { %347 = vst [vmem:[%s1802_s29 + $0x68] sm:$0xff] %v346_v13  ;;  %v376_v28 = vld [vmem:[%s1797_s28 + $0x1c0] sm:$0xff]  ;;  %v378_v29 = vld [vmem:[%s1797_s28 + $0x1d0] sm:$0xff] }
  0x22   : > { %349 = vst [vmem:[%s1802_s29 + $0x70] sm:$0xff] %v348_v14  ;;  %v380_v30 = vld [vmem:[%s1797_s28 + $0x1e0] sm:$0xff]  ;;  %v382_v31 = vld [vmem:[%s1797_s28 + $0x1f0] sm:$0xff] }
  0x23   : > { %351 = vst [vmem:[%s1802_s29 + $0x78] sm:$0xff] %v350_v15  ;;  %v384_v32 = vld [vmem:[%s1797_s28 + $0x200] sm:$0xff]  ;;  %v386_v33 = vld [vmem:[%s1797_s28 + $0x210] sm:$0xff] }
  0x24   : > { %353 = vst [vmem:[%s1802_s29 + $0x80] sm:$0xff] %v352_v16  ;;  %v388_v34 = vld [vmem:[%s1797_s28 + $0x220] sm:$0xff]  ;;  %v390_v35 = vld [vmem:[%s1797_s28 + $0x230] sm:$0xff] }
  0x25   : > { %355 = vst [vmem:[%s1802_s29 + $0x88] sm:$0xff] %v354_v17  ;;  %v392_v36 = vld [vmem:[%s1797_s28 + $0x240] sm:$0xff]  ;;  %v394_v37 = vld [vmem:[%s1797_s28 + $0x250] sm:$0xff] }
  0x26   : > { %357 = vst [vmem:[%s1802_s29 + $0x90] sm:$0xff] %v356_v18  ;;  %v396_v38 = vld [vmem:[%s1797_s28 + $0x260] sm:$0xff]  ;;  %v398_v39 = vld [vmem:[%s1797_s28 + $0x270] sm:$0xff] }
  0x27   : > { %359 = vst [vmem:[%s1802_s29 + $0x98] sm:$0xff] %v358_v19  ;;  %v400_v40 = vld [vmem:[%s1797_s28 + $0x280] sm:$0xff]  ;;  %v402_v41 = vld [vmem:[%s1797_s28 + $0x290] sm:$0xff] }
  0x28   : > { %361 = vst [vmem:[%s1802_s29 + $0xa0] sm:$0xff] %v360_v20  ;;  %v404_v42 = vld [vmem:[%s1797_s28 + $0x2a0] sm:$0xff]  ;;  %v406_v43 = vld [vmem:[%s1797_s28 + $0x2b0] sm:$0xff] }
  0x29   : > { %363 = vst [vmem:[%s1802_s29 + $0xa8] sm:$0xff] %v362_v21  ;;  %v408_v44 = vld [vmem:[%s1797_s28 + $0x2c0] sm:$0xff]  ;;  %v410_v45 = vld [vmem:[%s1797_s28 + $0x2d0] sm:$0xff] }
  0x2a   : > { %365 = vst [vmem:[%s1802_s29 + $0xb0] sm:$0xff] %v364_v22  ;;  %v412_v46 = vld [vmem:[%s1797_s28 + $0x2e0] sm:$0xff]  ;;  %v414_v47 = vld [vmem:[%s1797_s28 + $0x2f0] sm:$0xff] }
  0x2b   : > { %367 = vst [vmem:[%s1802_s29 + $0xb8] sm:$0xff] %v366_v23  ;;  %v416_v48 = vld [vmem:[%s1797_s28 + $0x300] sm:$0xff]  ;;  %v418_v49 = vld [vmem:[%s1797_s28 + $0x310] sm:$0xff] }
  0x2c   : > { %369 = vst [vmem:[%s1802_s29 + $0xc0] sm:$0xff] %v368_v24  ;;  %v420_v50 = vld [vmem:[%s1797_s28 + $0x320] sm:$0xff]  ;;  %v422_v51 = vld [vmem:[%s1797_s28 + $0x330] sm:$0xff] }
  0x2d   : > { %371 = vst [vmem:[%s1802_s29 + $0xc8] sm:$0xff] %v370_v25  ;;  %v424_v52 = vld [vmem:[%s1797_s28 + $0x340] sm:$0xff]  ;;  %v426_v53 = vld [vmem:[%s1797_s28 + $0x350] sm:$0xff] }
  0x2e   : > { %373 = vst [vmem:[%s1802_s29 + $0xd0] sm:$0xff] %v372_v26  ;;  %v428_v54 = vld [vmem:[%s1797_s28 + $0x360] sm:$0xff]  ;;  %v430_v55 = vld [vmem:[%s1797_s28 + $0x370] sm:$0xff] }
  0x2f   : > { %375 = vst [vmem:[%s1802_s29 + $0xd8] sm:$0xff] %v374_v27  ;;  %v432_v56 = vld [vmem:[%s1797_s28 + $0x380] sm:$0xff]  ;;  %v434_v57 = vld [vmem:[%s1797_s28 + $0x390] sm:$0xff] }
  0x30   : > { %377 = vst [vmem:[%s1802_s29 + $0xe0] sm:$0xff] %v376_v28  ;;  %v436_v58 = vld [vmem:[%s1797_s28 + $0x3a0] sm:$0xff]  ;;  %v438_v59 = vld [vmem:[%s1797_s28 + $0x3b0] sm:$0xff] }
  0x31   : > { %379 = vst [vmem:[%s1802_s29 + $0xe8] sm:$0xff] %v378_v29  ;;  %v440_v60 = vld [vmem:[%s1797_s28 + $0x3c0] sm:$0xff]  ;;  %v442_v61 = vld [vmem:[%s1797_s28 + $0x3d0] sm:$0xff] }
  0x32   : > { %381 = vst [vmem:[%s1802_s29 + $0xf0] sm:$0xff] %v380_v30  ;;  %v444_v62 = vld [vmem:[%s1797_s28 + $0x3e0] sm:$0xff]  ;;  %v446_v63 = vld [vmem:[%s1797_s28 + $0x3f0] sm:$0xff] }
  0x33   : > { %383 = vst [vmem:[%s1802_s29 + $0xf8] sm:$0xff] %v382_v31 }
  0x34   : > { %385 = vst [vmem:[%s1802_s29 + $0x100] sm:$0xff] %v384_v32 }
  0x35   : > { %387 = vst [vmem:[%s1802_s29 + $0x108] sm:$0xff] %v386_v33 }
  0x36   : > { %389 = vst [vmem:[%s1802_s29 + $0x110] sm:$0xff] %v388_v34 }
  0x37   : > { %391 = vst [vmem:[%s1802_s29 + $0x118] sm:$0xff] %v390_v35 }
  0x38   : > { %393 = vst [vmem:[%s1802_s29 + $0x120] sm:$0xff] %v392_v36 }
  0x39   : > { %395 = vst [vmem:[%s1802_s29 + $0x128] sm:$0xff] %v394_v37 }
  0x3a   : > { %397 = vst [vmem:[%s1802_s29 + $0x130] sm:$0xff] %v396_v38 }
  0x3b   : > { %399 = vst [vmem:[%s1802_s29 + $0x138] sm:$0xff] %v398_v39 }
  0x3c   : > { %401 = vst [vmem:[%s1802_s29 + $0x140] sm:$0xff] %v400_v40 }
  0x3d   : > { %403 = vst [vmem:[%s1802_s29 + $0x148] sm:$0xff] %v402_v41 }
  0x3e   : > { %405 = vst [vmem:[%s1802_s29 + $0x150] sm:$0xff] %v404_v42 }
  0x3f   : > { %407 = vst [vmem:[%s1802_s29 + $0x158] sm:$0xff] %v406_v43 }
  0x40   : > { %409 = vst [vmem:[%s1802_s29 + $0x160] sm:$0xff] %v408_v44 }
  0x41   : > { %411 = vst [vmem:[%s1802_s29 + $0x168] sm:$0xff] %v410_v45 }
  0x42   : > { %413 = vst [vmem:[%s1802_s29 + $0x170] sm:$0xff] %v412_v46 }
  0x43   : > { %415 = vst [vmem:[%s1802_s29 + $0x178] sm:$0xff] %v414_v47 }
  0x44   : > { %417 = vst [vmem:[%s1802_s29 + $0x180] sm:$0xff] %v416_v48 }
  0x45   : > { %419 = vst [vmem:[%s1802_s29 + $0x188] sm:$0xff] %v418_v49 }
  0x46   : > { %421 = vst [vmem:[%s1802_s29 + $0x190] sm:$0xff] %v420_v50 }
  0x47   : > { %423 = vst [vmem:[%s1802_s29 + $0x198] sm:$0xff] %v422_v51 }
  0x48   : > { %425 = vst [vmem:[%s1802_s29 + $0x1a0] sm:$0xff] %v424_v52 }
  0x49   : > { %427 = vst [vmem:[%s1802_s29 + $0x1a8] sm:$0xff] %v426_v53 }
  0x4a   : > { %429 = vst [vmem:[%s1802_s29 + $0x1b0] sm:$0xff] %v428_v54 }
  0x4b   : > { %431 = vst [vmem:[%s1802_s29 + $0x1b8] sm:$0xff] %v430_v55 }
  0x4c   : > { %433 = vst [vmem:[%s1802_s29 + $0x1c0] sm:$0xff] %v432_v56 }
  0x4d   : > { %435 = vst [vmem:[%s1802_s29 + $0x1c8] sm:$0xff] %v434_v57 }
  0x4e   : > { %437 = vst [vmem:[%s1802_s29 + $0x1d0] sm:$0xff] %v436_v58 }
  0x4f   : > { %439 = vst [vmem:[%s1802_s29 + $0x1d8] sm:$0xff] %v438_v59 }
  0x50   : > { %441 = vst [vmem:[%s1802_s29 + $0x1e0] sm:$0xff] %v440_v60 }
  0x51   : > { %443 = vst [vmem:[%s1802_s29 + $0x1e8] sm:$0xff] %v442_v61 }
  0x52   : > { %445 = vst [vmem:[%s1802_s29 + $0x1f0] sm:$0xff] %v444_v62 }
  0x53   : > { %447 = vst [vmem:[%s1802_s29 + $0x1f8] sm:$0xff] %v446_v63 }
  0x54 PF: > { %p1278_p8 = scmp.ge.s32.totalorder %s1727_s16, 1  ;;  %p460_p9 = scmp.lt.s32.totalorder %s1727_s16, 3 }
  0x56   : > { %p461_p10 = pnand %p1278_p8, %p460_p9 }
  0x57   : > { %s467_s30 = sand.u32 (!%p461_p10), 1, %s1711_s12  }
  0x58   : > { %464 = sbr.rel (%p461_p10) target bundleno = 334 (0x14e), region = 66  ;;  %s1279_s4 = sshll.u32 (!%p461_p10), %s467_s30, 9 }
  0x59   : > { %s1934_s5 = scalar_lea.vmem (!%p461_p10), [#allocation2], %s1279_s4  ;;  %s1280_s7 = sshll.u32 (!%p461_p10), %s467_s30, 5 }
  0x5a   : > { %s2146_s8 = scalar_lea.vmem (!%p461_p10), [#allocation3], %s1280_s7 }
  0x5d   : > { %v1372_v0 = vld [vmem:[%s1934_s5 + $0x70] sm:$0xf]  ;;  %v1599_v1 = vld [vmem:[%s1934_s5 + $0x74] sm:$0xf0]  ;;  %v1364_v11 = vld [vmem:[%s1934_s5 + $0x60] sm:$0xf] }
  0x5e   : > { %v1436_v2 = vld [vmem:[%s1934_s5 + $0xf0] sm:$0xf]  ;;  %v1373_v3 = vor.u32 %v1599_v1, %v1372_v0  ;;  %v1615_v4 = vld [vmem:[%s1934_s5 + $0xf4] sm:$0xf0]  ;;  %v1597_v13 = vld [vmem:[%s1934_s5 + $0x64] sm:$0xf0] }
  0x5f   : > { %v1500_v5 = vld [vmem:[%s1934_s5 + $0x170] sm:$0xf]  ;;  %v1631_v6 = vld [vmem:[%s1934_s5 + $0x174] sm:$0xf0]  ;;  %v1437_v7 = vor.u32 %v1615_v4, %v1436_v2  ;;  %v1428_v14 = vld [vmem:[%s1934_s5 + $0xe0] sm:$0xf]  ;;  %v1365_v16 = vor.u32 %v1597_v13, %v1364_v11 }
  0x60   : > { %v1501_v8 = vor.u32 %v1631_v6, %v1500_v5  ;;  %v1564_v9 = vld [vmem:[%s1934_s5 + $0x1f0] sm:$0xf]  ;;  %v1647_v10 = vld [vmem:[%s1934_s5 + $0x1f4] sm:$0xf0]  ;;  %952 = vmatpush.bf16.msra.mxu0 %v1373_v3  ;;  %v1613_v15 = vld [vmem:[%s1934_s5 + $0xe4] sm:$0xf0] }
  0x61   : > { %v1565_v12 = vor.u32 %v1647_v10, %v1564_v9  ;;  %971 = vmatpush.bf16.msra.mxu1 %v1437_v7  ;;  %v1429_v17 = vor.u32 %v1613_v15, %v1428_v14  ;;  %v1492_v18 = vld [vmem:[%s1934_s5 + $0x160] sm:$0xf]  ;;  %v1629_v19 = vld [vmem:[%s1934_s5 + $0x164] sm:$0xf0]  ;;  %v1356_v23 = vld [vmem:[%s1934_s5 + $0x50] sm:$0xf] }
  0x62   : > { %990 = vmatpush.bf16.msra.mxu2 %v1501_v8  ;;  %v1556_v20 = vld [vmem:[%s1934_s5 + $0x1e0] sm:$0xf]  ;;  %v1493_v21 = vor.u32 %v1629_v19, %v1492_v18  ;;  %v1645_v22 = vld [vmem:[%s1934_s5 + $0x1e4] sm:$0xf0]  ;;  %v1595_v24 = vld [vmem:[%s1934_s5 + $0x54] sm:$0xf0] }
  0x63   : > { %1009 = vmatpush.bf16.msra.mxu3 %v1565_v12  ;;  %v1557_v25 = vor.u32 %v1645_v22, %v1556_v20  ;;  %v1420_v26 = vld [vmem:[%s1934_s5 + $0xd0] sm:$0xf]  ;;  %v1611_v27 = vld [vmem:[%s1934_s5 + $0xd4] sm:$0xf0]  ;;  %v1357_v29 = vor.u32 %v1595_v24, %v1356_v23  ;;  %v1348_v35 = vld [vmem:[%s1934_s5 + $0x40] sm:$0xf] }
  0x64   : > { %v1484_v28 = vld [vmem:[%s1934_s5 + $0x150] sm:$0xf]  ;;  %953 = vmatpush.bf16.msra.mxu0 %v1365_v16  ;;  %v1627_v30 = vld [vmem:[%s1934_s5 + $0x154] sm:$0xf0]  ;;  %v1421_v33 = vor.u32 %v1611_v27, %v1420_v26  ;;  %v1593_v36 = vld [vmem:[%s1934_s5 + $0x44] sm:$0xf0] }
  0x65   : > { %v1548_v31 = vld [vmem:[%s1934_s5 + $0x1d0] sm:$0xf]  ;;  %v1643_v32 = vld [vmem:[%s1934_s5 + $0x1d4] sm:$0xf0]  ;;  %972 = vmatpush.bf16.msra.mxu1 %v1429_v17  ;;  %v1485_v34 = vor.u32 %v1627_v30, %v1484_v28  ;;  %v1412_v37 = vld [vmem:[%s1934_s5 + $0xc0] sm:$0xf]  ;;  %v1349_v44 = vor.u32 %v1593_v36, %v1348_v35 }
  0x66   : > { %991 = vmatpush.bf16.msra.mxu2 %v1493_v21  ;;  %v1549_v38 = vor.u32 %v1643_v32, %v1548_v31  ;;  %v1609_v39 = vld [vmem:[%s1934_s5 + $0xc4] sm:$0xf0]  ;;  %v1476_v40 = vld [vmem:[%s1934_s5 + $0x140] sm:$0xf]  ;;  %v1340_v47 = vld [vmem:[%s1934_s5 + $0x30] sm:$0xf] }
  0x67   : > { %1010 = vmatpush.bf16.msra.mxu3 %v1557_v25  ;;  %v1625_v41 = vld [vmem:[%s1934_s5 + $0x144] sm:$0xf0]  ;;  %v1540_v42 = vld [vmem:[%s1934_s5 + $0x1c0] sm:$0xf]  ;;  %v1413_v45 = vor.u32 %v1609_v39, %v1412_v37  ;;  %v1591_v48 = vld [vmem:[%s1934_s5 + $0x34] sm:$0xf0] }
  0x68   : > { %v1641_v43 = vld [vmem:[%s1934_s5 + $0x1c4] sm:$0xf0]  ;;  %954 = vmatpush.bf16.msra.mxu0 %v1357_v29  ;;  %v1477_v46 = vor.u32 %v1625_v41, %v1476_v40  ;;  %v1404_v49 = vld [vmem:[%s1934_s5 + $0xb0] sm:$0xf]  ;;  %v1607_v51 = vld [vmem:[%s1934_s5 + $0xb4] sm:$0xf0]  ;;  %v1341_v56 = vor.u32 %v1591_v48, %v1340_v47 }
  0x69   : > { %973 = vmatpush.bf16.msra.mxu1 %v1421_v33  ;;  %v1541_v50 = vor.u32 %v1641_v43, %v1540_v42  ;;  %v1468_v52 = vld [vmem:[%s1934_s5 + $0x130] sm:$0xf]  ;;  %v1623_v53 = vld [vmem:[%s1934_s5 + $0x134] sm:$0xf0]  ;;  %v1405_v57 = vor.u32 %v1607_v51, %v1404_v49  ;;  %v1332_v59 = vld [vmem:[%s1934_s5 + $0x20] sm:$0xf] }
  0x6a   : > { %992 = vmatpush.bf16.msra.mxu2 %v1485_v34  ;;  %v1532_v54 = vld [vmem:[%s1934_s5 + $0x1b0] sm:$0xf]  ;;  %v1639_v55 = vld [vmem:[%s1934_s5 + $0x1b4] sm:$0xf0]  ;;  %v1469_v58 = vor.u32 %v1623_v53, %v1468_v52  ;;  %v1589_v60 = vld [vmem:[%s1934_s5 + $0x24] sm:$0xf0] }
  0x6b   : > { %1011 = vmatpush.bf16.msra.mxu3 %v1549_v38  ;;  %v1396_v61 = vld [vmem:[%s1934_s5 + $0xa0] sm:$0xf]  ;;  %v1533_v62 = vor.u32 %v1639_v55, %v1532_v54  ;;  %v1605_v63 = vld [vmem:[%s1934_s5 + $0xa4] sm:$0xf0]  ;;  %v1333_v4 = vor.u32 %v1589_v60, %v1332_v59  ;;  %v1324_v7 = vld [vmem:[%s1934_s5 + $0x10] sm:$0xf] }
  0x6c   : > { %955 = vmatpush.bf16.msra.mxu0 %v1349_v44  ;;  %v1460_v0 = vld [vmem:[%s1934_s5 + $0x120] sm:$0xf]  ;;  %v1621_v1 = vld [vmem:[%s1934_s5 + $0x124] sm:$0xf0]  ;;  %v1397_v5 = vor.u32 %v1605_v63, %v1396_v61  ;;  %v1587_v8 = vld [vmem:[%s1934_s5 + $0x14] sm:$0xf0] }
  0x6d   : > { %974 = vmatpush.bf16.msra.mxu1 %v1413_v45  ;;  %v1524_v2 = vld [vmem:[%s1934_s5 + $0x1a0] sm:$0xf]  ;;  %v1637_v3 = vld [vmem:[%s1934_s5 + $0x1a4] sm:$0xf0]  ;;  %v1461_v6 = vor.u32 %v1621_v1, %v1460_v0  ;;  %v1388_v9 = vld [vmem:[%s1934_s5 + $0x90] sm:$0xf]  ;;  %v1325_v17 = vor.u32 %v1587_v8, %v1324_v7 }
  0x6e   : > { %993 = vmatpush.bf16.msra.mxu2 %v1477_v46  ;;  %v1525_v10 = vor.u32 %v1637_v3, %v1524_v2  ;;  %v1603_v11 = vld [vmem:[%s1934_s5 + $0x94] sm:$0xf0]  ;;  %v1452_v12 = vld [vmem:[%s1934_s5 + $0x110] sm:$0xf]  ;;  %v1316_v16 = vld [vmem:[%s1934_s5] sm:$0xf] }
  0x6f   : > { %1012 = vmatpush.bf16.msra.mxu3 %v1541_v50  ;;  %v1619_v13 = vld [vmem:[%s1934_s5 + $0x114] sm:$0xf0]  ;;  %v1516_v14 = vld [vmem:[%s1934_s5 + $0x190] sm:$0xf]  ;;  %v1585_v18 = vld [vmem:[%s1934_s5 + $0x4] sm:$0xf0]  ;;  %v1389_v21 = vor.u32 %v1603_v11, %v1388_v9 }
  0x70   : > { %956 = vmatpush.bf16.msra.mxu0 %v1341_v56  ;;  %v1635_v15 = vld [vmem:[%s1934_s5 + $0x194] sm:$0xf0]  ;;  %v1380_v19 = vld [vmem:[%s1934_s5 + $0x80] sm:$0xf]  ;;  %v1601_v20 = vld [vmem:[%s1934_s5 + $0x84] sm:$0xf0]  ;;  %v1453_v22 = vor.u32 %v1619_v13, %v1452_v12  ;;  %v1317_v34 = vor.u32 %v1585_v18, %v1316_v16 }
  0x71   : > { %975 = vmatpush.bf16.msra.mxu1 %v1405_v57  ;;  %v1444_v23 = vld [vmem:[%s1934_s5 + $0x100] sm:$0xf]  ;;  %v1617_v24 = vld [vmem:[%s1934_s5 + $0x104] sm:$0xf0]  ;;  %v1517_v26 = vor.u32 %v1635_v15, %v1516_v14  ;;  %v1578_v29 = vld [vmem:[%s2177_s0 + $0xc] sm:$0xf0]  ;;  %v1381_v38 = vor.u32 %v1601_v20, %v1380_v19 }
  0x72   : > { %994 = vmatpush.bf16.msra.mxu2 %v1469_v58  ;;  %v1508_v25 = vld [vmem:[%s1934_s5 + $0x180] sm:$0xf]  ;;  %v1633_v27 = vld [vmem:[%s1934_s5 + $0x184] sm:$0xf0]  ;;  %v1576_v30 = vld [vmem:[%s2177_s0 + $0x4] sm:$0xf]  ;;  %v1445_v39 = vor.u32 %v1617_v24, %v1444_v23 }
  0x73   : > { %1013 = vmatpush.bf16.msra.mxu3 %v1533_v62  ;;  %v1284_v28 = vld [vmem:[%s2177_s0] sm:$0xf]  ;;  %v1286_v31 = vld [vmem:[%s2177_s0 + $0x10] sm:$0xf0]  ;;  %v1502_v33 = vld [vmem:[%s1934_s5 + $0x178] sm:$0xf0]  ;;  %v1509_v43 = vor.u32 %v1633_v27, %v1508_v25 }
  0x74   : > { %957 = vmatpush.bf16.msra.mxu0 %v1333_v4  ;;  %v1630_v32 = vld [vmem:[%s1934_s5 + $0x174] sm:$0xf]  ;;  %v1292_v35 = vld [vmem:[%s2177_s0 + $0x8] sm:$0xf]  ;;  %v1438_v37 = vld [vmem:[%s1934_s5 + $0xf8] sm:$0xf0]  ;;  %v2031_v48 = vor.u32 %v1578_v29, %v1284_v28  ;;  %v2036_v53 = vor.u32 %v1576_v30, %v1286_v31 }
  0x75   : > { %976 = vmatpush.bf16.msra.mxu1 %v1397_v5  ;;  %v1614_v36 = vld [vmem:[%s1934_s5 + $0xf4] sm:$0xf]  ;;  %v1579_v40 = vld [vmem:[%s2177_s0 + $0x14] sm:$0xf0]  ;;  %v1577_v41 = vld [vmem:[%s2177_s0 + $0xc] sm:$0xf]  ;;  %v1505_v44 = vor.u32 %v1630_v32, %v1502_v33 }
  0x76   : > { %995 = vmatpush.bf16.msra.mxu2 %v1461_v6  ;;  %v1294_v42 = vld [vmem:[%s2177_s0 + $0x18] sm:$0xf0]  ;;  %v1598_v45 = vld [vmem:[%s1934_s5 + $0x74] sm:$0xf]  ;;  %v1441_v49 = vor.u32 %v1614_v36, %v1438_v37  ;;  %v1628_v51 = vld [vmem:[%s1934_s5 + $0x164] sm:$0xf]  ;;  %v2038_v54 = vor.u32 %v1579_v40, %v1292_v35 }
  0x77   : > { %1014 = vmatpush.bf16.msra.mxu3 %v1525_v10  ;;  %v1374_v46 = vld [vmem:[%s1934_s5 + $0x78] sm:$0xf0]  ;;  %v1646_v47 = vld [vmem:[%s1934_s5 + $0x1f4] sm:$0xf]  ;;  %v1494_v52 = vld [vmem:[%s1934_s5 + $0x168] sm:$0xf0]  ;;  %v2042_v57 = vor.u32 %v1577_v41, %v1294_v42 }
  0x78   : > { %958 = vmatpush.bf16.msra.mxu0 %v1325_v17  ;;  %v1566_v50 = vld [vmem:[%s1934_s5 + $0x1f8] sm:$0xf0]  ;;  %v1612_v55 = vld [vmem:[%s1934_s5 + $0xe4] sm:$0xf]  ;;  %v1430_v56 = vld [vmem:[%s1934_s5 + $0xe8] sm:$0xf0]  ;;  %v1377_v58 = vor.u32 %v1598_v45, %v1374_v46  ;;  %v1497_v60 = vor.u32 %v1628_v51, %v1494_v52 }
  0x79   : > { %977 = vmatpush.bf16.msra.mxu1 %v1389_v21  ;;  %v1569_v59 = vor.u32 %v1646_v47, %v1566_v50  ;;  %v1596_v61 = vld [vmem:[%s1934_s5 + $0x64] sm:$0xf]  ;;  %v1366_v62 = vld [vmem:[%s1934_s5 + $0x68] sm:$0xf0]  ;;  %v1433_v0 = vor.u32 %v1612_v55, %v1430_v56  ;;  %v1626_v2 = vld [vmem:[%s1934_s5 + $0x154] sm:$0xf] }
  0x7a   : > { %996 = vmatpush.bf16.msra.mxu2 %v1453_v22  ;;  %v1644_v63 = vld [vmem:[%s1934_s5 + $0x1e4] sm:$0xf]  ;;  %v1558_v1 = vld [vmem:[%s1934_s5 + $0x1e8] sm:$0xf0]  ;;  %v1486_v3 = vld [vmem:[%s1934_s5 + $0x158] sm:$0xf0]  ;;  %v1369_v6 = vor.u32 %v1596_v61, %v1366_v62 }
  0x7b   : > { %1015 = vmatpush.bf16.msra.mxu3 %v1517_v26  ;;  %v1610_v4 = vld [vmem:[%s1934_s5 + $0xd4] sm:$0xf]  ;;  %v1422_v5 = vld [vmem:[%s1934_s5 + $0xd8] sm:$0xf0]  ;;  %v1561_v7 = vor.u32 %v1644_v63, %v1558_v1  ;;  %v1489_v8 = vor.u32 %v1626_v2, %v1486_v3  ;;  %v1624_v14 = vld [vmem:[%s1934_s5 + $0x144] sm:$0xf] }
  0x7c   : > { %959 = vmatpush.bf16.msra.mxu0 %v1317_v34  ;;  %v1594_v9 = vld [vmem:[%s1934_s5 + $0x54] sm:$0xf]  ;;  %v1358_v10 = vld [vmem:[%s1934_s5 + $0x58] sm:$0xf0]  ;;  %v1425_v12 = vor.u32 %v1610_v4, %v1422_v5  ;;  %v1478_v15 = vld [vmem:[%s1934_s5 + $0x148] sm:$0xf0] }
  0x7d   : > { %978 = vmatpush.bf16.msra.mxu1 %v1381_v38  ;;  %v1642_v11 = vld [vmem:[%s1934_s5 + $0x1d4] sm:$0xf]  ;;  %v1550_v13 = vld [vmem:[%s1934_s5 + $0x1d8] sm:$0xf0]  ;;  %v1608_v16 = vld [vmem:[%s1934_s5 + $0xc4] sm:$0xf]  ;;  %v1361_v18 = vor.u32 %v1594_v9, %v1358_v10  ;;  %v1481_v23 = vor.u32 %v1624_v14, %v1478_v15 }
  0x7e   : > { %997 = vmatpush.bf16.msra.mxu2 %v1445_v39  ;;  %v1414_v17 = vld [vmem:[%s1934_s5 + $0xc8] sm:$0xf0]  ;;  %v1592_v19 = vld [vmem:[%s1934_s5 + $0x44] sm:$0xf]  ;;  %v1553_v22 = vor.u32 %v1642_v11, %v1550_v13  ;;  %v1300_v25 = vld [vmem:[%s2177_s0 + $0x20] sm:$0xf] }
  0x7f   : > { %1016 = vmatpush.bf16.msra.mxu3 %v1509_v43  ;;  %960 = vmatmul.bf16.vlgmr.msra.gmra.mxu0 %v2031_v48  ;;  %v1350_v20 = vld [vmem:[%s1934_s5 + $0x48] sm:$0xf0]  ;;  %v1640_v21 = vld [vmem:[%s1934_s5 + $0x1c4] sm:$0xf]  ;;  %v1582_v26 = vld [vmem:[%s2177_s0 + $0x2c] sm:$0xf0]  ;;  %v1417_v27 = vor.u32 %v1608_v16, %v1414_v17 }
  0x80   : > { %979 = vmatmul.bf16.vlgmr.msra.gmra.mxu1 %v2036_v53  ;;  %1028 = vmatpush.bf16.msrb.mxu0 %v1377_v58  ;;  %v1542_v24 = vld [vmem:[%s1934_s5 + $0x1c8] sm:$0xf0]  ;;  %v1580_v28 = vld [vmem:[%s2177_s0 + $0x24] sm:$0xf]  ;;  %v1302_v29 = vld [vmem:[%s2177_s0 + $0x30] sm:$0xf0]  ;;  %v1353_v35 = vor.u32 %v1592_v19, %v1350_v20 }
  0x81   : > { %1047 = vmatpush.bf16.msrb.mxu1 %v1441_v49  ;;  %998 = vmatmul.bf16.vlgmr.msra.gmra.mxu2 %v2038_v54  ;;  %v1622_v30 = vld [vmem:[%s1934_s5 + $0x134] sm:$0xf]  ;;  %v1470_v31 = vld [vmem:[%s1934_s5 + $0x138] sm:$0xf0]  ;;  %v1308_v32 = vld [vmem:[%s2177_s0 + $0x28] sm:$0xf]  ;;  %v1545_v39 = vor.u32 %v1640_v21, %v1542_v24  ;;  %v2104_v50 = vor.u32 %v1580_v28, %v1302_v29 }
  0x82   : > { %1066 = vmatpush.bf16.msrb.mxu2 %v1505_v44  ;;  %1017 = vmatmul.bf16.vlgmr.msra.gmra.mxu3 %v2042_v57  ;;  %v1606_v33 = vld [vmem:[%s1934_s5 + $0xb4] sm:$0xf]  ;;  %v1406_v34 = vld [vmem:[%s1934_s5 + $0xb8] sm:$0xf0]  ;;  %v1583_v36 = vld [vmem:[%s2177_s0 + $0x34] sm:$0xf0]  ;;  %v1473_v40 = vor.u32 %v1622_v30, %v1470_v31  ;;  %v2099_v44 = vor.u32 %v1582_v26, %v1300_v25 }
  0x83   : > { %1085 = vmatpush.bf16.msrb.mxu3 %v1569_v59  ;;  %v1581_v37 = vld [vmem:[%s2177_s0 + $0x2c] sm:$0xf]  ;;  %v1310_v38 = vld [vmem:[%s2177_s0 + $0x38] sm:$0xf0]  ;;  %v1590_v41 = vld [vmem:[%s1934_s5 + $0x34] sm:$0xf]  ;;  %v1409_v45 = vor.u32 %v1606_v33, %v1406_v34  ;;  %v2106_v51 = vor.u32 %v1583_v36, %v1308_v32 }
  0x84   : > { %1029 = vmatpush.bf16.msrb.mxu0 %v1369_v6  ;;  %v1342_v42 = vld [vmem:[%s1934_s5 + $0x38] sm:$0xf0]  ;;  %v1638_v43 = vld [vmem:[%s1934_s5 + $0x1b4] sm:$0xf]  ;;  %v1620_v47 = vld [vmem:[%s1934_s5 + $0x124] sm:$0xf]  ;;  %v1313_v56 = vor.u32 %v1581_v37, %v1310_v38 }
  0x85   : > { %1048 = vmatpush.bf16.msrb.mxu1 %v1433_v0  ;;  %v1534_v46 = vld [vmem:[%s1934_s5 + $0x1b8] sm:$0xf0]  ;;  %v1462_v49 = vld [vmem:[%s1934_s5 + $0x128] sm:$0xf0]  ;;  %v1604_v52 = vld [vmem:[%s1934_s5 + $0xa4] sm:$0xf]  ;;  %v1345_v58 = vor.u32 %v1590_v41, %v1342_v42 }
  0x86   : > { %1067 = vmatpush.bf16.msrb.mxu2 %v1497_v60  ;;  %v1398_v55 = vld [vmem:[%s1934_s5 + $0xa8] sm:$0xf0]  ;;  %v1537_v59 = vor.u32 %v1638_v43, %v1534_v46  ;;  %v1465_v60 = vor.u32 %v1620_v47, %v1462_v49  ;;  %v1588_v61 = vld [vmem:[%s1934_s5 + $0x24] sm:$0xf]  ;;  %v1618_v2 = vld [vmem:[%s1934_s5 + $0x114] sm:$0xf] }
  0x87   : > { %1086 = vmatpush.bf16.msrb.mxu3 %v1561_v7  ;;  %v1334_v62 = vld [vmem:[%s1934_s5 + $0x28] sm:$0xf0]  ;;  %v1636_v63 = vld [vmem:[%s1934_s5 + $0x1a4] sm:$0xf]  ;;  %v1401_v0 = vor.u32 %v1604_v52, %v1398_v55  ;;  %v1454_v3 = vld [vmem:[%s1934_s5 + $0x118] sm:$0xf0] }
  0x88   : > { %1030 = vmatpush.bf16.msrb.mxu0 %v1361_v18  ;;  %v1526_v1 = vld [vmem:[%s1934_s5 + $0x1a8] sm:$0xf0]  ;;  %v1602_v4 = vld [vmem:[%s1934_s5 + $0x94] sm:$0xf]  ;;  %v1390_v5 = vld [vmem:[%s1934_s5 + $0x98] sm:$0xf0]  ;;  %v1337_v6 = vor.u32 %v1588_v61, %v1334_v62 }
  0x89   : > { %1049 = vmatpush.bf16.msrb.mxu1 %v1425_v12  ;;  %v1529_v7 = vor.u32 %v1636_v63, %v1526_v1  ;;  %v1586_v9 = vld [vmem:[%s1934_s5 + $0x14] sm:$0xf]  ;;  %v1326_v10 = vld [vmem:[%s1934_s5 + $0x18] sm:$0xf0]  ;;  %v1393_v12 = vor.u32 %v1602_v4, %v1390_v5  ;;  %v1616_v14 = vld [vmem:[%s1934_s5 + $0x104] sm:$0xf] }
  0x8a   : > { %1068 = vmatpush.bf16.msrb.mxu2 %v1489_v8  ;;  %v1457_v8 = vor.u32 %v1618_v2, %v1454_v3  ;;  %v1634_v11 = vld [vmem:[%s1934_s5 + $0x194] sm:$0xf]  ;;  %v1518_v13 = vld [vmem:[%s1934_s5 + $0x198] sm:$0xf0]  ;;  %v1446_v15 = vld [vmem:[%s1934_s5 + $0x108] sm:$0xf0]  ;;  %v1329_v18 = vor.u32 %v1586_v9, %v1326_v10 }
  0x8b   : > { %1087 = vmatpush.bf16.msrb.mxu3 %v1553_v22  ;;  %v1600_v16 = vld [vmem:[%s1934_s5 + $0x84] sm:$0xf]  ;;  %v1382_v17 = vld [vmem:[%s1934_s5 + $0x88] sm:$0xf0]  ;;  %v1521_v19 = vor.u32 %v1634_v11, %v1518_v13  ;;  %v1449_v20 = vor.u32 %v1616_v14, %v1446_v15  ;;  %s1648_s12 = sshll.u32 (%p1784_p6), %s1719_s14, 3 }
  0x8c   : > { %1031 = vmatpush.bf16.msrb.mxu0 %v1353_v35  ;;  %v1584_v21 = vld [vmem:[%s1934_s5 + $0x4] sm:$0xf]  ;;  %v1318_v22 = vld [vmem:[%s1934_s5 + $0x8] sm:$0xf0]  ;;  %s1132_s10 = scalar_lea.vmem (%p1784_p6), %s2180_s3, %s1648_s12 }
  0x8d   : > { %1050 = vmatpush.bf16.msrb.mxu1 %v1417_v27  ;;  %v1632_v24 = vld [vmem:[%s1934_s5 + $0x184] sm:$0xf]  ;;  %v1510_v25 = vld [vmem:[%s1934_s5 + $0x188] sm:$0xf0]  ;;  %v1321_v26 = vor.u32 %v1584_v21, %v1318_v22  ;;  %s1281_s5 = sshll.u32 %s1719_s14, 1 }
  0x8e   : > { %1069 = vmatpush.bf16.msrb.mxu2 %v1481_v23  ;;  %v1385_v23 = vor.u32 %v1600_v16, %v1382_v17  ;;  %v1513_v27 = vor.u32 %v1632_v24, %v1510_v25  ;;  %p508_p11 = scmp.lt.s32.totalorder %s1281_s5, 3 }
  0x8f   : > { %1088 = vmatpush.bf16.msrb.mxu3 %v1545_v39  ;;  %965 = vmatmul.bf16.gmra.mxu0 %v2099_v44 }
  0x90   : > { %984 = vmatmul.bf16.gmra.mxu1 %v2104_v50  ;;  %1032 = vmatpush.bf16.msrb.mxu0 %v1345_v58  ;;  %s2189_s5 = smov (!%p508_p11, %s1281_s5), 3 }
  0x91   : > { %1051 = vmatpush.bf16.msrb.mxu1 %v1409_v45  ;;  %1003 = vmatmul.bf16.gmra.mxu2 %v2106_v51  ;;  %s510_s6 = scalar_lea.vmem %s2179_s2, %s2189_s5 }
  0x92   : > { %1070 = vmatpush.bf16.msrb.mxu2 %v1473_v40  ;;  %1022 = vmatmul.bf16.gmra.mxu3 %v1313_v56  ;;  %v586_v34 = vld [vmem:[%s510_s6] sm:$0x3] }
  0x93   : > { %1089 = vmatpush.bf16.msrb.mxu3 %v1537_v59  ;;  %v588_v38 = vperm.slane %v586_v34, 0  ;;  %v589_v41 = vperm.slane %v586_v34, 1 }
  0x94   : > { %1033 = vmatpush.bf16.msrb.mxu0 %v1337_v6 }
  0x95   : > { %1052 = vmatpush.bf16.msrb.mxu1 %v1401_v0 }
  0x96   : > { %1071 = vmatpush.bf16.msrb.mxu2 %v1465_v60 }
  0x97   : > { %1090 = vmatpush.bf16.msrb.mxu3 %v1529_v7 }
  0x98   : > { %1034 = vmatpush.bf16.msrb.mxu0 %v1329_v18 }
  0x99   : > { %1053 = vmatpush.bf16.msrb.mxu1 %v1393_v12 }
  0x9a   : > { %1072 = vmatpush.bf16.msrb.mxu2 %v1457_v8 }
  0x9b   : > { %1091 = vmatpush.bf16.msrb.mxu3 %v1521_v19 }
  0x9c   : > { %1035 = vmatpush.bf16.msrb.mxu0 %v1321_v26 }
  0x9d   : > { %1054 = vmatpush.bf16.msrb.mxu1 %v1385_v23 }
  0x9e   : > { %1073 = vmatpush.bf16.msrb.mxu2 %v1449_v20 }
  0x9f   : > { %1092 = vmatpush.bf16.msrb.mxu3 %v1513_v27  ;;  %1036 = vmatmul.bf16.vlgmr.msrb.gmra.mxu0 %v2031_v48 }
  0xa0   : > { %1055 = vmatmul.bf16.vlgmr.msrb.gmra.mxu1 %v2036_v53 }
  0xa1   : > { %1074 = vmatmul.bf16.vlgmr.msrb.gmra.mxu2 %v2038_v54 }
  0xa2   : > { %1093 = vmatmul.bf16.vlgmr.msrb.gmra.mxu3 %v2042_v57 }
  0xaf   : > { %1041 = vmatmul.bf16.gmra.mxu0 %v2099_v44 }
  0xb0   : > { %1060 = vmatmul.bf16.gmra.mxu1 %v2104_v50 }
  0xb1   : > { %1079 = vmatmul.bf16.gmra.mxu2 %v2106_v51 }
  0xb2   : > { %1098 = vmatmul.bf16.gmra.mxu3 %v1313_v56 }
  0xfc   : > { %v961_v28 = vpop.f32.mrf.mxu0 }
  0xfd   : > { %v980_v29 = vpop.f32.mrf.mxu1  ;;  %v962_v40 = vadd.f32 %v961_v28, %v588_v38 }
  0xff   : > { %v981_v44 = vadd.f32 %v980_v29, %v962_v40 }
 0x104   : > { %v999_v30 = vpop.f32.mrf.mxu2  ;;  %v963_v32 = vpop.f32.mrf.mxu0 }
 0x105   : > { %v1018_v31 = vpop.f32.mrf.mxu3  ;;  %v982_v48 = vpop.f32.mrf.mxu1  ;;  %v1000_v49 = vadd.f32 %v999_v30, %v981_v44  ;;  %v964_v51 = vadd.f32 %v963_v32, %v588_v38 }
 0x107   : > { %v1019_v56 = vadd.f32 %v1018_v31, %v1000_v49  ;;  %v983_v61 = vadd.f32 %v982_v48, %v964_v51 }
 0x109   : > { %v1104_v0 = vmax.f32 %v1019_v56, 0.0 }
 0x10c   : > { %v1001_v53 = vpop.f32.mrf.mxu2  ;;  %v966_v33 = vpop.f32.mrf.mxu0 }
 0x10d   : > { %v1020_v54 = vpop.f32.mrf.mxu3  ;;  %v985_v57 = vpop.f32.mrf.mxu1  ;;  %v1002_v1 = vadd.f32 %v1001_v53, %v983_v61  ;;  %v967_v2 = vadd.f32 %v966_v33, %v588_v38 }
 0x10f   : > { %v1021_v8 = vadd.f32 %v1020_v54, %v1002_v1  ;;  %v986_v9 = vadd.f32 %v985_v57, %v967_v2 }
 0x111   : > { %v1106_v15 = vmax.f32 %v1021_v8, 0.0 }
 0x114   : > { %v1004_v35 = vpop.f32.mrf.mxu2  ;;  %v968_v37 = vpop.f32.mrf.mxu0 }
 0x115   : > { %v1023_v36 = vpop.f32.mrf.mxu3  ;;  %v987_v39 = vpop.f32.mrf.mxu1  ;;  %v1005_v16 = vadd.f32 %v1004_v35, %v986_v9  ;;  %v969_v19 = vadd.f32 %v968_v37, %v588_v38 }
 0x117   : > { %v1024_v23 = vadd.f32 %v1023_v36, %v1005_v16  ;;  %v988_v26 = vadd.f32 %v987_v39, %v969_v19 }
 0x119   : > { %v1108_v29 = vmax.f32 %v1024_v23, 0.0 }
 0x11c   : > { %v1006_v42 = vpop.f32.mrf.mxu2  ;;  %v1037_v45 = vpop.f32.mrf.mxu0 }
 0x11d   : > { %v1025_v43 = vpop.f32.mrf.mxu3  ;;  %v1056_v46 = vpop.f32.mrf.mxu1  ;;  %v1038_v47 = vadd.f32 %v1037_v45, %v589_v41  ;;  %v1007_v30 = vadd.f32 %v1006_v42, %v988_v26 }
 0x11f   : > { %v1057_v50 = vadd.f32 %v1056_v46, %v1038_v47  ;;  %v1026_v33 = vadd.f32 %v1025_v43, %v1007_v30 }
 0x121   : > { %v1110_v36 = vmax.f32 %v1026_v33, 0.0 }
 0x124   : > { %v1075_v52 = vpop.f32.mrf.mxu2  ;;  %v1039_v59 = vpop.f32.mrf.mxu0 }
 0x125   : > { %v1094_v55 = vpop.f32.mrf.mxu3  ;;  %v1076_v58 = vadd.f32 %v1075_v52, %v1057_v50  ;;  %v1058_v60 = vpop.f32.mrf.mxu1  ;;  %v1040_v63 = vadd.f32 %v1039_v59, %v589_v41 }
 0x127   : > { %v1095_v62 = vadd.f32 %v1094_v55, %v1076_v58  ;;  %v1059_v5 = vadd.f32 %v1058_v60, %v1040_v63 }
 0x129   : > { %v1105_v3 = vmax.f32 %v1095_v62, 0.0 }
 0x12b   : > { %v1112_v4 = vpack.c.bf16 %v1105_v3, %v1104_v0 }
 0x12c   : > { %v1077_v6 = vpop.f32.mrf.mxu2  ;;  %v1042_v11 = vpop.f32.mrf.mxu0 }
 0x12d   : > { %v1096_v7 = vpop.f32.mrf.mxu3  ;;  %1116 = vst [vmem:[%s2146_s8] sm:$0xff] %v1112_v4  ;;  %v1078_v10 = vadd.f32 %v1077_v6, %v1059_v5  ;;  %v1043_v12 = vadd.f32 %v1042_v11, %v589_v41  ;;  %v1061_v14 = vpop.f32.mrf.mxu1 }
 0x12f   : > { %v1097_v13 = vadd.f32 %v1096_v7, %v1078_v10  ;;  %v1062_v18 = vadd.f32 %v1061_v14, %v1043_v12 }
 0x131   : > { %v1107_v17 = vmax.f32 %v1097_v13, 0.0 }
 0x133   : > { %v1113_v20 = vpack.c.bf16 %v1107_v17, %v1106_v15 }
 0x134   : > { %v1080_v21 = vpop.f32.mrf.mxu2  ;;  %v1044_v25 = vpop.f32.mrf.mxu0  ;;  %v1167_v39 = vld [vmem:[%s2146_s8] sm:$0xff] (%p1784_p6) }
 0x135   : > { %v1099_v22 = vpop.f32.mrf.mxu3  ;;  %1117 = vst [vmem:[%s2146_s8 + $0x8] sm:$0xff] %v1113_v20  ;;  %v1081_v24 = vadd.f32 %v1080_v21, %v1062_v18  ;;  %v1045_v28 = vadd.f32 %v1044_v25, %v589_v41  ;;  %v1063_v32 = vpop.f32.mrf.mxu1 }
 0x136   : > { %1168 = vst [vmem:[%s1132_s10] sm:$0xff] (%p1784_p6), %v1167_v39 }
 0x137   : > { %v1100_v27 = vadd.f32 %v1099_v22, %v1081_v24  ;;  %v1064_v53 = vadd.f32 %v1063_v32, %v1045_v28 }
 0x139   : > { %v1109_v31 = vmax.f32 %v1100_v27, 0.0 }
 0x13b   : > { %v1114_v48 = vpack.c.bf16 %v1109_v31, %v1108_v29 }
 0x13c   : > { %v1082_v54 = vpop.f32.mrf.mxu2  ;;  %v1169_v40 = vld [vmem:[%s2146_s8 + $0x8] sm:$0xff] (%p1784_p6) }
 0x13d   : > { %1118 = vst [vmem:[%s2146_s8 + $0x10] sm:$0xff] %v1114_v48  ;;  %v1083_v57 = vadd.f32 %v1082_v54, %v1064_v53  ;;  %v1101_v34 = vpop.f32.mrf.mxu3 }
 0x13e   : > { %1170 = vst [vmem:[%s1132_s10 + $0x10] sm:$0xff] (%p1784_p6), %v1169_v40 }
 0x13f   : > { %v1102_v35 = vadd.f32 %v1101_v34, %v1083_v57 }
 0x141   : > { %v1111_v37 = vmax.f32 %v1102_v35, 0.0  ;;  %1126 = sbr.rel (!%p1784_p6) target bundleno = 334 (0x14e), region = 74 }
 0x143   : > { %v1115_v38 = vpack.c.bf16 %v1111_v37, %v1110_v36 }
 0x144   : > { %v1171_v41 = vld [vmem:[%s2146_s8 + $0x10] sm:$0xff] (%p1784_p6) }
 0x145   : > { %1119 = vst [vmem:[%s2146_s8 + $0x18] sm:$0xff] %v1115_v38 }
 0x146   : > { %1172 = vst [vmem:[%s1132_s10 + $0x20] sm:$0xff] %v1171_v41 }
 0x14c   : > { %v1173_v42 = vld [vmem:[%s2146_s8 + $0x18] sm:$0xff] }
 0x14d   : > { %1174 = vst [vmem:[%s1132_s10 + $0x30] sm:$0xff] %v1173_v42 }
 0x14e PF: > { %s13_s16 = sadd.s32 1, %s1727_s16   ;;  %s2182_s12 = smov %s1715_s13 }
 0x14f   : > { %p10_p12 = scmp.ge.s32.totalorder %s13_s16, 4   ;;  %s2183_s13 = smov %s1789_s22 }
 0x150   : > { %s2184_s14 = smov %s1723_s15  ;;  %s2185_s15 = smov %s2187_s17 }
 0x151   :  { %12 = sbr.rel (!%p10_p12) target bundleno = 3 (0x3), region = 149 }

// kernel: base_regressor_forward.21
= control target key start
LH: loop header
LB: loop body
LE: loop exit
PB: predicated region body
PF: predicated region fallthrough
CT: control target
= control target key end

     0   :  { %s1158_s12 = smov 0   ;;  %s1160_s13 = smov 0   ;;  %s1286_s0 = inlined_call_operand.vmem [shape: bf16[32,4608], index: 0, kind: input, shape index: {}]   ;;  %s1287_s1 = inlined_call_operand.vmem [shape: bf16[4608,128], index: 1, kind: input, shape index: {}]   ;;  %s1288_s2 = inlined_call_operand.vmem [shape: f32[1,128], index: 2, kind: input, shape index: {}]   ;;  %s1289_s3 = inlined_call_operand.vmem [shape: bf16[32,128], index: 3, kind: output, shape index: {}]  }
   0x1   :  { %s1162_s14 = smov 0   ;;  %s1164_s15 = smov 0  }
   0x2   :  { %s1166_s16 = smov 0  }
   0x3 LB: > { %s25_s17 = sadd.s32 1, %s1131_s15  ;;  %p48_p1 = scmp.ne.s32.totalorder %s1123_s13, %s1119_s12  ;;  %s1135_s16 = sphi %s1166_s16, %s13_s16   ;;  %s1131_s15 = sphi %s1164_s15, %s1293_s15   ;;  %s1127_s14 = sphi %s1162_s14, %s1292_s14   ;;  %s1123_s13 = sphi %s1160_s13, %s1291_s13   ;;  %s1119_s12 = sphi %s1158_s12, %s1290_s12  }
   0x4   : > { %p26_p0 = scmp.ge.s32.totalorder %s25_s17, 9  ;;  %p49_p2 = scmp.eq.s32.totalorder %s1135_s16, 0 }
   0x5   : > { %s41_s19 = sadd.s32 1, %s1123_s13  ;;  %p829_p5 = scmp.ge.s32.totalorder %s1135_s16, 9 }
   0x6   : > { %s1295_s17 = smov (%p26_p0, %s25_s17), 0  ;;  %p50_p3 = por %p49_p2, %p48_p1 }
   0x7   : > { %s37_s18 = ssub.s32 %s1131_s15, %s1295_s17  ;;  %162 = sbr.rel (%p829_p5) target bundleno = 24 (0x18), region = 20 }
   0x8   : > { %p39_p4 = scmp.eq.s32.totalorder %s37_s18, 0 }
   0xa   : > { %s1193_s20 = scalar_select %p39_p4, %s1123_s13, %s41_s19  }
   0xc   : > { %165 = sbr.rel (!%p50_p3) target bundleno = 24 (0x18), region = 24  ;;  %s167_s21 = sand.u32 (%p50_p3), 1, %s1123_s13  }
   0xd   : > { %s1003_s22 = sshll.u32 (%p50_p3), %s1131_s15, 4  ;;  %s830_s23 = sshll.u32 (%p50_p3), %s167_s21, 6 }
   0xe   : > { %s175_s26 = scalar_lea.vmem (%p50_p3), %s1286_s0, %s1003_s22  ;;  %s169_s27 = scalar_lea.vmem (%p50_p3), [#allocation3], %s830_s23 }
   0xf   : > { %v188_v0 = vld [vmem:[%s175_s26] sm:$0xff] (%p50_p3)  ;;  %v190_v1 = vld [vmem:[%s175_s26 + $0x8] sm:$0xff] (%p50_p3)  ;;  %v192_v2 = vld [vmem:[%s175_s26 + $0x90] sm:$0xff] (%p50_p3) }
  0x10   : > { %189 = vst [vmem:[%s169_s27] sm:$0xff] (%p50_p3), %v188_v0  ;;  %v194_v3 = vld [vmem:[%s175_s26 + $0x98] sm:$0xff] (%p50_p3)  ;;  %v196_v4 = vld [vmem:[%s175_s26 + $0x120] sm:$0xff] (%p50_p3)  ;;  %v198_v5 = vld [vmem:[%s175_s26 + $0x128] sm:$0xff] (%p50_p3) }
  0x11   : > { %191 = vst [vmem:[%s169_s27 + $0x8] sm:$0xff] %v190_v1  ;;  %v200_v6 = vld [vmem:[%s175_s26 + $0x1b0] sm:$0xff]  ;;  %v202_v7 = vld [vmem:[%s175_s26 + $0x1b8] sm:$0xff] }
  0x12   : > { %193 = vst [vmem:[%s169_s27 + $0x10] sm:$0xff] %v192_v2 }
  0x13   : > { %195 = vst [vmem:[%s169_s27 + $0x18] sm:$0xff] %v194_v3 }
  0x14   : > { %197 = vst [vmem:[%s169_s27 + $0x20] sm:$0xff] %v196_v4 }
  0x15   : > { %199 = vst [vmem:[%s169_s27 + $0x28] sm:$0xff] %v198_v5 }
  0x16   : > { %201 = vst [vmem:[%s169_s27 + $0x30] sm:$0xff] %v200_v6 }
  0x17   : > { %203 = vst [vmem:[%s169_s27 + $0x38] sm:$0xff] %v202_v7 }
  0x18 PF: > { %p833_p6 = scmp.ge.s32.totalorder %s1135_s16, 1  ;;  %p220_p7 = scmp.lt.s32.totalorder %s1135_s16, 10 }
  0x1a   : > { %p221_p8 = pnand %p833_p6, %p220_p7 }
  0x1b   : > { %s227_s28 = sand.u32 (!%p221_p8), 1, %s1119_s12   ;;  %s835_s29 = sshll.u32 (!%p221_p8), %s1127_s14, 6 }
  0x1c   : > { %224 = sbr.rel (%p221_p8) target bundleno = 254 (0xfe), region = 51  ;;  %s834_s30 = sshll.u32 (!%p221_p8), %s227_s28, 6 }
  0x1d   : > { %p267_p9 = scmp.lt.s32.totalorder (!%p221_p8), %s835_s29, 575  ;;  %s1210_s8 = scalar_lea.vmem (!%p221_p8), [#allocation3], %s834_s30 }
  0x1e   : > { %p837_p10 = scmp.ne.s32.totalorder (!%p221_p8), %s1127_s14, 0 }
  0x21   : > { %s1297_s29 = smov (!%p267_p9, %s835_s29), 575  ;;  %290 = sbr.rel (%p837_p10) target bundleno = 43 (0x2b), region = 59 }
  0x22   : > { %s836_s4 = sshll.u32 %s1297_s29, 2 }
  0x23   : > { %s1208_s7 = scalar_lea.vmem %s1287_s1, %s836_s4 }
  0x26   : > { %v1137_v8 = vmov 0.0  }
  0x27   : > { %291 = vst [vmem:[#allocation2 + $0x10] sm:$0xff] %v1137_v8 }
  0x28   : > { %292 = vst [vmem:[#allocation2] sm:$0xff] %v1137_v8 }
  0x29   : > { %293 = vst [vmem:[#allocation2 + $0x18] sm:$0xff] %v1137_v8 }
  0x2a   : > { %294 = vst [vmem:[#allocation2 + $0x8] sm:$0xff] %v1137_v8 }
  0x2b PF: > { %v1019_v9 = vld [vmem:[%s1208_s7 + $0x38] sm:$0xff]  ;;  %v1018_v13 = vld [vmem:[%s1208_s7 + $0x30] sm:$0xff]  ;;  %v1017_v17 = vld [vmem:[%s1208_s7 + $0x28] sm:$0xff]  ;;  %p998_p11 = scmp.ne.s32.totalorder %s1127_s14, 8 }
  0x2c   : > { %v1027_v10 = vld [vmem:[%s1208_s7 + $0x78] sm:$0xff]  ;;  %603 = vmatpush.bf16.msra.mxu0 %v1019_v9  ;;  %v1026_v14 = vld [vmem:[%s1208_s7 + $0x70] sm:$0xff]  ;;  %v1025_v18 = vld [vmem:[%s1208_s7 + $0x68] sm:$0xff] }
  0x2d   : > { %v1035_v11 = vld [vmem:[%s1208_s7 + $0xb8] sm:$0xff]  ;;  %622 = vmatpush.bf16.msra.mxu1 %v1027_v10  ;;  %v1034_v15 = vld [vmem:[%s1208_s7 + $0xb0] sm:$0xff]  ;;  %v1033_v19 = vld [vmem:[%s1208_s7 + $0xa8] sm:$0xff] }
  0x2e   : > { %v1043_v12 = vld [vmem:[%s1208_s7 + $0xf8] sm:$0xff]  ;;  %641 = vmatpush.bf16.msra.mxu2 %v1035_v11  ;;  %v1042_v16 = vld [vmem:[%s1208_s7 + $0xf0] sm:$0xff]  ;;  %v1041_v20 = vld [vmem:[%s1208_s7 + $0xe8] sm:$0xff] }
  0x2f   : > { %660 = vmatpush.bf16.msra.mxu3 %v1043_v12  ;;  %v1016_v21 = vld [vmem:[%s1208_s7 + $0x20] sm:$0xff]  ;;  %v1015_v25 = vld [vmem:[%s1208_s7 + $0x18] sm:$0xff]  ;;  %v1014_v29 = vld [vmem:[%s1208_s7 + $0x10] sm:$0xff] }
  0x30   : > { %604 = vmatpush.bf16.msra.mxu0 %v1018_v13  ;;  %v1024_v22 = vld [vmem:[%s1208_s7 + $0x60] sm:$0xff]  ;;  %v1023_v26 = vld [vmem:[%s1208_s7 + $0x58] sm:$0xff]  ;;  %v1022_v30 = vld [vmem:[%s1208_s7 + $0x50] sm:$0xff] }
  0x31   : > { %623 = vmatpush.bf16.msra.mxu1 %v1026_v14  ;;  %v1032_v23 = vld [vmem:[%s1208_s7 + $0xa0] sm:$0xff]  ;;  %v1031_v27 = vld [vmem:[%s1208_s7 + $0x98] sm:$0xff]  ;;  %v1030_v31 = vld [vmem:[%s1208_s7 + $0x90] sm:$0xff] }
  0x32   : > { %642 = vmatpush.bf16.msra.mxu2 %v1034_v15  ;;  %v1040_v24 = vld [vmem:[%s1208_s7 + $0xe0] sm:$0xff]  ;;  %v1039_v28 = vld [vmem:[%s1208_s7 + $0xd8] sm:$0xff]  ;;  %v1038_v32 = vld [vmem:[%s1208_s7 + $0xd0] sm:$0xff] }
  0x33   : > { %661 = vmatpush.bf16.msra.mxu3 %v1042_v16  ;;  %v1013_v33 = vld [vmem:[%s1208_s7 + $0x8] sm:$0xff]  ;;  %v1012_v37 = vld [vmem:[%s1208_s7] sm:$0xff]  ;;  %v1006_v42 = vld [vmem:[%s1210_s8 + $0xc] sm:$0xf0] }
  0x34   : > { %605 = vmatpush.bf16.msra.mxu0 %v1017_v17  ;;  %v1021_v34 = vld [vmem:[%s1208_s7 + $0x48] sm:$0xff]  ;;  %v1020_v38 = vld [vmem:[%s1208_s7 + $0x40] sm:$0xff]  ;;  %v842_v44 = vld [vmem:[%s1210_s8 + $0x10] sm:$0xf0] }
  0x35   : > { %624 = vmatpush.bf16.msra.mxu1 %v1025_v18  ;;  %v1029_v35 = vld [vmem:[%s1208_s7 + $0x88] sm:$0xff]  ;;  %v1028_v39 = vld [vmem:[%s1208_s7 + $0x80] sm:$0xff]  ;;  %v1007_v46 = vld [vmem:[%s1210_s8 + $0x14] sm:$0xf0] }
  0x36   : > { %643 = vmatpush.bf16.msra.mxu2 %v1033_v19  ;;  %v1037_v36 = vld [vmem:[%s1208_s7 + $0xc8] sm:$0xff]  ;;  %v1036_v40 = vld [vmem:[%s1208_s7 + $0xc0] sm:$0xff]  ;;  %v850_v48 = vld [vmem:[%s1210_s8 + $0x18] sm:$0xf0] }
  0x37   : > { %662 = vmatpush.bf16.msra.mxu3 %v1041_v20  ;;  %v840_v41 = vld [vmem:[%s1210_s8] sm:$0xf]  ;;  %v1004_v43 = vld [vmem:[%s1210_s8 + $0x4] sm:$0xf]  ;;  %v848_v45 = vld [vmem:[%s1210_s8 + $0x8] sm:$0xf] }
  0x38   : > { %606 = vmatpush.bf16.msra.mxu0 %v1016_v21  ;;  %v1005_v47 = vld [vmem:[%s1210_s8 + $0xc] sm:$0xf]  ;;  %v841_v49 = vor.u32 %v1006_v42, %v840_v41  ;;  %v845_v50 = vor.u32 %v1004_v43, %v842_v44  ;;  %v849_v51 = vor.u32 %v1007_v46, %v848_v45  ;;  %v856_v53 = vld [vmem:[%s1210_s8 + $0x20] sm:$0xf]  ;;  %v1010_v54 = vld [vmem:[%s1210_s8 + $0x2c] sm:$0xf0] }
  0x39   : > { %625 = vmatpush.bf16.msra.mxu1 %v1024_v22  ;;  %v853_v52 = vor.u32 %v1005_v47, %v850_v48  ;;  %v1008_v55 = vld [vmem:[%s1210_s8 + $0x24] sm:$0xf]  ;;  %v858_v56 = vld [vmem:[%s1210_s8 + $0x30] sm:$0xf0]  ;;  %v864_v57 = vld [vmem:[%s1210_s8 + $0x28] sm:$0xf]  ;;  %v857_v61 = vor.u32 %v1010_v54, %v856_v53 }
  0x3a   : > { %644 = vmatpush.bf16.msra.mxu2 %v1032_v23  ;;  %v1011_v58 = vld [vmem:[%s1210_s8 + $0x34] sm:$0xf0]  ;;  %v1009_v59 = vld [vmem:[%s1210_s8 + $0x2c] sm:$0xf]  ;;  %v866_v60 = vld [vmem:[%s1210_s8 + $0x38] sm:$0xf0]  ;;  %v861_v62 = vor.u32 %v1008_v55, %v858_v56 }
  0x3b   : > { %663 = vmatpush.bf16.msra.mxu3 %v1040_v24  ;;  %v865_v63 = vor.u32 %v1011_v58, %v864_v57  ;;  %v869_v0 = vor.u32 %v1009_v59, %v866_v60  ;;  %v295_v9 = vld [vmem:[#allocation2 + $0x10] sm:$0xff]  ;;  %v296_v16 = vld [vmem:[#allocation2] sm:$0xff] }
  0x3c   : > { %607 = vmatpush.bf16.msra.mxu0 %v1015_v25  ;;  %v297_v25 = vld [vmem:[#allocation2 + $0x18] sm:$0xff] }
  0x3d   : > { %626 = vmatpush.bf16.msra.mxu1 %v1023_v26 }
  0x3e   : > { %645 = vmatpush.bf16.msra.mxu2 %v1031_v27 }
  0x3f   : > { %664 = vmatpush.bf16.msra.mxu3 %v1039_v28 }
  0x40   : > { %608 = vmatpush.bf16.msra.mxu0 %v1014_v29 }
  0x41   : > { %627 = vmatpush.bf16.msra.mxu1 %v1022_v30 }
  0x42   : > { %646 = vmatpush.bf16.msra.mxu2 %v1030_v31 }
  0x43   : > { %665 = vmatpush.bf16.msra.mxu3 %v1038_v32 }
  0x44   : > { %609 = vmatpush.bf16.msra.mxu0 %v1013_v33  ;;  %v298_v33 = vld [vmem:[#allocation2 + $0x8] sm:$0xff] }
  0x45   : > { %628 = vmatpush.bf16.msra.mxu1 %v1021_v34 }
  0x46   : > { %647 = vmatpush.bf16.msra.mxu2 %v1029_v35 }
  0x47   : > { %666 = vmatpush.bf16.msra.mxu3 %v1037_v36 }
  0x48   : > { %610 = vmatpush.bf16.msra.mxu0 %v1012_v37 }
  0x49   : > { %629 = vmatpush.bf16.msra.mxu1 %v1020_v38 }
  0x4a   : > { %648 = vmatpush.bf16.msra.mxu2 %v1028_v39 }
  0x4b   : > { %667 = vmatpush.bf16.msra.mxu3 %v1036_v40  ;;  %611 = vmatmul.bf16.vlgmr.msra.gmra.mxu0 %v841_v49 }
  0x4c   : > { %630 = vmatmul.bf16.vlgmr.msra.gmra.mxu1 %v845_v50 }
  0x4d   : > { %649 = vmatmul.bf16.vlgmr.msra.gmra.mxu2 %v849_v51 }
  0x4e   : > { %668 = vmatmul.bf16.vlgmr.msra.gmra.mxu3 %v853_v52 }
  0x5b   : > { %616 = vmatmul.bf16.gmra.mxu0 %v857_v61 }
  0x5c   : > { %635 = vmatmul.bf16.gmra.mxu1 %v861_v62 }
  0x5d   : > { %654 = vmatmul.bf16.gmra.mxu2 %v865_v63 }
  0x5e   : > { %673 = vmatmul.bf16.gmra.mxu3 %v869_v0 }
  0xc8   : > { %v612_v1 = vpop.f32.mrf.mxu0 }
  0xc9   : > { %v631_v2 = vpop.f32.mrf.mxu1 }
  0xca   : > { %v632_v3 = vadd.f32 %v631_v2, %v612_v1 }
  0xd0   : > { %v650_v4 = vpop.f32.mrf.mxu2  ;;  %v614_v7 = vpop.f32.mrf.mxu0 }
  0xd1   : > { %v669_v5 = vpop.f32.mrf.mxu3  ;;  %v651_v6 = vadd.f32 %v650_v4, %v632_v3  ;;  %v633_v8 = vpop.f32.mrf.mxu1 }
  0xd2   : > { %v634_v12 = vadd.f32 %v633_v8, %v614_v7 }
  0xd3   : > { %v670_v10 = vadd.f32 %v669_v5, %v651_v6 }
  0xd5   : > { %v679_v11 = vadd.f32 %v670_v10, %v295_v9 }
  0xd7   : > { %683 = vst [vmem:[#allocation2 + $0x10] sm:$0xff] %v679_v11 }
  0xd8   : > { %v652_v13 = vpop.f32.mrf.mxu2  ;;  %v617_v17 = vpop.f32.mrf.mxu0 }
  0xd9   : > { %v671_v14 = vpop.f32.mrf.mxu3  ;;  %v653_v15 = vadd.f32 %v652_v13, %v634_v12  ;;  %v636_v18 = vpop.f32.mrf.mxu1 }
  0xda   : > { %v637_v21 = vadd.f32 %v636_v18, %v617_v17 }
  0xdb   : > { %v672_v19 = vadd.f32 %v671_v14, %v653_v15 }
  0xdd   : > { %v680_v20 = vadd.f32 %v672_v19, %v296_v16 }
  0xdf   : > { %684 = vst [vmem:[#allocation2] sm:$0xff] %v680_v20 }
  0xe0   : > { %v655_v22 = vpop.f32.mrf.mxu2  ;;  %v619_v27 = vpop.f32.mrf.mxu0 }
  0xe1   : > { %v674_v23 = vpop.f32.mrf.mxu3  ;;  %v656_v24 = vadd.f32 %v655_v22, %v637_v21  ;;  %v638_v28 = vpop.f32.mrf.mxu1 }
  0xe2   : > { %v639_v30 = vadd.f32 %v638_v28, %v619_v27 }
  0xe3   : > { %v675_v26 = vadd.f32 %v674_v23, %v656_v24 }
  0xe5   : > { %v681_v29 = vadd.f32 %v675_v26, %v297_v25 }
  0xe7   : > { %685 = vst [vmem:[#allocation2 + $0x18] sm:$0xff] %v681_v29 }
  0xe8   : > { %v657_v31 = vpop.f32.mrf.mxu2 }
  0xe9   : > { %v658_v32 = vadd.f32 %v657_v31, %v639_v30  ;;  %v676_v34 = vpop.f32.mrf.mxu3 }
  0xeb   : > { %v677_v35 = vadd.f32 %v676_v34, %v658_v32  ;;  %690 = sbr.rel (%p998_p11) target bundleno = 254 (0xfe), region = 63 }
  0xed   : > { %v682_v36 = vadd.f32 %v677_v35, %v298_v33 }
  0xef   : > { %686 = vst [vmem:[#allocation2 + $0x8] sm:$0xff] %v682_v36 }
  0xf0   : > { %v691_v37 = vld [vmem:[#allocation2 + $0x10] sm:$0xff]  ;;  %v692_v38 = vld [vmem:[#allocation2] sm:$0xff]  ;;  %v693_v40 = vld [vmem:[#allocation2 + $0x18] sm:$0xff] }
  0xf1   : > { %v1096_v39 = vld [vmem:[%s1288_s2] ss:$0 sm:$0xff] }
  0xf2   : > { %v699_v42 = vadd.f32 %v1096_v39, %v691_v37  ;;  %v700_v43 = vadd.f32 %v1096_v39, %v692_v38  ;;  %v701_v44 = vadd.f32 %v1096_v39, %v693_v40 }
  0xf4   : > { %v703_v46 = vmax.f32 %v699_v42, 0.0  ;;  %v704_v47 = vmax.f32 %v700_v43, 0.0  ;;  %v705_v48 = vmax.f32 %v701_v44, 0.0 }
  0xf6   : > { %v694_v41 = vld [vmem:[#allocation2 + $0x8] sm:$0xff]  ;;  %v1047_v50 = vpack.c.bf16 %v704_v47, %v703_v46 }
  0xf7   : > { %v702_v45 = vadd.f32 %v1096_v39, %v694_v41 }
  0xf8   : > { %1048 = vst [vmem:[%s1289_s3] sm:$0xff] %v1047_v50  }
  0xf9   : > { %v706_v49 = vmax.f32 %v702_v45, 0.0 }
  0xfb   : > { %v1052_v51 = vpack.c.bf16 %v706_v49, %v705_v48 }
  0xfd   : > { %1054 = vst [vmem:[%s1289_s3 + $0x8] sm:$0xff] %v1052_v51  }
  0xfe PF: > { %s13_s16 = sadd.s32 1, %s1135_s16   ;;  %s1290_s12 = smov %s1123_s13 }
  0xff   : > { %p10_p12 = scmp.ge.s32.totalorder %s13_s16, 11   ;;  %s1291_s13 = smov %s1193_s20 }
 0x100   : > { %s1292_s14 = smov %s1131_s15  ;;  %s1293_s15 = smov %s1295_s17 }
 0x101   :  { %12 = sbr.rel (!%p10_p12) target bundleno = 3 (0x3), region = 104 }

// kernel: base_regressor_forward.22
= control target key start
LH: loop header
LB: loop body
LE: loop exit
PB: predicated region body
PF: predicated region fallthrough
CT: control target
= control target key end

     0   :  { %s484_s1 = inlined_call_operand.vmem [shape: bf16[256,128], index: 1, kind: input, shape index: {}]   ;;  %s485_s2 = inlined_call_operand.vmem [shape: f32[1,128], index: 2, kind: input, shape index: {}]   ;;  %s486_s0 = inlined_call_operand.vmem [shape: bf16[32,256], index: 0, kind: input, shape index: {}]   ;;  %s487_s3 = inlined_call_operand.vmem [shape: bf16[32,128], index: 3, kind: input, shape index: {}]   ;;  %s488_s4 = inlined_call_operand.vmem [shape: bf16[32,128], index: 4, kind: output, shape index: {}]  }
   0x1   :  { %v326_v0 = vld [vmem:[%s484_s1 + $0x38] sm:$0xff]  ;;  %v325_v2 = vld [vmem:[%s484_s1 + $0x30] sm:$0xff]  ;;  %v324_v4 = vld [vmem:[%s484_s1 + $0x28] sm:$0xff] }
   0x2   :  { %v334_v1 = vld [vmem:[%s484_s1 + $0x78] sm:$0xff]  ;;  %173 = vmatpush.bf16.msra.mxu0 %v326_v0  ;;  %355 = vmatpush.bf16.msra.mxu2 %v326_v0  ;;  %v333_v3 = vld [vmem:[%s484_s1 + $0x70] sm:$0xff]  ;;  %v332_v5 = vld [vmem:[%s484_s1 + $0x68] sm:$0xff] }
   0x3   :  { %192 = vmatpush.bf16.msra.mxu1 %v334_v1  ;;  %363 = vmatpush.bf16.msra.mxu3 %v334_v1  ;;  %v323_v6 = vld [vmem:[%s484_s1 + $0x20] sm:$0xff]  ;;  %v322_v8 = vld [vmem:[%s484_s1 + $0x18] sm:$0xff]  ;;  %v321_v10 = vld [vmem:[%s484_s1 + $0x10] sm:$0xff] }
   0x4   :  { %v331_v7 = vld [vmem:[%s484_s1 + $0x60] sm:$0xff]  ;;  %v330_v9 = vld [vmem:[%s484_s1 + $0x58] sm:$0xff]  ;;  %v329_v11 = vld [vmem:[%s484_s1 + $0x50] sm:$0xff] }
   0x5   :  { %v320_v12 = vld [vmem:[%s484_s1 + $0x8] sm:$0xff]  ;;  %v319_v14 = vld [vmem:[%s484_s1] sm:$0xff]  ;;  %v245_v18 = vld [vmem:[%s486_s0 + $0x10] sm:$0xf] }
   0x6   :  { %174 = vmatpush.bf16.msra.mxu0 %v325_v2  ;;  %356 = vmatpush.bf16.msra.mxu2 %v325_v2  ;;  %v328_v13 = vld [vmem:[%s484_s1 + $0x48] sm:$0xff]  ;;  %v327_v15 = vld [vmem:[%s484_s1 + $0x40] sm:$0xff]  ;;  %v318_v19 = vld [vmem:[%s486_s0 + $0x14] sm:$0xf0] }
   0x7   :  { %193 = vmatpush.bf16.msra.mxu1 %v333_v3  ;;  %364 = vmatpush.bf16.msra.mxu3 %v333_v3  ;;  %v237_v16 = vld [vmem:[%s486_s0] sm:$0xf]  ;;  %v316_v17 = vld [vmem:[%s486_s0 + $0x4] sm:$0xf0]  ;;  %v315_v20 = vld [vmem:[%s486_s0 + $0x4] sm:$0xf]  ;;  %v246_v25 = vor.u32 %v318_v19, %v245_v18 }
   0x8   :  { %v239_v21 = vld [vmem:[%s486_s0 + $0x8] sm:$0xf0]  ;;  %v317_v22 = vld [vmem:[%s486_s0 + $0x14] sm:$0xf]  ;;  %v247_v23 = vld [vmem:[%s486_s0 + $0x18] sm:$0xf0]  ;;  %v238_v24 = vor.u32 %v316_v17, %v237_v16 }
   0x9   :  { %v242_v26 = vor.u32 %v315_v20, %v239_v21  ;;  %v250_v27 = vor.u32 %v317_v22, %v247_v23  ;;  %v371_v29 = vld [vmem:[%s485_s2] ss:$0 sm:$0xff]  ;;  %v353_v42 = vld [vmem:[%s487_s3 + $0x8] sm:$0xff]  }
   0xa   :  { %175 = vmatpush.bf16.msra.mxu0 %v324_v4  ;;  %357 = vmatpush.bf16.msra.mxu2 %v324_v4  ;;  %v336_v32 = vld [vmem:[%s487_s3] sm:$0xff]   ;;  %v341_v46 = vunpack.c.l.bf16 %v353_v42  ;;  %v342_v51 = vunpack.c.h.bf16 %v353_v42 }
   0xb   :  { %194 = vmatpush.bf16.msra.mxu1 %v332_v5  ;;  %365 = vmatpush.bf16.msra.mxu3 %v332_v5  ;;  %v337_v37 = vunpack.c.l.bf16 %v336_v32  ;;  %v338_v39 = vunpack.c.h.bf16 %v336_v32 }
   0xe   :  { %176 = vmatpush.bf16.msra.mxu0 %v323_v6  ;;  %358 = vmatpush.bf16.msra.mxu2 %v323_v6 }
   0xf   :  { %195 = vmatpush.bf16.msra.mxu1 %v331_v7  ;;  %366 = vmatpush.bf16.msra.mxu3 %v331_v7 }
  0x12   :  { %177 = vmatpush.bf16.msra.mxu0 %v322_v8  ;;  %359 = vmatpush.bf16.msra.mxu2 %v322_v8 }
  0x13   :  { %196 = vmatpush.bf16.msra.mxu1 %v330_v9  ;;  %367 = vmatpush.bf16.msra.mxu3 %v330_v9 }
  0x16   :  { %178 = vmatpush.bf16.msra.mxu0 %v321_v10  ;;  %360 = vmatpush.bf16.msra.mxu2 %v321_v10 }
  0x17   :  { %197 = vmatpush.bf16.msra.mxu1 %v329_v11  ;;  %368 = vmatpush.bf16.msra.mxu3 %v329_v11 }
  0x1a   :  { %179 = vmatpush.bf16.msra.mxu0 %v320_v12  ;;  %361 = vmatpush.bf16.msra.mxu2 %v320_v12 }
  0x1b   :  { %198 = vmatpush.bf16.msra.mxu1 %v328_v13  ;;  %369 = vmatpush.bf16.msra.mxu3 %v328_v13 }
  0x1e   :  { %180 = vmatpush.bf16.msra.mxu0 %v319_v14  ;;  %362 = vmatpush.bf16.msra.mxu2 %v319_v14 }
  0x1f   :  { %199 = vmatpush.bf16.msra.mxu1 %v327_v15  ;;  %370 = vmatpush.bf16.msra.mxu3 %v327_v15 }
  0x21   :  { %181 = vmatmul.bf16.vlgmr.msra.gmra.mxu0 %v238_v24  ;;  %186 = vmatmul.bf16.vlgmr.msra.gmra.mxu2 %v246_v25 }
  0x22   :  { %200 = vmatmul.bf16.vlgmr.msra.gmra.mxu1 %v242_v26  ;;  %205 = vmatmul.bf16.vlgmr.msra.gmra.mxu3 %v250_v27 }
  0x9e   :  { %v182_v28 = vpop.f32.mrf.mxu0 }
  0x9f   :  { %v201_v30 = vpop.f32.mrf.mxu1  ;;  %v183_v31 = vadd.f32 %v371_v29, %v182_v28 }
  0xa1   :  { %v202_v36 = vadd.f32 %v201_v30, %v183_v31 }
  0xa3   :  { %v219_v44 = vadd.f32 %v337_v37, %v202_v36 }
  0xa4   :  { %v187_v33 = vpop.f32.mrf.mxu2 }
  0xa5   :  { %v206_v34 = vpop.f32.mrf.mxu3  ;;  %v188_v41 = vadd.f32 %v371_v29, %v187_v33 }
  0xa6   :  { %v184_v35 = vpop.f32.mrf.mxu0 }
  0xa7   :  { %v185_v38 = vadd.f32 %v371_v29, %v184_v35  ;;  %v203_v40 = vpop.f32.mrf.mxu1  ;;  %v207_v48 = vadd.f32 %v206_v34, %v188_v41 }
  0xa9   :  { %v204_v43 = vadd.f32 %v203_v40, %v185_v38  ;;  %v221_v54 = vadd.f32 %v341_v46, %v207_v48 }
  0xab   :  { %v220_v45 = vadd.f32 %v338_v39, %v204_v43 }
  0xac   :  { %v189_v47 = vpop.f32.mrf.mxu2 }
  0xad   :  { %v346_v49 = vpack.c.bf16 %v220_v45, %v219_v44  ;;  %v190_v50 = vadd.f32 %v371_v29, %v189_v47  ;;  %v208_v52 = vpop.f32.mrf.mxu3 }
  0xaf   :  { %347 = vst [vmem:[%s488_s4] sm:$0xff] %v346_v49   ;;  %v209_v53 = vadd.f32 %v208_v52, %v190_v50 }
  0xb1   :  { %v222_v55 = vadd.f32 %v342_v51, %v209_v53 }
  0xb3   :  { %v351_v56 = vpack.c.bf16 %v222_v55, %v221_v54 }
  0xb5   :  { %354 = vst [vmem:[%s488_s4 + $0x8] sm:$0xff] %v351_v56  }

// kernel: base_regressor_forward.23
= control target key start
LH: loop header
LB: loop body
LE: loop exit
PB: predicated region body
PF: predicated region fallthrough
CT: control target
= control target key end

     0   :  { %v309_v11 = vmov 0.92419624   ;;  %v310_v30 = vmov 3   ;;  %s404_s1 = inlined_call_operand.vmem [shape: bf16[128,128], index: 1, kind: input, shape index: {}]   ;;  %s405_s2 = inlined_call_operand.vmem [shape: f32[1,128], index: 2, kind: input, shape index: {}]   ;;  %s406_s0 = inlined_call_operand.vmem [shape: bf16[32,128], index: 0, kind: input, shape index: {}]   ;;  %s407_s3 = inlined_call_operand.vmem [shape: f32[1,128], index: 3, kind: input, shape index: {}]   ;;  %s408_s4 = inlined_call_operand.vmem [shape: f32[32,128], index: 4, kind: output, shape index: {}]  }
   0x1   :  { %v268_v0 = vld [vmem:[%s404_s1 + $0x38] sm:$0xff]  ;;  %v267_v1 = vld [vmem:[%s404_s1 + $0x30] sm:$0xff]  ;;  %v266_v2 = vld [vmem:[%s404_s1 + $0x28] sm:$0xff]  ;;  %283 = vrcp.f32 %v309_v11  ;;  %280 = vset.pattern.permute.xlu1 %v310_v30  ;;  %279 = vset.pattern.permute.xlu0 %v310_v30 }
   0x2   :  { %101 = vmatpush.bf16.msra.mxu0 %v268_v0  ;;  %269 = vmatpush.bf16.msra.mxu1 %v268_v0  ;;  %v265_v3 = vld [vmem:[%s404_s1 + $0x20] sm:$0xff]  ;;  %v264_v4 = vld [vmem:[%s404_s1 + $0x18] sm:$0xff]  ;;  %v263_v5 = vld [vmem:[%s404_s1 + $0x10] sm:$0xff] }
   0x3   :  { %v262_v6 = vld [vmem:[%s404_s1 + $0x8] sm:$0xff]  ;;  %v261_v7 = vld [vmem:[%s404_s1] sm:$0xff] }
   0x4   :  { %v259_v8 = vld [vmem:[%s406_s0] sm:$0xff]  ;;  %v260_v9 = vld [vmem:[%s406_s0 + $0x8] sm:$0xff] }
   0x5   :  { %v281_v10 = vld [vmem:[%s405_s2] ss:$0 sm:$0xff] }
   0x6   :  { %102 = vmatpush.bf16.msra.mxu0 %v267_v1  ;;  %270 = vmatpush.bf16.msra.mxu1 %v267_v1  ;;  %v282_v11 = vld [vmem:[%s407_s3] ss:$0 sm:$0xff] }
   0x7   :  { %v284_v18 = vpop.eup %283 }
   0x8   :  { %v153_v23 = vmul.f32 0.92419624, %v284_v18  ;;  %vm157_vm0 = vweird.f32 %v284_v18 }
   0xa   :  { %103 = vmatpush.bf16.msra.mxu0 %v266_v2  ;;  %271 = vmatpush.bf16.msra.mxu1 %v266_v2  ;;  %v154_v31 = vsub.f32 1.0, %v153_v23 }
   0xc   :  { %v155_v38 = vmul.f32 %v284_v18, %v154_v31 }
   0xe   :  { %104 = vmatpush.bf16.msra.mxu0 %v265_v3  ;;  %272 = vmatpush.bf16.msra.mxu1 %v265_v3  ;;  %v156_v41 = vadd.f32 %v284_v18, %v155_v38 }
  0x10   :  { %v158_v44 = vsel %vm157_vm0, %v284_v18, %v156_v41 }
  0x12   :  { %105 = vmatpush.bf16.msra.mxu0 %v264_v4  ;;  %273 = vmatpush.bf16.msra.mxu1 %v264_v4 }
  0x16   :  { %106 = vmatpush.bf16.msra.mxu0 %v263_v5  ;;  %274 = vmatpush.bf16.msra.mxu1 %v263_v5 }
  0x1a   :  { %107 = vmatpush.bf16.msra.mxu0 %v262_v6  ;;  %275 = vmatpush.bf16.msra.mxu1 %v262_v6 }
  0x1e   :  { %108 = vmatpush.bf16.msra.mxu0 %v261_v7  ;;  %276 = vmatpush.bf16.msra.mxu1 %v261_v7 }
  0x21   :  { %109 = vmatmul.bf16.vlgmr.msra.gmra.mxu0 %v259_v8  ;;  %114 = vmatmul.bf16.vlgmr.msra.gmra.mxu1 %v260_v9 }
  0x9e   :  { %v110_v12 = vpop.f32.mrf.mxu0  ;;  %v115_v13 = vpop.f32.mrf.mxu1 }
  0x9f   :  { %v369_v14 = vadd.f32 %v281_v10, %v110_v12  ;;  %v371_v15 = vadd.f32 %v281_v10, %v115_v13 }
  0xa1   :  { %v120_v16 = vmul.f32 0.92419624, %v369_v14  ;;  %v122_v17 = vmul.f32 0.92419624, %v371_v15 }
  0xa3   :  { %v128_v19 = vmin.f32 %v120_v16, 20.0  ;;  %v130_v20 = vmin.f32 %v122_v17, 20.0  ;;  %vm124_vm1 = vcmp.gt.f32.partialorder %v120_v16, 20.0  ;;  %vm126_vm2 = vcmp.gt.f32.partialorder %v122_v17, 20.0 }
  0xa5   :  { %v132_v21 = vmul.f32 1.442695, %v128_v19  ;;  %v136_v22 = vmul.f32 1.442695, %v130_v20 }
  0xa6   :  { %v112_v24 = vpop.f32.mrf.mxu0  ;;  %v117_v25 = vpop.f32.mrf.mxu1 }
  0xa7   :  { %285 = vpow2.f32 %v132_v21  ;;  %v375_v26 = vadd.f32 %v281_v10, %v112_v24  ;;  %v377_v27 = vadd.f32 %v281_v10, %v117_v25 }
  0xa8   :  { %287 = vpow2.f32 %v136_v22 }
  0xa9   :  { %v121_v28 = vmul.f32 0.92419624, %v375_v26  ;;  %v123_v29 = vmul.f32 0.92419624, %v377_v27 }
  0xab   :  { %v129_v32 = vmin.f32 %v121_v28, 20.0  ;;  %v131_v33 = vmin.f32 %v123_v29, 20.0  ;;  %vm125_vm3 = vcmp.gt.f32.partialorder %v121_v28, 20.0  ;;  %vm127_vm4 = vcmp.gt.f32.partialorder %v123_v29, 20.0 }
  0xad   :  { %v286_v34 = vpop.eup %285  ;;  %v134_v35 = vmul.f32 1.442695, %v129_v32  ;;  %v138_v39 = vmul.f32 1.442695, %v131_v33 }
  0xae   :  { %v288_v36 = vpop.eup %287  ;;  %v140_v37 = vadd.f32 1.0, %v286_v34 }
  0xaf   :  { %v142_v40 = vadd.f32 1.0, %v288_v36  ;;  %289 = vpow2.f32 %v134_v35 }
  0xb0   :  { %291 = vlog2.f32 %v140_v37 }
  0xb1   :  { %293 = vlog2.f32 %v142_v40 }
  0xb2   :  { %295 = vpow2.f32 %v138_v39 }
  0xb5   :  { %v290_v42 = vpop.eup %289 }
  0xb6   :  { %v292_v43 = vpop.eup %291  ;;  %v141_v45 = vadd.f32 1.0, %v290_v42 }
  0xb7   :  { %v294_v46 = vpop.eup %293  ;;  %v145_v47 = vmul.f32 0.6931472, %v292_v43 }
  0xb8   :  { %v296_v48 = vpop.eup %295  ;;  %v149_v49 = vmul.f32 0.6931472, %v294_v46  ;;  %297 = vlog2.f32 %v141_v45 }
  0xb9   :  { %v159_v50 = vmul.f32 %v158_v44, %v145_v47  ;;  %v143_v51 = vadd.f32 1.0, %v296_v48 }
  0xba   :  { %v161_v52 = vmul.f32 %v158_v44, %v149_v49 }
  0xbb   :  { %v163_v53 = vsel %vm124_vm1, %v369_v14, %v159_v50  ;;  %299 = vlog2.f32 %v143_v51 }
  0xbc   :  { %v167_v54 = vadd.f32 0.25, %v163_v53  ;;  %v165_v55 = vsel %vm126_vm2, %v371_v15, %v161_v52 }
  0xbd   :  { %v169_v56 = vadd.f32 0.25, %v165_v55 }
  0xbe   :  { %v298_v57 = vpop.eup %297  ;;  %v171_v58 = vmin.f32 %v167_v54, 100.0 }
  0xbf   :  { %v173_v59 = vmin.f32 %v169_v56, 100.0  ;;  %v147_v60 = vmul.f32 0.6931472, %v298_v57 }
  0xc0   :  { %301 = vrcp.f32 %v171_v58 }
  0xc1   :  { %v300_v61 = vpop.eup %299  ;;  %303 = vrcp.f32 %v173_v59  ;;  %v160_v62 = vmul.f32 %v158_v44, %v147_v60 }
  0xc2   :  { %v151_v63 = vmul.f32 0.6931472, %v300_v61 }
  0xc3   :  { %v164_v0 = vsel %vm125_vm3, %v375_v26, %v160_v62 }
  0xc4   :  { %v168_v1 = vadd.f32 0.25, %v164_v0  ;;  %v162_v2 = vmul.f32 %v158_v44, %v151_v63 }
  0xc6   :  { %v302_v3 = vpop.eup %301  ;;  %v172_v4 = vmin.f32 %v168_v1, 100.0  ;;  %v166_v5 = vsel %vm127_vm4, %v377_v27, %v162_v2 }
  0xc7   :  { %v304_v6 = vpop.eup %303  ;;  %v170_v7 = vadd.f32 0.25, %v166_v5  ;;  %181 = vperm.xlu0 %279, %v302_v3  }
  0xc8   :  { %305 = vrcp.f32 %v172_v4  ;;  %191 = vperm.xlu1 %280, %v304_v6  }
  0xc9   :  { %v174_v8 = vmin.f32 %v170_v7, 100.0 }
  0xcb   :  { %307 = vrcp.f32 %v174_v8 }
  0xce   :  { %v306_v9 = vpop.eup %305 }
  0xcf   :  { %186 = vperm.xlu0 %279, %v306_v9  }
  0xd1   :  { %v308_v10 = vpop.eup %307 }
  0xd2   :  { %196 = vperm.xlu1 %280, %v308_v10  }
 0x139   :  { %v182_v12 = vpop.permute.xlu0 %181 }
 0x13a   :  { %v192_v13 = vpop.permute.xlu1 %191  ;;  %v199_v16 = vmul.f32 %v182_v12, %v369_v14 }
 0x13b   :  { %v201_v17 = vmul.f32 %v192_v13, %v371_v15 }
 0x13c   :  { %v207_v18 = vadd.f32 %v282_v11, %v199_v16 }
 0x13d   :  { %v209_v19 = vadd.f32 %v282_v11, %v201_v17 }
 0x13e   :  { %211 = vst [vmem:[%s408_s4] sm:$0xff] %v207_v18 }
 0x13f   :  { %213 = vst [vmem:[%s408_s4 + $0x10] sm:$0xff] %v209_v19 }
 0x141   :  { %v187_v20 = vpop.permute.xlu0 %186 }
 0x142   :  { %v200_v21 = vmul.f32 %v187_v20, %v375_v26 }
 0x144   :  { %v197_v22 = vpop.permute.xlu1 %196  ;;  %v208_v23 = vadd.f32 %v282_v11, %v200_v21 }
 0x145   :  { %v202_v24 = vmul.f32 %v197_v22, %v377_v27 }
 0x146   :  { %212 = vst [vmem:[%s408_s4 + $0x8] sm:$0xff] %v208_v23 }
 0x147   :  { %v210_v14 = vadd.f32 %v282_v11, %v202_v24 }
 0x149   :  { %214 = vst [vmem:[%s408_s4 + $0x18] sm:$0xff] %v210_v14 }

</bundles_post_ra>
